<compile_context>
chip_gen: v7x
topology: tpu7x:2x2x1
jax: 0.10.0
libtpu: 0.0.40
codegen_flags: <defaults>
</compile_context>

<pallas_src>
import jax
import jax.numpy as jnp
from jax.experimental import pallas as pl
from jax.experimental.pallas import tpu as pltpu

# ---------------------------------------------------------------------------
# sizes (small, consistent with the module's shape conventions)
B = 4    # batch
I = 3    # input_channels
H = 16   # hidden_channels
HH = 32  # hidden width of the vector-field MLPs
O = 2    # output_channels
T = 8    # number of observation times


# ---------------------------------------------------------------------------
# Fused kernel: prologue linears + encoder CDE + coupled ODE(h)/CDE(z) + final linear
def fused_kernel(dts_ref, cb_ref, cc_ref, cd_ref, x0_ref,
                 wi_ref, bi_ref, wfc_ref, bfc_ref, wl_ref, bl_ref,
                 w1c_ref, b1c_ref, w2b_ref, b2c_ref,
                 enc_ref, ode_ref, zt_ref, pred_ref):
    # load weights once (all tiny, stay resident)
    wi, bi = wi_ref[...], bi_ref[...]
    wfc, bfc = wfc_ref[...], bfc_ref[...]
    wl, bl = wl_ref[...], bl_ref[...]
    w1c, b1c = w1c_ref[...], b1c_ref[...]
    w2b, b2c = w2b_ref[...], b2c_ref[...]

    # prologue: z0 = initial_network(X(t0));  h_init = fc(Encoder[0]) = fc(z0)
    z0 = jnp.dot(x0_ref[...], wi, preferred_element_type=jnp.float32) + bi
    h0 = jnp.dot(z0, wfc, preferred_element_type=jnp.float32) + bfc

    enc_ref[0] = z0
    ode_ref[0] = h0
    zt_ref[0] = z0
    pred_ref[0] = jnp.dot(z0, wl, preferred_element_type=jnp.float32) + bl

    def fields(ze, h, z, dx):
        """Encoder CDE field, func_f (ODE) and func_g (CDE) in 2 MXU ops.

        Row blocks of the stacked state pick their own column blocks of the
        concatenated layer-1 weight; the layer-2 weight is block-diagonal so the
        off-diagonal garbage of layer 1 is multiplied by exact zeros.
        """
        x = jnp.concatenate([ze, h, z], axis=0)                                  # (3B, H)
        r = jnp.maximum(
            jnp.dot(x, w1c, preferred_element_type=jnp.float32) + b1c, 0.0)      # (3B, 3*HH)
        y = jnp.tanh(
            jnp.dot(r, w2b, preferred_element_type=jnp.float32) + b2c)           # (3B, 2*I*H+H)
        enc_cols = y[0:B, 0:I * H]                   # tanh(relu(ze@w1+b1)@w2[i]+b2[i]) blocks
        f_out = y[B:2 * B, I * H:I * H + H]          # func_f(h)        -> dh/dt
        g_cols = y[2 * B:3 * B, I * H + H:]          # func_g(z) blocks
        d_ze = enc_cols[:, 0:H] * dx[:, 0:1]         # contract with dX/dt per input channel
        d_z = g_cols[:, 0:H] * dx[:, 0:1]
        for i in range(1, I):                        # static, I = 3 (cheap VPU)
            d_ze = d_ze + enc_cols[:, i * H:(i + 1) * H] * dx[:, i:i + 1]
            d_z = d_z + g_cols[:, i * H:(i + 1) * H] * dx[:, i:i + 1]
        return d_ze, f_out, d_z

    ze, h, z = z0, h0, z0
    for t in range(1, T):                            # static unroll, T = 8 (one RK step / interval)
        dt = dts_ref[t]
        cb = cb_ref[t - 1]                           # spline coeffs of interval t-1: (B, I)
        cc = cc_ref[t - 1]
        cd = cd_ref[t - 1]

        def dX(s):                                   # spline derivative at offset s in interval
            return cb + 2.0 * cc * s + 3.0 * cd * (s * s)

        # torchdiffeq 'rk4' = 3/8 rule (rk4_alt_step_func)
        k1e, k1h, k1z = fields(ze, h, z, dX(0.0))
        k2e, k2h, k2z = fields(ze + dt * k1e / 3.0, h + dt * k1h / 3.0,
                               z + dt * k1z / 3.0, dX(dt / 3.0))
        k3e, k3h, k3z = fields(ze + dt * (k2e - k1e / 3.0), h + dt * (k2h - k1h / 3.0),
                               z + dt * (k2z - k1z / 3.0), dX(2.0 * dt / 3.0))
        k4e, k4h, k4z = fields(ze + dt * (k1e - k2e + k3e), h + dt * (k1h - k2h + k3h),
                               z + dt * (k1z - k2z + k3z), dX(dt))
        ze = ze + dt * (k1e + 3.0 * (k2e + k3e) + k4e) * 0.125
        h = h + dt * (k1h + 3.0 * (k2h + k3h) + k4h) * 0.125
        z = z + dt * (k1z + 3.0 * (k2z + k3z) + k4z) * 0.125

        # VMEM-resident output blocks; single HBM writeback per output at kernel end
        enc_ref[t] = ze
        ode_ref[t] = h
        zt_ref[t] = z
        pred_ref[t] = jnp.dot(z, wl, preferred_element_type=jnp.float32) + bl


def run_fused(dts, cb, cc, cd, x0, wi, bi, wfc, bfc, wl, bl, w1c, b1c, w2b, b2c):
    full = lambda shape: pl.BlockSpec(shape, lambda i, _s=shape: (0,) * len(_s))
    traj = pl.BlockSpec((T, B, H), lambda i: (0, 0, 0))
    n2 = 2 * I * H + H
    return pl.pallas_call(
        fused_kernel,
        grid=(1,),                                                 # single program: loop is in-kernel
        in_specs=[
            pl.BlockSpec(memory_space=pltpu.MemorySpace.SMEM),     # dts scalar table
            full((T - 1, B, I)), full((T - 1, B, I)), full((T - 1, B, I)),  # spline b, c, d
            full((B, I)),                                          # X(t0) = first a-coeff
            full((I, H)), full((1, H)),                            # initial_network
            full((H, H)), full((1, H)),                            # fc
            full((H, O)), full((1, O)),                            # final linear
            full((H, 3 * HH)), full((1, 3 * HH)),                  # fused layer-1 [w1|wf1|wg1]
            full((3 * HH, n2)), full((1, n2)),                     # block-diag layer-2
        ],
        out_specs=[traj, traj, traj,
                   pl.BlockSpec((T, B, O), lambda i: (0, 0, 0))],
        out_shape=(jax.ShapeDtypeStruct((T, B, H), jnp.float32),   # Encoder trajectory
                   jax.ShapeDtypeStruct((T, B, H), jnp.float32),   # ode_result (h trajectory)
                   jax.ShapeDtypeStruct((T, B, H), jnp.float32),   # z_t
                   jax.ShapeDtypeStruct((T, B, O), jnp.float32)),  # pred_y
        compiler_params=pltpu.CompilerParams(dimension_semantics=("arbitrary",)),
    )(dts, cb, cc, cd, x0, wi, bi, wfc, bfc, wl, bl, w1c, b1c, w2b, b2c)


# ---------------------------------------------------------------------------
# deterministic parameter init (torch.nn.Linear default: U(-1/sqrt(fan_in), 1/sqrt(fan_in)))
def linear_params(key, fan_in, fan_out):
    k1, k2 = jax.random.split(key)
    bound = float(fan_in) ** -0.5
    w = jax.random.uniform(k1, (fan_in, fan_out), jnp.float32, -bound, bound)
    b = jax.random.uniform(k2, (1, fan_out), jnp.float32, -bound, bound)
    return w, b


def vf_out_params(key):
    k1, k2 = jax.random.split(key)
    bound = float(HH) ** -0.5
    w = jax.random.uniform(k1, (I, HH, H), jnp.float32, -bound, bound)
    b = jax.random.uniform(k2, (I, 1, H), jnp.float32, -bound, bound)
    return w, b


# ---------------------------------------------------------------------------
if __name__ == "__main__":
    key = jax.random.PRNGKey(0)
    keys = jax.random.split(key, 12)

    times = jnp.linspace(0.0, 1.0, T, dtype=jnp.float32)
    coeffs = 0.1 * jax.random.normal(keys[0], (B, T - 1, 4 * I), jnp.float32)

    # torch.chunk(coeffs, 4, dim=-1) -> a, b, c, d each (B, T-1, I); time-major for the kernel
    a_c, b_c, c_c, d_c = jnp.split(coeffs, 4, axis=-1)
    tmaj = lambda x: jnp.transpose(x, (1, 0, 2))                   # (T-1, B, I)
    cb, cc, cd = tmaj(b_c), tmaj(c_c), tmaj(d_c)
    dts = jnp.concatenate([jnp.zeros((1,), jnp.float32), times[1:] - times[:-1]])

    # parameters (same keys / shapes / init as before -> same model)
    wi, bi = linear_params(keys[1], I, H)       # self.initial_network
    wfc, bfc = linear_params(keys[2], H, H)     # self.fc
    wl, bl = linear_params(keys[3], H, O)       # self.linear
    w1, b1 = linear_params(keys[4], H, HH)      # func (encoder CDE field) layer 1
    w2, b2 = vf_out_params(keys[5])             # func layer 2 (per input channel)
    wf1, bf1 = linear_params(keys[6], H, HH)    # func_f layer 1
    wf2, bf2 = linear_params(keys[7], HH, H)    # func_f layer 2
    wg1, bg1 = linear_params(keys[8], H, HH)    # func_g layer 1
    wg2, bg2 = vf_out_params(keys[9])           # func_g layer 2

    # one-time weight packing (parameter setup, not the hot path):
    #   flatten the per-channel CDE output weights (I,HH,H) -> (HH, I*H), biases -> (1, I*H)
    w2fe = jnp.transpose(w2, (1, 0, 2)).reshape(HH, I * H)
    b2fe = jnp.transpose(b2, (1, 0, 2)).reshape(1, I * H)
    w2fg = jnp.transpose(wg2, (1, 0, 2)).reshape(HH, I * H)
    b2fg = jnp.transpose(bg2, (1, 0, 2)).reshape(1, I * H)
    #   layer-1: column-concat of the three field weights; layer-2: block-diagonal pack
    w1c = jnp.concatenate([w1, wf1, wg1], axis=1)                  # (H, 3*HH)
    b1c = jnp.concatenate([b1, bf1, bg1], axis=1)                  # (1, 3*HH)
    n2 = 2 * I * H + H
    w2b = jnp.zeros((3 * HH, n2), jnp.float32)
    w2b = w2b.at[0:HH, 0:I * H].set(w2fe)                          # encoder field block
    w2b = w2b.at[HH:2 * HH, I * H:I * H + H].set(wf2)              # func_f block
    w2b = w2b.at[2 * HH:, I * H + H:].set(w2fg)                    # func_g block
    b2c = jnp.concatenate([b2fe, bf2, b2fg], axis=1)               # (1, n2)

    # X(t0) = a-coeff of the first interval (initial_network applied in-kernel)
    x0 = a_c[:, 0, :]                                              # (B, I)

    encoder, ode_result, z_t, pred_y = run_fused(
        dts, cb, cc, cd, x0, wi, bi, wfc, bfc, wl, bl, w1c, b1c, w2b, b2c)

    jax.block_until_ready((pred_y, z_t, ode_result, encoder))
    assert pred_y.shape == (T, B, O) and z_t.shape == (T, B, H)
    assert encoder.shape == (T, B, H) and ode_result.shape == (T, B, H)
    print("KERNEL_OK")
</pallas_src>

<mosaic_0001>
module attributes {stable_mosaic.version = 11 : i64} {
  func.func @fused_kernel(%arg0: i32, %arg1: memref<8xf32, #tpu.memory_space<smem>>, %arg2: memref<7x4x3xf32, #tpu.memory_space<vmem>>, %arg3: memref<7x4x3xf32, #tpu.memory_space<vmem>>, %arg4: memref<7x4x3xf32, #tpu.memory_space<vmem>>, %arg5: memref<4x3xf32, #tpu.memory_space<vmem>>, %arg6: memref<3x16xf32, #tpu.memory_space<vmem>>, %arg7: memref<1x16xf32, #tpu.memory_space<vmem>>, %arg8: memref<16x16xf32, #tpu.memory_space<vmem>>, %arg9: memref<1x16xf32, #tpu.memory_space<vmem>>, %arg10: memref<16x2xf32, #tpu.memory_space<vmem>>, %arg11: memref<1x2xf32, #tpu.memory_space<vmem>>, %arg12: memref<16x96xf32, #tpu.memory_space<vmem>>, %arg13: memref<1x96xf32, #tpu.memory_space<vmem>>, %arg14: memref<96x112xf32, #tpu.memory_space<vmem>>, %arg15: memref<1x112xf32, #tpu.memory_space<vmem>>, %arg16: memref<8x4x16xf32, #tpu.memory_space<vmem>>, %arg17: memref<8x4x16xf32, #tpu.memory_space<vmem>>, %arg18: memref<8x4x16xf32, #tpu.memory_space<vmem>>, %arg19: memref<8x4x2xf32, #tpu.memory_space<vmem>>) attributes {dimension_semantics = [#tpu.dimension_semantics<arbitrary>], iteration_bounds = array<i64: 1>, scalar_prefetch = 0 : i64, scratch_operands = 0 : i64, tpu.core_type = #tpu.core_type<tc>, window_params = [{transform_indices = @transform_0, window_bounds = array<i64: 8>}, {pipeline_mode = #tpu.pipeline_mode<synchronous>, transform_indices = @transform_1, window_bounds = array<i64: 7, 4, 3>}, {pipeline_mode = #tpu.pipeline_mode<synchronous>, transform_indices = @transform_2, window_bounds = array<i64: 7, 4, 3>}, {pipeline_mode = #tpu.pipeline_mode<synchronous>, transform_indices = @transform_3, window_bounds = array<i64: 7, 4, 3>}, {pipeline_mode = #tpu.pipeline_mode<synchronous>, transform_indices = @transform_4, window_bounds = array<i64: 4, 3>}, {pipeline_mode = #tpu.pipeline_mode<synchronous>, transform_indices = @transform_5, window_bounds = array<i64: 3, 16>}, {pipeline_mode = #tpu.pipeline_mode<synchronous>, transform_indices = @transform_6, window_bounds = array<i64: 1, 16>}, {pipeline_mode = #tpu.pipeline_mode<synchronous>, transform_indices = @transform_7, window_bounds = array<i64: 16, 16>}, {pipeline_mode = #tpu.pipeline_mode<synchronous>, transform_indices = @transform_8, window_bounds = array<i64: 1, 16>}, {pipeline_mode = #tpu.pipeline_mode<synchronous>, transform_indices = @transform_9, window_bounds = array<i64: 16, 2>}, {pipeline_mode = #tpu.pipeline_mode<synchronous>, transform_indices = @transform_10, window_bounds = array<i64: 1, 2>}, {pipeline_mode = #tpu.pipeline_mode<synchronous>, transform_indices = @transform_11, window_bounds = array<i64: 16, 96>}, {pipeline_mode = #tpu.pipeline_mode<synchronous>, transform_indices = @transform_12, window_bounds = array<i64: 1, 96>}, {pipeline_mode = #tpu.pipeline_mode<synchronous>, transform_indices = @transform_13, window_bounds = array<i64: 96, 112>}, {pipeline_mode = #tpu.pipeline_mode<synchronous>, transform_indices = @transform_14, window_bounds = array<i64: 1, 112>}, {pipeline_mode = #tpu.pipeline_mode<synchronous>, transform_indices = @transform_15, window_bounds = array<i64: 8, 4, 16>}, {pipeline_mode = #tpu.pipeline_mode<synchronous>, transform_indices = @transform_16, window_bounds = array<i64: 8, 4, 16>}, {pipeline_mode = #tpu.pipeline_mode<synchronous>, transform_indices = @transform_17, window_bounds = array<i64: 8, 4, 16>}, {pipeline_mode = #tpu.pipeline_mode<synchronous>, transform_indices = @transform_18, window_bounds = array<i64: 8, 4, 2>}]} {
    %c0 = arith.constant 0 : index
    %c0_0 = arith.constant 0 : index
    %0 = vector.load %arg6[%c0, %c0_0] : memref<3x16xf32, #tpu.memory_space<vmem>>, vector<3x16xf32>
    %c0_1 = arith.constant 0 : index
    %c0_2 = arith.constant 0 : index
    %1 = vector.load %arg7[%c0_1, %c0_2] : memref<1x16xf32, #tpu.memory_space<vmem>>, vector<1x16xf32>
    %c0_3 = arith.constant 0 : index
    %c0_4 = arith.constant 0 : index
    %2 = vector.load %arg8[%c0_3, %c0_4] : memref<16x16xf32, #tpu.memory_space<vmem>>, vector<16x16xf32>
    %c0_5 = arith.constant 0 : index
    %c0_6 = arith.constant 0 : index
    %3 = vector.load %arg9[%c0_5, %c0_6] : memref<1x16xf32, #tpu.memory_space<vmem>>, vector<1x16xf32>
    %c0_7 = arith.constant 0 : index
    %c0_8 = arith.constant 0 : index
    %4 = vector.load %arg10[%c0_7, %c0_8] : memref<16x2xf32, #tpu.memory_space<vmem>>, vector<16x2xf32>
    %c0_9 = arith.constant 0 : index
    %c0_10 = arith.constant 0 : index
    %5 = vector.load %arg11[%c0_9, %c0_10] : memref<1x2xf32, #tpu.memory_space<vmem>>, vector<1x2xf32>
    %c0_11 = arith.constant 0 : index
    %c0_12 = arith.constant 0 : index
    %6 = vector.load %arg12[%c0_11, %c0_12] : memref<16x96xf32, #tpu.memory_space<vmem>>, vector<16x96xf32>
    %c0_13 = arith.constant 0 : index
    %c0_14 = arith.constant 0 : index
    %7 = vector.load %arg13[%c0_13, %c0_14] : memref<1x96xf32, #tpu.memory_space<vmem>>, vector<1x96xf32>
    %c0_15 = arith.constant 0 : index
    %c0_16 = arith.constant 0 : index
    %8 = vector.load %arg14[%c0_15, %c0_16] : memref<96x112xf32, #tpu.memory_space<vmem>>, vector<96x112xf32>
    %c0_17 = arith.constant 0 : index
    %c0_18 = arith.constant 0 : index
    %9 = vector.load %arg15[%c0_17, %c0_18] : memref<1x112xf32, #tpu.memory_space<vmem>>, vector<1x112xf32>
    %c0_19 = arith.constant 0 : index
    %c0_20 = arith.constant 0 : index
    %10 = vector.load %arg5[%c0_19, %c0_20] : memref<4x3xf32, #tpu.memory_space<vmem>>, vector<4x3xf32>
    %cst = arith.constant dense<0.000000e+00> : vector<4x16xf32>
    %11 = tpu.matmul %10, %0, %cst {dimension_numbers = #tpu.dot_dimension_numbers<[1], [0], [0], [1], [0, 0, 1, 1], [], []>} : vector<4x3xf32>, vector<3x16xf32>, vector<4x16xf32> -> vector<4x16xf32>
    %12 = vector.broadcast %1 : vector<1x16xf32> to vector<4x16xf32>
    %13 = arith.addf %11, %12 : vector<4x16xf32>
    %cst_21 = arith.constant dense<0.000000e+00> : vector<4x16xf32>
    %14 = tpu.matmul %13, %2, %cst_21 {dimension_numbers = #tpu.dot_dimension_numbers<[1], [0], [0], [1], [0, 0, 1, 1], [], []>} : vector<4x16xf32>, vector<16x16xf32>, vector<4x16xf32> -> vector<4x16xf32>
    %15 = vector.broadcast %3 : vector<1x16xf32> to vector<4x16xf32>
    %16 = arith.addf %14, %15 : vector<4x16xf32>
    %c0_22 = arith.constant 0 : index
    %c0_23 = arith.constant 0 : index
    %c0_24 = arith.constant 0 : index
    %17 = vector.load %arg16[%c0_22, %c0_23, %c0_24] : memref<8x4x16xf32, #tpu.memory_space<vmem>>, vector<1x4x16xf32>
    %18 = vector.shape_cast %17 : vector<1x4x16xf32> to vector<4x16xf32>
    %19 = vector.shape_cast %13 : vector<4x16xf32> to vector<1x4x16xf32>
    tpu.vector_store %arg16[%c0_22, %c0_23, %c0_24], %19 {strides = array<i32>} : memref<8x4x16xf32, #tpu.memory_space<vmem>>, vector<1x4x16xf32>,
    %c0_25 = arith.constant 0 : index
    %c0_26 = arith.constant 0 : index
    %c0_27 = arith.constant 0 : index
    %20 = vector.load %arg17[%c0_25, %c0_26, %c0_27] : memref<8x4x16xf32, #tpu.memory_space<vmem>>, vector<1x4x16xf32>
    %21 = vector.shape_cast %20 : vector<1x4x16xf32> to vector<4x16xf32>
    %22 = vector.shape_cast %16 : vector<4x16xf32> to vector<1x4x16xf32>
    tpu.vector_store %arg17[%c0_25, %c0_26, %c0_27], %22 {strides = array<i32>} : memref<8x4x16xf32, #tpu.memory_space<vmem>>, vector<1x4x16xf32>,
    %c0_28 = arith.constant 0 : index
    %c0_29 = arith.constant 0 : index
    %c0_30 = arith.constant 0 : index
    %23 = vector.load %arg18[%c0_28, %c0_29, %c0_30] : memref<8x4x16xf32, #tpu.memory_space<vmem>>, vector<1x4x16xf32>
    %24 = vector.shape_cast %23 : vector<1x4x16xf32> to vector<4x16xf32>
    %25 = vector.shape_cast %13 : vector<4x16xf32> to vector<1x4x16xf32>
    tpu.vector_store %arg18[%c0_28, %c0_29, %c0_30], %25 {strides = array<i32>} : memref<8x4x16xf32, #tpu.memory_space<vmem>>, vector<1x4x16xf32>,
    %cst_31 = arith.constant dense<0.000000e+00> : vector<4x2xf32>
    %26 = tpu.matmul %13, %4, %cst_31 {dimension_numbers = #tpu.dot_dimension_numbers<[1], [0], [0], [1], [0, 0, 1, 1], [], []>} : vector<4x16xf32>, vector<16x2xf32>, vector<4x2xf32> -> vector<4x2xf32>
    %27 = vector.broadcast %5 : vector<1x2xf32> to vector<4x2xf32>
    %28 = arith.addf %26, %27 : vector<4x2xf32>
    %c0_32 = arith.constant 0 : index
    %c0_33 = arith.constant 0 : index
    %c0_34 = arith.constant 0 : index
    %29 = vector.load %arg19[%c0_32, %c0_33, %c0_34] : memref<8x4x2xf32, #tpu.memory_space<vmem>>, vector<1x4x2xf32>
    %30 = vector.shape_cast %29 : vector<1x4x2xf32> to vector<4x2xf32>
    %31 = vector.shape_cast %28 : vector<4x2xf32> to vector<1x4x2xf32>
    tpu.vector_store %arg19[%c0_32, %c0_33, %c0_34], %31 {strides = array<i32>} : memref<8x4x2xf32, #tpu.memory_space<vmem>>, vector<1x4x2xf32>,
    %c1 = arith.constant 1 : index
    %32 = memref.load %arg1[%c1] : memref<8xf32, #tpu.memory_space<smem>>
    %c0_35 = arith.constant 0 : index
    %c0_36 = arith.constant 0 : index
    %c0_37 = arith.constant 0 : index
    %33 = vector.load %arg2[%c0_35, %c0_36, %c0_37] : memref<7x4x3xf32, #tpu.memory_space<vmem>>, vector<1x4x3xf32>
    %34 = vector.shape_cast %33 : vector<1x4x3xf32> to vector<4x3xf32>
    %c0_38 = arith.constant 0 : index
    %c0_39 = arith.constant 0 : index
    %c0_40 = arith.constant 0 : index
    %35 = vector.load %arg3[%c0_38, %c0_39, %c0_40] : memref<7x4x3xf32, #tpu.memory_space<vmem>>, vector<1x4x3xf32>
    %36 = vector.shape_cast %35 : vector<1x4x3xf32> to vector<4x3xf32>
    %c0_41 = arith.constant 0 : index
    %c0_42 = arith.constant 0 : index
    %c0_43 = arith.constant 0 : index
    %37 = vector.load %arg4[%c0_41, %c0_42, %c0_43] : memref<7x4x3xf32, #tpu.memory_space<vmem>>, vector<1x4x3xf32>
    %38 = vector.shape_cast %37 : vector<1x4x3xf32> to vector<4x3xf32>
    %cst_44 = arith.constant 2.000000e+00 : f32
    %39 = vector.broadcast %cst_44 : f32 to vector<4x3xf32>
    %40 = arith.mulf %39, %36 : vector<4x3xf32>
    %cst_45 = arith.constant 0.000000e+00 : f32
    %41 = vector.broadcast %cst_45 : f32 to vector<4x3xf32>
    %42 = arith.mulf %40, %41 : vector<4x3xf32>
    %43 = arith.addf %34, %42 : vector<4x3xf32>
    %cst_46 = arith.constant 3.000000e+00 : f32
    %44 = vector.broadcast %cst_46 : f32 to vector<4x3xf32>
    %45 = arith.mulf %44, %38 : vector<4x3xf32>
    %cst_47 = arith.constant 0.000000e+00 : f32
    %46 = vector.broadcast %cst_47 : f32 to vector<4x3xf32>
    %47 = arith.mulf %45, %46 : vector<4x3xf32>
    %48 = arith.addf %43, %47 : vector<4x3xf32>
    %49 = tpu.concatenate %13, %16, %13 in 0 : vector<4x16xf32>, vector<4x16xf32>, vector<4x16xf32> -> vector<12x16xf32>
    %cst_48 = arith.constant dense<0.000000e+00> : vector<12x96xf32>
    %50 = tpu.matmul %49, %6, %cst_48 {dimension_numbers = #tpu.dot_dimension_numbers<[1], [0], [0], [1], [0, 0, 1, 1], [], []>} : vector<12x16xf32>, vector<16x96xf32>, vector<12x96xf32> -> vector<12x96xf32>
    %51 = vector.broadcast %7 : vector<1x96xf32> to vector<12x96xf32>
    %52 = arith.addf %50, %51 : vector<12x96xf32>
    %cst_49 = arith.constant 0.000000e+00 : f32
    %53 = vector.broadcast %cst_49 : f32 to vector<12x96xf32>
    %54 = arith.maximumf %52, %53 : vector<12x96xf32>
    %cst_50 = arith.constant dense<0.000000e+00> : vector<12x112xf32>
    %55 = tpu.matmul %54, %8, %cst_50 {dimension_numbers = #tpu.dot_dimension_numbers<[1], [0], [0], [1], [0, 0, 1, 1], [], []>} : vector<12x96xf32>, vector<96x112xf32>, vector<12x112xf32> -> vector<12x112xf32>
    %56 = vector.broadcast %9 : vector<1x112xf32> to vector<12x112xf32>
    %57 = arith.addf %55, %56 : vector<12x112xf32>
    %58 = math.tanh %57 : vector<12x112xf32>
    %59 = vector.extract_strided_slice %58 {offsets = [0, 0], sizes = [4, 48], strides = [1, 1]} : vector<12x112xf32> to vector<4x48xf32>
    %60 = vector.extract_strided_slice %58 {offsets = [4, 48], sizes = [4, 16], strides = [1, 1]} : vector<12x112xf32> to vector<4x16xf32>
    %61 = vector.extract_strided_slice %58 {offsets = [8, 64], sizes = [4, 48], strides = [1, 1]} : vector<12x112xf32> to vector<4x48xf32>
    %62 = vector.extract_strided_slice %59 {offsets = [0, 0], sizes = [4, 16], strides = [1, 1]} : vector<4x48xf32> to vector<4x16xf32>
    %63 = vector.extract_strided_slice %48 {offsets = [0, 0], sizes = [4, 1], strides = [1, 1]} : vector<4x3xf32> to vector<4x1xf32>
    %64 = vector.broadcast %63 : vector<4x1xf32> to vector<4x16xf32>
    %65 = arith.mulf %62, %64 : vector<4x16xf32>
    %66 = vector.extract_strided_slice %61 {offsets = [0, 0], sizes = [4, 16], strides = [1, 1]} : vector<4x48xf32> to vector<4x16xf32>
    %67 = vector.extract_strided_slice %48 {offsets = [0, 0], sizes = [4, 1], strides = [1, 1]} : vector<4x3xf32> to vector<4x1xf32>
    %68 = vector.broadcast %67 : vector<4x1xf32> to vector<4x16xf32>
    %69 = arith.mulf %66, %68 : vector<4x16xf32>
    %70 = vector.extract_strided_slice %59 {offsets = [0, 16], sizes = [4, 16], strides = [1, 1]} : vector<4x48xf32> to vector<4x16xf32>
    %71 = vector.extract_strided_slice %48 {offsets = [0, 1], sizes = [4, 1], strides = [1, 1]} : vector<4x3xf32> to vector<4x1xf32>
    %72 = vector.broadcast %71 : vector<4x1xf32> to vector<4x16xf32>
    %73 = arith.mulf %70, %72 : vector<4x16xf32>
    %74 = arith.addf %65, %73 : vector<4x16xf32>
    %75 = vector.extract_strided_slice %61 {offsets = [0, 16], sizes = [4, 16], strides = [1, 1]} : vector<4x48xf32> to vector<4x16xf32>
    %76 = vector.extract_strided_slice %48 {offsets = [0, 1], sizes = [4, 1], strides = [1, 1]} : vector<4x3xf32> to vector<4x1xf32>
    %77 = vector.broadcast %76 : vector<4x1xf32> to vector<4x16xf32>
    %78 = arith.mulf %75, %77 : vector<4x16xf32>
    %79 = arith.addf %69, %78 : vector<4x16xf32>
    %80 = vector.extract_strided_slice %59 {offsets = [0, 32], sizes = [4, 16], strides = [1, 1]} : vector<4x48xf32> to vector<4x16xf32>
    %81 = vector.extract_strided_slice %48 {offsets = [0, 2], sizes = [4, 1], strides = [1, 1]} : vector<4x3xf32> to vector<4x1xf32>
    %82 = vector.broadcast %81 : vector<4x1xf32> to vector<4x16xf32>
    %83 = arith.mulf %80, %82 : vector<4x16xf32>
    %84 = arith.addf %74, %83 : vector<4x16xf32>
    %85 = vector.extract_strided_slice %61 {offsets = [0, 32], sizes = [4, 16], strides = [1, 1]} : vector<4x48xf32> to vector<4x16xf32>
    %86 = vector.extract_strided_slice %48 {offsets = [0, 2], sizes = [4, 1], strides = [1, 1]} : vector<4x3xf32> to vector<4x1xf32>
    %87 = vector.broadcast %86 : vector<4x1xf32> to vector<4x16xf32>
    %88 = arith.mulf %85, %87 : vector<4x16xf32>
    %89 = arith.addf %79, %88 : vector<4x16xf32>
    %90 = vector.broadcast %32 : f32 to vector<4x16xf32>
    %91 = arith.mulf %90, %84 : vector<4x16xf32>
    %cst_51 = arith.constant 3.000000e+00 : f32
    %92 = vector.broadcast %cst_51 : f32 to vector<4x16xf32>
    %93 = arith.divf %91, %92 : vector<4x16xf32>
    %94 = arith.addf %13, %93 : vector<4x16xf32>
    %95 = vector.broadcast %32 : f32 to vector<4x16xf32>
    %96 = arith.mulf %95, %60 : vector<4x16xf32>
    %cst_52 = arith.constant 3.000000e+00 : f32
    %97 = vector.broadcast %cst_52 : f32 to vector<4x16xf32>
    %98 = arith.divf %96, %97 : vector<4x16xf32>
    %99 = arith.addf %16, %98 : vector<4x16xf32>
    %100 = vector.broadcast %32 : f32 to vector<4x16xf32>
    %101 = arith.mulf %100, %89 : vector<4x16xf32>
    %cst_53 = arith.constant 3.000000e+00 : f32
    %102 = vector.broadcast %cst_53 : f32 to vector<4x16xf32>
    %103 = arith.divf %101, %102 : vector<4x16xf32>
    %104 = arith.addf %13, %103 : vector<4x16xf32>
    %cst_54 = arith.constant 3.000000e+00 : f32
    %105 = arith.divf %32, %cst_54 : f32
    %cst_55 = arith.constant 2.000000e+00 : f32
    %106 = vector.broadcast %cst_55 : f32 to vector<4x3xf32>
    %107 = arith.mulf %106, %36 : vector<4x3xf32>
    %108 = vector.broadcast %105 : f32 to vector<4x3xf32>
    %109 = arith.mulf %107, %108 : vector<4x3xf32>
    %110 = arith.addf %34, %109 : vector<4x3xf32>
    %cst_56 = arith.constant 3.000000e+00 : f32
    %111 = vector.broadcast %cst_56 : f32 to vector<4x3xf32>
    %112 = arith.mulf %111, %38 : vector<4x3xf32>
    %113 = arith.mulf %105, %105 : f32
    %114 = vector.broadcast %113 : f32 to vector<4x3xf32>
    %115 = arith.mulf %112, %114 : vector<4x3xf32>
    %116 = arith.addf %110, %115 : vector<4x3xf32>
    %117 = tpu.concatenate %94, %99, %104 in 0 : vector<4x16xf32>, vector<4x16xf32>, vector<4x16xf32> -> vector<12x16xf32>
    %cst_57 = arith.constant dense<0.000000e+00> : vector<12x96xf32>
    %118 = tpu.matmul %117, %6, %cst_57 {dimension_numbers = #tpu.dot_dimension_numbers<[1], [0], [0], [1], [0, 0, 1, 1], [], []>} : vector<12x16xf32>, vector<16x96xf32>, vector<12x96xf32> -> vector<12x96xf32>
    %119 = vector.broadcast %7 : vector<1x96xf32> to vector<12x96xf32>
    %120 = arith.addf %118, %119 : vector<12x96xf32>
    %cst_58 = arith.constant 0.000000e+00 : f32
    %121 = vector.broadcast %cst_58 : f32 to vector<12x96xf32>
    %122 = arith.maximumf %120, %121 : vector<12x96xf32>
    %cst_59 = arith.constant dense<0.000000e+00> : vector<12x112xf32>
    %123 = tpu.matmul %122, %8, %cst_59 {dimension_numbers = #tpu.dot_dimension_numbers<[1], [0], [0], [1], [0, 0, 1, 1], [], []>} : vector<12x96xf32>, vector<96x112xf32>, vector<12x112xf32> -> vector<12x112xf32>
    %124 = vector.broadcast %9 : vector<1x112xf32> to vector<12x112xf32>
    %125 = arith.addf %123, %124 : vector<12x112xf32>
    %126 = math.tanh %125 : vector<12x112xf32>
    %127 = vector.extract_strided_slice %126 {offsets = [0, 0], sizes = [4, 48], strides = [1, 1]} : vector<12x112xf32> to vector<4x48xf32>
    %128 = vector.extract_strided_slice %126 {offsets = [4, 48], sizes = [4, 16], strides = [1, 1]} : vector<12x112xf32> to vector<4x16xf32>
    %129 = vector.extract_strided_slice %126 {offsets = [8, 64], sizes = [4, 48], strides = [1, 1]} : vector<12x112xf32> to vector<4x48xf32>
    %130 = vector.extract_strided_slice %127 {offsets = [0, 0], sizes = [4, 16], strides = [1, 1]} : vector<4x48xf32> to vector<4x16xf32>
    %131 = vector.extract_strided_slice %116 {offsets = [0, 0], sizes = [4, 1], strides = [1, 1]} : vector<4x3xf32> to vector<4x1xf32>
    %132 = vector.broadcast %131 : vector<4x1xf32> to vector<4x16xf32>
    %133 = arith.mulf %130, %132 : vector<4x16xf32>
    %134 = vector.extract_strided_slice %129 {offsets = [0, 0], sizes = [4, 16], strides = [1, 1]} : vector<4x48xf32> to vector<4x16xf32>
    %135 = vector.extract_strided_slice %116 {offsets = [0, 0], sizes = [4, 1], strides = [1, 1]} : vector<4x3xf32> to vector<4x1xf32>
    %136 = vector.broadcast %135 : vector<4x1xf32> to vector<4x16xf32>
    %137 = arith.mulf %134, %136 : vector<4x16xf32>
    %138 = vector.extract_strided_slice %127 {offsets = [0, 16], sizes = [4, 16], strides = [1, 1]} : vector<4x48xf32> to vector<4x16xf32>
    %139 = vector.extract_strided_slice %116 {offsets = [0, 1], sizes = [4, 1], strides = [1, 1]} : vector<4x3xf32> to vector<4x1xf32>
    %140 = vector.broadcast %139 : vector<4x1xf32> to vector<4x16xf32>
    %141 = arith.mulf %138, %140 : vector<4x16xf32>
    %142 = arith.addf %133, %141 : vector<4x16xf32>
    %143 = vector.extract_strided_slice %129 {offsets = [0, 16], sizes = [4, 16], strides = [1, 1]} : vector<4x48xf32> to vector<4x16xf32>
    %144 = vector.extract_strided_slice %116 {offsets = [0, 1], sizes = [4, 1], strides = [1, 1]} : vector<4x3xf32> to vector<4x1xf32>
    %145 = vector.broadcast %144 : vector<4x1xf32> to vector<4x16xf32>
    %146 = arith.mulf %143, %145 : vector<4x16xf32>
    %147 = arith.addf %137, %146 : vector<4x16xf32>
    %148 = vector.extract_strided_slice %127 {offsets = [0, 32], sizes = [4, 16], strides = [1, 1]} : vector<4x48xf32> to vector<4x16xf32>
    %149 = vector.extract_strided_slice %116 {offsets = [0, 2], sizes = [4, 1], strides = [1, 1]} : vector<4x3xf32> to vector<4x1xf32>
    %150 = vector.broadcast %149 : vector<4x1xf32> to vector<4x16xf32>
    %151 = arith.mulf %148, %150 : vector<4x16xf32>
    %152 = arith.addf %142, %151 : vector<4x16xf32>
    %153 = vector.extract_strided_slice %129 {offsets = [0, 32], sizes = [4, 16], strides = [1, 1]} : vector<4x48xf32> to vector<4x16xf32>
    %154 = vector.extract_strided_slice %116 {offsets = [0, 2], sizes = [4, 1], strides = [1, 1]} : vector<4x3xf32> to vector<4x1xf32>
    %155 = vector.broadcast %154 : vector<4x1xf32> to vector<4x16xf32>
    %156 = arith.mulf %153, %155 : vector<4x16xf32>
    %157 = arith.addf %147, %156 : vector<4x16xf32>
    %cst_60 = arith.constant 3.000000e+00 : f32
    %158 = vector.broadcast %cst_60 : f32 to vector<4x16xf32>
    %159 = arith.divf %84, %158 : vector<4x16xf32>
    %160 = arith.subf %152, %159 : vector<4x16xf32>
    %161 = vector.broadcast %32 : f32 to vector<4x16xf32>
    %162 = arith.mulf %161, %160 : vector<4x16xf32>
    %163 = arith.addf %13, %162 : vector<4x16xf32>
    %cst_61 = arith.constant 3.000000e+00 : f32
    %164 = vector.broadcast %cst_61 : f32 to vector<4x16xf32>
    %165 = arith.divf %60, %164 : vector<4x16xf32>
    %166 = arith.subf %128, %165 : vector<4x16xf32>
    %167 = vector.broadcast %32 : f32 to vector<4x16xf32>
    %168 = arith.mulf %167, %166 : vector<4x16xf32>
    %169 = arith.addf %16, %168 : vector<4x16xf32>
    %cst_62 = arith.constant 3.000000e+00 : f32
    %170 = vector.broadcast %cst_62 : f32 to vector<4x16xf32>
    %171 = arith.divf %89, %170 : vector<4x16xf32>
    %172 = arith.subf %157, %171 : vector<4x16xf32>
    %173 = vector.broadcast %32 : f32 to vector<4x16xf32>
    %174 = arith.mulf %173, %172 : vector<4x16xf32>
    %175 = arith.addf %13, %174 : vector<4x16xf32>
    %cst_63 = arith.constant 2.000000e+00 : f32
    %176 = arith.mulf %cst_63, %32 : f32
    %cst_64 = arith.constant 3.000000e+00 : f32
    %177 = arith.divf %176, %cst_64 : f32
    %cst_65 = arith.constant 2.000000e+00 : f32
    %178 = vector.broadcast %cst_65 : f32 to vector<4x3xf32>
    %179 = arith.mulf %178, %36 : vector<4x3xf32>
    %180 = vector.broadcast %177 : f32 to vector<4x3xf32>
    %181 = arith.mulf %179, %180 : vector<4x3xf32>
    %182 = arith.addf %34, %181 : vector<4x3xf32>
    %cst_66 = arith.constant 3.000000e+00 : f32
    %183 = vector.broadcast %cst_66 : f32 to vector<4x3xf32>
    %184 = arith.mulf %183, %38 : vector<4x3xf32>
    %185 = arith.mulf %177, %177 : f32
    %186 = vector.broadcast %185 : f32 to vector<4x3xf32>
    %187 = arith.mulf %184, %186 : vector<4x3xf32>
    %188 = arith.addf %182, %187 : vector<4x3xf32>
    %189 = tpu.concatenate %163, %169, %175 in 0 : vector<4x16xf32>, vector<4x16xf32>, vector<4x16xf32> -> vector<12x16xf32>
    %cst_67 = arith.constant dense<0.000000e+00> : vector<12x96xf32>
    %190 = tpu.matmul %189, %6, %cst_67 {dimension_numbers = #tpu.dot_dimension_numbers<[1], [0], [0], [1], [0, 0, 1, 1], [], []>} : vector<12x16xf32>, vector<16x96xf32>, vector<12x96xf32> -> vector<12x96xf32>
    %191 = vector.broadcast %7 : vector<1x96xf32> to vector<12x96xf32>
    %192 = arith.addf %190, %191 : vector<12x96xf32>
    %cst_68 = arith.constant 0.000000e+00 : f32
    %193 = vector.broadcast %cst_68 : f32 to vector<12x96xf32>
    %194 = arith.maximumf %192, %193 : vector<12x96xf32>
    %cst_69 = arith.constant dense<0.000000e+00> : vector<12x112xf32>
    %195 = tpu.matmul %194, %8, %cst_69 {dimension_numbers = #tpu.dot_dimension_numbers<[1], [0], [0], [1], [0, 0, 1, 1], [], []>} : vector<12x96xf32>, vector<96x112xf32>, vector<12x112xf32> -> vector<12x112xf32>
    %196 = vector.broadcast %9 : vector<1x112xf32> to vector<12x112xf32>
    %197 = arith.addf %195, %196 : vector<12x112xf32>
    %198 = math.tanh %197 : vector<12x112xf32>
    %199 = vector.extract_strided_slice %198 {offsets = [0, 0], sizes = [4, 48], strides = [1, 1]} : vector<12x112xf32> to vector<4x48xf32>
    %200 = vector.extract_strided_slice %198 {offsets = [4, 48], sizes = [4, 16], strides = [1, 1]} : vector<12x112xf32> to vector<4x16xf32>
    %201 = vector.extract_strided_slice %198 {offsets = [8, 64], sizes = [4, 48], strides = [1, 1]} : vector<12x112xf32> to vector<4x48xf32>
    %202 = vector.extract_strided_slice %199 {offsets = [0, 0], sizes = [4, 16], strides = [1, 1]} : vector<4x48xf32> to vector<4x16xf32>
    %203 = vector.extract_strided_slice %188 {offsets = [0, 0], sizes = [4, 1], strides = [1, 1]} : vector<4x3xf32> to vector<4x1xf32>
    %204 = vector.broadcast %203 : vector<4x1xf32> to vector<4x16xf32>
    %205 = arith.mulf %202, %204 : vector<4x16xf32>
    %206 = vector.extract_strided_slice %201 {offsets = [0, 0], sizes = [4, 16], strides = [1, 1]} : vector<4x48xf32> to vector<4x16xf32>
    %207 = vector.extract_strided_slice %188 {offsets = [0, 0], sizes = [4, 1], strides = [1, 1]} : vector<4x3xf32> to vector<4x1xf32>
    %208 = vector.broadcast %207 : vector<4x1xf32> to vector<4x16xf32>
    %209 = arith.mulf %206, %208 : vector<4x16xf32>
    %210 = vector.extract_strided_slice %199 {offsets = [0, 16], sizes = [4, 16], strides = [1, 1]} : vector<4x48xf32> to vector<4x16xf32>
    %211 = vector.extract_strided_slice %188 {offsets = [0, 1], sizes = [4, 1], strides = [1, 1]} : vector<4x3xf32> to vector<4x1xf32>
    %212 = vector.broadcast %211 : vector<4x1xf32> to vector<4x16xf32>
    %213 = arith.mulf %210, %212 : vector<4x16xf32>
    %214 = arith.addf %205, %213 : vector<4x16xf32>
    %215 = vector.extract_strided_slice %201 {offsets = [0, 16], sizes = [4, 16], strides = [1, 1]} : vector<4x48xf32> to vector<4x16xf32>
    %216 = vector.extract_strided_slice %188 {offsets = [0, 1], sizes = [4, 1], strides = [1, 1]} : vector<4x3xf32> to vector<4x1xf32>
    %217 = vector.broadcast %216 : vector<4x1xf32> to vector<4x16xf32>
    %218 = arith.mulf %215, %217 : vector<4x16xf32>
    %219 = arith.addf %209, %218 : vector<4x16xf32>
    %220 = vector.extract_strided_slice %199 {offsets = [0, 32], sizes = [4, 16], strides = [1, 1]} : vector<4x48xf32> to vector<4x16xf32>
    %221 = vector.extract_strided_slice %188 {offsets = [0, 2], sizes = [4, 1], strides = [1, 1]} : vector<4x3xf32> to vector<4x1xf32>
    %222 = vector.broadcast %221 : vector<4x1xf32> to vector<4x16xf32>
    %223 = arith.mulf %220, %222 : vector<4x16xf32>
    %224 = arith.addf %214, %223 : vector<4x16xf32>
    %225 = vector.extract_strided_slice %201 {offsets = [0, 32], sizes = [4, 16], strides = [1, 1]} : vector<4x48xf32> to vector<4x16xf32>
    %226 = vector.extract_strided_slice %188 {offsets = [0, 2], sizes = [4, 1], strides = [1, 1]} : vector<4x3xf32> to vector<4x1xf32>
    %227 = vector.broadcast %226 : vector<4x1xf32> to vector<4x16xf32>
    %228 = arith.mulf %225, %227 : vector<4x16xf32>
    %229 = arith.addf %219, %228 : vector<4x16xf32>
    %230 = arith.subf %84, %152 : vector<4x16xf32>
    %231 = arith.addf %230, %224 : vector<4x16xf32>
    %232 = vector.broadcast %32 : f32 to vector<4x16xf32>
    %233 = arith.mulf %232, %231 : vector<4x16xf32>
    %234 = arith.addf %13, %233 : vector<4x16xf32>
    %235 = arith.subf %60, %128 : vector<4x16xf32>
    %236 = arith.addf %235, %200 : vector<4x16xf32>
    %237 = vector.broadcast %32 : f32 to vector<4x16xf32>
    %238 = arith.mulf %237, %236 : vector<4x16xf32>
    %239 = arith.addf %16, %238 : vector<4x16xf32>
    %240 = arith.subf %89, %157 : vector<4x16xf32>
    %241 = arith.addf %240, %229 : vector<4x16xf32>
    %242 = vector.broadcast %32 : f32 to vector<4x16xf32>
    %243 = arith.mulf %242, %241 : vector<4x16xf32>
    %244 = arith.addf %13, %243 : vector<4x16xf32>
    %cst_70 = arith.constant 2.000000e+00 : f32
    %245 = vector.broadcast %cst_70 : f32 to vector<4x3xf32>
    %246 = arith.mulf %245, %36 : vector<4x3xf32>
    %247 = vector.broadcast %32 : f32 to vector<4x3xf32>
    %248 = arith.mulf %246, %247 : vector<4x3xf32>
    %249 = arith.addf %34, %248 : vector<4x3xf32>
    %cst_71 = arith.constant 3.000000e+00 : f32
    %250 = vector.broadcast %cst_71 : f32 to vector<4x3xf32>
    %251 = arith.mulf %250, %38 : vector<4x3xf32>
    %252 = arith.mulf %32, %32 : f32
    %253 = vector.broadcast %252 : f32 to vector<4x3xf32>
    %254 = arith.mulf %251, %253 : vector<4x3xf32>
    %255 = arith.addf %249, %254 : vector<4x3xf32>
    %256 = tpu.concatenate %234, %239, %244 in 0 : vector<4x16xf32>, vector<4x16xf32>, vector<4x16xf32> -> vector<12x16xf32>
    %cst_72 = arith.constant dense<0.000000e+00> : vector<12x96xf32>
    %257 = tpu.matmul %256, %6, %cst_72 {dimension_numbers = #tpu.dot_dimension_numbers<[1], [0], [0], [1], [0, 0, 1, 1], [], []>} : vector<12x16xf32>, vector<16x96xf32>, vector<12x96xf32> -> vector<12x96xf32>
    %258 = vector.broadcast %7 : vector<1x96xf32> to vector<12x96xf32>
    %259 = arith.addf %257, %258 : vector<12x96xf32>
    %cst_73 = arith.constant 0.000000e+00 : f32
    %260 = vector.broadcast %cst_73 : f32 to vector<12x96xf32>
    %261 = arith.maximumf %259, %260 : vector<12x96xf32>
    %cst_74 = arith.constant dense<0.000000e+00> : vector<12x112xf32>
    %262 = tpu.matmul %261, %8, %cst_74 {dimension_numbers = #tpu.dot_dimension_numbers<[1], [0], [0], [1], [0, 0, 1, 1], [], []>} : vector<12x96xf32>, vector<96x112xf32>, vector<12x112xf32> -> vector<12x112xf32>
    %263 = vector.broadcast %9 : vector<1x112xf32> to vector<12x112xf32>
    %264 = arith.addf %262, %263 : vector<12x112xf32>
    %265 = math.tanh %264 : vector<12x112xf32>
    %266 = vector.extract_strided_slice %265 {offsets = [0, 0], sizes = [4, 48], strides = [1, 1]} : vector<12x112xf32> to vector<4x48xf32>
    %267 = vector.extract_strided_slice %265 {offsets = [4, 48], sizes = [4, 16], strides = [1, 1]} : vector<12x112xf32> to vector<4x16xf32>
    %268 = vector.extract_strided_slice %265 {offsets = [8, 64], sizes = [4, 48], strides = [1, 1]} : vector<12x112xf32> to vector<4x48xf32>
    %269 = vector.extract_strided_slice %266 {offsets = [0, 0], sizes = [4, 16], strides = [1, 1]} : vector<4x48xf32> to vector<4x16xf32>
    %270 = vector.extract_strided_slice %255 {offsets = [0, 0], sizes = [4, 1], strides = [1, 1]} : vector<4x3xf32> to vector<4x1xf32>
    %271 = vector.broadcast %270 : vector<4x1xf32> to vector<4x16xf32>
    %272 = arith.mulf %269, %271 : vector<4x16xf32>
    %273 = vector.extract_strided_slice %268 {offsets = [0, 0], sizes = [4, 16], strides = [1, 1]} : vector<4x48xf32> to vector<4x16xf32>
    %274 = vector.extract_strided_slice %255 {offsets = [0, 0], sizes = [4, 1], strides = [1, 1]} : vector<4x3xf32> to vector<4x1xf32>
    %275 = vector.broadcast %274 : vector<4x1xf32> to vector<4x16xf32>
    %276 = arith.mulf %273, %275 : vector<4x16xf32>
    %277 = vector.extract_strided_slice %266 {offsets = [0, 16], sizes = [4, 16], strides = [1, 1]} : vector<4x48xf32> to vector<4x16xf32>
    %278 = vector.extract_strided_slice %255 {offsets = [0, 1], sizes = [4, 1], strides = [1, 1]} : vector<4x3xf32> to vector<4x1xf32>
    %279 = vector.broadcast %278 : vector<4x1xf32> to vector<4x16xf32>
    %280 = arith.mulf %277, %279 : vector<4x16xf32>
    %281 = arith.addf %272, %280 : vector<4x16xf32>
    %282 = vector.extract_strided_slice %268 {offsets = [0, 16], sizes = [4, 16], strides = [1, 1]} : vector<4x48xf32> to vector<4x16xf32>
    %283 = vector.extract_strided_slice %255 {offsets = [0, 1], sizes = [4, 1], strides = [1, 1]} : vector<4x3xf32> to vector<4x1xf32>
    %284 = vector.broadcast %283 : vector<4x1xf32> to vector<4x16xf32>
    %285 = arith.mulf %282, %284 : vector<4x16xf32>
    %286 = arith.addf %276, %285 : vector<4x16xf32>
    %287 = vector.extract_strided_slice %266 {offsets = [0, 32], sizes = [4, 16], strides = [1, 1]} : vector<4x48xf32> to vector<4x16xf32>
    %288 = vector.extract_strided_slice %255 {offsets = [0, 2], sizes = [4, 1], strides = [1, 1]} : vector<4x3xf32> to vector<4x1xf32>
    %289 = vector.broadcast %288 : vector<4x1xf32> to vector<4x16xf32>
    %290 = arith.mulf %287, %289 : vector<4x16xf32>
    %291 = arith.addf %281, %290 : vector<4x16xf32>
    %292 = vector.extract_strided_slice %268 {offsets = [0, 32], sizes = [4, 16], strides = [1, 1]} : vector<4x48xf32> to vector<4x16xf32>
    %293 = vector.extract_strided_slice %255 {offsets = [0, 2], sizes = [4, 1], strides = [1, 1]} : vector<4x3xf32> to vector<4x1xf32>
    %294 = vector.broadcast %293 : vector<4x1xf32> to vector<4x16xf32>
    %295 = arith.mulf %292, %294 : vector<4x16xf32>
    %296 = arith.addf %286, %295 : vector<4x16xf32>
    %297 = arith.addf %152, %224 : vector<4x16xf32>
    %cst_75 = arith.constant 3.000000e+00 : f32
    %298 = vector.broadcast %cst_75 : f32 to vector<4x16xf32>
    %299 = arith.mulf %298, %297 : vector<4x16xf32>
    %300 = arith.addf %84, %299 : vector<4x16xf32>
    %301 = arith.addf %300, %291 : vector<4x16xf32>
    %302 = vector.broadcast %32 : f32 to vector<4x16xf32>
    %303 = arith.mulf %302, %301 : vector<4x16xf32>
    %cst_76 = arith.constant 1.250000e-01 : f32
    %304 = vector.broadcast %cst_76 : f32 to vector<4x16xf32>
    %305 = arith.mulf %303, %304 : vector<4x16xf32>
    %306 = arith.addf %13, %305 : vector<4x16xf32>
    %307 = arith.addf %128, %200 : vector<4x16xf32>
    %cst_77 = arith.constant 3.000000e+00 : f32
    %308 = vector.broadcast %cst_77 : f32 to vector<4x16xf32>
    %309 = arith.mulf %308, %307 : vector<4x16xf32>
    %310 = arith.addf %60, %309 : vector<4x16xf32>
    %311 = arith.addf %310, %267 : vector<4x16xf32>
    %312 = vector.broadcast %32 : f32 to vector<4x16xf32>
    %313 = arith.mulf %312, %311 : vector<4x16xf32>
    %cst_78 = arith.constant 1.250000e-01 : f32
    %314 = vector.broadcast %cst_78 : f32 to vector<4x16xf32>
    %315 = arith.mulf %313, %314 : vector<4x16xf32>
    %316 = arith.addf %16, %315 : vector<4x16xf32>
    %317 = arith.addf %157, %229 : vector<4x16xf32>
    %cst_79 = arith.constant 3.000000e+00 : f32
    %318 = vector.broadcast %cst_79 : f32 to vector<4x16xf32>
    %319 = arith.mulf %318, %317 : vector<4x16xf32>
    %320 = arith.addf %89, %319 : vector<4x16xf32>
    %321 = arith.addf %320, %296 : vector<4x16xf32>
    %322 = vector.broadcast %32 : f32 to vector<4x16xf32>
    %323 = arith.mulf %322, %321 : vector<4x16xf32>
    %cst_80 = arith.constant 1.250000e-01 : f32
    %324 = vector.broadcast %cst_80 : f32 to vector<4x16xf32>
    %325 = arith.mulf %323, %324 : vector<4x16xf32>
    %326 = arith.addf %13, %325 : vector<4x16xf32>
    %c1_81 = arith.constant 1 : index
    %c0_82 = arith.constant 0 : index
    %c0_83 = arith.constant 0 : index
    %327 = vector.load %arg16[%c1_81, %c0_82, %c0_83] : memref<8x4x16xf32, #tpu.memory_space<vmem>>, vector<1x4x16xf32>
    %328 = vector.shape_cast %327 : vector<1x4x16xf32> to vector<4x16xf32>
    %329 = vector.shape_cast %306 : vector<4x16xf32> to vector<1x4x16xf32>
    tpu.vector_store %arg16[%c1_81, %c0_82, %c0_83], %329 {strides = array<i32>} : memref<8x4x16xf32, #tpu.memory_space<vmem>>, vector<1x4x16xf32>,
    %c1_84 = arith.constant 1 : index
    %c0_85 = arith.constant 0 : index
    %c0_86 = arith.constant 0 : index
    %330 = vector.load %arg17[%c1_84, %c0_85, %c0_86] : memref<8x4x16xf32, #tpu.memory_space<vmem>>, vector<1x4x16xf32>
    %331 = vector.shape_cast %330 : vector<1x4x16xf32> to vector<4x16xf32>
    %332 = vector.shape_cast %316 : vector<4x16xf32> to vector<1x4x16xf32>
    tpu.vector_store %arg17[%c1_84, %c0_85, %c0_86], %332 {strides = array<i32>} : memref<8x4x16xf32, #tpu.memory_space<vmem>>, vector<1x4x16xf32>,
    %c1_87 = arith.constant 1 : index
    %c0_88 = arith.constant 0 : index
    %c0_89 = arith.constant 0 : index
    %333 = vector.load %arg18[%c1_87, %c0_88, %c0_89] : memref<8x4x16xf32, #tpu.memory_space<vmem>>, vector<1x4x16xf32>
    %334 = vector.shape_cast %333 : vector<1x4x16xf32> to vector<4x16xf32>
    %335 = vector.shape_cast %326 : vector<4x16xf32> to vector<1x4x16xf32>
    tpu.vector_store %arg18[%c1_87, %c0_88, %c0_89], %335 {strides = array<i32>} : memref<8x4x16xf32, #tpu.memory_space<vmem>>, vector<1x4x16xf32>,
    %cst_90 = arith.constant dense<0.000000e+00> : vector<4x2xf32>
    %336 = tpu.matmul %326, %4, %cst_90 {dimension_numbers = #tpu.dot_dimension_numbers<[1], [0], [0], [1], [0, 0, 1, 1], [], []>} : vector<4x16xf32>, vector<16x2xf32>, vector<4x2xf32> -> vector<4x2xf32>
    %337 = vector.broadcast %5 : vector<1x2xf32> to vector<4x2xf32>
    %338 = arith.addf %336, %337 : vector<4x2xf32>
    %c1_91 = arith.constant 1 : index
    %c0_92 = arith.constant 0 : index
    %c0_93 = arith.constant 0 : index
    %339 = vector.load %arg19[%c1_91, %c0_92, %c0_93] : memref<8x4x2xf32, #tpu.memory_space<vmem>>, vector<1x4x2xf32>
    %340 = vector.shape_cast %339 : vector<1x4x2xf32> to vector<4x2xf32>
    %341 = vector.shape_cast %338 : vector<4x2xf32> to vector<1x4x2xf32>
    tpu.vector_store %arg19[%c1_91, %c0_92, %c0_93], %341 {strides = array<i32>} : memref<8x4x2xf32, #tpu.memory_space<vmem>>, vector<1x4x2xf32>,
    %c2 = arith.constant 2 : index
    %342 = memref.load %arg1[%c2] : memref<8xf32, #tpu.memory_space<smem>>
    %c1_94 = arith.constant 1 : index
    %c0_95 = arith.constant 0 : index
    %c0_96 = arith.constant 0 : index
    %343 = vector.load %arg2[%c1_94, %c0_95, %c0_96] : memref<7x4x3xf32, #tpu.memory_space<vmem>>, vector<1x4x3xf32>
    %344 = vector.shape_cast %343 : vector<1x4x3xf32> to vector<4x3xf32>
    %c1_97 = arith.constant 1 : index
    %c0_98 = arith.constant 0 : index
    %c0_99 = arith.constant 0 : index
    %345 = vector.load %arg3[%c1_97, %c0_98, %c0_99] : memref<7x4x3xf32, #tpu.memory_space<vmem>>, vector<1x4x3xf32>
    %346 = vector.shape_cast %345 : vector<1x4x3xf32> to vector<4x3xf32>
    %c1_100 = arith.constant 1 : index
    %c0_101 = arith.constant 0 : index
    %c0_102 = arith.constant 0 : index
    %347 = vector.load %arg4[%c1_100, %c0_101, %c0_102] : memref<7x4x3xf32, #tpu.memory_space<vmem>>, vector<1x4x3xf32>
    %348 = vector.shape_cast %347 : vector<1x4x3xf32> to vector<4x3xf32>
    %cst_103 = arith.constant 2.000000e+00 : f32
    %349 = vector.broadcast %cst_103 : f32 to vector<4x3xf32>
    %350 = arith.mulf %349, %346 : vector<4x3xf32>
    %cst_104 = arith.constant 0.000000e+00 : f32
    %351 = vector.broadcast %cst_104 : f32 to vector<4x3xf32>
    %352 = arith.mulf %350, %351 : vector<4x3xf32>
    %353 = arith.addf %344, %352 : vector<4x3xf32>
    %cst_105 = arith.constant 3.000000e+00 : f32
    %354 = vector.broadcast %cst_105 : f32 to vector<4x3xf32>
    %355 = arith.mulf %354, %348 : vector<4x3xf32>
    %cst_106 = arith.constant 0.000000e+00 : f32
    %356 = vector.broadcast %cst_106 : f32 to vector<4x3xf32>
    %357 = arith.mulf %355, %356 : vector<4x3xf32>
    %358 = arith.addf %353, %357 : vector<4x3xf32>
    %359 = tpu.concatenate %306, %316, %326 in 0 : vector<4x16xf32>, vector<4x16xf32>, vector<4x16xf32> -> vector<12x16xf32>
    %cst_107 = arith.constant dense<0.000000e+00> : vector<12x96xf32>
    %360 = tpu.matmul %359, %6, %cst_107 {dimension_numbers = #tpu.dot_dimension_numbers<[1], [0], [0], [1], [0, 0, 1, 1], [], []>} : vector<12x16xf32>, vector<16x96xf32>, vector<12x96xf32> -> vector<12x96xf32>
    %361 = vector.broadcast %7 : vector<1x96xf32> to vector<12x96xf32>
    %362 = arith.addf %360, %361 : vector<12x96xf32>
    %cst_108 = arith.constant 0.000000e+00 : f32
    %363 = vector.broadcast %cst_108 : f32 to vector<12x96xf32>
    %364 = arith.maximumf %362, %363 : vector<12x96xf32>
    %cst_109 = arith.constant dense<0.000000e+00> : vector<12x112xf32>
    %365 = tpu.matmul %364, %8, %cst_109 {dimension_numbers = #tpu.dot_dimension_numbers<[1], [0], [0], [1], [0, 0, 1, 1], [], []>} : vector<12x96xf32>, vector<96x112xf32>, vector<12x112xf32> -> vector<12x112xf32>
    %366 = vector.broadcast %9 : vector<1x112xf32> to vector<12x112xf32>
    %367 = arith.addf %365, %366 : vector<12x112xf32>
    %368 = math.tanh %367 : vector<12x112xf32>
    %369 = vector.extract_strided_slice %368 {offsets = [0, 0], sizes = [4, 48], strides = [1, 1]} : vector<12x112xf32> to vector<4x48xf32>
    %370 = vector.extract_strided_slice %368 {offsets = [4, 48], sizes = [4, 16], strides = [1, 1]} : vector<12x112xf32> to vector<4x16xf32>
    %371 = vector.extract_strided_slice %368 {offsets = [8, 64], sizes = [4, 48], strides = [1, 1]} : vector<12x112xf32> to vector<4x48xf32>
    %372 = vector.extract_strided_slice %369 {offsets = [0, 0], sizes = [4, 16], strides = [1, 1]} : vector<4x48xf32> to vector<4x16xf32>
    %373 = vector.extract_strided_slice %358 {offsets = [0, 0], sizes = [4, 1], strides = [1, 1]} : vector<4x3xf32> to vector<4x1xf32>
    %374 = vector.broadcast %373 : vector<4x1xf32> to vector<4x16xf32>
    %375 = arith.mulf %372, %374 : vector<4x16xf32>
    %376 = vector.extract_strided_slice %371 {offsets = [0, 0], sizes = [4, 16], strides = [1, 1]} : vector<4x48xf32> to vector<4x16xf32>
    %377 = vector.extract_strided_slice %358 {offsets = [0, 0], sizes = [4, 1], strides = [1, 1]} : vector<4x3xf32> to vector<4x1xf32>
    %378 = vector.broadcast %377 : vector<4x1xf32> to vector<4x16xf32>
    %379 = arith.mulf %376, %378 : vector<4x16xf32>
    %380 = vector.extract_strided_slice %369 {offsets = [0, 16], sizes = [4, 16], strides = [1, 1]} : vector<4x48xf32> to vector<4x16xf32>
    %381 = vector.extract_strided_slice %358 {offsets = [0, 1], sizes = [4, 1], strides = [1, 1]} : vector<4x3xf32> to vector<4x1xf32>
    %382 = vector.broadcast %381 : vector<4x1xf32> to vector<4x16xf32>
    %383 = arith.mulf %380, %382 : vector<4x16xf32>
    %384 = arith.addf %375, %383 : vector<4x16xf32>
    %385 = vector.extract_strided_slice %371 {offsets = [0, 16], sizes = [4, 16], strides = [1, 1]} : vector<4x48xf32> to vector<4x16xf32>
    %386 = vector.extract_strided_slice %358 {offsets = [0, 1], sizes = [4, 1], strides = [1, 1]} : vector<4x3xf32> to vector<4x1xf32>
    %387 = vector.broadcast %386 : vector<4x1xf32> to vector<4x16xf32>
    %388 = arith.mulf %385, %387 : vector<4x16xf32>
    %389 = arith.addf %379, %388 : vector<4x16xf32>
    %390 = vector.extract_strided_slice %369 {offsets = [0, 32], sizes = [4, 16], strides = [1, 1]} : vector<4x48xf32> to vector<4x16xf32>
    %391 = vector.extract_strided_slice %358 {offsets = [0, 2], sizes = [4, 1], strides = [1, 1]} : vector<4x3xf32> to vector<4x1xf32>
    %392 = vector.broadcast %391 : vector<4x1xf32> to vector<4x16xf32>
    %393 = arith.mulf %390, %392 : vector<4x16xf32>
    %394 = arith.addf %384, %393 : vector<4x16xf32>
    %395 = vector.extract_strided_slice %371 {offsets = [0, 32], sizes = [4, 16], strides = [1, 1]} : vector<4x48xf32> to vector<4x16xf32>
    %396 = vector.extract_strided_slice %358 {offsets = [0, 2], sizes = [4, 1], strides = [1, 1]} : vector<4x3xf32> to vector<4x1xf32>
    %397 = vector.broadcast %396 : vector<4x1xf32> to vector<4x16xf32>
    %398 = arith.mulf %395, %397 : vector<4x16xf32>
    %399 = arith.addf %389, %398 : vector<4x16xf32>
    %400 = vector.broadcast %342 : f32 to vector<4x16xf32>
    %401 = arith.mulf %400, %394 : vector<4x16xf32>
    %cst_110 = arith.constant 3.000000e+00 : f32
    %402 = vector.broadcast %cst_110 : f32 to vector<4x16xf32>
    %403 = arith.divf %401, %402 : vector<4x16xf32>
    %404 = arith.addf %306, %403 : vector<4x16xf32>
    %405 = vector.broadcast %342 : f32 to vector<4x16xf32>
    %406 = arith.mulf %405, %370 : vector<4x16xf32>
    %cst_111 = arith.constant 3.000000e+00 : f32
    %407 = vector.broadcast %cst_111 : f32 to vector<4x16xf32>
    %408 = arith.divf %406, %407 : vector<4x16xf32>
    %409 = arith.addf %316, %408 : vector<4x16xf32>
    %410 = vector.broadcast %342 : f32 to vector<4x16xf32>
    %411 = arith.mulf %410, %399 : vector<4x16xf32>
    %cst_112 = arith.constant 3.000000e+00 : f32
    %412 = vector.broadcast %cst_112 : f32 to vector<4x16xf32>
    %413 = arith.divf %411, %412 : vector<4x16xf32>
    %414 = arith.addf %326, %413 : vector<4x16xf32>
    %cst_113 = arith.constant 3.000000e+00 : f32
    %415 = arith.divf %342, %cst_113 : f32
    %cst_114 = arith.constant 2.000000e+00 : f32
    %416 = vector.broadcast %cst_114 : f32 to vector<4x3xf32>
    %417 = arith.mulf %416, %346 : vector<4x3xf32>
    %418 = vector.broadcast %415 : f32 to vector<4x3xf32>
    %419 = arith.mulf %417, %418 : vector<4x3xf32>
    %420 = arith.addf %344, %419 : vector<4x3xf32>
    %cst_115 = arith.constant 3.000000e+00 : f32
    %421 = vector.broadcast %cst_115 : f32 to vector<4x3xf32>
    %422 = arith.mulf %421, %348 : vector<4x3xf32>
    %423 = arith.mulf %415, %415 : f32
    %424 = vector.broadcast %423 : f32 to vector<4x3xf32>
    %425 = arith.mulf %422, %424 : vector<4x3xf32>
    %426 = arith.addf %420, %425 : vector<4x3xf32>
    %427 = tpu.concatenate %404, %409, %414 in 0 : vector<4x16xf32>, vector<4x16xf32>, vector<4x16xf32> -> vector<12x16xf32>
    %cst_116 = arith.constant dense<0.000000e+00> : vector<12x96xf32>
    %428 = tpu.matmul %427, %6, %cst_116 {dimension_numbers = #tpu.dot_dimension_numbers<[1], [0], [0], [1], [0, 0, 1, 1], [], []>} : vector<12x16xf32>, vector<16x96xf32>, vector<12x96xf32> -> vector<12x96xf32>
    %429 = vector.broadcast %7 : vector<1x96xf32> to vector<12x96xf32>
    %430 = arith.addf %428, %429 : vector<12x96xf32>
    %cst_117 = arith.constant 0.000000e+00 : f32
    %431 = vector.broadcast %cst_117 : f32 to vector<12x96xf32>
    %432 = arith.maximumf %430, %431 : vector<12x96xf32>
    %cst_118 = arith.constant dense<0.000000e+00> : vector<12x112xf32>
    %433 = tpu.matmul %432, %8, %cst_118 {dimension_numbers = #tpu.dot_dimension_numbers<[1], [0], [0], [1], [0, 0, 1, 1], [], []>} : vector<12x96xf32>, vector<96x112xf32>, vector<12x112xf32> -> vector<12x112xf32>
    %434 = vector.broadcast %9 : vector<1x112xf32> to vector<12x112xf32>
    %435 = arith.addf %433, %434 : vector<12x112xf32>
    %436 = math.tanh %435 : vector<12x112xf32>
    %437 = vector.extract_strided_slice %436 {offsets = [0, 0], sizes = [4, 48], strides = [1, 1]} : vector<12x112xf32> to vector<4x48xf32>
    %438 = vector.extract_strided_slice %436 {offsets = [4, 48], sizes = [4, 16], strides = [1, 1]} : vector<12x112xf32> to vector<4x16xf32>
    %439 = vector.extract_strided_slice %436 {offsets = [8, 64], sizes = [4, 48], strides = [1, 1]} : vector<12x112xf32> to vector<4x48xf32>
    %440 = vector.extract_strided_slice %437 {offsets = [0, 0], sizes = [4, 16], strides = [1, 1]} : vector<4x48xf32> to vector<4x16xf32>
    %441 = vector.extract_strided_slice %426 {offsets = [0, 0], sizes = [4, 1], strides = [1, 1]} : vector<4x3xf32> to vector<4x1xf32>
    %442 = vector.broadcast %441 : vector<4x1xf32> to vector<4x16xf32>
    %443 = arith.mulf %440, %442 : vector<4x16xf32>
    %444 = vector.extract_strided_slice %439 {offsets = [0, 0], sizes = [4, 16], strides = [1, 1]} : vector<4x48xf32> to vector<4x16xf32>
    %445 = vector.extract_strided_slice %426 {offsets = [0, 0], sizes = [4, 1], strides = [1, 1]} : vector<4x3xf32> to vector<4x1xf32>
    %446 = vector.broadcast %445 : vector<4x1xf32> to vector<4x16xf32>
    %447 = arith.mulf %444, %446 : vector<4x16xf32>
    %448 = vector.extract_strided_slice %437 {offsets = [0, 16], sizes = [4, 16], strides = [1, 1]} : vector<4x48xf32> to vector<4x16xf32>
    %449 = vector.extract_strided_slice %426 {offsets = [0, 1], sizes = [4, 1], strides = [1, 1]} : vector<4x3xf32> to vector<4x1xf32>
    %450 = vector.broadcast %449 : vector<4x1xf32> to vector<4x16xf32>
    %451 = arith.mulf %448, %450 : vector<4x16xf32>
    %452 = arith.addf %443, %451 : vector<4x16xf32>
    %453 = vector.extract_strided_slice %439 {offsets = [0, 16], sizes = [4, 16], strides = [1, 1]} : vector<4x48xf32> to vector<4x16xf32>
    %454 = vector.extract_strided_slice %426 {offsets = [0, 1], sizes = [4, 1], strides = [1, 1]} : vector<4x3xf32> to vector<4x1xf32>
    %455 = vector.broadcast %454 : vector<4x1xf32> to vector<4x16xf32>
    %456 = arith.mulf %453, %455 : vector<4x16xf32>
    %457 = arith.addf %447, %456 : vector<4x16xf32>
    %458 = vector.extract_strided_slice %437 {offsets = [0, 32], sizes = [4, 16], strides = [1, 1]} : vector<4x48xf32> to vector<4x16xf32>
    %459 = vector.extract_strided_slice %426 {offsets = [0, 2], sizes = [4, 1], strides = [1, 1]} : vector<4x3xf32> to vector<4x1xf32>
    %460 = vector.broadcast %459 : vector<4x1xf32> to vector<4x16xf32>
    %461 = arith.mulf %458, %460 : vector<4x16xf32>
    %462 = arith.addf %452, %461 : vector<4x16xf32>
    %463 = vector.extract_strided_slice %439 {offsets = [0, 32], sizes = [4, 16], strides = [1, 1]} : vector<4x48xf32> to vector<4x16xf32>
    %464 = vector.extract_strided_slice %426 {offsets = [0, 2], sizes = [4, 1], strides = [1, 1]} : vector<4x3xf32> to vector<4x1xf32>
    %465 = vector.broadcast %464 : vector<4x1xf32> to vector<4x16xf32>
    %466 = arith.mulf %463, %465 : vector<4x16xf32>
    %467 = arith.addf %457, %466 : vector<4x16xf32>
    %cst_119 = arith.constant 3.000000e+00 : f32
    %468 = vector.broadcast %cst_119 : f32 to vector<4x16xf32>
    %469 = arith.divf %394, %468 : vector<4x16xf32>
    %470 = arith.subf %462, %469 : vector<4x16xf32>
    %471 = vector.broadcast %342 : f32 to vector<4x16xf32>
    %472 = arith.mulf %471, %470 : vector<4x16xf32>
    %473 = arith.addf %306, %472 : vector<4x16xf32>
    %cst_120 = arith.constant 3.000000e+00 : f32
    %474 = vector.broadcast %cst_120 : f32 to vector<4x16xf32>
    %475 = arith.divf %370, %474 : vector<4x16xf32>
    %476 = arith.subf %438, %475 : vector<4x16xf32>
    %477 = vector.broadcast %342 : f32 to vector<4x16xf32>
    %478 = arith.mulf %477, %476 : vector<4x16xf32>
    %479 = arith.addf %316, %478 : vector<4x16xf32>
    %cst_121 = arith.constant 3.000000e+00 : f32
    %480 = vector.broadcast %cst_121 : f32 to vector<4x16xf32>
    %481 = arith.divf %399, %480 : vector<4x16xf32>
    %482 = arith.subf %467, %481 : vector<4x16xf32>
    %483 = vector.broadcast %342 : f32 to vector<4x16xf32>
    %484 = arith.mulf %483, %482 : vector<4x16xf32>
    %485 = arith.addf %326, %484 : vector<4x16xf32>
    %cst_122 = arith.constant 2.000000e+00 : f32
    %486 = arith.mulf %cst_122, %342 : f32
    %cst_123 = arith.constant 3.000000e+00 : f32
    %487 = arith.divf %486, %cst_123 : f32
    %cst_124 = arith.constant 2.000000e+00 : f32
    %488 = vector.broadcast %cst_124 : f32 to vector<4x3xf32>
    %489 = arith.mulf %488, %346 : vector<4x3xf32>
    %490 = vector.broadcast %487 : f32 to vector<4x3xf32>
    %491 = arith.mulf %489, %490 : vector<4x3xf32>
    %492 = arith.addf %344, %491 : vector<4x3xf32>
    %cst_125 = arith.constant 3.000000e+00 : f32
    %493 = vector.broadcast %cst_125 : f32 to vector<4x3xf32>
    %494 = arith.mulf %493, %348 : vector<4x3xf32>
    %495 = arith.mulf %487, %487 : f32
    %496 = vector.broadcast %495 : f32 to vector<4x3xf32>
    %497 = arith.mulf %494, %496 : vector<4x3xf32>
    %498 = arith.addf %492, %497 : vector<4x3xf32>
    %499 = tpu.concatenate %473, %479, %485 in 0 : vector<4x16xf32>, vector<4x16xf32>, vector<4x16xf32> -> vector<12x16xf32>
    %cst_126 = arith.constant dense<0.000000e+00> : vector<12x96xf32>
    %500 = tpu.matmul %499, %6, %cst_126 {dimension_numbers = #tpu.dot_dimension_numbers<[1], [0], [0], [1], [0, 0, 1, 1], [], []>} : vector<12x16xf32>, vector<16x96xf32>, vector<12x96xf32> -> vector<12x96xf32>
    %501 = vector.broadcast %7 : vector<1x96xf32> to vector<12x96xf32>
    %502 = arith.addf %500, %501 : vector<12x96xf32>
    %cst_127 = arith.constant 0.000000e+00 : f32
    %503 = vector.broadcast %cst_127 : f32 to vector<12x96xf32>
    %504 = arith.maximumf %502, %503 : vector<12x96xf32>
    %cst_128 = arith.constant dense<0.000000e+00> : vector<12x112xf32>
    %505 = tpu.matmul %504, %8, %cst_128 {dimension_numbers = #tpu.dot_dimension_numbers<[1], [0], [0], [1], [0, 0, 1, 1], [], []>} : vector<12x96xf32>, vector<96x112xf32>, vector<12x112xf32> -> vector<12x112xf32>
    %506 = vector.broadcast %9 : vector<1x112xf32> to vector<12x112xf32>
    %507 = arith.addf %505, %506 : vector<12x112xf32>
    %508 = math.tanh %507 : vector<12x112xf32>
    %509 = vector.extract_strided_slice %508 {offsets = [0, 0], sizes = [4, 48], strides = [1, 1]} : vector<12x112xf32> to vector<4x48xf32>
    %510 = vector.extract_strided_slice %508 {offsets = [4, 48], sizes = [4, 16], strides = [1, 1]} : vector<12x112xf32> to vector<4x16xf32>
    %511 = vector.extract_strided_slice %508 {offsets = [8, 64], sizes = [4, 48], strides = [1, 1]} : vector<12x112xf32> to vector<4x48xf32>
    %512 = vector.extract_strided_slice %509 {offsets = [0, 0], sizes = [4, 16], strides = [1, 1]} : vector<4x48xf32> to vector<4x16xf32>
    %513 = vector.extract_strided_slice %498 {offsets = [0, 0], sizes = [4, 1], strides = [1, 1]} : vector<4x3xf32> to vector<4x1xf32>
    %514 = vector.broadcast %513 : vector<4x1xf32> to vector<4x16xf32>
    %515 = arith.mulf %512, %514 : vector<4x16xf32>
    %516 = vector.extract_strided_slice %511 {offsets = [0, 0], sizes = [4, 16], strides = [1, 1]} : vector<4x48xf32> to vector<4x16xf32>
    %517 = vector.extract_strided_slice %498 {offsets = [0, 0], sizes = [4, 1], strides = [1, 1]} : vector<4x3xf32> to vector<4x1xf32>
    %518 = vector.broadcast %517 : vector<4x1xf32> to vector<4x16xf32>
    %519 = arith.mulf %516, %518 : vector<4x16xf32>
    %520 = vector.extract_strided_slice %509 {offsets = [0, 16], sizes = [4, 16], strides = [1, 1]} : vector<4x48xf32> to vector<4x16xf32>
    %521 = vector.extract_strided_slice %498 {offsets = [0, 1], sizes = [4, 1], strides = [1, 1]} : vector<4x3xf32> to vector<4x1xf32>
    %522 = vector.broadcast %521 : vector<4x1xf32> to vector<4x16xf32>
    %523 = arith.mulf %520, %522 : vector<4x16xf32>
    %524 = arith.addf %515, %523 : vector<4x16xf32>
    %525 = vector.extract_strided_slice %511 {offsets = [0, 16], sizes = [4, 16], strides = [1, 1]} : vector<4x48xf32> to vector<4x16xf32>
    %526 = vector.extract_strided_slice %498 {offsets = [0, 1], sizes = [4, 1], strides = [1, 1]} : vector<4x3xf32> to vector<4x1xf32>
    %527 = vector.broadcast %526 : vector<4x1xf32> to vector<4x16xf32>
    %528 = arith.mulf %525, %527 : vector<4x16xf32>
    %529 = arith.addf %519, %528 : vector<4x16xf32>
    %530 = vector.extract_strided_slice %509 {offsets = [0, 32], sizes = [4, 16], strides = [1, 1]} : vector<4x48xf32> to vector<4x16xf32>
    %531 = vector.extract_strided_slice %498 {offsets = [0, 2], sizes = [4, 1], strides = [1, 1]} : vector<4x3xf32> to vector<4x1xf32>
    %532 = vector.broadcast %531 : vector<4x1xf32> to vector<4x16xf32>
    %533 = arith.mulf %530, %532 : vector<4x16xf32>
    %534 = arith.addf %524, %533 : vector<4x16xf32>
    %535 = vector.extract_strided_slice %511 {offsets = [0, 32], sizes = [4, 16], strides = [1, 1]} : vector<4x48xf32> to vector<4x16xf32>
    %536 = vector.extract_strided_slice %498 {offsets = [0, 2], sizes = [4, 1], strides = [1, 1]} : vector<4x3xf32> to vector<4x1xf32>
    %537 = vector.broadcast %536 : vector<4x1xf32> to vector<4x16xf32>
    %538 = arith.mulf %535, %537 : vector<4x16xf32>
    %539 = arith.addf %529, %538 : vector<4x16xf32>
    %540 = arith.subf %394, %462 : vector<4x16xf32>
    %541 = arith.addf %540, %534 : vector<4x16xf32>
    %542 = vector.broadcast %342 : f32 to vector<4x16xf32>
    %543 = arith.mulf %542, %541 : vector<4x16xf32>
    %544 = arith.addf %306, %543 : vector<4x16xf32>
    %545 = arith.subf %370, %438 : vector<4x16xf32>
    %546 = arith.addf %545, %510 : vector<4x16xf32>
    %547 = vector.broadcast %342 : f32 to vector<4x16xf32>
    %548 = arith.mulf %547, %546 : vector<4x16xf32>
    %549 = arith.addf %316, %548 : vector<4x16xf32>
    %550 = arith.subf %399, %467 : vector<4x16xf32>
    %551 = arith.addf %550, %539 : vector<4x16xf32>
    %552 = vector.broadcast %342 : f32 to vector<4x16xf32>
    %553 = arith.mulf %552, %551 : vector<4x16xf32>
    %554 = arith.addf %326, %553 : vector<4x16xf32>
    %cst_129 = arith.constant 2.000000e+00 : f32
    %555 = vector.broadcast %cst_129 : f32 to vector<4x3xf32>
    %556 = arith.mulf %555, %346 : vector<4x3xf32>
    %557 = vector.broadcast %342 : f32 to vector<4x3xf32>
    %558 = arith.mulf %556, %557 : vector<4x3xf32>
    %559 = arith.addf %344, %558 : vector<4x3xf32>
    %cst_130 = arith.constant 3.000000e+00 : f32
    %560 = vector.broadcast %cst_130 : f32 to vector<4x3xf32>
    %561 = arith.mulf %560, %348 : vector<4x3xf32>
    %562 = arith.mulf %342, %342 : f32
    %563 = vector.broadcast %562 : f32 to vector<4x3xf32>
    %564 = arith.mulf %561, %563 : vector<4x3xf32>
    %565 = arith.addf %559, %564 : vector<4x3xf32>
    %566 = tpu.concatenate %544, %549, %554 in 0 : vector<4x16xf32>, vector<4x16xf32>, vector<4x16xf32> -> vector<12x16xf32>
    %cst_131 = arith.constant dense<0.000000e+00> : vector<12x96xf32>
    %567 = tpu.matmul %566, %6, %cst_131 {dimension_numbers = #tpu.dot_dimension_numbers<[1], [0], [0], [1], [0, 0, 1, 1], [], []>} : vector<12x16xf32>, vector<16x96xf32>, vector<12x96xf32> -> vector<12x96xf32>
    %568 = vector.broadcast %7 : vector<1x96xf32> to vector<12x96xf32>
    %569 = arith.addf %567, %568 : vector<12x96xf32>
    %cst_132 = arith.constant 0.000000e+00 : f32
    %570 = vector.broadcast %cst_132 : f32 to vector<12x96xf32>
    %571 = arith.maximumf %569, %570 : vector<12x96xf32>
    %cst_133 = arith.constant dense<0.000000e+00> : vector<12x112xf32>
    %572 = tpu.matmul %571, %8, %cst_133 {dimension_numbers = #tpu.dot_dimension_numbers<[1], [0], [0], [1], [0, 0, 1, 1], [], []>} : vector<12x96xf32>, vector<96x112xf32>, vector<12x112xf32> -> vector<12x112xf32>
    %573 = vector.broadcast %9 : vector<1x112xf32> to vector<12x112xf32>
    %574 = arith.addf %572, %573 : vector<12x112xf32>
    %575 = math.tanh %574 : vector<12x112xf32>
    %576 = vector.extract_strided_slice %575 {offsets = [0, 0], sizes = [4, 48], strides = [1, 1]} : vector<12x112xf32> to vector<4x48xf32>
    %577 = vector.extract_strided_slice %575 {offsets = [4, 48], sizes = [4, 16], strides = [1, 1]} : vector<12x112xf32> to vector<4x16xf32>
    %578 = vector.extract_strided_slice %575 {offsets = [8, 64], sizes = [4, 48], strides = [1, 1]} : vector<12x112xf32> to vector<4x48xf32>
    %579 = vector.extract_strided_slice %576 {offsets = [0, 0], sizes = [4, 16], strides = [1, 1]} : vector<4x48xf32> to vector<4x16xf32>
    %580 = vector.extract_strided_slice %565 {offsets = [0, 0], sizes = [4, 1], strides = [1, 1]} : vector<4x3xf32> to vector<4x1xf32>
    %581 = vector.broadcast %580 : vector<4x1xf32> to vector<4x16xf32>
    %582 = arith.mulf %579, %581 : vector<4x16xf32>
    %583 = vector.extract_strided_slice %578 {offsets = [0, 0], sizes = [4, 16], strides = [1, 1]} : vector<4x48xf32> to vector<4x16xf32>
    %584 = vector.extract_strided_slice %565 {offsets = [0, 0], sizes = [4, 1], strides = [1, 1]} : vector<4x3xf32> to vector<4x1xf32>
    %585 = vector.broadcast %584 : vector<4x1xf32> to vector<4x16xf32>
    %586 = arith.mulf %583, %585 : vector<4x16xf32>
    %587 = vector.extract_strided_slice %576 {offsets = [0, 16], sizes = [4, 16], strides = [1, 1]} : vector<4x48xf32> to vector<4x16xf32>
    %588 = vector.extract_strided_slice %565 {offsets = [0, 1], sizes = [4, 1], strides = [1, 1]} : vector<4x3xf32> to vector<4x1xf32>
    %589 = vector.broadcast %588 : vector<4x1xf32> to vector<4x16xf32>
    %590 = arith.mulf %587, %589 : vector<4x16xf32>
    %591 = arith.addf %582, %590 : vector<4x16xf32>
    %592 = vector.extract_strided_slice %578 {offsets = [0, 16], sizes = [4, 16], strides = [1, 1]} : vector<4x48xf32> to vector<4x16xf32>
    %593 = vector.extract_strided_slice %565 {offsets = [0, 1], sizes = [4, 1], strides = [1, 1]} : vector<4x3xf32> to vector<4x1xf32>
    %594 = vector.broadcast %593 : vector<4x1xf32> to vector<4x16xf32>
    %595 = arith.mulf %592, %594 : vector<4x16xf32>
    %596 = arith.addf %586, %595 : vector<4x16xf32>
    %597 = vector.extract_strided_slice %576 {offsets = [0, 32], sizes = [4, 16], strides = [1, 1]} : vector<4x48xf32> to vector<4x16xf32>
    %598 = vector.extract_strided_slice %565 {offsets = [0, 2], sizes = [4, 1], strides = [1, 1]} : vector<4x3xf32> to vector<4x1xf32>
    %599 = vector.broadcast %598 : vector<4x1xf32> to vector<4x16xf32>
    %600 = arith.mulf %597, %599 : vector<4x16xf32>
    %601 = arith.addf %591, %600 : vector<4x16xf32>
    %602 = vector.extract_strided_slice %578 {offsets = [0, 32], sizes = [4, 16], strides = [1, 1]} : vector<4x48xf32> to vector<4x16xf32>
    %603 = vector.extract_strided_slice %565 {offsets = [0, 2], sizes = [4, 1], strides = [1, 1]} : vector<4x3xf32> to vector<4x1xf32>
    %604 = vector.broadcast %603 : vector<4x1xf32> to vector<4x16xf32>
    %605 = arith.mulf %602, %604 : vector<4x16xf32>
    %606 = arith.addf %596, %605 : vector<4x16xf32>
    %607 = arith.addf %462, %534 : vector<4x16xf32>
    %cst_134 = arith.constant 3.000000e+00 : f32
    %608 = vector.broadcast %cst_134 : f32 to vector<4x16xf32>
    %609 = arith.mulf %608, %607 : vector<4x16xf32>
    %610 = arith.addf %394, %609 : vector<4x16xf32>
    %611 = arith.addf %610, %601 : vector<4x16xf32>
    %612 = vector.broadcast %342 : f32 to vector<4x16xf32>
    %613 = arith.mulf %612, %611 : vector<4x16xf32>
    %cst_135 = arith.constant 1.250000e-01 : f32
    %614 = vector.broadcast %cst_135 : f32 to vector<4x16xf32>
    %615 = arith.mulf %613, %614 : vector<4x16xf32>
    %616 = arith.addf %306, %615 : vector<4x16xf32>
    %617 = arith.addf %438, %510 : vector<4x16xf32>
    %cst_136 = arith.constant 3.000000e+00 : f32
    %618 = vector.broadcast %cst_136 : f32 to vector<4x16xf32>
    %619 = arith.mulf %618, %617 : vector<4x16xf32>
    %620 = arith.addf %370, %619 : vector<4x16xf32>
    %621 = arith.addf %620, %577 : vector<4x16xf32>
    %622 = vector.broadcast %342 : f32 to vector<4x16xf32>
    %623 = arith.mulf %622, %621 : vector<4x16xf32>
    %cst_137 = arith.constant 1.250000e-01 : f32
    %624 = vector.broadcast %cst_137 : f32 to vector<4x16xf32>
    %625 = arith.mulf %623, %624 : vector<4x16xf32>
    %626 = arith.addf %316, %625 : vector<4x16xf32>
    %627 = arith.addf %467, %539 : vector<4x16xf32>
    %cst_138 = arith.constant 3.000000e+00 : f32
    %628 = vector.broadcast %cst_138 : f32 to vector<4x16xf32>
    %629 = arith.mulf %628, %627 : vector<4x16xf32>
    %630 = arith.addf %399, %629 : vector<4x16xf32>
    %631 = arith.addf %630, %606 : vector<4x16xf32>
    %632 = vector.broadcast %342 : f32 to vector<4x16xf32>
    %633 = arith.mulf %632, %631 : vector<4x16xf32>
    %cst_139 = arith.constant 1.250000e-01 : f32
    %634 = vector.broadcast %cst_139 : f32 to vector<4x16xf32>
    %635 = arith.mulf %633, %634 : vector<4x16xf32>
    %636 = arith.addf %326, %635 : vector<4x16xf32>
    %c2_140 = arith.constant 2 : index
    %c0_141 = arith.constant 0 : index
    %c0_142 = arith.constant 0 : index
    %637 = vector.load %arg16[%c2_140, %c0_141, %c0_142] : memref<8x4x16xf32, #tpu.memory_space<vmem>>, vector<1x4x16xf32>
    %638 = vector.shape_cast %637 : vector<1x4x16xf32> to vector<4x16xf32>
    %639 = vector.shape_cast %616 : vector<4x16xf32> to vector<1x4x16xf32>
    tpu.vector_store %arg16[%c2_140, %c0_141, %c0_142], %639 {strides = array<i32>} : memref<8x4x16xf32, #tpu.memory_space<vmem>>, vector<1x4x16xf32>,
    %c2_143 = arith.constant 2 : index
    %c0_144 = arith.constant 0 : index
    %c0_145 = arith.constant 0 : index
    %640 = vector.load %arg17[%c2_143, %c0_144, %c0_145] : memref<8x4x16xf32, #tpu.memory_space<vmem>>, vector<1x4x16xf32>
    %641 = vector.shape_cast %640 : vector<1x4x16xf32> to vector<4x16xf32>
    %642 = vector.shape_cast %626 : vector<4x16xf32> to vector<1x4x16xf32>
    tpu.vector_store %arg17[%c2_143, %c0_144, %c0_145], %642 {strides = array<i32>} : memref<8x4x16xf32, #tpu.memory_space<vmem>>, vector<1x4x16xf32>,
    %c2_146 = arith.constant 2 : index
    %c0_147 = arith.constant 0 : index
    %c0_148 = arith.constant 0 : index
    %643 = vector.load %arg18[%c2_146, %c0_147, %c0_148] : memref<8x4x16xf32, #tpu.memory_space<vmem>>, vector<1x4x16xf32>
    %644 = vector.shape_cast %643 : vector<1x4x16xf32> to vector<4x16xf32>
    %645 = vector.shape_cast %636 : vector<4x16xf32> to vector<1x4x16xf32>
    tpu.vector_store %arg18[%c2_146, %c0_147, %c0_148], %645 {strides = array<i32>} : memref<8x4x16xf32, #tpu.memory_space<vmem>>, vector<1x4x16xf32>,
    %cst_149 = arith.constant dense<0.000000e+00> : vector<4x2xf32>
    %646 = tpu.matmul %636, %4, %cst_149 {dimension_numbers = #tpu.dot_dimension_numbers<[1], [0], [0], [1], [0, 0, 1, 1], [], []>} : vector<4x16xf32>, vector<16x2xf32>, vector<4x2xf32> -> vector<4x2xf32>
    %647 = vector.broadcast %5 : vector<1x2xf32> to vector<4x2xf32>
    %648 = arith.addf %646, %647 : vector<4x2xf32>
    %c2_150 = arith.constant 2 : index
    %c0_151 = arith.constant 0 : index
    %c0_152 = arith.constant 0 : index
    %649 = vector.load %arg19[%c2_150, %c0_151, %c0_152] : memref<8x4x2xf32, #tpu.memory_space<vmem>>, vector<1x4x2xf32>
    %650 = vector.shape_cast %649 : vector<1x4x2xf32> to vector<4x2xf32>
    %651 = vector.shape_cast %648 : vector<4x2xf32> to vector<1x4x2xf32>
    tpu.vector_store %arg19[%c2_150, %c0_151, %c0_152], %651 {strides = array<i32>} : memref<8x4x2xf32, #tpu.memory_space<vmem>>, vector<1x4x2xf32>,
    %c3 = arith.constant 3 : index
    %652 = memref.load %arg1[%c3] : memref<8xf32, #tpu.memory_space<smem>>
    %c2_153 = arith.constant 2 : index
    %c0_154 = arith.constant 0 : index
    %c0_155 = arith.constant 0 : index
    %653 = vector.load %arg2[%c2_153, %c0_154, %c0_155] : memref<7x4x3xf32, #tpu.memory_space<vmem>>, vector<1x4x3xf32>
    %654 = vector.shape_cast %653 : vector<1x4x3xf32> to vector<4x3xf32>
    %c2_156 = arith.constant 2 : index
    %c0_157 = arith.constant 0 : index
    %c0_158 = arith.constant 0 : index
    %655 = vector.load %arg3[%c2_156, %c0_157, %c0_158] : memref<7x4x3xf32, #tpu.memory_space<vmem>>, vector<1x4x3xf32>
    %656 = vector.shape_cast %655 : vector<1x4x3xf32> to vector<4x3xf32>
    %c2_159 = arith.constant 2 : index
    %c0_160 = arith.constant 0 : index
    %c0_161 = arith.constant 0 : index
    %657 = vector.load %arg4[%c2_159, %c0_160, %c0_161] : memref<7x4x3xf32, #tpu.memory_space<vmem>>, vector<1x4x3xf32>
    %658 = vector.shape_cast %657 : vector<1x4x3xf32> to vector<4x3xf32>
    %cst_162 = arith.constant 2.000000e+00 : f32
    %659 = vector.broadcast %cst_162 : f32 to vector<4x3xf32>
    %660 = arith.mulf %659, %656 : vector<4x3xf32>
    %cst_163 = arith.constant 0.000000e+00 : f32
    %661 = vector.broadcast %cst_163 : f32 to vector<4x3xf32>
    %662 = arith.mulf %660, %661 : vector<4x3xf32>
    %663 = arith.addf %654, %662 : vector<4x3xf32>
    %cst_164 = arith.constant 3.000000e+00 : f32
    %664 = vector.broadcast %cst_164 : f32 to vector<4x3xf32>
    %665 = arith.mulf %664, %658 : vector<4x3xf32>
    %cst_165 = arith.constant 0.000000e+00 : f32
    %666 = vector.broadcast %cst_165 : f32 to vector<4x3xf32>
    %667 = arith.mulf %665, %666 : vector<4x3xf32>
    %668 = arith.addf %663, %667 : vector<4x3xf32>
    %669 = tpu.concatenate %616, %626, %636 in 0 : vector<4x16xf32>, vector<4x16xf32>, vector<4x16xf32> -> vector<12x16xf32>
    %cst_166 = arith.constant dense<0.000000e+00> : vector<12x96xf32>
    %670 = tpu.matmul %669, %6, %cst_166 {dimension_numbers = #tpu.dot_dimension_numbers<[1], [0], [0], [1], [0, 0, 1, 1], [], []>} : vector<12x16xf32>, vector<16x96xf32>, vector<12x96xf32> -> vector<12x96xf32>
    %671 = vector.broadcast %7 : vector<1x96xf32> to vector<12x96xf32>
    %672 = arith.addf %670, %671 : vector<12x96xf32>
    %cst_167 = arith.constant 0.000000e+00 : f32
    %673 = vector.broadcast %cst_167 : f32 to vector<12x96xf32>
    %674 = arith.maximumf %672, %673 : vector<12x96xf32>
    %cst_168 = arith.constant dense<0.000000e+00> : vector<12x112xf32>
    %675 = tpu.matmul %674, %8, %cst_168 {dimension_numbers = #tpu.dot_dimension_numbers<[1], [0], [0], [1], [0, 0, 1, 1], [], []>} : vector<12x96xf32>, vector<96x112xf32>, vector<12x112xf32> -> vector<12x112xf32>
    %676 = vector.broadcast %9 : vector<1x112xf32> to vector<12x112xf32>
    %677 = arith.addf %675, %676 : vector<12x112xf32>
    %678 = math.tanh %677 : vector<12x112xf32>
    %679 = vector.extract_strided_slice %678 {offsets = [0, 0], sizes = [4, 48], strides = [1, 1]} : vector<12x112xf32> to vector<4x48xf32>
    %680 = vector.extract_strided_slice %678 {offsets = [4, 48], sizes = [4, 16], strides = [1, 1]} : vector<12x112xf32> to vector<4x16xf32>
    %681 = vector.extract_strided_slice %678 {offsets = [8, 64], sizes = [4, 48], strides = [1, 1]} : vector<12x112xf32> to vector<4x48xf32>
    %682 = vector.extract_strided_slice %679 {offsets = [0, 0], sizes = [4, 16], strides = [1, 1]} : vector<4x48xf32> to vector<4x16xf32>
    %683 = vector.extract_strided_slice %668 {offsets = [0, 0], sizes = [4, 1], strides = [1, 1]} : vector<4x3xf32> to vector<4x1xf32>
    %684 = vector.broadcast %683 : vector<4x1xf32> to vector<4x16xf32>
    %685 = arith.mulf %682, %684 : vector<4x16xf32>
    %686 = vector.extract_strided_slice %681 {offsets = [0, 0], sizes = [4, 16], strides = [1, 1]} : vector<4x48xf32> to vector<4x16xf32>
    %687 = vector.extract_strided_slice %668 {offsets = [0, 0], sizes = [4, 1], strides = [1, 1]} : vector<4x3xf32> to vector<4x1xf32>
    %688 = vector.broadcast %687 : vector<4x1xf32> to vector<4x16xf32>
    %689 = arith.mulf %686, %688 : vector<4x16xf32>
    %690 = vector.extract_strided_slice %679 {offsets = [0, 16], sizes = [4, 16], strides = [1, 1]} : vector<4x48xf32> to vector<4x16xf32>
    %691 = vector.extract_strided_slice %668 {offsets = [0, 1], sizes = [4, 1], strides = [1, 1]} : vector<4x3xf32> to vector<4x1xf32>
    %692 = vector.broadcast %691 : vector<4x1xf32> to vector<4x16xf32>
    %693 = arith.mulf %690, %692 : vector<4x16xf32>
    %694 = arith.addf %685, %693 : vector<4x16xf32>
    %695 = vector.extract_strided_slice %681 {offsets = [0, 16], sizes = [4, 16], strides = [1, 1]} : vector<4x48xf32> to vector<4x16xf32>
    %696 = vector.extract_strided_slice %668 {offsets = [0, 1], sizes = [4, 1], strides = [1, 1]} : vector<4x3xf32> to vector<4x1xf32>
    %697 = vector.broadcast %696 : vector<4x1xf32> to vector<4x16xf32>
    %698 = arith.mulf %695, %697 : vector<4x16xf32>
    %699 = arith.addf %689, %698 : vector<4x16xf32>
    %700 = vector.extract_strided_slice %679 {offsets = [0, 32], sizes = [4, 16], strides = [1, 1]} : vector<4x48xf32> to vector<4x16xf32>
    %701 = vector.extract_strided_slice %668 {offsets = [0, 2], sizes = [4, 1], strides = [1, 1]} : vector<4x3xf32> to vector<4x1xf32>
    %702 = vector.broadcast %701 : vector<4x1xf32> to vector<4x16xf32>
    %703 = arith.mulf %700, %702 : vector<4x16xf32>
    %704 = arith.addf %694, %703 : vector<4x16xf32>
    %705 = vector.extract_strided_slice %681 {offsets = [0, 32], sizes = [4, 16], strides = [1, 1]} : vector<4x48xf32> to vector<4x16xf32>
    %706 = vector.extract_strided_slice %668 {offsets = [0, 2], sizes = [4, 1], strides = [1, 1]} : vector<4x3xf32> to vector<4x1xf32>
    %707 = vector.broadcast %706 : vector<4x1xf32> to vector<4x16xf32>
    %708 = arith.mulf %705, %707 : vector<4x16xf32>
    %709 = arith.addf %699, %708 : vector<4x16xf32>
    %710 = vector.broadcast %652 : f32 to vector<4x16xf32>
    %711 = arith.mulf %710, %704 : vector<4x16xf32>
    %cst_169 = arith.constant 3.000000e+00 : f32
    %712 = vector.broadcast %cst_169 : f32 to vector<4x16xf32>
    %713 = arith.divf %711, %712 : vector<4x16xf32>
    %714 = arith.addf %616, %713 : vector<4x16xf32>
    %715 = vector.broadcast %652 : f32 to vector<4x16xf32>
    %716 = arith.mulf %715, %680 : vector<4x16xf32>
    %cst_170 = arith.constant 3.000000e+00 : f32
    %717 = vector.broadcast %cst_170 : f32 to vector<4x16xf32>
    %718 = arith.divf %716, %717 : vector<4x16xf32>
    %719 = arith.addf %626, %718 : vector<4x16xf32>
    %720 = vector.broadcast %652 : f32 to vector<4x16xf32>
    %721 = arith.mulf %720, %709 : vector<4x16xf32>
    %cst_171 = arith.constant 3.000000e+00 : f32
    %722 = vector.broadcast %cst_171 : f32 to vector<4x16xf32>
    %723 = arith.divf %721, %722 : vector<4x16xf32>
    %724 = arith.addf %636, %723 : vector<4x16xf32>
    %cst_172 = arith.constant 3.000000e+00 : f32
    %725 = arith.divf %652, %cst_172 : f32
    %cst_173 = arith.constant 2.000000e+00 : f32
    %726 = vector.broadcast %cst_173 : f32 to vector<4x3xf32>
    %727 = arith.mulf %726, %656 : vector<4x3xf32>
    %728 = vector.broadcast %725 : f32 to vector<4x3xf32>
    %729 = arith.mulf %727, %728 : vector<4x3xf32>
    %730 = arith.addf %654, %729 : vector<4x3xf32>
    %cst_174 = arith.constant 3.000000e+00 : f32
    %731 = vector.broadcast %cst_174 : f32 to vector<4x3xf32>
    %732 = arith.mulf %731, %658 : vector<4x3xf32>
    %733 = arith.mulf %725, %725 : f32
    %734 = vector.broadcast %733 : f32 to vector<4x3xf32>
    %735 = arith.mulf %732, %734 : vector<4x3xf32>
    %736 = arith.addf %730, %735 : vector<4x3xf32>
    %737 = tpu.concatenate %714, %719, %724 in 0 : vector<4x16xf32>, vector<4x16xf32>, vector<4x16xf32> -> vector<12x16xf32>
    %cst_175 = arith.constant dense<0.000000e+00> : vector<12x96xf32>
    %738 = tpu.matmul %737, %6, %cst_175 {dimension_numbers = #tpu.dot_dimension_numbers<[1], [0], [0], [1], [0, 0, 1, 1], [], []>} : vector<12x16xf32>, vector<16x96xf32>, vector<12x96xf32> -> vector<12x96xf32>
    %739 = vector.broadcast %7 : vector<1x96xf32> to vector<12x96xf32>
    %740 = arith.addf %738, %739 : vector<12x96xf32>
    %cst_176 = arith.constant 0.000000e+00 : f32
    %741 = vector.broadcast %cst_176 : f32 to vector<12x96xf32>
    %742 = arith.maximumf %740, %741 : vector<12x96xf32>
    %cst_177 = arith.constant dense<0.000000e+00> : vector<12x112xf32>
    %743 = tpu.matmul %742, %8, %cst_177 {dimension_numbers = #tpu.dot_dimension_numbers<[1], [0], [0], [1], [0, 0, 1, 1], [], []>} : vector<12x96xf32>, vector<96x112xf32>, vector<12x112xf32> -> vector<12x112xf32>
    %744 = vector.broadcast %9 : vector<1x112xf32> to vector<12x112xf32>
    %745 = arith.addf %743, %744 : vector<12x112xf32>
    %746 = math.tanh %745 : vector<12x112xf32>
    %747 = vector.extract_strided_slice %746 {offsets = [0, 0], sizes = [4, 48], strides = [1, 1]} : vector<12x112xf32> to vector<4x48xf32>
    %748 = vector.extract_strided_slice %746 {offsets = [4, 48], sizes = [4, 16], strides = [1, 1]} : vector<12x112xf32> to vector<4x16xf32>
    %749 = vector.extract_strided_slice %746 {offsets = [8, 64], sizes = [4, 48], strides = [1, 1]} : vector<12x112xf32> to vector<4x48xf32>
    %750 = vector.extract_strided_slice %747 {offsets = [0, 0], sizes = [4, 16], strides = [1, 1]} : vector<4x48xf32> to vector<4x16xf32>
    %751 = vector.extract_strided_slice %736 {offsets = [0, 0], sizes = [4, 1], strides = [1, 1]} : vector<4x3xf32> to vector<4x1xf32>
    %752 = vector.broadcast %751 : vector<4x1xf32> to vector<4x16xf32>
    %753 = arith.mulf %750, %752 : vector<4x16xf32>
    %754 = vector.extract_strided_slice %749 {offsets = [0, 0], sizes = [4, 16], strides = [1, 1]} : vector<4x48xf32> to vector<4x16xf32>
    %755 = vector.extract_strided_slice %736 {offsets = [0, 0], sizes = [4, 1], strides = [1, 1]} : vector<4x3xf32> to vector<4x1xf32>
    %756 = vector.broadcast %755 : vector<4x1xf32> to vector<4x16xf32>
    %757 = arith.mulf %754, %756 : vector<4x16xf32>
    %758 = vector.extract_strided_slice %747 {offsets = [0, 16], sizes = [4, 16], strides = [1, 1]} : vector<4x48xf32> to vector<4x16xf32>
    %759 = vector.extract_strided_slice %736 {offsets = [0, 1], sizes = [4, 1], strides = [1, 1]} : vector<4x3xf32> to vector<4x1xf32>
    %760 = vector.broadcast %759 : vector<4x1xf32> to vector<4x16xf32>
    %761 = arith.mulf %758, %760 : vector<4x16xf32>
    %762 = arith.addf %753, %761 : vector<4x16xf32>
    %763 = vector.extract_strided_slice %749 {offsets = [0, 16], sizes = [4, 16], strides = [1, 1]} : vector<4x48xf32> to vector<4x16xf32>
    %764 = vector.extract_strided_slice %736 {offsets = [0, 1], sizes = [4, 1], strides = [1, 1]} : vector<4x3xf32> to vector<4x1xf32>
    %765 = vector.broadcast %764 : vector<4x1xf32> to vector<4x16xf32>
    %766 = arith.mulf %763, %765 : vector<4x16xf32>
    %767 = arith.addf %757, %766 : vector<4x16xf32>
    %768 = vector.extract_strided_slice %747 {offsets = [0, 32], sizes = [4, 16], strides = [1, 1]} : vector<4x48xf32> to vector<4x16xf32>
    %769 = vector.extract_strided_slice %736 {offsets = [0, 2], sizes = [4, 1], strides = [1, 1]} : vector<4x3xf32> to vector<4x1xf32>
    %770 = vector.broadcast %769 : vector<4x1xf32> to vector<4x16xf32>
    %771 = arith.mulf %768, %770 : vector<4x16xf32>
    %772 = arith.addf %762, %771 : vector<4x16xf32>
    %773 = vector.extract_strided_slice %749 {offsets = [0, 32], sizes = [4, 16], strides = [1, 1]} : vector<4x48xf32> to vector<4x16xf32>
    %774 = vector.extract_strided_slice %736 {offsets = [0, 2], sizes = [4, 1], strides = [1, 1]} : vector<4x3xf32> to vector<4x1xf32>
    %775 = vector.broadcast %774 : vector<4x1xf32> to vector<4x16xf32>
    %776 = arith.mulf %773, %775 : vector<4x16xf32>
    %777 = arith.addf %767, %776 : vector<4x16xf32>
    %cst_178 = arith.constant 3.000000e+00 : f32
    %778 = vector.broadcast %cst_178 : f32 to vector<4x16xf32>
    %779 = arith.divf %704, %778 : vector<4x16xf32>
    %780 = arith.subf %772, %779 : vector<4x16xf32>
    %781 = vector.broadcast %652 : f32 to vector<4x16xf32>
    %782 = arith.mulf %781, %780 : vector<4x16xf32>
    %783 = arith.addf %616, %782 : vector<4x16xf32>
    %cst_179 = arith.constant 3.000000e+00 : f32
    %784 = vector.broadcast %cst_179 : f32 to vector<4x16xf32>
    %785 = arith.divf %680, %784 : vector<4x16xf32>
    %786 = arith.subf %748, %785 : vector<4x16xf32>
    %787 = vector.broadcast %652 : f32 to vector<4x16xf32>
    %788 = arith.mulf %787, %786 : vector<4x16xf32>
    %789 = arith.addf %626, %788 : vector<4x16xf32>
    %cst_180 = arith.constant 3.000000e+00 : f32
    %790 = vector.broadcast %cst_180 : f32 to vector<4x16xf32>
    %791 = arith.divf %709, %790 : vector<4x16xf32>
    %792 = arith.subf %777, %791 : vector<4x16xf32>
    %793 = vector.broadcast %652 : f32 to vector<4x16xf32>
    %794 = arith.mulf %793, %792 : vector<4x16xf32>
    %795 = arith.addf %636, %794 : vector<4x16xf32>
    %cst_181 = arith.constant 2.000000e+00 : f32
    %796 = arith.mulf %cst_181, %652 : f32
    %cst_182 = arith.constant 3.000000e+00 : f32
    %797 = arith.divf %796, %cst_182 : f32
    %cst_183 = arith.constant 2.000000e+00 : f32
    %798 = vector.broadcast %cst_183 : f32 to vector<4x3xf32>
    %799 = arith.mulf %798, %656 : vector<4x3xf32>
    %800 = vector.broadcast %797 : f32 to vector<4x3xf32>
    %801 = arith.mulf %799, %800 : vector<4x3xf32>
    %802 = arith.addf %654, %801 : vector<4x3xf32>
    %cst_184 = arith.constant 3.000000e+00 : f32
    %803 = vector.broadcast %cst_184 : f32 to vector<4x3xf32>
    %804 = arith.mulf %803, %658 : vector<4x3xf32>
    %805 = arith.mulf %797, %797 : f32
    %806 = vector.broadcast %805 : f32 to vector<4x3xf32>
    %807 = arith.mulf %804, %806 : vector<4x3xf32>
    %808 = arith.addf %802, %807 : vector<4x3xf32>
    %809 = tpu.concatenate %783, %789, %795 in 0 : vector<4x16xf32>, vector<4x16xf32>, vector<4x16xf32> -> vector<12x16xf32>
    %cst_185 = arith.constant dense<0.000000e+00> : vector<12x96xf32>
    %810 = tpu.matmul %809, %6, %cst_185 {dimension_numbers = #tpu.dot_dimension_numbers<[1], [0], [0], [1], [0, 0, 1, 1], [], []>} : vector<12x16xf32>, vector<16x96xf32>, vector<12x96xf32> -> vector<12x96xf32>
    %811 = vector.broadcast %7 : vector<1x96xf32> to vector<12x96xf32>
    %812 = arith.addf %810, %811 : vector<12x96xf32>
    %cst_186 = arith.constant 0.000000e+00 : f32
    %813 = vector.broadcast %cst_186 : f32 to vector<12x96xf32>
    %814 = arith.maximumf %812, %813 : vector<12x96xf32>
    %cst_187 = arith.constant dense<0.000000e+00> : vector<12x112xf32>
    %815 = tpu.matmul %814, %8, %cst_187 {dimension_numbers = #tpu.dot_dimension_numbers<[1], [0], [0], [1], [0, 0, 1, 1], [], []>} : vector<12x96xf32>, vector<96x112xf32>, vector<12x112xf32> -> vector<12x112xf32>
    %816 = vector.broadcast %9 : vector<1x112xf32> to vector<12x112xf32>
    %817 = arith.addf %815, %816 : vector<12x112xf32>
    %818 = math.tanh %817 : vector<12x112xf32>
    %819 = vector.extract_strided_slice %818 {offsets = [0, 0], sizes = [4, 48], strides = [1, 1]} : vector<12x112xf32> to vector<4x48xf32>
    %820 = vector.extract_strided_slice %818 {offsets = [4, 48], sizes = [4, 16], strides = [1, 1]} : vector<12x112xf32> to vector<4x16xf32>
    %821 = vector.extract_strided_slice %818 {offsets = [8, 64], sizes = [4, 48], strides = [1, 1]} : vector<12x112xf32> to vector<4x48xf32>
    %822 = vector.extract_strided_slice %819 {offsets = [0, 0], sizes = [4, 16], strides = [1, 1]} : vector<4x48xf32> to vector<4x16xf32>
    %823 = vector.extract_strided_slice %808 {offsets = [0, 0], sizes = [4, 1], strides = [1, 1]} : vector<4x3xf32> to vector<4x1xf32>
    %824 = vector.broadcast %823 : vector<4x1xf32> to vector<4x16xf32>
    %825 = arith.mulf %822, %824 : vector<4x16xf32>
    %826 = vector.extract_strided_slice %821 {offsets = [0, 0], sizes = [4, 16], strides = [1, 1]} : vector<4x48xf32> to vector<4x16xf32>
    %827 = vector.extract_strided_slice %808 {offsets = [0, 0], sizes = [4, 1], strides = [1, 1]} : vector<4x3xf32> to vector<4x1xf32>
    %828 = vector.broadcast %827 : vector<4x1xf32> to vector<4x16xf32>
    %829 = arith.mulf %826, %828 : vector<4x16xf32>
    %830 = vector.extract_strided_slice %819 {offsets = [0, 16], sizes = [4, 16], strides = [1, 1]} : vector<4x48xf32> to vector<4x16xf32>
    %831 = vector.extract_strided_slice %808 {offsets = [0, 1], sizes = [4, 1], strides = [1, 1]} : vector<4x3xf32> to vector<4x1xf32>
    %832 = vector.broadcast %831 : vector<4x1xf32> to vector<4x16xf32>
    %833 = arith.mulf %830, %832 : vector<4x16xf32>
    %834 = arith.addf %825, %833 : vector<4x16xf32>
    %835 = vector.extract_strided_slice %821 {offsets = [0, 16], sizes = [4, 16], strides = [1, 1]} : vector<4x48xf32> to vector<4x16xf32>
    %836 = vector.extract_strided_slice %808 {offsets = [0, 1], sizes = [4, 1], strides = [1, 1]} : vector<4x3xf32> to vector<4x1xf32>
    %837 = vector.broadcast %836 : vector<4x1xf32> to vector<4x16xf32>
    %838 = arith.mulf %835, %837 : vector<4x16xf32>
    %839 = arith.addf %829, %838 : vector<4x16xf32>
    %840 = vector.extract_strided_slice %819 {offsets = [0, 32], sizes = [4, 16], strides = [1, 1]} : vector<4x48xf32> to vector<4x16xf32>
    %841 = vector.extract_strided_slice %808 {offsets = [0, 2], sizes = [4, 1], strides = [1, 1]} : vector<4x3xf32> to vector<4x1xf32>
    %842 = vector.broadcast %841 : vector<4x1xf32> to vector<4x16xf32>
    %843 = arith.mulf %840, %842 : vector<4x16xf32>
    %844 = arith.addf %834, %843 : vector<4x16xf32>
    %845 = vector.extract_strided_slice %821 {offsets = [0, 32], sizes = [4, 16], strides = [1, 1]} : vector<4x48xf32> to vector<4x16xf32>
    %846 = vector.extract_strided_slice %808 {offsets = [0, 2], sizes = [4, 1], strides = [1, 1]} : vector<4x3xf32> to vector<4x1xf32>
    %847 = vector.broadcast %846 : vector<4x1xf32> to vector<4x16xf32>
    %848 = arith.mulf %845, %847 : vector<4x16xf32>
    %849 = arith.addf %839, %848 : vector<4x16xf32>
    %850 = arith.subf %704, %772 : vector<4x16xf32>
    %851 = arith.addf %850, %844 : vector<4x16xf32>
    %852 = vector.broadcast %652 : f32 to vector<4x16xf32>
    %853 = arith.mulf %852, %851 : vector<4x16xf32>
    %854 = arith.addf %616, %853 : vector<4x16xf32>
    %855 = arith.subf %680, %748 : vector<4x16xf32>
    %856 = arith.addf %855, %820 : vector<4x16xf32>
    %857 = vector.broadcast %652 : f32 to vector<4x16xf32>
    %858 = arith.mulf %857, %856 : vector<4x16xf32>
    %859 = arith.addf %626, %858 : vector<4x16xf32>
    %860 = arith.subf %709, %777 : vector<4x16xf32>
    %861 = arith.addf %860, %849 : vector<4x16xf32>
    %862 = vector.broadcast %652 : f32 to vector<4x16xf32>
    %863 = arith.mulf %862, %861 : vector<4x16xf32>
    %864 = arith.addf %636, %863 : vector<4x16xf32>
    %cst_188 = arith.constant 2.000000e+00 : f32
    %865 = vector.broadcast %cst_188 : f32 to vector<4x3xf32>
    %866 = arith.mulf %865, %656 : vector<4x3xf32>
    %867 = vector.broadcast %652 : f32 to vector<4x3xf32>
    %868 = arith.mulf %866, %867 : vector<4x3xf32>
    %869 = arith.addf %654, %868 : vector<4x3xf32>
    %cst_189 = arith.constant 3.000000e+00 : f32
    %870 = vector.broadcast %cst_189 : f32 to vector<4x3xf32>
    %871 = arith.mulf %870, %658 : vector<4x3xf32>
    %872 = arith.mulf %652, %652 : f32
    %873 = vector.broadcast %872 : f32 to vector<4x3xf32>
    %874 = arith.mulf %871, %873 : vector<4x3xf32>
    %875 = arith.addf %869, %874 : vector<4x3xf32>
    %876 = tpu.concatenate %854, %859, %864 in 0 : vector<4x16xf32>, vector<4x16xf32>, vector<4x16xf32> -> vector<12x16xf32>
    %cst_190 = arith.constant dense<0.000000e+00> : vector<12x96xf32>
    %877 = tpu.matmul %876, %6, %cst_190 {dimension_numbers = #tpu.dot_dimension_numbers<[1], [0], [0], [1], [0, 0, 1, 1], [], []>} : vector<12x16xf32>, vector<16x96xf32>, vector<12x96xf32> -> vector<12x96xf32>
    %878 = vector.broadcast %7 : vector<1x96xf32> to vector<12x96xf32>
    %879 = arith.addf %877, %878 : vector<12x96xf32>
    %cst_191 = arith.constant 0.000000e+00 : f32
    %880 = vector.broadcast %cst_191 : f32 to vector<12x96xf32>
    %881 = arith.maximumf %879, %880 : vector<12x96xf32>
    %cst_192 = arith.constant dense<0.000000e+00> : vector<12x112xf32>
    %882 = tpu.matmul %881, %8, %cst_192 {dimension_numbers = #tpu.dot_dimension_numbers<[1], [0], [0], [1], [0, 0, 1, 1], [], []>} : vector<12x96xf32>, vector<96x112xf32>, vector<12x112xf32> -> vector<12x112xf32>
    %883 = vector.broadcast %9 : vector<1x112xf32> to vector<12x112xf32>
    %884 = arith.addf %882, %883 : vector<12x112xf32>
    %885 = math.tanh %884 : vector<12x112xf32>
    %886 = vector.extract_strided_slice %885 {offsets = [0, 0], sizes = [4, 48], strides = [1, 1]} : vector<12x112xf32> to vector<4x48xf32>
    %887 = vector.extract_strided_slice %885 {offsets = [4, 48], sizes = [4, 16], strides = [1, 1]} : vector<12x112xf32> to vector<4x16xf32>
    %888 = vector.extract_strided_slice %885 {offsets = [8, 64], sizes = [4, 48], strides = [1, 1]} : vector<12x112xf32> to vector<4x48xf32>
    %889 = vector.extract_strided_slice %886 {offsets = [0, 0], sizes = [4, 16], strides = [1, 1]} : vector<4x48xf32> to vector<4x16xf32>
    %890 = vector.extract_strided_slice %875 {offsets = [0, 0], sizes = [4, 1], strides = [1, 1]} : vector<4x3xf32> to vector<4x1xf32>
    %891 = vector.broadcast %890 : vector<4x1xf32> to vector<4x16xf32>
    %892 = arith.mulf %889, %891 : vector<4x16xf32>
    %893 = vector.extract_strided_slice %888 {offsets = [0, 0], sizes = [4, 16], strides = [1, 1]} : vector<4x48xf32> to vector<4x16xf32>
    %894 = vector.extract_strided_slice %875 {offsets = [0, 0], sizes = [4, 1], strides = [1, 1]} : vector<4x3xf32> to vector<4x1xf32>
    %895 = vector.broadcast %894 : vector<4x1xf32> to vector<4x16xf32>
    %896 = arith.mulf %893, %895 : vector<4x16xf32>
    %897 = vector.extract_strided_slice %886 {offsets = [0, 16], sizes = [4, 16], strides = [1, 1]} : vector<4x48xf32> to vector<4x16xf32>
    %898 = vector.extract_strided_slice %875 {offsets = [0, 1], sizes = [4, 1], strides = [1, 1]} : vector<4x3xf32> to vector<4x1xf32>
    %899 = vector.broadcast %898 : vector<4x1xf32> to vector<4x16xf32>
    %900 = arith.mulf %897, %899 : vector<4x16xf32>
    %901 = arith.addf %892, %900 : vector<4x16xf32>
    %902 = vector.extract_strided_slice %888 {offsets = [0, 16], sizes = [4, 16], strides = [1, 1]} : vector<4x48xf32> to vector<4x16xf32>
    %903 = vector.extract_strided_slice %875 {offsets = [0, 1], sizes = [4, 1], strides = [1, 1]} : vector<4x3xf32> to vector<4x1xf32>
    %904 = vector.broadcast %903 : vector<4x1xf32> to vector<4x16xf32>
    %905 = arith.mulf %902, %904 : vector<4x16xf32>
    %906 = arith.addf %896, %905 : vector<4x16xf32>
    %907 = vector.extract_strided_slice %886 {offsets = [0, 32], sizes = [4, 16], strides = [1, 1]} : vector<4x48xf32> to vector<4x16xf32>
    %908 = vector.extract_strided_slice %875 {offsets = [0, 2], sizes = [4, 1], strides = [1, 1]} : vector<4x3xf32> to vector<4x1xf32>
    %909 = vector.broadcast %908 : vector<4x1xf32> to vector<4x16xf32>
    %910 = arith.mulf %907, %909 : vector<4x16xf32>
    %911 = arith.addf %901, %910 : vector<4x16xf32>
    %912 = vector.extract_strided_slice %888 {offsets = [0, 32], sizes = [4, 16], strides = [1, 1]} : vector<4x48xf32> to vector<4x16xf32>
    %913 = vector.extract_strided_slice %875 {offsets = [0, 2], sizes = [4, 1], strides = [1, 1]} : vector<4x3xf32> to vector<4x1xf32>
    %914 = vector.broadcast %913 : vector<4x1xf32> to vector<4x16xf32>
    %915 = arith.mulf %912, %914 : vector<4x16xf32>
    %916 = arith.addf %906, %915 : vector<4x16xf32>
    %917 = arith.addf %772, %844 : vector<4x16xf32>
    %cst_193 = arith.constant 3.000000e+00 : f32
    %918 = vector.broadcast %cst_193 : f32 to vector<4x16xf32>
    %919 = arith.mulf %918, %917 : vector<4x16xf32>
    %920 = arith.addf %704, %919 : vector<4x16xf32>
    %921 = arith.addf %920, %911 : vector<4x16xf32>
    %922 = vector.broadcast %652 : f32 to vector<4x16xf32>
    %923 = arith.mulf %922, %921 : vector<4x16xf32>
    %cst_194 = arith.constant 1.250000e-01 : f32
    %924 = vector.broadcast %cst_194 : f32 to vector<4x16xf32>
    %925 = arith.mulf %923, %924 : vector<4x16xf32>
    %926 = arith.addf %616, %925 : vector<4x16xf32>
    %927 = arith.addf %748, %820 : vector<4x16xf32>
    %cst_195 = arith.constant 3.000000e+00 : f32
    %928 = vector.broadcast %cst_195 : f32 to vector<4x16xf32>
    %929 = arith.mulf %928, %927 : vector<4x16xf32>
    %930 = arith.addf %680, %929 : vector<4x16xf32>
    %931 = arith.addf %930, %887 : vector<4x16xf32>
    %932 = vector.broadcast %652 : f32 to vector<4x16xf32>
    %933 = arith.mulf %932, %931 : vector<4x16xf32>
    %cst_196 = arith.constant 1.250000e-01 : f32
    %934 = vector.broadcast %cst_196 : f32 to vector<4x16xf32>
    %935 = arith.mulf %933, %934 : vector<4x16xf32>
    %936 = arith.addf %626, %935 : vector<4x16xf32>
    %937 = arith.addf %777, %849 : vector<4x16xf32>
    %cst_197 = arith.constant 3.000000e+00 : f32
    %938 = vector.broadcast %cst_197 : f32 to vector<4x16xf32>
    %939 = arith.mulf %938, %937 : vector<4x16xf32>
    %940 = arith.addf %709, %939 : vector<4x16xf32>
    %941 = arith.addf %940, %916 : vector<4x16xf32>
    %942 = vector.broadcast %652 : f32 to vector<4x16xf32>
    %943 = arith.mulf %942, %941 : vector<4x16xf32>
    %cst_198 = arith.constant 1.250000e-01 : f32
    %944 = vector.broadcast %cst_198 : f32 to vector<4x16xf32>
    %945 = arith.mulf %943, %944 : vector<4x16xf32>
    %946 = arith.addf %636, %945 : vector<4x16xf32>
    %c3_199 = arith.constant 3 : index
    %c0_200 = arith.constant 0 : index
    %c0_201 = arith.constant 0 : index
    %947 = vector.load %arg16[%c3_199, %c0_200, %c0_201] : memref<8x4x16xf32, #tpu.memory_space<vmem>>, vector<1x4x16xf32>
    %948 = vector.shape_cast %947 : vector<1x4x16xf32> to vector<4x16xf32>
    %949 = vector.shape_cast %926 : vector<4x16xf32> to vector<1x4x16xf32>
    tpu.vector_store %arg16[%c3_199, %c0_200, %c0_201], %949 {strides = array<i32>} : memref<8x4x16xf32, #tpu.memory_space<vmem>>, vector<1x4x16xf32>,
    %c3_202 = arith.constant 3 : index
    %c0_203 = arith.constant 0 : index
    %c0_204 = arith.constant 0 : index
    %950 = vector.load %arg17[%c3_202, %c0_203, %c0_204] : memref<8x4x16xf32, #tpu.memory_space<vmem>>, vector<1x4x16xf32>
    %951 = vector.shape_cast %950 : vector<1x4x16xf32> to vector<4x16xf32>
    %952 = vector.shape_cast %936 : vector<4x16xf32> to vector<1x4x16xf32>
    tpu.vector_store %arg17[%c3_202, %c0_203, %c0_204], %952 {strides = array<i32>} : memref<8x4x16xf32, #tpu.memory_space<vmem>>, vector<1x4x16xf32>,
    %c3_205 = arith.constant 3 : index
    %c0_206 = arith.constant 0 : index
    %c0_207 = arith.constant 0 : index
    %953 = vector.load %arg18[%c3_205, %c0_206, %c0_207] : memref<8x4x16xf32, #tpu.memory_space<vmem>>, vector<1x4x16xf32>
    %954 = vector.shape_cast %953 : vector<1x4x16xf32> to vector<4x16xf32>
    %955 = vector.shape_cast %946 : vector<4x16xf32> to vector<1x4x16xf32>
    tpu.vector_store %arg18[%c3_205, %c0_206, %c0_207], %955 {strides = array<i32>} : memref<8x4x16xf32, #tpu.memory_space<vmem>>, vector<1x4x16xf32>,
    %cst_208 = arith.constant dense<0.000000e+00> : vector<4x2xf32>
    %956 = tpu.matmul %946, %4, %cst_208 {dimension_numbers = #tpu.dot_dimension_numbers<[1], [0], [0], [1], [0, 0, 1, 1], [], []>} : vector<4x16xf32>, vector<16x2xf32>, vector<4x2xf32> -> vector<4x2xf32>
    %957 = vector.broadcast %5 : vector<1x2xf32> to vector<4x2xf32>
    %958 = arith.addf %956, %957 : vector<4x2xf32>
    %c3_209 = arith.constant 3 : index
    %c0_210 = arith.constant 0 : index
    %c0_211 = arith.constant 0 : index
    %959 = vector.load %arg19[%c3_209, %c0_210, %c0_211] : memref<8x4x2xf32, #tpu.memory_space<vmem>>, vector<1x4x2xf32>
    %960 = vector.shape_cast %959 : vector<1x4x2xf32> to vector<4x2xf32>
    %961 = vector.shape_cast %958 : vector<4x2xf32> to vector<1x4x2xf32>
    tpu.vector_store %arg19[%c3_209, %c0_210, %c0_211], %961 {strides = array<i32>} : memref<8x4x2xf32, #tpu.memory_space<vmem>>, vector<1x4x2xf32>,
    %c4 = arith.constant 4 : index
    %962 = memref.load %arg1[%c4] : memref<8xf32, #tpu.memory_space<smem>>
    %c3_212 = arith.constant 3 : index
    %c0_213 = arith.constant 0 : index
    %c0_214 = arith.constant 0 : index
    %963 = vector.load %arg2[%c3_212, %c0_213, %c0_214] : memref<7x4x3xf32, #tpu.memory_space<vmem>>, vector<1x4x3xf32>
    %964 = vector.shape_cast %963 : vector<1x4x3xf32> to vector<4x3xf32>
    %c3_215 = arith.constant 3 : index
    %c0_216 = arith.constant 0 : index
    %c0_217 = arith.constant 0 : index
    %965 = vector.load %arg3[%c3_215, %c0_216, %c0_217] : memref<7x4x3xf32, #tpu.memory_space<vmem>>, vector<1x4x3xf32>
    %966 = vector.shape_cast %965 : vector<1x4x3xf32> to vector<4x3xf32>
    %c3_218 = arith.constant 3 : index
    %c0_219 = arith.constant 0 : index
    %c0_220 = arith.constant 0 : index
    %967 = vector.load %arg4[%c3_218, %c0_219, %c0_220] : memref<7x4x3xf32, #tpu.memory_space<vmem>>, vector<1x4x3xf32>
    %968 = vector.shape_cast %967 : vector<1x4x3xf32> to vector<4x3xf32>
    %cst_221 = arith.constant 2.000000e+00 : f32
    %969 = vector.broadcast %cst_221 : f32 to vector<4x3xf32>
    %970 = arith.mulf %969, %966 : vector<4x3xf32>
    %cst_222 = arith.constant 0.000000e+00 : f32
    %971 = vector.broadcast %cst_222 : f32 to vector<4x3xf32>
    %972 = arith.mulf %970, %971 : vector<4x3xf32>
    %973 = arith.addf %964, %972 : vector<4x3xf32>
    %cst_223 = arith.constant 3.000000e+00 : f32
    %974 = vector.broadcast %cst_223 : f32 to vector<4x3xf32>
    %975 = arith.mulf %974, %968 : vector<4x3xf32>
    %cst_224 = arith.constant 0.000000e+00 : f32
    %976 = vector.broadcast %cst_224 : f32 to vector<4x3xf32>
    %977 = arith.mulf %975, %976 : vector<4x3xf32>
    %978 = arith.addf %973, %977 : vector<4x3xf32>
    %979 = tpu.concatenate %926, %936, %946 in 0 : vector<4x16xf32>, vector<4x16xf32>, vector<4x16xf32> -> vector<12x16xf32>
    %cst_225 = arith.constant dense<0.000000e+00> : vector<12x96xf32>
    %980 = tpu.matmul %979, %6, %cst_225 {dimension_numbers = #tpu.dot_dimension_numbers<[1], [0], [0], [1], [0, 0, 1, 1], [], []>} : vector<12x16xf32>, vector<16x96xf32>, vector<12x96xf32> -> vector<12x96xf32>
    %981 = vector.broadcast %7 : vector<1x96xf32> to vector<12x96xf32>
    %982 = arith.addf %980, %981 : vector<12x96xf32>
    %cst_226 = arith.constant 0.000000e+00 : f32
    %983 = vector.broadcast %cst_226 : f32 to vector<12x96xf32>
    %984 = arith.maximumf %982, %983 : vector<12x96xf32>
    %cst_227 = arith.constant dense<0.000000e+00> : vector<12x112xf32>
    %985 = tpu.matmul %984, %8, %cst_227 {dimension_numbers = #tpu.dot_dimension_numbers<[1], [0], [0], [1], [0, 0, 1, 1], [], []>} : vector<12x96xf32>, vector<96x112xf32>, vector<12x112xf32> -> vector<12x112xf32>
    %986 = vector.broadcast %9 : vector<1x112xf32> to vector<12x112xf32>
    %987 = arith.addf %985, %986 : vector<12x112xf32>
    %988 = math.tanh %987 : vector<12x112xf32>
    %989 = vector.extract_strided_slice %988 {offsets = [0, 0], sizes = [4, 48], strides = [1, 1]} : vector<12x112xf32> to vector<4x48xf32>
    %990 = vector.extract_strided_slice %988 {offsets = [4, 48], sizes = [4, 16], strides = [1, 1]} : vector<12x112xf32> to vector<4x16xf32>
    %991 = vector.extract_strided_slice %988 {offsets = [8, 64], sizes = [4, 48], strides = [1, 1]} : vector<12x112xf32> to vector<4x48xf32>
    %992 = vector.extract_strided_slice %989 {offsets = [0, 0], sizes = [4, 16], strides = [1, 1]} : vector<4x48xf32> to vector<4x16xf32>
    %993 = vector.extract_strided_slice %978 {offsets = [0, 0], sizes = [4, 1], strides = [1, 1]} : vector<4x3xf32> to vector<4x1xf32>
    %994 = vector.broadcast %993 : vector<4x1xf32> to vector<4x16xf32>
    %995 = arith.mulf %992, %994 : vector<4x16xf32>
    %996 = vector.extract_strided_slice %991 {offsets = [0, 0], sizes = [4, 16], strides = [1, 1]} : vector<4x48xf32> to vector<4x16xf32>
    %997 = vector.extract_strided_slice %978 {offsets = [0, 0], sizes = [4, 1], strides = [1, 1]} : vector<4x3xf32> to vector<4x1xf32>
    %998 = vector.broadcast %997 : vector<4x1xf32> to vector<4x16xf32>
    %999 = arith.mulf %996, %998 : vector<4x16xf32>
    %1000 = vector.extract_strided_slice %989 {offsets = [0, 16], sizes = [4, 16], strides = [1, 1]} : vector<4x48xf32> to vector<4x16xf32>
    %1001 = vector.extract_strided_slice %978 {offsets = [0, 1], sizes = [4, 1], strides = [1, 1]} : vector<4x3xf32> to vector<4x1xf32>
    %1002 = vector.broadcast %1001 : vector<4x1xf32> to vector<4x16xf32>
    %1003 = arith.mulf %1000, %1002 : vector<4x16xf32>
    %1004 = arith.addf %995, %1003 : vector<4x16xf32>
    %1005 = vector.extract_strided_slice %991 {offsets = [0, 16], sizes = [4, 16], strides = [1, 1]} : vector<4x48xf32> to vector<4x16xf32>
    %1006 = vector.extract_strided_slice %978 {offsets = [0, 1], sizes = [4, 1], strides = [1, 1]} : vector<4x3xf32> to vector<4x1xf32>
    %1007 = vector.broadcast %1006 : vector<4x1xf32> to vector<4x16xf32>
    %1008 = arith.mulf %1005, %1007 : vector<4x16xf32>
    %1009 = arith.addf %999, %1008 : vector<4x16xf32>
    %1010 = vector.extract_strided_slice %989 {offsets = [0, 32], sizes = [4, 16], strides = [1, 1]} : vector<4x48xf32> to vector<4x16xf32>
    %1011 = vector.extract_strided_slice %978 {offsets = [0, 2], sizes = [4, 1], strides = [1, 1]} : vector<4x3xf32> to vector<4x1xf32>
    %1012 = vector.broadcast %1011 : vector<4x1xf32> to vector<4x16xf32>
    %1013 = arith.mulf %1010, %1012 : vector<4x16xf32>
    %1014 = arith.addf %1004, %1013 : vector<4x16xf32>
    %1015 = vector.extract_strided_slice %991 {offsets = [0, 32], sizes = [4, 16], strides = [1, 1]} : vector<4x48xf32> to vector<4x16xf32>
    %1016 = vector.extract_strided_slice %978 {offsets = [0, 2], sizes = [4, 1], strides = [1, 1]} : vector<4x3xf32> to vector<4x1xf32>
    %1017 = vector.broadcast %1016 : vector<4x1xf32> to vector<4x16xf32>
    %1018 = arith.mulf %1015, %1017 : vector<4x16xf32>
    %1019 = arith.addf %1009, %1018 : vector<4x16xf32>
    %1020 = vector.broadcast %962 : f32 to vector<4x16xf32>
    %1021 = arith.mulf %1020, %1014 : vector<4x16xf32>
    %cst_228 = arith.constant 3.000000e+00 : f32
    %1022 = vector.broadcast %cst_228 : f32 to vector<4x16xf32>
    %1023 = arith.divf %1021, %1022 : vector<4x16xf32>
    %1024 = arith.addf %926, %1023 : vector<4x16xf32>
    %1025 = vector.broadcast %962 : f32 to vector<4x16xf32>
    %1026 = arith.mulf %1025, %990 : vector<4x16xf32>
    %cst_229 = arith.constant 3.000000e+00 : f32
    %1027 = vector.broadcast %cst_229 : f32 to vector<4x16xf32>
    %1028 = arith.divf %1026, %1027 : vector<4x16xf32>
    %1029 = arith.addf %936, %1028 : vector<4x16xf32>
    %1030 = vector.broadcast %962 : f32 to vector<4x16xf32>
    %1031 = arith.mulf %1030, %1019 : vector<4x16xf32>
    %cst_230 = arith.constant 3.000000e+00 : f32
    %1032 = vector.broadcast %cst_230 : f32 to vector<4x16xf32>
    %1033 = arith.divf %1031, %1032 : vector<4x16xf32>
    %1034 = arith.addf %946, %1033 : vector<4x16xf32>
    %cst_231 = arith.constant 3.000000e+00 : f32
    %1035 = arith.divf %962, %cst_231 : f32
    %cst_232 = arith.constant 2.000000e+00 : f32
    %1036 = vector.broadcast %cst_232 : f32 to vector<4x3xf32>
    %1037 = arith.mulf %1036, %966 : vector<4x3xf32>
    %1038 = vector.broadcast %1035 : f32 to vector<4x3xf32>
    %1039 = arith.mulf %1037, %1038 : vector<4x3xf32>
    %1040 = arith.addf %964, %1039 : vector<4x3xf32>
    %cst_233 = arith.constant 3.000000e+00 : f32
    %1041 = vector.broadcast %cst_233 : f32 to vector<4x3xf32>
    %1042 = arith.mulf %1041, %968 : vector<4x3xf32>
    %1043 = arith.mulf %1035, %1035 : f32
    %1044 = vector.broadcast %1043 : f32 to vector<4x3xf32>
    %1045 = arith.mulf %1042, %1044 : vector<4x3xf32>
    %1046 = arith.addf %1040, %1045 : vector<4x3xf32>
    %1047 = tpu.concatenate %1024, %1029, %1034 in 0 : vector<4x16xf32>, vector<4x16xf32>, vector<4x16xf32> -> vector<12x16xf32>
    %cst_234 = arith.constant dense<0.000000e+00> : vector<12x96xf32>
    %1048 = tpu.matmul %1047, %6, %cst_234 {dimension_numbers = #tpu.dot_dimension_numbers<[1], [0], [0], [1], [0, 0, 1, 1], [], []>} : vector<12x16xf32>, vector<16x96xf32>, vector<12x96xf32> -> vector<12x96xf32>
    %1049 = vector.broadcast %7 : vector<1x96xf32> to vector<12x96xf32>
    %1050 = arith.addf %1048, %1049 : vector<12x96xf32>
    %cst_235 = arith.constant 0.000000e+00 : f32
    %1051 = vector.broadcast %cst_235 : f32 to vector<12x96xf32>
    %1052 = arith.maximumf %1050, %1051 : vector<12x96xf32>
    %cst_236 = arith.constant dense<0.000000e+00> : vector<12x112xf32>
    %1053 = tpu.matmul %1052, %8, %cst_236 {dimension_numbers = #tpu.dot_dimension_numbers<[1], [0], [0], [1], [0, 0, 1, 1], [], []>} : vector<12x96xf32>, vector<96x112xf32>, vector<12x112xf32> -> vector<12x112xf32>
    %1054 = vector.broadcast %9 : vector<1x112xf32> to vector<12x112xf32>
    %1055 = arith.addf %1053, %1054 : vector<12x112xf32>
    %1056 = math.tanh %1055 : vector<12x112xf32>
    %1057 = vector.extract_strided_slice %1056 {offsets = [0, 0], sizes = [4, 48], strides = [1, 1]} : vector<12x112xf32> to vector<4x48xf32>
    %1058 = vector.extract_strided_slice %1056 {offsets = [4, 48], sizes = [4, 16], strides = [1, 1]} : vector<12x112xf32> to vector<4x16xf32>
    %1059 = vector.extract_strided_slice %1056 {offsets = [8, 64], sizes = [4, 48], strides = [1, 1]} : vector<12x112xf32> to vector<4x48xf32>
    %1060 = vector.extract_strided_slice %1057 {offsets = [0, 0], sizes = [4, 16], strides = [1, 1]} : vector<4x48xf32> to vector<4x16xf32>
    %1061 = vector.extract_strided_slice %1046 {offsets = [0, 0], sizes = [4, 1], strides = [1, 1]} : vector<4x3xf32> to vector<4x1xf32>
    %1062 = vector.broadcast %1061 : vector<4x1xf32> to vector<4x16xf32>
    %1063 = arith.mulf %1060, %1062 : vector<4x16xf32>
    %1064 = vector.extract_strided_slice %1059 {offsets = [0, 0], sizes = [4, 16], strides = [1, 1]} : vector<4x48xf32> to vector<4x16xf32>
    %1065 = vector.extract_strided_slice %1046 {offsets = [0, 0], sizes = [4, 1], strides = [1, 1]} : vector<4x3xf32> to vector<4x1xf32>
    %1066 = vector.broadcast %1065 : vector<4x1xf32> to vector<4x16xf32>
    %1067 = arith.mulf %1064, %1066 : vector<4x16xf32>
    %1068 = vector.extract_strided_slice %1057 {offsets = [0, 16], sizes = [4, 16], strides = [1, 1]} : vector<4x48xf32> to vector<4x16xf32>
    %1069 = vector.extract_strided_slice %1046 {offsets = [0, 1], sizes = [4, 1], strides = [1, 1]} : vector<4x3xf32> to vector<4x1xf32>
    %1070 = vector.broadcast %1069 : vector<4x1xf32> to vector<4x16xf32>
    %1071 = arith.mulf %1068, %1070 : vector<4x16xf32>
    %1072 = arith.addf %1063, %1071 : vector<4x16xf32>
    %1073 = vector.extract_strided_slice %1059 {offsets = [0, 16], sizes = [4, 16], strides = [1, 1]} : vector<4x48xf32> to vector<4x16xf32>
    %1074 = vector.extract_strided_slice %1046 {offsets = [0, 1], sizes = [4, 1], strides = [1, 1]} : vector<4x3xf32> to vector<4x1xf32>
    %1075 = vector.broadcast %1074 : vector<4x1xf32> to vector<4x16xf32>
    %1076 = arith.mulf %1073, %1075 : vector<4x16xf32>
    %1077 = arith.addf %1067, %1076 : vector<4x16xf32>
    %1078 = vector.extract_strided_slice %1057 {offsets = [0, 32], sizes = [4, 16], strides = [1, 1]} : vector<4x48xf32> to vector<4x16xf32>
    %1079 = vector.extract_strided_slice %1046 {offsets = [0, 2], sizes = [4, 1], strides = [1, 1]} : vector<4x3xf32> to vector<4x1xf32>
    %1080 = vector.broadcast %1079 : vector<4x1xf32> to vector<4x16xf32>
    %1081 = arith.mulf %1078, %1080 : vector<4x16xf32>
    %1082 = arith.addf %1072, %1081 : vector<4x16xf32>
    %1083 = vector.extract_strided_slice %1059 {offsets = [0, 32], sizes = [4, 16], strides = [1, 1]} : vector<4x48xf32> to vector<4x16xf32>
    %1084 = vector.extract_strided_slice %1046 {offsets = [0, 2], sizes = [4, 1], strides = [1, 1]} : vector<4x3xf32> to vector<4x1xf32>
    %1085 = vector.broadcast %1084 : vector<4x1xf32> to vector<4x16xf32>
    %1086 = arith.mulf %1083, %1085 : vector<4x16xf32>
    %1087 = arith.addf %1077, %1086 : vector<4x16xf32>
    %cst_237 = arith.constant 3.000000e+00 : f32
    %1088 = vector.broadcast %cst_237 : f32 to vector<4x16xf32>
    %1089 = arith.divf %1014, %1088 : vector<4x16xf32>
    %1090 = arith.subf %1082, %1089 : vector<4x16xf32>
    %1091 = vector.broadcast %962 : f32 to vector<4x16xf32>
    %1092 = arith.mulf %1091, %1090 : vector<4x16xf32>
    %1093 = arith.addf %926, %1092 : vector<4x16xf32>
    %cst_238 = arith.constant 3.000000e+00 : f32
    %1094 = vector.broadcast %cst_238 : f32 to vector<4x16xf32>
    %1095 = arith.divf %990, %1094 : vector<4x16xf32>
    %1096 = arith.subf %1058, %1095 : vector<4x16xf32>
    %1097 = vector.broadcast %962 : f32 to vector<4x16xf32>
    %1098 = arith.mulf %1097, %1096 : vector<4x16xf32>
    %1099 = arith.addf %936, %1098 : vector<4x16xf32>
    %cst_239 = arith.constant 3.000000e+00 : f32
    %1100 = vector.broadcast %cst_239 : f32 to vector<4x16xf32>
    %1101 = arith.divf %1019, %1100 : vector<4x16xf32>
    %1102 = arith.subf %1087, %1101 : vector<4x16xf32>
    %1103 = vector.broadcast %962 : f32 to vector<4x16xf32>
    %1104 = arith.mulf %1103, %1102 : vector<4x16xf32>
    %1105 = arith.addf %946, %1104 : vector<4x16xf32>
    %cst_240 = arith.constant 2.000000e+00 : f32
    %1106 = arith.mulf %cst_240, %962 : f32
    %cst_241 = arith.constant 3.000000e+00 : f32
    %1107 = arith.divf %1106, %cst_241 : f32
    %cst_242 = arith.constant 2.000000e+00 : f32
    %1108 = vector.broadcast %cst_242 : f32 to vector<4x3xf32>
    %1109 = arith.mulf %1108, %966 : vector<4x3xf32>
    %1110 = vector.broadcast %1107 : f32 to vector<4x3xf32>
    %1111 = arith.mulf %1109, %1110 : vector<4x3xf32>
    %1112 = arith.addf %964, %1111 : vector<4x3xf32>
    %cst_243 = arith.constant 3.000000e+00 : f32
    %1113 = vector.broadcast %cst_243 : f32 to vector<4x3xf32>
    %1114 = arith.mulf %1113, %968 : vector<4x3xf32>
    %1115 = arith.mulf %1107, %1107 : f32
    %1116 = vector.broadcast %1115 : f32 to vector<4x3xf32>
    %1117 = arith.mulf %1114, %1116 : vector<4x3xf32>
    %1118 = arith.addf %1112, %1117 : vector<4x3xf32>
    %1119 = tpu.concatenate %1093, %1099, %1105 in 0 : vector<4x16xf32>, vector<4x16xf32>, vector<4x16xf32> -> vector<12x16xf32>
    %cst_244 = arith.constant dense<0.000000e+00> : vector<12x96xf32>
    %1120 = tpu.matmul %1119, %6, %cst_244 {dimension_numbers = #tpu.dot_dimension_numbers<[1], [0], [0], [1], [0, 0, 1, 1], [], []>} : vector<12x16xf32>, vector<16x96xf32>, vector<12x96xf32> -> vector<12x96xf32>
    %1121 = vector.broadcast %7 : vector<1x96xf32> to vector<12x96xf32>
    %1122 = arith.addf %1120, %1121 : vector<12x96xf32>
    %cst_245 = arith.constant 0.000000e+00 : f32
    %1123 = vector.broadcast %cst_245 : f32 to vector<12x96xf32>
    %1124 = arith.maximumf %1122, %1123 : vector<12x96xf32>
    %cst_246 = arith.constant dense<0.000000e+00> : vector<12x112xf32>
    %1125 = tpu.matmul %1124, %8, %cst_246 {dimension_numbers = #tpu.dot_dimension_numbers<[1], [0], [0], [1], [0, 0, 1, 1], [], []>} : vector<12x96xf32>, vector<96x112xf32>, vector<12x112xf32> -> vector<12x112xf32>
    %1126 = vector.broadcast %9 : vector<1x112xf32> to vector<12x112xf32>
    %1127 = arith.addf %1125, %1126 : vector<12x112xf32>
    %1128 = math.tanh %1127 : vector<12x112xf32>
    %1129 = vector.extract_strided_slice %1128 {offsets = [0, 0], sizes = [4, 48], strides = [1, 1]} : vector<12x112xf32> to vector<4x48xf32>
    %1130 = vector.extract_strided_slice %1128 {offsets = [4, 48], sizes = [4, 16], strides = [1, 1]} : vector<12x112xf32> to vector<4x16xf32>
    %1131 = vector.extract_strided_slice %1128 {offsets = [8, 64], sizes = [4, 48], strides = [1, 1]} : vector<12x112xf32> to vector<4x48xf32>
    %1132 = vector.extract_strided_slice %1129 {offsets = [0, 0], sizes = [4, 16], strides = [1, 1]} : vector<4x48xf32> to vector<4x16xf32>
    %1133 = vector.extract_strided_slice %1118 {offsets = [0, 0], sizes = [4, 1], strides = [1, 1]} : vector<4x3xf32> to vector<4x1xf32>
    %1134 = vector.broadcast %1133 : vector<4x1xf32> to vector<4x16xf32>
    %1135 = arith.mulf %1132, %1134 : vector<4x16xf32>
    %1136 = vector.extract_strided_slice %1131 {offsets = [0, 0], sizes = [4, 16], strides = [1, 1]} : vector<4x48xf32> to vector<4x16xf32>
    %1137 = vector.extract_strided_slice %1118 {offsets = [0, 0], sizes = [4, 1], strides = [1, 1]} : vector<4x3xf32> to vector<4x1xf32>
    %1138 = vector.broadcast %1137 : vector<4x1xf32> to vector<4x16xf32>
    %1139 = arith.mulf %1136, %1138 : vector<4x16xf32>
    %1140 = vector.extract_strided_slice %1129 {offsets = [0, 16], sizes = [4, 16], strides = [1, 1]} : vector<4x48xf32> to vector<4x16xf32>
    %1141 = vector.extract_strided_slice %1118 {offsets = [0, 1], sizes = [4, 1], strides = [1, 1]} : vector<4x3xf32> to vector<4x1xf32>
    %1142 = vector.broadcast %1141 : vector<4x1xf32> to vector<4x16xf32>
    %1143 = arith.mulf %1140, %1142 : vector<4x16xf32>
    %1144 = arith.addf %1135, %1143 : vector<4x16xf32>
    %1145 = vector.extract_strided_slice %1131 {offsets = [0, 16], sizes = [4, 16], strides = [1, 1]} : vector<4x48xf32> to vector<4x16xf32>
    %1146 = vector.extract_strided_slice %1118 {offsets = [0, 1], sizes = [4, 1], strides = [1, 1]} : vector<4x3xf32> to vector<4x1xf32>
    %1147 = vector.broadcast %1146 : vector<4x1xf32> to vector<4x16xf32>
    %1148 = arith.mulf %1145, %1147 : vector<4x16xf32>
    %1149 = arith.addf %1139, %1148 : vector<4x16xf32>
    %1150 = vector.extract_strided_slice %1129 {offsets = [0, 32], sizes = [4, 16], strides = [1, 1]} : vector<4x48xf32> to vector<4x16xf32>
    %1151 = vector.extract_strided_slice %1118 {offsets = [0, 2], sizes = [4, 1], strides = [1, 1]} : vector<4x3xf32> to vector<4x1xf32>
    %1152 = vector.broadcast %1151 : vector<4x1xf32> to vector<4x16xf32>
    %1153 = arith.mulf %1150, %1152 : vector<4x16xf32>
    %1154 = arith.addf %1144, %1153 : vector<4x16xf32>
    %1155 = vector.extract_strided_slice %1131 {offsets = [0, 32], sizes = [4, 16], strides = [1, 1]} : vector<4x48xf32> to vector<4x16xf32>
    %1156 = vector.extract_strided_slice %1118 {offsets = [0, 2], sizes = [4, 1], strides = [1, 1]} : vector<4x3xf32> to vector<4x1xf32>
    %1157 = vector.broadcast %1156 : vector<4x1xf32> to vector<4x16xf32>
    %1158 = arith.mulf %1155, %1157 : vector<4x16xf32>
    %1159 = arith.addf %1149, %1158 : vector<4x16xf32>
    %1160 = arith.subf %1014, %1082 : vector<4x16xf32>
    %1161 = arith.addf %1160, %1154 : vector<4x16xf32>
    %1162 = vector.broadcast %962 : f32 to vector<4x16xf32>
    %1163 = arith.mulf %1162, %1161 : vector<4x16xf32>
    %1164 = arith.addf %926, %1163 : vector<4x16xf32>
    %1165 = arith.subf %990, %1058 : vector<4x16xf32>
    %1166 = arith.addf %1165, %1130 : vector<4x16xf32>
    %1167 = vector.broadcast %962 : f32 to vector<4x16xf32>
    %1168 = arith.mulf %1167, %1166 : vector<4x16xf32>
    %1169 = arith.addf %936, %1168 : vector<4x16xf32>
    %1170 = arith.subf %1019, %1087 : vector<4x16xf32>
    %1171 = arith.addf %1170, %1159 : vector<4x16xf32>
    %1172 = vector.broadcast %962 : f32 to vector<4x16xf32>
    %1173 = arith.mulf %1172, %1171 : vector<4x16xf32>
    %1174 = arith.addf %946, %1173 : vector<4x16xf32>
    %cst_247 = arith.constant 2.000000e+00 : f32
    %1175 = vector.broadcast %cst_247 : f32 to vector<4x3xf32>
    %1176 = arith.mulf %1175, %966 : vector<4x3xf32>
    %1177 = vector.broadcast %962 : f32 to vector<4x3xf32>
    %1178 = arith.mulf %1176, %1177 : vector<4x3xf32>
    %1179 = arith.addf %964, %1178 : vector<4x3xf32>
    %cst_248 = arith.constant 3.000000e+00 : f32
    %1180 = vector.broadcast %cst_248 : f32 to vector<4x3xf32>
    %1181 = arith.mulf %1180, %968 : vector<4x3xf32>
    %1182 = arith.mulf %962, %962 : f32
    %1183 = vector.broadcast %1182 : f32 to vector<4x3xf32>
    %1184 = arith.mulf %1181, %1183 : vector<4x3xf32>
    %1185 = arith.addf %1179, %1184 : vector<4x3xf32>
    %1186 = tpu.concatenate %1164, %1169, %1174 in 0 : vector<4x16xf32>, vector<4x16xf32>, vector<4x16xf32> -> vector<12x16xf32>
    %cst_249 = arith.constant dense<0.000000e+00> : vector<12x96xf32>
    %1187 = tpu.matmul %1186, %6, %cst_249 {dimension_numbers = #tpu.dot_dimension_numbers<[1], [0], [0], [1], [0, 0, 1, 1], [], []>} : vector<12x16xf32>, vector<16x96xf32>, vector<12x96xf32> -> vector<12x96xf32>
    %1188 = vector.broadcast %7 : vector<1x96xf32> to vector<12x96xf32>
    %1189 = arith.addf %1187, %1188 : vector<12x96xf32>
    %cst_250 = arith.constant 0.000000e+00 : f32
    %1190 = vector.broadcast %cst_250 : f32 to vector<12x96xf32>
    %1191 = arith.maximumf %1189, %1190 : vector<12x96xf32>
    %cst_251 = arith.constant dense<0.000000e+00> : vector<12x112xf32>
    %1192 = tpu.matmul %1191, %8, %cst_251 {dimension_numbers = #tpu.dot_dimension_numbers<[1], [0], [0], [1], [0, 0, 1, 1], [], []>} : vector<12x96xf32>, vector<96x112xf32>, vector<12x112xf32> -> vector<12x112xf32>
    %1193 = vector.broadcast %9 : vector<1x112xf32> to vector<12x112xf32>
    %1194 = arith.addf %1192, %1193 : vector<12x112xf32>
    %1195 = math.tanh %1194 : vector<12x112xf32>
    %1196 = vector.extract_strided_slice %1195 {offsets = [0, 0], sizes = [4, 48], strides = [1, 1]} : vector<12x112xf32> to vector<4x48xf32>
    %1197 = vector.extract_strided_slice %1195 {offsets = [4, 48], sizes = [4, 16], strides = [1, 1]} : vector<12x112xf32> to vector<4x16xf32>
    %1198 = vector.extract_strided_slice %1195 {offsets = [8, 64], sizes = [4, 48], strides = [1, 1]} : vector<12x112xf32> to vector<4x48xf32>
    %1199 = vector.extract_strided_slice %1196 {offsets = [0, 0], sizes = [4, 16], strides = [1, 1]} : vector<4x48xf32> to vector<4x16xf32>
    %1200 = vector.extract_strided_slice %1185 {offsets = [0, 0], sizes = [4, 1], strides = [1, 1]} : vector<4x3xf32> to vector<4x1xf32>
    %1201 = vector.broadcast %1200 : vector<4x1xf32> to vector<4x16xf32>
    %1202 = arith.mulf %1199, %1201 : vector<4x16xf32>
    %1203 = vector.extract_strided_slice %1198 {offsets = [0, 0], sizes = [4, 16], strides = [1, 1]} : vector<4x48xf32> to vector<4x16xf32>
    %1204 = vector.extract_strided_slice %1185 {offsets = [0, 0], sizes = [4, 1], strides = [1, 1]} : vector<4x3xf32> to vector<4x1xf32>
    %1205 = vector.broadcast %1204 : vector<4x1xf32> to vector<4x16xf32>
    %1206 = arith.mulf %1203, %1205 : vector<4x16xf32>
    %1207 = vector.extract_strided_slice %1196 {offsets = [0, 16], sizes = [4, 16], strides = [1, 1]} : vector<4x48xf32> to vector<4x16xf32>
    %1208 = vector.extract_strided_slice %1185 {offsets = [0, 1], sizes = [4, 1], strides = [1, 1]} : vector<4x3xf32> to vector<4x1xf32>
    %1209 = vector.broadcast %1208 : vector<4x1xf32> to vector<4x16xf32>
    %1210 = arith.mulf %1207, %1209 : vector<4x16xf32>
    %1211 = arith.addf %1202, %1210 : vector<4x16xf32>
    %1212 = vector.extract_strided_slice %1198 {offsets = [0, 16], sizes = [4, 16], strides = [1, 1]} : vector<4x48xf32> to vector<4x16xf32>
    %1213 = vector.extract_strided_slice %1185 {offsets = [0, 1], sizes = [4, 1], strides = [1, 1]} : vector<4x3xf32> to vector<4x1xf32>
    %1214 = vector.broadcast %1213 : vector<4x1xf32> to vector<4x16xf32>
    %1215 = arith.mulf %1212, %1214 : vector<4x16xf32>
    %1216 = arith.addf %1206, %1215 : vector<4x16xf32>
    %1217 = vector.extract_strided_slice %1196 {offsets = [0, 32], sizes = [4, 16], strides = [1, 1]} : vector<4x48xf32> to vector<4x16xf32>
    %1218 = vector.extract_strided_slice %1185 {offsets = [0, 2], sizes = [4, 1], strides = [1, 1]} : vector<4x3xf32> to vector<4x1xf32>
    %1219 = vector.broadcast %1218 : vector<4x1xf32> to vector<4x16xf32>
    %1220 = arith.mulf %1217, %1219 : vector<4x16xf32>
    %1221 = arith.addf %1211, %1220 : vector<4x16xf32>
    %1222 = vector.extract_strided_slice %1198 {offsets = [0, 32], sizes = [4, 16], strides = [1, 1]} : vector<4x48xf32> to vector<4x16xf32>
    %1223 = vector.extract_strided_slice %1185 {offsets = [0, 2], sizes = [4, 1], strides = [1, 1]} : vector<4x3xf32> to vector<4x1xf32>
    %1224 = vector.broadcast %1223 : vector<4x1xf32> to vector<4x16xf32>
    %1225 = arith.mulf %1222, %1224 : vector<4x16xf32>
    %1226 = arith.addf %1216, %1225 : vector<4x16xf32>
    %1227 = arith.addf %1082, %1154 : vector<4x16xf32>
    %cst_252 = arith.constant 3.000000e+00 : f32
    %1228 = vector.broadcast %cst_252 : f32 to vector<4x16xf32>
    %1229 = arith.mulf %1228, %1227 : vector<4x16xf32>
    %1230 = arith.addf %1014, %1229 : vector<4x16xf32>
    %1231 = arith.addf %1230, %1221 : vector<4x16xf32>
    %1232 = vector.broadcast %962 : f32 to vector<4x16xf32>
    %1233 = arith.mulf %1232, %1231 : vector<4x16xf32>
    %cst_253 = arith.constant 1.250000e-01 : f32
    %1234 = vector.broadcast %cst_253 : f32 to vector<4x16xf32>
    %1235 = arith.mulf %1233, %1234 : vector<4x16xf32>
    %1236 = arith.addf %926, %1235 : vector<4x16xf32>
    %1237 = arith.addf %1058, %1130 : vector<4x16xf32>
    %cst_254 = arith.constant 3.000000e+00 : f32
    %1238 = vector.broadcast %cst_254 : f32 to vector<4x16xf32>
    %1239 = arith.mulf %1238, %1237 : vector<4x16xf32>
    %1240 = arith.addf %990, %1239 : vector<4x16xf32>
    %1241 = arith.addf %1240, %1197 : vector<4x16xf32>
    %1242 = vector.broadcast %962 : f32 to vector<4x16xf32>
    %1243 = arith.mulf %1242, %1241 : vector<4x16xf32>
    %cst_255 = arith.constant 1.250000e-01 : f32
    %1244 = vector.broadcast %cst_255 : f32 to vector<4x16xf32>
    %1245 = arith.mulf %1243, %1244 : vector<4x16xf32>
    %1246 = arith.addf %936, %1245 : vector<4x16xf32>
    %1247 = arith.addf %1087, %1159 : vector<4x16xf32>
    %cst_256 = arith.constant 3.000000e+00 : f32
    %1248 = vector.broadcast %cst_256 : f32 to vector<4x16xf32>
    %1249 = arith.mulf %1248, %1247 : vector<4x16xf32>
    %1250 = arith.addf %1019, %1249 : vector<4x16xf32>
    %1251 = arith.addf %1250, %1226 : vector<4x16xf32>
    %1252 = vector.broadcast %962 : f32 to vector<4x16xf32>
    %1253 = arith.mulf %1252, %1251 : vector<4x16xf32>
    %cst_257 = arith.constant 1.250000e-01 : f32
    %1254 = vector.broadcast %cst_257 : f32 to vector<4x16xf32>
    %1255 = arith.mulf %1253, %1254 : vector<4x16xf32>
    %1256 = arith.addf %946, %1255 : vector<4x16xf32>
    %c4_258 = arith.constant 4 : index
    %c0_259 = arith.constant 0 : index
    %c0_260 = arith.constant 0 : index
    %1257 = vector.load %arg16[%c4_258, %c0_259, %c0_260] : memref<8x4x16xf32, #tpu.memory_space<vmem>>, vector<1x4x16xf32>
    %1258 = vector.shape_cast %1257 : vector<1x4x16xf32> to vector<4x16xf32>
    %1259 = vector.shape_cast %1236 : vector<4x16xf32> to vector<1x4x16xf32>
    tpu.vector_store %arg16[%c4_258, %c0_259, %c0_260], %1259 {strides = array<i32>} : memref<8x4x16xf32, #tpu.memory_space<vmem>>, vector<1x4x16xf32>,
    %c4_261 = arith.constant 4 : index
    %c0_262 = arith.constant 0 : index
    %c0_263 = arith.constant 0 : index
    %1260 = vector.load %arg17[%c4_261, %c0_262, %c0_263] : memref<8x4x16xf32, #tpu.memory_space<vmem>>, vector<1x4x16xf32>
    %1261 = vector.shape_cast %1260 : vector<1x4x16xf32> to vector<4x16xf32>
    %1262 = vector.shape_cast %1246 : vector<4x16xf32> to vector<1x4x16xf32>
    tpu.vector_store %arg17[%c4_261, %c0_262, %c0_263], %1262 {strides = array<i32>} : memref<8x4x16xf32, #tpu.memory_space<vmem>>, vector<1x4x16xf32>,
    %c4_264 = arith.constant 4 : index
    %c0_265 = arith.constant 0 : index
    %c0_266 = arith.constant 0 : index
    %1263 = vector.load %arg18[%c4_264, %c0_265, %c0_266] : memref<8x4x16xf32, #tpu.memory_space<vmem>>, vector<1x4x16xf32>
    %1264 = vector.shape_cast %1263 : vector<1x4x16xf32> to vector<4x16xf32>
    %1265 = vector.shape_cast %1256 : vector<4x16xf32> to vector<1x4x16xf32>
    tpu.vector_store %arg18[%c4_264, %c0_265, %c0_266], %1265 {strides = array<i32>} : memref<8x4x16xf32, #tpu.memory_space<vmem>>, vector<1x4x16xf32>,
    %cst_267 = arith.constant dense<0.000000e+00> : vector<4x2xf32>
    %1266 = tpu.matmul %1256, %4, %cst_267 {dimension_numbers = #tpu.dot_dimension_numbers<[1], [0], [0], [1], [0, 0, 1, 1], [], []>} : vector<4x16xf32>, vector<16x2xf32>, vector<4x2xf32> -> vector<4x2xf32>
    %1267 = vector.broadcast %5 : vector<1x2xf32> to vector<4x2xf32>
    %1268 = arith.addf %1266, %1267 : vector<4x2xf32>
    %c4_268 = arith.constant 4 : index
    %c0_269 = arith.constant 0 : index
    %c0_270 = arith.constant 0 : index
    %1269 = vector.load %arg19[%c4_268, %c0_269, %c0_270] : memref<8x4x2xf32, #tpu.memory_space<vmem>>, vector<1x4x2xf32>
    %1270 = vector.shape_cast %1269 : vector<1x4x2xf32> to vector<4x2xf32>
    %1271 = vector.shape_cast %1268 : vector<4x2xf32> to vector<1x4x2xf32>
    tpu.vector_store %arg19[%c4_268, %c0_269, %c0_270], %1271 {strides = array<i32>} : memref<8x4x2xf32, #tpu.memory_space<vmem>>, vector<1x4x2xf32>,
    %c5 = arith.constant 5 : index
    %1272 = memref.load %arg1[%c5] : memref<8xf32, #tpu.memory_space<smem>>
    %c4_271 = arith.constant 4 : index
    %c0_272 = arith.constant 0 : index
    %c0_273 = arith.constant 0 : index
    %1273 = vector.load %arg2[%c4_271, %c0_272, %c0_273] : memref<7x4x3xf32, #tpu.memory_space<vmem>>, vector<1x4x3xf32>
    %1274 = vector.shape_cast %1273 : vector<1x4x3xf32> to vector<4x3xf32>
    %c4_274 = arith.constant 4 : index
    %c0_275 = arith.constant 0 : index
    %c0_276 = arith.constant 0 : index
    %1275 = vector.load %arg3[%c4_274, %c0_275, %c0_276] : memref<7x4x3xf32, #tpu.memory_space<vmem>>, vector<1x4x3xf32>
    %1276 = vector.shape_cast %1275 : vector<1x4x3xf32> to vector<4x3xf32>
    %c4_277 = arith.constant 4 : index
    %c0_278 = arith.constant 0 : index
    %c0_279 = arith.constant 0 : index
    %1277 = vector.load %arg4[%c4_277, %c0_278, %c0_279] : memref<7x4x3xf32, #tpu.memory_space<vmem>>, vector<1x4x3xf32>
    %1278 = vector.shape_cast %1277 : vector<1x4x3xf32> to vector<4x3xf32>
    %cst_280 = arith.constant 2.000000e+00 : f32
    %1279 = vector.broadcast %cst_280 : f32 to vector<4x3xf32>
    %1280 = arith.mulf %1279, %1276 : vector<4x3xf32>
    %cst_281 = arith.constant 0.000000e+00 : f32
    %1281 = vector.broadcast %cst_281 : f32 to vector<4x3xf32>
    %1282 = arith.mulf %1280, %1281 : vector<4x3xf32>
    %1283 = arith.addf %1274, %1282 : vector<4x3xf32>
    %cst_282 = arith.constant 3.000000e+00 : f32
    %1284 = vector.broadcast %cst_282 : f32 to vector<4x3xf32>
    %1285 = arith.mulf %1284, %1278 : vector<4x3xf32>
    %cst_283 = arith.constant 0.000000e+00 : f32
    %1286 = vector.broadcast %cst_283 : f32 to vector<4x3xf32>
    %1287 = arith.mulf %1285, %1286 : vector<4x3xf32>
    %1288 = arith.addf %1283, %1287 : vector<4x3xf32>
    %1289 = tpu.concatenate %1236, %1246, %1256 in 0 : vector<4x16xf32>, vector<4x16xf32>, vector<4x16xf32> -> vector<12x16xf32>
    %cst_284 = arith.constant dense<0.000000e+00> : vector<12x96xf32>
    %1290 = tpu.matmul %1289, %6, %cst_284 {dimension_numbers = #tpu.dot_dimension_numbers<[1], [0], [0], [1], [0, 0, 1, 1], [], []>} : vector<12x16xf32>, vector<16x96xf32>, vector<12x96xf32> -> vector<12x96xf32>
    %1291 = vector.broadcast %7 : vector<1x96xf32> to vector<12x96xf32>
    %1292 = arith.addf %1290, %1291 : vector<12x96xf32>
    %cst_285 = arith.constant 0.000000e+00 : f32
    %1293 = vector.broadcast %cst_285 : f32 to vector<12x96xf32>
    %1294 = arith.maximumf %1292, %1293 : vector<12x96xf32>
    %cst_286 = arith.constant dense<0.000000e+00> : vector<12x112xf32>
    %1295 = tpu.matmul %1294, %8, %cst_286 {dimension_numbers = #tpu.dot_dimension_numbers<[1], [0], [0], [1], [0, 0, 1, 1], [], []>} : vector<12x96xf32>, vector<96x112xf32>, vector<12x112xf32> -> vector<12x112xf32>
    %1296 = vector.broadcast %9 : vector<1x112xf32> to vector<12x112xf32>
    %1297 = arith.addf %1295, %1296 : vector<12x112xf32>
    %1298 = math.tanh %1297 : vector<12x112xf32>
    %1299 = vector.extract_strided_slice %1298 {offsets = [0, 0], sizes = [4, 48], strides = [1, 1]} : vector<12x112xf32> to vector<4x48xf32>
    %1300 = vector.extract_strided_slice %1298 {offsets = [4, 48], sizes = [4, 16], strides = [1, 1]} : vector<12x112xf32> to vector<4x16xf32>
    %1301 = vector.extract_strided_slice %1298 {offsets = [8, 64], sizes = [4, 48], strides = [1, 1]} : vector<12x112xf32> to vector<4x48xf32>
    %1302 = vector.extract_strided_slice %1299 {offsets = [0, 0], sizes = [4, 16], strides = [1, 1]} : vector<4x48xf32> to vector<4x16xf32>
    %1303 = vector.extract_strided_slice %1288 {offsets = [0, 0], sizes = [4, 1], strides = [1, 1]} : vector<4x3xf32> to vector<4x1xf32>
    %1304 = vector.broadcast %1303 : vector<4x1xf32> to vector<4x16xf32>
    %1305 = arith.mulf %1302, %1304 : vector<4x16xf32>
    %1306 = vector.extract_strided_slice %1301 {offsets = [0, 0], sizes = [4, 16], strides = [1, 1]} : vector<4x48xf32> to vector<4x16xf32>
    %1307 = vector.extract_strided_slice %1288 {offsets = [0, 0], sizes = [4, 1], strides = [1, 1]} : vector<4x3xf32> to vector<4x1xf32>
    %1308 = vector.broadcast %1307 : vector<4x1xf32> to vector<4x16xf32>
    %1309 = arith.mulf %1306, %1308 : vector<4x16xf32>
    %1310 = vector.extract_strided_slice %1299 {offsets = [0, 16], sizes = [4, 16], strides = [1, 1]} : vector<4x48xf32> to vector<4x16xf32>
    %1311 = vector.extract_strided_slice %1288 {offsets = [0, 1], sizes = [4, 1], strides = [1, 1]} : vector<4x3xf32> to vector<4x1xf32>
    %1312 = vector.broadcast %1311 : vector<4x1xf32> to vector<4x16xf32>
    %1313 = arith.mulf %1310, %1312 : vector<4x16xf32>
    %1314 = arith.addf %1305, %1313 : vector<4x16xf32>
    %1315 = vector.extract_strided_slice %1301 {offsets = [0, 16], sizes = [4, 16], strides = [1, 1]} : vector<4x48xf32> to vector<4x16xf32>
    %1316 = vector.extract_strided_slice %1288 {offsets = [0, 1], sizes = [4, 1], strides = [1, 1]} : vector<4x3xf32> to vector<4x1xf32>
    %1317 = vector.broadcast %1316 : vector<4x1xf32> to vector<4x16xf32>
    %1318 = arith.mulf %1315, %1317 : vector<4x16xf32>
    %1319 = arith.addf %1309, %1318 : vector<4x16xf32>
    %1320 = vector.extract_strided_slice %1299 {offsets = [0, 32], sizes = [4, 16], strides = [1, 1]} : vector<4x48xf32> to vector<4x16xf32>
    %1321 = vector.extract_strided_slice %1288 {offsets = [0, 2], sizes = [4, 1], strides = [1, 1]} : vector<4x3xf32> to vector<4x1xf32>
    %1322 = vector.broadcast %1321 : vector<4x1xf32> to vector<4x16xf32>
    %1323 = arith.mulf %1320, %1322 : vector<4x16xf32>
    %1324 = arith.addf %1314, %1323 : vector<4x16xf32>
    %1325 = vector.extract_strided_slice %1301 {offsets = [0, 32], sizes = [4, 16], strides = [1, 1]} : vector<4x48xf32> to vector<4x16xf32>
    %1326 = vector.extract_strided_slice %1288 {offsets = [0, 2], sizes = [4, 1], strides = [1, 1]} : vector<4x3xf32> to vector<4x1xf32>
    %1327 = vector.broadcast %1326 : vector<4x1xf32> to vector<4x16xf32>
    %1328 = arith.mulf %1325, %1327 : vector<4x16xf32>
    %1329 = arith.addf %1319, %1328 : vector<4x16xf32>
    %1330 = vector.broadcast %1272 : f32 to vector<4x16xf32>
    %1331 = arith.mulf %1330, %1324 : vector<4x16xf32>
    %cst_287 = arith.constant 3.000000e+00 : f32
    %1332 = vector.broadcast %cst_287 : f32 to vector<4x16xf32>
    %1333 = arith.divf %1331, %1332 : vector<4x16xf32>
    %1334 = arith.addf %1236, %1333 : vector<4x16xf32>
    %1335 = vector.broadcast %1272 : f32 to vector<4x16xf32>
    %1336 = arith.mulf %1335, %1300 : vector<4x16xf32>
    %cst_288 = arith.constant 3.000000e+00 : f32
    %1337 = vector.broadcast %cst_288 : f32 to vector<4x16xf32>
    %1338 = arith.divf %1336, %1337 : vector<4x16xf32>
    %1339 = arith.addf %1246, %1338 : vector<4x16xf32>
    %1340 = vector.broadcast %1272 : f32 to vector<4x16xf32>
    %1341 = arith.mulf %1340, %1329 : vector<4x16xf32>
    %cst_289 = arith.constant 3.000000e+00 : f32
    %1342 = vector.broadcast %cst_289 : f32 to vector<4x16xf32>
    %1343 = arith.divf %1341, %1342 : vector<4x16xf32>
    %1344 = arith.addf %1256, %1343 : vector<4x16xf32>
    %cst_290 = arith.constant 3.000000e+00 : f32
    %1345 = arith.divf %1272, %cst_290 : f32
    %cst_291 = arith.constant 2.000000e+00 : f32
    %1346 = vector.broadcast %cst_291 : f32 to vector<4x3xf32>
    %1347 = arith.mulf %1346, %1276 : vector<4x3xf32>
    %1348 = vector.broadcast %1345 : f32 to vector<4x3xf32>
    %1349 = arith.mulf %1347, %1348 : vector<4x3xf32>
    %1350 = arith.addf %1274, %1349 : vector<4x3xf32>
    %cst_292 = arith.constant 3.000000e+00 : f32
    %1351 = vector.broadcast %cst_292 : f32 to vector<4x3xf32>
    %1352 = arith.mulf %1351, %1278 : vector<4x3xf32>
    %1353 = arith.mulf %1345, %1345 : f32
    %1354 = vector.broadcast %1353 : f32 to vector<4x3xf32>
    %1355 = arith.mulf %1352, %1354 : vector<4x3xf32>
    %1356 = arith.addf %1350, %1355 : vector<4x3xf32>
    %1357 = tpu.concatenate %1334, %1339, %1344 in 0 : vector<4x16xf32>, vector<4x16xf32>, vector<4x16xf32> -> vector<12x16xf32>
    %cst_293 = arith.constant dense<0.000000e+00> : vector<12x96xf32>
    %1358 = tpu.matmul %1357, %6, %cst_293 {dimension_numbers = #tpu.dot_dimension_numbers<[1], [0], [0], [1], [0, 0, 1, 1], [], []>} : vector<12x16xf32>, vector<16x96xf32>, vector<12x96xf32> -> vector<12x96xf32>
    %1359 = vector.broadcast %7 : vector<1x96xf32> to vector<12x96xf32>
    %1360 = arith.addf %1358, %1359 : vector<12x96xf32>
    %cst_294 = arith.constant 0.000000e+00 : f32
    %1361 = vector.broadcast %cst_294 : f32 to vector<12x96xf32>
    %1362 = arith.maximumf %1360, %1361 : vector<12x96xf32>
    %cst_295 = arith.constant dense<0.000000e+00> : vector<12x112xf32>
    %1363 = tpu.matmul %1362, %8, %cst_295 {dimension_numbers = #tpu.dot_dimension_numbers<[1], [0], [0], [1], [0, 0, 1, 1], [], []>} : vector<12x96xf32>, vector<96x112xf32>, vector<12x112xf32> -> vector<12x112xf32>
    %1364 = vector.broadcast %9 : vector<1x112xf32> to vector<12x112xf32>
    %1365 = arith.addf %1363, %1364 : vector<12x112xf32>
    %1366 = math.tanh %1365 : vector<12x112xf32>
    %1367 = vector.extract_strided_slice %1366 {offsets = [0, 0], sizes = [4, 48], strides = [1, 1]} : vector<12x112xf32> to vector<4x48xf32>
    %1368 = vector.extract_strided_slice %1366 {offsets = [4, 48], sizes = [4, 16], strides = [1, 1]} : vector<12x112xf32> to vector<4x16xf32>
    %1369 = vector.extract_strided_slice %1366 {offsets = [8, 64], sizes = [4, 48], strides = [1, 1]} : vector<12x112xf32> to vector<4x48xf32>
    %1370 = vector.extract_strided_slice %1367 {offsets = [0, 0], sizes = [4, 16], strides = [1, 1]} : vector<4x48xf32> to vector<4x16xf32>
    %1371 = vector.extract_strided_slice %1356 {offsets = [0, 0], sizes = [4, 1], strides = [1, 1]} : vector<4x3xf32> to vector<4x1xf32>
    %1372 = vector.broadcast %1371 : vector<4x1xf32> to vector<4x16xf32>
    %1373 = arith.mulf %1370, %1372 : vector<4x16xf32>
    %1374 = vector.extract_strided_slice %1369 {offsets = [0, 0], sizes = [4, 16], strides = [1, 1]} : vector<4x48xf32> to vector<4x16xf32>
    %1375 = vector.extract_strided_slice %1356 {offsets = [0, 0], sizes = [4, 1], strides = [1, 1]} : vector<4x3xf32> to vector<4x1xf32>
    %1376 = vector.broadcast %1375 : vector<4x1xf32> to vector<4x16xf32>
    %1377 = arith.mulf %1374, %1376 : vector<4x16xf32>
    %1378 = vector.extract_strided_slice %1367 {offsets = [0, 16], sizes = [4, 16], strides = [1, 1]} : vector<4x48xf32> to vector<4x16xf32>
    %1379 = vector.extract_strided_slice %1356 {offsets = [0, 1], sizes = [4, 1], strides = [1, 1]} : vector<4x3xf32> to vector<4x1xf32>
    %1380 = vector.broadcast %1379 : vector<4x1xf32> to vector<4x16xf32>
    %1381 = arith.mulf %1378, %1380 : vector<4x16xf32>
    %1382 = arith.addf %1373, %1381 : vector<4x16xf32>
    %1383 = vector.extract_strided_slice %1369 {offsets = [0, 16], sizes = [4, 16], strides = [1, 1]} : vector<4x48xf32> to vector<4x16xf32>
    %1384 = vector.extract_strided_slice %1356 {offsets = [0, 1], sizes = [4, 1], strides = [1, 1]} : vector<4x3xf32> to vector<4x1xf32>
    %1385 = vector.broadcast %1384 : vector<4x1xf32> to vector<4x16xf32>
    %1386 = arith.mulf %1383, %1385 : vector<4x16xf32>
    %1387 = arith.addf %1377, %1386 : vector<4x16xf32>
    %1388 = vector.extract_strided_slice %1367 {offsets = [0, 32], sizes = [4, 16], strides = [1, 1]} : vector<4x48xf32> to vector<4x16xf32>
    %1389 = vector.extract_strided_slice %1356 {offsets = [0, 2], sizes = [4, 1], strides = [1, 1]} : vector<4x3xf32> to vector<4x1xf32>
    %1390 = vector.broadcast %1389 : vector<4x1xf32> to vector<4x16xf32>
    %1391 = arith.mulf %1388, %1390 : vector<4x16xf32>
    %1392 = arith.addf %1382, %1391 : vector<4x16xf32>
    %1393 = vector.extract_strided_slice %1369 {offsets = [0, 32], sizes = [4, 16], strides = [1, 1]} : vector<4x48xf32> to vector<4x16xf32>
    %1394 = vector.extract_strided_slice %1356 {offsets = [0, 2], sizes = [4, 1], strides = [1, 1]} : vector<4x3xf32> to vector<4x1xf32>
    %1395 = vector.broadcast %1394 : vector<4x1xf32> to vector<4x16xf32>
    %1396 = arith.mulf %1393, %1395 : vector<4x16xf32>
    %1397 = arith.addf %1387, %1396 : vector<4x16xf32>
    %cst_296 = arith.constant 3.000000e+00 : f32
    %1398 = vector.broadcast %cst_296 : f32 to vector<4x16xf32>
    %1399 = arith.divf %1324, %1398 : vector<4x16xf32>
    %1400 = arith.subf %1392, %1399 : vector<4x16xf32>
    %1401 = vector.broadcast %1272 : f32 to vector<4x16xf32>
    %1402 = arith.mulf %1401, %1400 : vector<4x16xf32>
    %1403 = arith.addf %1236, %1402 : vector<4x16xf32>
    %cst_297 = arith.constant 3.000000e+00 : f32
    %1404 = vector.broadcast %cst_297 : f32 to vector<4x16xf32>
    %1405 = arith.divf %1300, %1404 : vector<4x16xf32>
    %1406 = arith.subf %1368, %1405 : vector<4x16xf32>
    %1407 = vector.broadcast %1272 : f32 to vector<4x16xf32>
    %1408 = arith.mulf %1407, %1406 : vector<4x16xf32>
    %1409 = arith.addf %1246, %1408 : vector<4x16xf32>
    %cst_298 = arith.constant 3.000000e+00 : f32
    %1410 = vector.broadcast %cst_298 : f32 to vector<4x16xf32>
    %1411 = arith.divf %1329, %1410 : vector<4x16xf32>
    %1412 = arith.subf %1397, %1411 : vector<4x16xf32>
    %1413 = vector.broadcast %1272 : f32 to vector<4x16xf32>
    %1414 = arith.mulf %1413, %1412 : vector<4x16xf32>
    %1415 = arith.addf %1256, %1414 : vector<4x16xf32>
    %cst_299 = arith.constant 2.000000e+00 : f32
    %1416 = arith.mulf %cst_299, %1272 : f32
    %cst_300 = arith.constant 3.000000e+00 : f32
    %1417 = arith.divf %1416, %cst_300 : f32
    %cst_301 = arith.constant 2.000000e+00 : f32
    %1418 = vector.broadcast %cst_301 : f32 to vector<4x3xf32>
    %1419 = arith.mulf %1418, %1276 : vector<4x3xf32>
    %1420 = vector.broadcast %1417 : f32 to vector<4x3xf32>
    %1421 = arith.mulf %1419, %1420 : vector<4x3xf32>
    %1422 = arith.addf %1274, %1421 : vector<4x3xf32>
    %cst_302 = arith.constant 3.000000e+00 : f32
    %1423 = vector.broadcast %cst_302 : f32 to vector<4x3xf32>
    %1424 = arith.mulf %1423, %1278 : vector<4x3xf32>
    %1425 = arith.mulf %1417, %1417 : f32
    %1426 = vector.broadcast %1425 : f32 to vector<4x3xf32>
    %1427 = arith.mulf %1424, %1426 : vector<4x3xf32>
    %1428 = arith.addf %1422, %1427 : vector<4x3xf32>
    %1429 = tpu.concatenate %1403, %1409, %1415 in 0 : vector<4x16xf32>, vector<4x16xf32>, vector<4x16xf32> -> vector<12x16xf32>
    %cst_303 = arith.constant dense<0.000000e+00> : vector<12x96xf32>
    %1430 = tpu.matmul %1429, %6, %cst_303 {dimension_numbers = #tpu.dot_dimension_numbers<[1], [0], [0], [1], [0, 0, 1, 1], [], []>} : vector<12x16xf32>, vector<16x96xf32>, vector<12x96xf32> -> vector<12x96xf32>
    %1431 = vector.broadcast %7 : vector<1x96xf32> to vector<12x96xf32>
    %1432 = arith.addf %1430, %1431 : vector<12x96xf32>
    %cst_304 = arith.constant 0.000000e+00 : f32
    %1433 = vector.broadcast %cst_304 : f32 to vector<12x96xf32>
    %1434 = arith.maximumf %1432, %1433 : vector<12x96xf32>
    %cst_305 = arith.constant dense<0.000000e+00> : vector<12x112xf32>
    %1435 = tpu.matmul %1434, %8, %cst_305 {dimension_numbers = #tpu.dot_dimension_numbers<[1], [0], [0], [1], [0, 0, 1, 1], [], []>} : vector<12x96xf32>, vector<96x112xf32>, vector<12x112xf32> -> vector<12x112xf32>
    %1436 = vector.broadcast %9 : vector<1x112xf32> to vector<12x112xf32>
    %1437 = arith.addf %1435, %1436 : vector<12x112xf32>
    %1438 = math.tanh %1437 : vector<12x112xf32>
    %1439 = vector.extract_strided_slice %1438 {offsets = [0, 0], sizes = [4, 48], strides = [1, 1]} : vector<12x112xf32> to vector<4x48xf32>
    %1440 = vector.extract_strided_slice %1438 {offsets = [4, 48], sizes = [4, 16], strides = [1, 1]} : vector<12x112xf32> to vector<4x16xf32>
    %1441 = vector.extract_strided_slice %1438 {offsets = [8, 64], sizes = [4, 48], strides = [1, 1]} : vector<12x112xf32> to vector<4x48xf32>
    %1442 = vector.extract_strided_slice %1439 {offsets = [0, 0], sizes = [4, 16], strides = [1, 1]} : vector<4x48xf32> to vector<4x16xf32>
    %1443 = vector.extract_strided_slice %1428 {offsets = [0, 0], sizes = [4, 1], strides = [1, 1]} : vector<4x3xf32> to vector<4x1xf32>
    %1444 = vector.broadcast %1443 : vector<4x1xf32> to vector<4x16xf32>
    %1445 = arith.mulf %1442, %1444 : vector<4x16xf32>
    %1446 = vector.extract_strided_slice %1441 {offsets = [0, 0], sizes = [4, 16], strides = [1, 1]} : vector<4x48xf32> to vector<4x16xf32>
    %1447 = vector.extract_strided_slice %1428 {offsets = [0, 0], sizes = [4, 1], strides = [1, 1]} : vector<4x3xf32> to vector<4x1xf32>
    %1448 = vector.broadcast %1447 : vector<4x1xf32> to vector<4x16xf32>
    %1449 = arith.mulf %1446, %1448 : vector<4x16xf32>
    %1450 = vector.extract_strided_slice %1439 {offsets = [0, 16], sizes = [4, 16], strides = [1, 1]} : vector<4x48xf32> to vector<4x16xf32>
    %1451 = vector.extract_strided_slice %1428 {offsets = [0, 1], sizes = [4, 1], strides = [1, 1]} : vector<4x3xf32> to vector<4x1xf32>
    %1452 = vector.broadcast %1451 : vector<4x1xf32> to vector<4x16xf32>
    %1453 = arith.mulf %1450, %1452 : vector<4x16xf32>
    %1454 = arith.addf %1445, %1453 : vector<4x16xf32>
    %1455 = vector.extract_strided_slice %1441 {offsets = [0, 16], sizes = [4, 16], strides = [1, 1]} : vector<4x48xf32> to vector<4x16xf32>
    %1456 = vector.extract_strided_slice %1428 {offsets = [0, 1], sizes = [4, 1], strides = [1, 1]} : vector<4x3xf32> to vector<4x1xf32>
    %1457 = vector.broadcast %1456 : vector<4x1xf32> to vector<4x16xf32>
    %1458 = arith.mulf %1455, %1457 : vector<4x16xf32>
    %1459 = arith.addf %1449, %1458 : vector<4x16xf32>
    %1460 = vector.extract_strided_slice %1439 {offsets = [0, 32], sizes = [4, 16], strides = [1, 1]} : vector<4x48xf32> to vector<4x16xf32>
    %1461 = vector.extract_strided_slice %1428 {offsets = [0, 2], sizes = [4, 1], strides = [1, 1]} : vector<4x3xf32> to vector<4x1xf32>
    %1462 = vector.broadcast %1461 : vector<4x1xf32> to vector<4x16xf32>
    %1463 = arith.mulf %1460, %1462 : vector<4x16xf32>
    %1464 = arith.addf %1454, %1463 : vector<4x16xf32>
    %1465 = vector.extract_strided_slice %1441 {offsets = [0, 32], sizes = [4, 16], strides = [1, 1]} : vector<4x48xf32> to vector<4x16xf32>
    %1466 = vector.extract_strided_slice %1428 {offsets = [0, 2], sizes = [4, 1], strides = [1, 1]} : vector<4x3xf32> to vector<4x1xf32>
    %1467 = vector.broadcast %1466 : vector<4x1xf32> to vector<4x16xf32>
    %1468 = arith.mulf %1465, %1467 : vector<4x16xf32>
    %1469 = arith.addf %1459, %1468 : vector<4x16xf32>
    %1470 = arith.subf %1324, %1392 : vector<4x16xf32>
    %1471 = arith.addf %1470, %1464 : vector<4x16xf32>
    %1472 = vector.broadcast %1272 : f32 to vector<4x16xf32>
    %1473 = arith.mulf %1472, %1471 : vector<4x16xf32>
    %1474 = arith.addf %1236, %1473 : vector<4x16xf32>
    %1475 = arith.subf %1300, %1368 : vector<4x16xf32>
    %1476 = arith.addf %1475, %1440 : vector<4x16xf32>
    %1477 = vector.broadcast %1272 : f32 to vector<4x16xf32>
    %1478 = arith.mulf %1477, %1476 : vector<4x16xf32>
    %1479 = arith.addf %1246, %1478 : vector<4x16xf32>
    %1480 = arith.subf %1329, %1397 : vector<4x16xf32>
    %1481 = arith.addf %1480, %1469 : vector<4x16xf32>
    %1482 = vector.broadcast %1272 : f32 to vector<4x16xf32>
    %1483 = arith.mulf %1482, %1481 : vector<4x16xf32>
    %1484 = arith.addf %1256, %1483 : vector<4x16xf32>
    %cst_306 = arith.constant 2.000000e+00 : f32
    %1485 = vector.broadcast %cst_306 : f32 to vector<4x3xf32>
    %1486 = arith.mulf %1485, %1276 : vector<4x3xf32>
    %1487 = vector.broadcast %1272 : f32 to vector<4x3xf32>
    %1488 = arith.mulf %1486, %1487 : vector<4x3xf32>
    %1489 = arith.addf %1274, %1488 : vector<4x3xf32>
    %cst_307 = arith.constant 3.000000e+00 : f32
    %1490 = vector.broadcast %cst_307 : f32 to vector<4x3xf32>
    %1491 = arith.mulf %1490, %1278 : vector<4x3xf32>
    %1492 = arith.mulf %1272, %1272 : f32
    %1493 = vector.broadcast %1492 : f32 to vector<4x3xf32>
    %1494 = arith.mulf %1491, %1493 : vector<4x3xf32>
    %1495 = arith.addf %1489, %1494 : vector<4x3xf32>
    %1496 = tpu.concatenate %1474, %1479, %1484 in 0 : vector<4x16xf32>, vector<4x16xf32>, vector<4x16xf32> -> vector<12x16xf32>
    %cst_308 = arith.constant dense<0.000000e+00> : vector<12x96xf32>
    %1497 = tpu.matmul %1496, %6, %cst_308 {dimension_numbers = #tpu.dot_dimension_numbers<[1], [0], [0], [1], [0, 0, 1, 1], [], []>} : vector<12x16xf32>, vector<16x96xf32>, vector<12x96xf32> -> vector<12x96xf32>
    %1498 = vector.broadcast %7 : vector<1x96xf32> to vector<12x96xf32>
    %1499 = arith.addf %1497, %1498 : vector<12x96xf32>
    %cst_309 = arith.constant 0.000000e+00 : f32
    %1500 = vector.broadcast %cst_309 : f32 to vector<12x96xf32>
    %1501 = arith.maximumf %1499, %1500 : vector<12x96xf32>
    %cst_310 = arith.constant dense<0.000000e+00> : vector<12x112xf32>
    %1502 = tpu.matmul %1501, %8, %cst_310 {dimension_numbers = #tpu.dot_dimension_numbers<[1], [0], [0], [1], [0, 0, 1, 1], [], []>} : vector<12x96xf32>, vector<96x112xf32>, vector<12x112xf32> -> vector<12x112xf32>
    %1503 = vector.broadcast %9 : vector<1x112xf32> to vector<12x112xf32>
    %1504 = arith.addf %1502, %1503 : vector<12x112xf32>
    %1505 = math.tanh %1504 : vector<12x112xf32>
    %1506 = vector.extract_strided_slice %1505 {offsets = [0, 0], sizes = [4, 48], strides = [1, 1]} : vector<12x112xf32> to vector<4x48xf32>
    %1507 = vector.extract_strided_slice %1505 {offsets = [4, 48], sizes = [4, 16], strides = [1, 1]} : vector<12x112xf32> to vector<4x16xf32>
    %1508 = vector.extract_strided_slice %1505 {offsets = [8, 64], sizes = [4, 48], strides = [1, 1]} : vector<12x112xf32> to vector<4x48xf32>
    %1509 = vector.extract_strided_slice %1506 {offsets = [0, 0], sizes = [4, 16], strides = [1, 1]} : vector<4x48xf32> to vector<4x16xf32>
    %1510 = vector.extract_strided_slice %1495 {offsets = [0, 0], sizes = [4, 1], strides = [1, 1]} : vector<4x3xf32> to vector<4x1xf32>
    %1511 = vector.broadcast %1510 : vector<4x1xf32> to vector<4x16xf32>
    %1512 = arith.mulf %1509, %1511 : vector<4x16xf32>
    %1513 = vector.extract_strided_slice %1508 {offsets = [0, 0], sizes = [4, 16], strides = [1, 1]} : vector<4x48xf32> to vector<4x16xf32>
    %1514 = vector.extract_strided_slice %1495 {offsets = [0, 0], sizes = [4, 1], strides = [1, 1]} : vector<4x3xf32> to vector<4x1xf32>
    %1515 = vector.broadcast %1514 : vector<4x1xf32> to vector<4x16xf32>
    %1516 = arith.mulf %1513, %1515 : vector<4x16xf32>
    %1517 = vector.extract_strided_slice %1506 {offsets = [0, 16], sizes = [4, 16], strides = [1, 1]} : vector<4x48xf32> to vector<4x16xf32>
    %1518 = vector.extract_strided_slice %1495 {offsets = [0, 1], sizes = [4, 1], strides = [1, 1]} : vector<4x3xf32> to vector<4x1xf32>
    %1519 = vector.broadcast %1518 : vector<4x1xf32> to vector<4x16xf32>
    %1520 = arith.mulf %1517, %1519 : vector<4x16xf32>
    %1521 = arith.addf %1512, %1520 : vector<4x16xf32>
    %1522 = vector.extract_strided_slice %1508 {offsets = [0, 16], sizes = [4, 16], strides = [1, 1]} : vector<4x48xf32> to vector<4x16xf32>
    %1523 = vector.extract_strided_slice %1495 {offsets = [0, 1], sizes = [4, 1], strides = [1, 1]} : vector<4x3xf32> to vector<4x1xf32>
    %1524 = vector.broadcast %1523 : vector<4x1xf32> to vector<4x16xf32>
    %1525 = arith.mulf %1522, %1524 : vector<4x16xf32>
    %1526 = arith.addf %1516, %1525 : vector<4x16xf32>
    %1527 = vector.extract_strided_slice %1506 {offsets = [0, 32], sizes = [4, 16], strides = [1, 1]} : vector<4x48xf32> to vector<4x16xf32>
    %1528 = vector.extract_strided_slice %1495 {offsets = [0, 2], sizes = [4, 1], strides = [1, 1]} : vector<4x3xf32> to vector<4x1xf32>
    %1529 = vector.broadcast %1528 : vector<4x1xf32> to vector<4x16xf32>
    %1530 = arith.mulf %1527, %1529 : vector<4x16xf32>
    %1531 = arith.addf %1521, %1530 : vector<4x16xf32>
    %1532 = vector.extract_strided_slice %1508 {offsets = [0, 32], sizes = [4, 16], strides = [1, 1]} : vector<4x48xf32> to vector<4x16xf32>
    %1533 = vector.extract_strided_slice %1495 {offsets = [0, 2], sizes = [4, 1], strides = [1, 1]} : vector<4x3xf32> to vector<4x1xf32>
    %1534 = vector.broadcast %1533 : vector<4x1xf32> to vector<4x16xf32>
    %1535 = arith.mulf %1532, %1534 : vector<4x16xf32>
    %1536 = arith.addf %1526, %1535 : vector<4x16xf32>
    %1537 = arith.addf %1392, %1464 : vector<4x16xf32>
    %cst_311 = arith.constant 3.000000e+00 : f32
    %1538 = vector.broadcast %cst_311 : f32 to vector<4x16xf32>
    %1539 = arith.mulf %1538, %1537 : vector<4x16xf32>
    %1540 = arith.addf %1324, %1539 : vector<4x16xf32>
    %1541 = arith.addf %1540, %1531 : vector<4x16xf32>
    %1542 = vector.broadcast %1272 : f32 to vector<4x16xf32>
    %1543 = arith.mulf %1542, %1541 : vector<4x16xf32>
    %cst_312 = arith.constant 1.250000e-01 : f32
    %1544 = vector.broadcast %cst_312 : f32 to vector<4x16xf32>
    %1545 = arith.mulf %1543, %1544 : vector<4x16xf32>
    %1546 = arith.addf %1236, %1545 : vector<4x16xf32>
    %1547 = arith.addf %1368, %1440 : vector<4x16xf32>
    %cst_313 = arith.constant 3.000000e+00 : f32
    %1548 = vector.broadcast %cst_313 : f32 to vector<4x16xf32>
    %1549 = arith.mulf %1548, %1547 : vector<4x16xf32>
    %1550 = arith.addf %1300, %1549 : vector<4x16xf32>
    %1551 = arith.addf %1550, %1507 : vector<4x16xf32>
    %1552 = vector.broadcast %1272 : f32 to vector<4x16xf32>
    %1553 = arith.mulf %1552, %1551 : vector<4x16xf32>
    %cst_314 = arith.constant 1.250000e-01 : f32
    %1554 = vector.broadcast %cst_314 : f32 to vector<4x16xf32>
    %1555 = arith.mulf %1553, %1554 : vector<4x16xf32>
    %1556 = arith.addf %1246, %1555 : vector<4x16xf32>
    %1557 = arith.addf %1397, %1469 : vector<4x16xf32>
    %cst_315 = arith.constant 3.000000e+00 : f32
    %1558 = vector.broadcast %cst_315 : f32 to vector<4x16xf32>
    %1559 = arith.mulf %1558, %1557 : vector<4x16xf32>
    %1560 = arith.addf %1329, %1559 : vector<4x16xf32>
    %1561 = arith.addf %1560, %1536 : vector<4x16xf32>
    %1562 = vector.broadcast %1272 : f32 to vector<4x16xf32>
    %1563 = arith.mulf %1562, %1561 : vector<4x16xf32>
    %cst_316 = arith.constant 1.250000e-01 : f32
    %1564 = vector.broadcast %cst_316 : f32 to vector<4x16xf32>
    %1565 = arith.mulf %1563, %1564 : vector<4x16xf32>
    %1566 = arith.addf %1256, %1565 : vector<4x16xf32>
    %c5_317 = arith.constant 5 : index
    %c0_318 = arith.constant 0 : index
    %c0_319 = arith.constant 0 : index
    %1567 = vector.load %arg16[%c5_317, %c0_318, %c0_319] : memref<8x4x16xf32, #tpu.memory_space<vmem>>, vector<1x4x16xf32>
    %1568 = vector.shape_cast %1567 : vector<1x4x16xf32> to vector<4x16xf32>
    %1569 = vector.shape_cast %1546 : vector<4x16xf32> to vector<1x4x16xf32>
    tpu.vector_store %arg16[%c5_317, %c0_318, %c0_319], %1569 {strides = array<i32>} : memref<8x4x16xf32, #tpu.memory_space<vmem>>, vector<1x4x16xf32>,
    %c5_320 = arith.constant 5 : index
    %c0_321 = arith.constant 0 : index
    %c0_322 = arith.constant 0 : index
    %1570 = vector.load %arg17[%c5_320, %c0_321, %c0_322] : memref<8x4x16xf32, #tpu.memory_space<vmem>>, vector<1x4x16xf32>
    %1571 = vector.shape_cast %1570 : vector<1x4x16xf32> to vector<4x16xf32>
    %1572 = vector.shape_cast %1556 : vector<4x16xf32> to vector<1x4x16xf32>
    tpu.vector_store %arg17[%c5_320, %c0_321, %c0_322], %1572 {strides = array<i32>} : memref<8x4x16xf32, #tpu.memory_space<vmem>>, vector<1x4x16xf32>,
    %c5_323 = arith.constant 5 : index
    %c0_324 = arith.constant 0 : index
    %c0_325 = arith.constant 0 : index
    %1573 = vector.load %arg18[%c5_323, %c0_324, %c0_325] : memref<8x4x16xf32, #tpu.memory_space<vmem>>, vector<1x4x16xf32>
    %1574 = vector.shape_cast %1573 : vector<1x4x16xf32> to vector<4x16xf32>
    %1575 = vector.shape_cast %1566 : vector<4x16xf32> to vector<1x4x16xf32>
    tpu.vector_store %arg18[%c5_323, %c0_324, %c0_325], %1575 {strides = array<i32>} : memref<8x4x16xf32, #tpu.memory_space<vmem>>, vector<1x4x16xf32>,
    %cst_326 = arith.constant dense<0.000000e+00> : vector<4x2xf32>
    %1576 = tpu.matmul %1566, %4, %cst_326 {dimension_numbers = #tpu.dot_dimension_numbers<[1], [0], [0], [1], [0, 0, 1, 1], [], []>} : vector<4x16xf32>, vector<16x2xf32>, vector<4x2xf32> -> vector<4x2xf32>
    %1577 = vector.broadcast %5 : vector<1x2xf32> to vector<4x2xf32>
    %1578 = arith.addf %1576, %1577 : vector<4x2xf32>
    %c5_327 = arith.constant 5 : index
    %c0_328 = arith.constant 0 : index
    %c0_329 = arith.constant 0 : index
    %1579 = vector.load %arg19[%c5_327, %c0_328, %c0_329] : memref<8x4x2xf32, #tpu.memory_space<vmem>>, vector<1x4x2xf32>
    %1580 = vector.shape_cast %1579 : vector<1x4x2xf32> to vector<4x2xf32>
    %1581 = vector.shape_cast %1578 : vector<4x2xf32> to vector<1x4x2xf32>
    tpu.vector_store %arg19[%c5_327, %c0_328, %c0_329], %1581 {strides = array<i32>} : memref<8x4x2xf32, #tpu.memory_space<vmem>>, vector<1x4x2xf32>,
    %c6 = arith.constant 6 : index
    %1582 = memref.load %arg1[%c6] : memref<8xf32, #tpu.memory_space<smem>>
    %c5_330 = arith.constant 5 : index
    %c0_331 = arith.constant 0 : index
    %c0_332 = arith.constant 0 : index
    %1583 = vector.load %arg2[%c5_330, %c0_331, %c0_332] : memref<7x4x3xf32, #tpu.memory_space<vmem>>, vector<1x4x3xf32>
    %1584 = vector.shape_cast %1583 : vector<1x4x3xf32> to vector<4x3xf32>
    %c5_333 = arith.constant 5 : index
    %c0_334 = arith.constant 0 : index
    %c0_335 = arith.constant 0 : index
    %1585 = vector.load %arg3[%c5_333, %c0_334, %c0_335] : memref<7x4x3xf32, #tpu.memory_space<vmem>>, vector<1x4x3xf32>
    %1586 = vector.shape_cast %1585 : vector<1x4x3xf32> to vector<4x3xf32>
    %c5_336 = arith.constant 5 : index
    %c0_337 = arith.constant 0 : index
    %c0_338 = arith.constant 0 : index
    %1587 = vector.load %arg4[%c5_336, %c0_337, %c0_338] : memref<7x4x3xf32, #tpu.memory_space<vmem>>, vector<1x4x3xf32>
    %1588 = vector.shape_cast %1587 : vector<1x4x3xf32> to vector<4x3xf32>
    %cst_339 = arith.constant 2.000000e+00 : f32
    %1589 = vector.broadcast %cst_339 : f32 to vector<4x3xf32>
    %1590 = arith.mulf %1589, %1586 : vector<4x3xf32>
    %cst_340 = arith.constant 0.000000e+00 : f32
    %1591 = vector.broadcast %cst_340 : f32 to vector<4x3xf32>
    %1592 = arith.mulf %1590, %1591 : vector<4x3xf32>
    %1593 = arith.addf %1584, %1592 : vector<4x3xf32>
    %cst_341 = arith.constant 3.000000e+00 : f32
    %1594 = vector.broadcast %cst_341 : f32 to vector<4x3xf32>
    %1595 = arith.mulf %1594, %1588 : vector<4x3xf32>
    %cst_342 = arith.constant 0.000000e+00 : f32
    %1596 = vector.broadcast %cst_342 : f32 to vector<4x3xf32>
    %1597 = arith.mulf %1595, %1596 : vector<4x3xf32>
    %1598 = arith.addf %1593, %1597 : vector<4x3xf32>
    %1599 = tpu.concatenate %1546, %1556, %1566 in 0 : vector<4x16xf32>, vector<4x16xf32>, vector<4x16xf32> -> vector<12x16xf32>
    %cst_343 = arith.constant dense<0.000000e+00> : vector<12x96xf32>
    %1600 = tpu.matmul %1599, %6, %cst_343 {dimension_numbers = #tpu.dot_dimension_numbers<[1], [0], [0], [1], [0, 0, 1, 1], [], []>} : vector<12x16xf32>, vector<16x96xf32>, vector<12x96xf32> -> vector<12x96xf32>
    %1601 = vector.broadcast %7 : vector<1x96xf32> to vector<12x96xf32>
    %1602 = arith.addf %1600, %1601 : vector<12x96xf32>
    %cst_344 = arith.constant 0.000000e+00 : f32
    %1603 = vector.broadcast %cst_344 : f32 to vector<12x96xf32>
    %1604 = arith.maximumf %1602, %1603 : vector<12x96xf32>
    %cst_345 = arith.constant dense<0.000000e+00> : vector<12x112xf32>
    %1605 = tpu.matmul %1604, %8, %cst_345 {dimension_numbers = #tpu.dot_dimension_numbers<[1], [0], [0], [1], [0, 0, 1, 1], [], []>} : vector<12x96xf32>, vector<96x112xf32>, vector<12x112xf32> -> vector<12x112xf32>
    %1606 = vector.broadcast %9 : vector<1x112xf32> to vector<12x112xf32>
    %1607 = arith.addf %1605, %1606 : vector<12x112xf32>
    %1608 = math.tanh %1607 : vector<12x112xf32>
    %1609 = vector.extract_strided_slice %1608 {offsets = [0, 0], sizes = [4, 48], strides = [1, 1]} : vector<12x112xf32> to vector<4x48xf32>
    %1610 = vector.extract_strided_slice %1608 {offsets = [4, 48], sizes = [4, 16], strides = [1, 1]} : vector<12x112xf32> to vector<4x16xf32>
    %1611 = vector.extract_strided_slice %1608 {offsets = [8, 64], sizes = [4, 48], strides = [1, 1]} : vector<12x112xf32> to vector<4x48xf32>
    %1612 = vector.extract_strided_slice %1609 {offsets = [0, 0], sizes = [4, 16], strides = [1, 1]} : vector<4x48xf32> to vector<4x16xf32>
    %1613 = vector.extract_strided_slice %1598 {offsets = [0, 0], sizes = [4, 1], strides = [1, 1]} : vector<4x3xf32> to vector<4x1xf32>
    %1614 = vector.broadcast %1613 : vector<4x1xf32> to vector<4x16xf32>
    %1615 = arith.mulf %1612, %1614 : vector<4x16xf32>
    %1616 = vector.extract_strided_slice %1611 {offsets = [0, 0], sizes = [4, 16], strides = [1, 1]} : vector<4x48xf32> to vector<4x16xf32>
    %1617 = vector.extract_strided_slice %1598 {offsets = [0, 0], sizes = [4, 1], strides = [1, 1]} : vector<4x3xf32> to vector<4x1xf32>
    %1618 = vector.broadcast %1617 : vector<4x1xf32> to vector<4x16xf32>
    %1619 = arith.mulf %1616, %1618 : vector<4x16xf32>
    %1620 = vector.extract_strided_slice %1609 {offsets = [0, 16], sizes = [4, 16], strides = [1, 1]} : vector<4x48xf32> to vector<4x16xf32>
    %1621 = vector.extract_strided_slice %1598 {offsets = [0, 1], sizes = [4, 1], strides = [1, 1]} : vector<4x3xf32> to vector<4x1xf32>
    %1622 = vector.broadcast %1621 : vector<4x1xf32> to vector<4x16xf32>
    %1623 = arith.mulf %1620, %1622 : vector<4x16xf32>
    %1624 = arith.addf %1615, %1623 : vector<4x16xf32>
    %1625 = vector.extract_strided_slice %1611 {offsets = [0, 16], sizes = [4, 16], strides = [1, 1]} : vector<4x48xf32> to vector<4x16xf32>
    %1626 = vector.extract_strided_slice %1598 {offsets = [0, 1], sizes = [4, 1], strides = [1, 1]} : vector<4x3xf32> to vector<4x1xf32>
    %1627 = vector.broadcast %1626 : vector<4x1xf32> to vector<4x16xf32>
    %1628 = arith.mulf %1625, %1627 : vector<4x16xf32>
    %1629 = arith.addf %1619, %1628 : vector<4x16xf32>
    %1630 = vector.extract_strided_slice %1609 {offsets = [0, 32], sizes = [4, 16], strides = [1, 1]} : vector<4x48xf32> to vector<4x16xf32>
    %1631 = vector.extract_strided_slice %1598 {offsets = [0, 2], sizes = [4, 1], strides = [1, 1]} : vector<4x3xf32> to vector<4x1xf32>
    %1632 = vector.broadcast %1631 : vector<4x1xf32> to vector<4x16xf32>
    %1633 = arith.mulf %1630, %1632 : vector<4x16xf32>
    %1634 = arith.addf %1624, %1633 : vector<4x16xf32>
    %1635 = vector.extract_strided_slice %1611 {offsets = [0, 32], sizes = [4, 16], strides = [1, 1]} : vector<4x48xf32> to vector<4x16xf32>
    %1636 = vector.extract_strided_slice %1598 {offsets = [0, 2], sizes = [4, 1], strides = [1, 1]} : vector<4x3xf32> to vector<4x1xf32>
    %1637 = vector.broadcast %1636 : vector<4x1xf32> to vector<4x16xf32>
    %1638 = arith.mulf %1635, %1637 : vector<4x16xf32>
    %1639 = arith.addf %1629, %1638 : vector<4x16xf32>
    %1640 = vector.broadcast %1582 : f32 to vector<4x16xf32>
    %1641 = arith.mulf %1640, %1634 : vector<4x16xf32>
    %cst_346 = arith.constant 3.000000e+00 : f32
    %1642 = vector.broadcast %cst_346 : f32 to vector<4x16xf32>
    %1643 = arith.divf %1641, %1642 : vector<4x16xf32>
    %1644 = arith.addf %1546, %1643 : vector<4x16xf32>
    %1645 = vector.broadcast %1582 : f32 to vector<4x16xf32>
    %1646 = arith.mulf %1645, %1610 : vector<4x16xf32>
    %cst_347 = arith.constant 3.000000e+00 : f32
    %1647 = vector.broadcast %cst_347 : f32 to vector<4x16xf32>
    %1648 = arith.divf %1646, %1647 : vector<4x16xf32>
    %1649 = arith.addf %1556, %1648 : vector<4x16xf32>
    %1650 = vector.broadcast %1582 : f32 to vector<4x16xf32>
    %1651 = arith.mulf %1650, %1639 : vector<4x16xf32>
    %cst_348 = arith.constant 3.000000e+00 : f32
    %1652 = vector.broadcast %cst_348 : f32 to vector<4x16xf32>
    %1653 = arith.divf %1651, %1652 : vector<4x16xf32>
    %1654 = arith.addf %1566, %1653 : vector<4x16xf32>
    %cst_349 = arith.constant 3.000000e+00 : f32
    %1655 = arith.divf %1582, %cst_349 : f32
    %cst_350 = arith.constant 2.000000e+00 : f32
    %1656 = vector.broadcast %cst_350 : f32 to vector<4x3xf32>
    %1657 = arith.mulf %1656, %1586 : vector<4x3xf32>
    %1658 = vector.broadcast %1655 : f32 to vector<4x3xf32>
    %1659 = arith.mulf %1657, %1658 : vector<4x3xf32>
    %1660 = arith.addf %1584, %1659 : vector<4x3xf32>
    %cst_351 = arith.constant 3.000000e+00 : f32
    %1661 = vector.broadcast %cst_351 : f32 to vector<4x3xf32>
    %1662 = arith.mulf %1661, %1588 : vector<4x3xf32>
    %1663 = arith.mulf %1655, %1655 : f32
    %1664 = vector.broadcast %1663 : f32 to vector<4x3xf32>
    %1665 = arith.mulf %1662, %1664 : vector<4x3xf32>
    %1666 = arith.addf %1660, %1665 : vector<4x3xf32>
    %1667 = tpu.concatenate %1644, %1649, %1654 in 0 : vector<4x16xf32>, vector<4x16xf32>, vector<4x16xf32> -> vector<12x16xf32>
    %cst_352 = arith.constant dense<0.000000e+00> : vector<12x96xf32>
    %1668 = tpu.matmul %1667, %6, %cst_352 {dimension_numbers = #tpu.dot_dimension_numbers<[1], [0], [0], [1], [0, 0, 1, 1], [], []>} : vector<12x16xf32>, vector<16x96xf32>, vector<12x96xf32> -> vector<12x96xf32>
    %1669 = vector.broadcast %7 : vector<1x96xf32> to vector<12x96xf32>
    %1670 = arith.addf %1668, %1669 : vector<12x96xf32>
    %cst_353 = arith.constant 0.000000e+00 : f32
    %1671 = vector.broadcast %cst_353 : f32 to vector<12x96xf32>
    %1672 = arith.maximumf %1670, %1671 : vector<12x96xf32>
    %cst_354 = arith.constant dense<0.000000e+00> : vector<12x112xf32>
    %1673 = tpu.matmul %1672, %8, %cst_354 {dimension_numbers = #tpu.dot_dimension_numbers<[1], [0], [0], [1], [0, 0, 1, 1], [], []>} : vector<12x96xf32>, vector<96x112xf32>, vector<12x112xf32> -> vector<12x112xf32>
    %1674 = vector.broadcast %9 : vector<1x112xf32> to vector<12x112xf32>
    %1675 = arith.addf %1673, %1674 : vector<12x112xf32>
    %1676 = math.tanh %1675 : vector<12x112xf32>
    %1677 = vector.extract_strided_slice %1676 {offsets = [0, 0], sizes = [4, 48], strides = [1, 1]} : vector<12x112xf32> to vector<4x48xf32>
    %1678 = vector.extract_strided_slice %1676 {offsets = [4, 48], sizes = [4, 16], strides = [1, 1]} : vector<12x112xf32> to vector<4x16xf32>
    %1679 = vector.extract_strided_slice %1676 {offsets = [8, 64], sizes = [4, 48], strides = [1, 1]} : vector<12x112xf32> to vector<4x48xf32>
    %1680 = vector.extract_strided_slice %1677 {offsets = [0, 0], sizes = [4, 16], strides = [1, 1]} : vector<4x48xf32> to vector<4x16xf32>
    %1681 = vector.extract_strided_slice %1666 {offsets = [0, 0], sizes = [4, 1], strides = [1, 1]} : vector<4x3xf32> to vector<4x1xf32>
    %1682 = vector.broadcast %1681 : vector<4x1xf32> to vector<4x16xf32>
    %1683 = arith.mulf %1680, %1682 : vector<4x16xf32>
    %1684 = vector.extract_strided_slice %1679 {offsets = [0, 0], sizes = [4, 16], strides = [1, 1]} : vector<4x48xf32> to vector<4x16xf32>
    %1685 = vector.extract_strided_slice %1666 {offsets = [0, 0], sizes = [4, 1], strides = [1, 1]} : vector<4x3xf32> to vector<4x1xf32>
    %1686 = vector.broadcast %1685 : vector<4x1xf32> to vector<4x16xf32>
    %1687 = arith.mulf %1684, %1686 : vector<4x16xf32>
    %1688 = vector.extract_strided_slice %1677 {offsets = [0, 16], sizes = [4, 16], strides = [1, 1]} : vector<4x48xf32> to vector<4x16xf32>
    %1689 = vector.extract_strided_slice %1666 {offsets = [0, 1], sizes = [4, 1], strides = [1, 1]} : vector<4x3xf32> to vector<4x1xf32>
    %1690 = vector.broadcast %1689 : vector<4x1xf32> to vector<4x16xf32>
    %1691 = arith.mulf %1688, %1690 : vector<4x16xf32>
    %1692 = arith.addf %1683, %1691 : vector<4x16xf32>
    %1693 = vector.extract_strided_slice %1679 {offsets = [0, 16], sizes = [4, 16], strides = [1, 1]} : vector<4x48xf32> to vector<4x16xf32>
    %1694 = vector.extract_strided_slice %1666 {offsets = [0, 1], sizes = [4, 1], strides = [1, 1]} : vector<4x3xf32> to vector<4x1xf32>
    %1695 = vector.broadcast %1694 : vector<4x1xf32> to vector<4x16xf32>
    %1696 = arith.mulf %1693, %1695 : vector<4x16xf32>
    %1697 = arith.addf %1687, %1696 : vector<4x16xf32>
    %1698 = vector.extract_strided_slice %1677 {offsets = [0, 32], sizes = [4, 16], strides = [1, 1]} : vector<4x48xf32> to vector<4x16xf32>
    %1699 = vector.extract_strided_slice %1666 {offsets = [0, 2], sizes = [4, 1], strides = [1, 1]} : vector<4x3xf32> to vector<4x1xf32>
    %1700 = vector.broadcast %1699 : vector<4x1xf32> to vector<4x16xf32>
    %1701 = arith.mulf %1698, %1700 : vector<4x16xf32>
    %1702 = arith.addf %1692, %1701 : vector<4x16xf32>
    %1703 = vector.extract_strided_slice %1679 {offsets = [0, 32], sizes = [4, 16], strides = [1, 1]} : vector<4x48xf32> to vector<4x16xf32>
    %1704 = vector.extract_strided_slice %1666 {offsets = [0, 2], sizes = [4, 1], strides = [1, 1]} : vector<4x3xf32> to vector<4x1xf32>
    %1705 = vector.broadcast %1704 : vector<4x1xf32> to vector<4x16xf32>
    %1706 = arith.mulf %1703, %1705 : vector<4x16xf32>
    %1707 = arith.addf %1697, %1706 : vector<4x16xf32>
    %cst_355 = arith.constant 3.000000e+00 : f32
    %1708 = vector.broadcast %cst_355 : f32 to vector<4x16xf32>
    %1709 = arith.divf %1634, %1708 : vector<4x16xf32>
    %1710 = arith.subf %1702, %1709 : vector<4x16xf32>
    %1711 = vector.broadcast %1582 : f32 to vector<4x16xf32>
    %1712 = arith.mulf %1711, %1710 : vector<4x16xf32>
    %1713 = arith.addf %1546, %1712 : vector<4x16xf32>
    %cst_356 = arith.constant 3.000000e+00 : f32
    %1714 = vector.broadcast %cst_356 : f32 to vector<4x16xf32>
    %1715 = arith.divf %1610, %1714 : vector<4x16xf32>
    %1716 = arith.subf %1678, %1715 : vector<4x16xf32>
    %1717 = vector.broadcast %1582 : f32 to vector<4x16xf32>
    %1718 = arith.mulf %1717, %1716 : vector<4x16xf32>
    %1719 = arith.addf %1556, %1718 : vector<4x16xf32>
    %cst_357 = arith.constant 3.000000e+00 : f32
    %1720 = vector.broadcast %cst_357 : f32 to vector<4x16xf32>
    %1721 = arith.divf %1639, %1720 : vector<4x16xf32>
    %1722 = arith.subf %1707, %1721 : vector<4x16xf32>
    %1723 = vector.broadcast %1582 : f32 to vector<4x16xf32>
    %1724 = arith.mulf %1723, %1722 : vector<4x16xf32>
    %1725 = arith.addf %1566, %1724 : vector<4x16xf32>
    %cst_358 = arith.constant 2.000000e+00 : f32
    %1726 = arith.mulf %cst_358, %1582 : f32
    %cst_359 = arith.constant 3.000000e+00 : f32
    %1727 = arith.divf %1726, %cst_359 : f32
    %cst_360 = arith.constant 2.000000e+00 : f32
    %1728 = vector.broadcast %cst_360 : f32 to vector<4x3xf32>
    %1729 = arith.mulf %1728, %1586 : vector<4x3xf32>
    %1730 = vector.broadcast %1727 : f32 to vector<4x3xf32>
    %1731 = arith.mulf %1729, %1730 : vector<4x3xf32>
    %1732 = arith.addf %1584, %1731 : vector<4x3xf32>
    %cst_361 = arith.constant 3.000000e+00 : f32
    %1733 = vector.broadcast %cst_361 : f32 to vector<4x3xf32>
    %1734 = arith.mulf %1733, %1588 : vector<4x3xf32>
    %1735 = arith.mulf %1727, %1727 : f32
    %1736 = vector.broadcast %1735 : f32 to vector<4x3xf32>
    %1737 = arith.mulf %1734, %1736 : vector<4x3xf32>
    %1738 = arith.addf %1732, %1737 : vector<4x3xf32>
    %1739 = tpu.concatenate %1713, %1719, %1725 in 0 : vector<4x16xf32>, vector<4x16xf32>, vector<4x16xf32> -> vector<12x16xf32>
    %cst_362 = arith.constant dense<0.000000e+00> : vector<12x96xf32>
    %1740 = tpu.matmul %1739, %6, %cst_362 {dimension_numbers = #tpu.dot_dimension_numbers<[1], [0], [0], [1], [0, 0, 1, 1], [], []>} : vector<12x16xf32>, vector<16x96xf32>, vector<12x96xf32> -> vector<12x96xf32>
    %1741 = vector.broadcast %7 : vector<1x96xf32> to vector<12x96xf32>
    %1742 = arith.addf %1740, %1741 : vector<12x96xf32>
    %cst_363 = arith.constant 0.000000e+00 : f32
    %1743 = vector.broadcast %cst_363 : f32 to vector<12x96xf32>
    %1744 = arith.maximumf %1742, %1743 : vector<12x96xf32>
    %cst_364 = arith.constant dense<0.000000e+00> : vector<12x112xf32>
    %1745 = tpu.matmul %1744, %8, %cst_364 {dimension_numbers = #tpu.dot_dimension_numbers<[1], [0], [0], [1], [0, 0, 1, 1], [], []>} : vector<12x96xf32>, vector<96x112xf32>, vector<12x112xf32> -> vector<12x112xf32>
    %1746 = vector.broadcast %9 : vector<1x112xf32> to vector<12x112xf32>
    %1747 = arith.addf %1745, %1746 : vector<12x112xf32>
    %1748 = math.tanh %1747 : vector<12x112xf32>
    %1749 = vector.extract_strided_slice %1748 {offsets = [0, 0], sizes = [4, 48], strides = [1, 1]} : vector<12x112xf32> to vector<4x48xf32>
    %1750 = vector.extract_strided_slice %1748 {offsets = [4, 48], sizes = [4, 16], strides = [1, 1]} : vector<12x112xf32> to vector<4x16xf32>
    %1751 = vector.extract_strided_slice %1748 {offsets = [8, 64], sizes = [4, 48], strides = [1, 1]} : vector<12x112xf32> to vector<4x48xf32>
    %1752 = vector.extract_strided_slice %1749 {offsets = [0, 0], sizes = [4, 16], strides = [1, 1]} : vector<4x48xf32> to vector<4x16xf32>
    %1753 = vector.extract_strided_slice %1738 {offsets = [0, 0], sizes = [4, 1], strides = [1, 1]} : vector<4x3xf32> to vector<4x1xf32>
    %1754 = vector.broadcast %1753 : vector<4x1xf32> to vector<4x16xf32>
    %1755 = arith.mulf %1752, %1754 : vector<4x16xf32>
    %1756 = vector.extract_strided_slice %1751 {offsets = [0, 0], sizes = [4, 16], strides = [1, 1]} : vector<4x48xf32> to vector<4x16xf32>
    %1757 = vector.extract_strided_slice %1738 {offsets = [0, 0], sizes = [4, 1], strides = [1, 1]} : vector<4x3xf32> to vector<4x1xf32>
    %1758 = vector.broadcast %1757 : vector<4x1xf32> to vector<4x16xf32>
    %1759 = arith.mulf %1756, %1758 : vector<4x16xf32>
    %1760 = vector.extract_strided_slice %1749 {offsets = [0, 16], sizes = [4, 16], strides = [1, 1]} : vector<4x48xf32> to vector<4x16xf32>
    %1761 = vector.extract_strided_slice %1738 {offsets = [0, 1], sizes = [4, 1], strides = [1, 1]} : vector<4x3xf32> to vector<4x1xf32>
    %1762 = vector.broadcast %1761 : vector<4x1xf32> to vector<4x16xf32>
    %1763 = arith.mulf %1760, %1762 : vector<4x16xf32>
    %1764 = arith.addf %1755, %1763 : vector<4x16xf32>
    %1765 = vector.extract_strided_slice %1751 {offsets = [0, 16], sizes = [4, 16], strides = [1, 1]} : vector<4x48xf32> to vector<4x16xf32>
    %1766 = vector.extract_strided_slice %1738 {offsets = [0, 1], sizes = [4, 1], strides = [1, 1]} : vector<4x3xf32> to vector<4x1xf32>
    %1767 = vector.broadcast %1766 : vector<4x1xf32> to vector<4x16xf32>
    %1768 = arith.mulf %1765, %1767 : vector<4x16xf32>
    %1769 = arith.addf %1759, %1768 : vector<4x16xf32>
    %1770 = vector.extract_strided_slice %1749 {offsets = [0, 32], sizes = [4, 16], strides = [1, 1]} : vector<4x48xf32> to vector<4x16xf32>
    %1771 = vector.extract_strided_slice %1738 {offsets = [0, 2], sizes = [4, 1], strides = [1, 1]} : vector<4x3xf32> to vector<4x1xf32>
    %1772 = vector.broadcast %1771 : vector<4x1xf32> to vector<4x16xf32>
    %1773 = arith.mulf %1770, %1772 : vector<4x16xf32>
    %1774 = arith.addf %1764, %1773 : vector<4x16xf32>
    %1775 = vector.extract_strided_slice %1751 {offsets = [0, 32], sizes = [4, 16], strides = [1, 1]} : vector<4x48xf32> to vector<4x16xf32>
    %1776 = vector.extract_strided_slice %1738 {offsets = [0, 2], sizes = [4, 1], strides = [1, 1]} : vector<4x3xf32> to vector<4x1xf32>
    %1777 = vector.broadcast %1776 : vector<4x1xf32> to vector<4x16xf32>
    %1778 = arith.mulf %1775, %1777 : vector<4x16xf32>
    %1779 = arith.addf %1769, %1778 : vector<4x16xf32>
    %1780 = arith.subf %1634, %1702 : vector<4x16xf32>
    %1781 = arith.addf %1780, %1774 : vector<4x16xf32>
    %1782 = vector.broadcast %1582 : f32 to vector<4x16xf32>
    %1783 = arith.mulf %1782, %1781 : vector<4x16xf32>
    %1784 = arith.addf %1546, %1783 : vector<4x16xf32>
    %1785 = arith.subf %1610, %1678 : vector<4x16xf32>
    %1786 = arith.addf %1785, %1750 : vector<4x16xf32>
    %1787 = vector.broadcast %1582 : f32 to vector<4x16xf32>
    %1788 = arith.mulf %1787, %1786 : vector<4x16xf32>
    %1789 = arith.addf %1556, %1788 : vector<4x16xf32>
    %1790 = arith.subf %1639, %1707 : vector<4x16xf32>
    %1791 = arith.addf %1790, %1779 : vector<4x16xf32>
    %1792 = vector.broadcast %1582 : f32 to vector<4x16xf32>
    %1793 = arith.mulf %1792, %1791 : vector<4x16xf32>
    %1794 = arith.addf %1566, %1793 : vector<4x16xf32>
    %cst_365 = arith.constant 2.000000e+00 : f32
    %1795 = vector.broadcast %cst_365 : f32 to vector<4x3xf32>
    %1796 = arith.mulf %1795, %1586 : vector<4x3xf32>
    %1797 = vector.broadcast %1582 : f32 to vector<4x3xf32>
    %1798 = arith.mulf %1796, %1797 : vector<4x3xf32>
    %1799 = arith.addf %1584, %1798 : vector<4x3xf32>
    %cst_366 = arith.constant 3.000000e+00 : f32
    %1800 = vector.broadcast %cst_366 : f32 to vector<4x3xf32>
    %1801 = arith.mulf %1800, %1588 : vector<4x3xf32>
    %1802 = arith.mulf %1582, %1582 : f32
    %1803 = vector.broadcast %1802 : f32 to vector<4x3xf32>
    %1804 = arith.mulf %1801, %1803 : vector<4x3xf32>
    %1805 = arith.addf %1799, %1804 : vector<4x3xf32>
    %1806 = tpu.concatenate %1784, %1789, %1794 in 0 : vector<4x16xf32>, vector<4x16xf32>, vector<4x16xf32> -> vector<12x16xf32>
    %cst_367 = arith.constant dense<0.000000e+00> : vector<12x96xf32>
    %1807 = tpu.matmul %1806, %6, %cst_367 {dimension_numbers = #tpu.dot_dimension_numbers<[1], [0], [0], [1], [0, 0, 1, 1], [], []>} : vector<12x16xf32>, vector<16x96xf32>, vector<12x96xf32> -> vector<12x96xf32>
    %1808 = vector.broadcast %7 : vector<1x96xf32> to vector<12x96xf32>
    %1809 = arith.addf %1807, %1808 : vector<12x96xf32>
    %cst_368 = arith.constant 0.000000e+00 : f32
    %1810 = vector.broadcast %cst_368 : f32 to vector<12x96xf32>
    %1811 = arith.maximumf %1809, %1810 : vector<12x96xf32>
    %cst_369 = arith.constant dense<0.000000e+00> : vector<12x112xf32>
    %1812 = tpu.matmul %1811, %8, %cst_369 {dimension_numbers = #tpu.dot_dimension_numbers<[1], [0], [0], [1], [0, 0, 1, 1], [], []>} : vector<12x96xf32>, vector<96x112xf32>, vector<12x112xf32> -> vector<12x112xf32>
    %1813 = vector.broadcast %9 : vector<1x112xf32> to vector<12x112xf32>
    %1814 = arith.addf %1812, %1813 : vector<12x112xf32>
    %1815 = math.tanh %1814 : vector<12x112xf32>
    %1816 = vector.extract_strided_slice %1815 {offsets = [0, 0], sizes = [4, 48], strides = [1, 1]} : vector<12x112xf32> to vector<4x48xf32>
    %1817 = vector.extract_strided_slice %1815 {offsets = [4, 48], sizes = [4, 16], strides = [1, 1]} : vector<12x112xf32> to vector<4x16xf32>
    %1818 = vector.extract_strided_slice %1815 {offsets = [8, 64], sizes = [4, 48], strides = [1, 1]} : vector<12x112xf32> to vector<4x48xf32>
    %1819 = vector.extract_strided_slice %1816 {offsets = [0, 0], sizes = [4, 16], strides = [1, 1]} : vector<4x48xf32> to vector<4x16xf32>
    %1820 = vector.extract_strided_slice %1805 {offsets = [0, 0], sizes = [4, 1], strides = [1, 1]} : vector<4x3xf32> to vector<4x1xf32>
    %1821 = vector.broadcast %1820 : vector<4x1xf32> to vector<4x16xf32>
    %1822 = arith.mulf %1819, %1821 : vector<4x16xf32>
    %1823 = vector.extract_strided_slice %1818 {offsets = [0, 0], sizes = [4, 16], strides = [1, 1]} : vector<4x48xf32> to vector<4x16xf32>
    %1824 = vector.extract_strided_slice %1805 {offsets = [0, 0], sizes = [4, 1], strides = [1, 1]} : vector<4x3xf32> to vector<4x1xf32>
    %1825 = vector.broadcast %1824 : vector<4x1xf32> to vector<4x16xf32>
    %1826 = arith.mulf %1823, %1825 : vector<4x16xf32>
    %1827 = vector.extract_strided_slice %1816 {offsets = [0, 16], sizes = [4, 16], strides = [1, 1]} : vector<4x48xf32> to vector<4x16xf32>
    %1828 = vector.extract_strided_slice %1805 {offsets = [0, 1], sizes = [4, 1], strides = [1, 1]} : vector<4x3xf32> to vector<4x1xf32>
    %1829 = vector.broadcast %1828 : vector<4x1xf32> to vector<4x16xf32>
    %1830 = arith.mulf %1827, %1829 : vector<4x16xf32>
    %1831 = arith.addf %1822, %1830 : vector<4x16xf32>
    %1832 = vector.extract_strided_slice %1818 {offsets = [0, 16], sizes = [4, 16], strides = [1, 1]} : vector<4x48xf32> to vector<4x16xf32>
    %1833 = vector.extract_strided_slice %1805 {offsets = [0, 1], sizes = [4, 1], strides = [1, 1]} : vector<4x3xf32> to vector<4x1xf32>
    %1834 = vector.broadcast %1833 : vector<4x1xf32> to vector<4x16xf32>
    %1835 = arith.mulf %1832, %1834 : vector<4x16xf32>
    %1836 = arith.addf %1826, %1835 : vector<4x16xf32>
    %1837 = vector.extract_strided_slice %1816 {offsets = [0, 32], sizes = [4, 16], strides = [1, 1]} : vector<4x48xf32> to vector<4x16xf32>
    %1838 = vector.extract_strided_slice %1805 {offsets = [0, 2], sizes = [4, 1], strides = [1, 1]} : vector<4x3xf32> to vector<4x1xf32>
    %1839 = vector.broadcast %1838 : vector<4x1xf32> to vector<4x16xf32>
    %1840 = arith.mulf %1837, %1839 : vector<4x16xf32>
    %1841 = arith.addf %1831, %1840 : vector<4x16xf32>
    %1842 = vector.extract_strided_slice %1818 {offsets = [0, 32], sizes = [4, 16], strides = [1, 1]} : vector<4x48xf32> to vector<4x16xf32>
    %1843 = vector.extract_strided_slice %1805 {offsets = [0, 2], sizes = [4, 1], strides = [1, 1]} : vector<4x3xf32> to vector<4x1xf32>
    %1844 = vector.broadcast %1843 : vector<4x1xf32> to vector<4x16xf32>
    %1845 = arith.mulf %1842, %1844 : vector<4x16xf32>
    %1846 = arith.addf %1836, %1845 : vector<4x16xf32>
    %1847 = arith.addf %1702, %1774 : vector<4x16xf32>
    %cst_370 = arith.constant 3.000000e+00 : f32
    %1848 = vector.broadcast %cst_370 : f32 to vector<4x16xf32>
    %1849 = arith.mulf %1848, %1847 : vector<4x16xf32>
    %1850 = arith.addf %1634, %1849 : vector<4x16xf32>
    %1851 = arith.addf %1850, %1841 : vector<4x16xf32>
    %1852 = vector.broadcast %1582 : f32 to vector<4x16xf32>
    %1853 = arith.mulf %1852, %1851 : vector<4x16xf32>
    %cst_371 = arith.constant 1.250000e-01 : f32
    %1854 = vector.broadcast %cst_371 : f32 to vector<4x16xf32>
    %1855 = arith.mulf %1853, %1854 : vector<4x16xf32>
    %1856 = arith.addf %1546, %1855 : vector<4x16xf32>
    %1857 = arith.addf %1678, %1750 : vector<4x16xf32>
    %cst_372 = arith.constant 3.000000e+00 : f32
    %1858 = vector.broadcast %cst_372 : f32 to vector<4x16xf32>
    %1859 = arith.mulf %1858, %1857 : vector<4x16xf32>
    %1860 = arith.addf %1610, %1859 : vector<4x16xf32>
    %1861 = arith.addf %1860, %1817 : vector<4x16xf32>
    %1862 = vector.broadcast %1582 : f32 to vector<4x16xf32>
    %1863 = arith.mulf %1862, %1861 : vector<4x16xf32>
    %cst_373 = arith.constant 1.250000e-01 : f32
    %1864 = vector.broadcast %cst_373 : f32 to vector<4x16xf32>
    %1865 = arith.mulf %1863, %1864 : vector<4x16xf32>
    %1866 = arith.addf %1556, %1865 : vector<4x16xf32>
    %1867 = arith.addf %1707, %1779 : vector<4x16xf32>
    %cst_374 = arith.constant 3.000000e+00 : f32
    %1868 = vector.broadcast %cst_374 : f32 to vector<4x16xf32>
    %1869 = arith.mulf %1868, %1867 : vector<4x16xf32>
    %1870 = arith.addf %1639, %1869 : vector<4x16xf32>
    %1871 = arith.addf %1870, %1846 : vector<4x16xf32>
    %1872 = vector.broadcast %1582 : f32 to vector<4x16xf32>
    %1873 = arith.mulf %1872, %1871 : vector<4x16xf32>
    %cst_375 = arith.constant 1.250000e-01 : f32
    %1874 = vector.broadcast %cst_375 : f32 to vector<4x16xf32>
    %1875 = arith.mulf %1873, %1874 : vector<4x16xf32>
    %1876 = arith.addf %1566, %1875 : vector<4x16xf32>
    %c6_376 = arith.constant 6 : index
    %c0_377 = arith.constant 0 : index
    %c0_378 = arith.constant 0 : index
    %1877 = vector.load %arg16[%c6_376, %c0_377, %c0_378] : memref<8x4x16xf32, #tpu.memory_space<vmem>>, vector<1x4x16xf32>
    %1878 = vector.shape_cast %1877 : vector<1x4x16xf32> to vector<4x16xf32>
    %1879 = vector.shape_cast %1856 : vector<4x16xf32> to vector<1x4x16xf32>
    tpu.vector_store %arg16[%c6_376, %c0_377, %c0_378], %1879 {strides = array<i32>} : memref<8x4x16xf32, #tpu.memory_space<vmem>>, vector<1x4x16xf32>,
    %c6_379 = arith.constant 6 : index
    %c0_380 = arith.constant 0 : index
    %c0_381 = arith.constant 0 : index
    %1880 = vector.load %arg17[%c6_379, %c0_380, %c0_381] : memref<8x4x16xf32, #tpu.memory_space<vmem>>, vector<1x4x16xf32>
    %1881 = vector.shape_cast %1880 : vector<1x4x16xf32> to vector<4x16xf32>
    %1882 = vector.shape_cast %1866 : vector<4x16xf32> to vector<1x4x16xf32>
    tpu.vector_store %arg17[%c6_379, %c0_380, %c0_381], %1882 {strides = array<i32>} : memref<8x4x16xf32, #tpu.memory_space<vmem>>, vector<1x4x16xf32>,
    %c6_382 = arith.constant 6 : index
    %c0_383 = arith.constant 0 : index
    %c0_384 = arith.constant 0 : index
    %1883 = vector.load %arg18[%c6_382, %c0_383, %c0_384] : memref<8x4x16xf32, #tpu.memory_space<vmem>>, vector<1x4x16xf32>
    %1884 = vector.shape_cast %1883 : vector<1x4x16xf32> to vector<4x16xf32>
    %1885 = vector.shape_cast %1876 : vector<4x16xf32> to vector<1x4x16xf32>
    tpu.vector_store %arg18[%c6_382, %c0_383, %c0_384], %1885 {strides = array<i32>} : memref<8x4x16xf32, #tpu.memory_space<vmem>>, vector<1x4x16xf32>,
    %cst_385 = arith.constant dense<0.000000e+00> : vector<4x2xf32>
    %1886 = tpu.matmul %1876, %4, %cst_385 {dimension_numbers = #tpu.dot_dimension_numbers<[1], [0], [0], [1], [0, 0, 1, 1], [], []>} : vector<4x16xf32>, vector<16x2xf32>, vector<4x2xf32> -> vector<4x2xf32>
    %1887 = vector.broadcast %5 : vector<1x2xf32> to vector<4x2xf32>
    %1888 = arith.addf %1886, %1887 : vector<4x2xf32>
    %c6_386 = arith.constant 6 : index
    %c0_387 = arith.constant 0 : index
    %c0_388 = arith.constant 0 : index
    %1889 = vector.load %arg19[%c6_386, %c0_387, %c0_388] : memref<8x4x2xf32, #tpu.memory_space<vmem>>, vector<1x4x2xf32>
    %1890 = vector.shape_cast %1889 : vector<1x4x2xf32> to vector<4x2xf32>
    %1891 = vector.shape_cast %1888 : vector<4x2xf32> to vector<1x4x2xf32>
    tpu.vector_store %arg19[%c6_386, %c0_387, %c0_388], %1891 {strides = array<i32>} : memref<8x4x2xf32, #tpu.memory_space<vmem>>, vector<1x4x2xf32>,
    %c7 = arith.constant 7 : index
    %1892 = memref.load %arg1[%c7] : memref<8xf32, #tpu.memory_space<smem>>
    %c6_389 = arith.constant 6 : index
    %c0_390 = arith.constant 0 : index
    %c0_391 = arith.constant 0 : index
    %1893 = vector.load %arg2[%c6_389, %c0_390, %c0_391] : memref<7x4x3xf32, #tpu.memory_space<vmem>>, vector<1x4x3xf32>
    %1894 = vector.shape_cast %1893 : vector<1x4x3xf32> to vector<4x3xf32>
    %c6_392 = arith.constant 6 : index
    %c0_393 = arith.constant 0 : index
    %c0_394 = arith.constant 0 : index
    %1895 = vector.load %arg3[%c6_392, %c0_393, %c0_394] : memref<7x4x3xf32, #tpu.memory_space<vmem>>, vector<1x4x3xf32>
    %1896 = vector.shape_cast %1895 : vector<1x4x3xf32> to vector<4x3xf32>
    %c6_395 = arith.constant 6 : index
    %c0_396 = arith.constant 0 : index
    %c0_397 = arith.constant 0 : index
    %1897 = vector.load %arg4[%c6_395, %c0_396, %c0_397] : memref<7x4x3xf32, #tpu.memory_space<vmem>>, vector<1x4x3xf32>
    %1898 = vector.shape_cast %1897 : vector<1x4x3xf32> to vector<4x3xf32>
    %cst_398 = arith.constant 2.000000e+00 : f32
    %1899 = vector.broadcast %cst_398 : f32 to vector<4x3xf32>
    %1900 = arith.mulf %1899, %1896 : vector<4x3xf32>
    %cst_399 = arith.constant 0.000000e+00 : f32
    %1901 = vector.broadcast %cst_399 : f32 to vector<4x3xf32>
    %1902 = arith.mulf %1900, %1901 : vector<4x3xf32>
    %1903 = arith.addf %1894, %1902 : vector<4x3xf32>
    %cst_400 = arith.constant 3.000000e+00 : f32
    %1904 = vector.broadcast %cst_400 : f32 to vector<4x3xf32>
    %1905 = arith.mulf %1904, %1898 : vector<4x3xf32>
    %cst_401 = arith.constant 0.000000e+00 : f32
    %1906 = vector.broadcast %cst_401 : f32 to vector<4x3xf32>
    %1907 = arith.mulf %1905, %1906 : vector<4x3xf32>
    %1908 = arith.addf %1903, %1907 : vector<4x3xf32>
    %1909 = tpu.concatenate %1856, %1866, %1876 in 0 : vector<4x16xf32>, vector<4x16xf32>, vector<4x16xf32> -> vector<12x16xf32>
    %cst_402 = arith.constant dense<0.000000e+00> : vector<12x96xf32>
    %1910 = tpu.matmul %1909, %6, %cst_402 {dimension_numbers = #tpu.dot_dimension_numbers<[1], [0], [0], [1], [0, 0, 1, 1], [], []>} : vector<12x16xf32>, vector<16x96xf32>, vector<12x96xf32> -> vector<12x96xf32>
    %1911 = vector.broadcast %7 : vector<1x96xf32> to vector<12x96xf32>
    %1912 = arith.addf %1910, %1911 : vector<12x96xf32>
    %cst_403 = arith.constant 0.000000e+00 : f32
    %1913 = vector.broadcast %cst_403 : f32 to vector<12x96xf32>
    %1914 = arith.maximumf %1912, %1913 : vector<12x96xf32>
    %cst_404 = arith.constant dense<0.000000e+00> : vector<12x112xf32>
    %1915 = tpu.matmul %1914, %8, %cst_404 {dimension_numbers = #tpu.dot_dimension_numbers<[1], [0], [0], [1], [0, 0, 1, 1], [], []>} : vector<12x96xf32>, vector<96x112xf32>, vector<12x112xf32> -> vector<12x112xf32>
    %1916 = vector.broadcast %9 : vector<1x112xf32> to vector<12x112xf32>
    %1917 = arith.addf %1915, %1916 : vector<12x112xf32>
    %1918 = math.tanh %1917 : vector<12x112xf32>
    %1919 = vector.extract_strided_slice %1918 {offsets = [0, 0], sizes = [4, 48], strides = [1, 1]} : vector<12x112xf32> to vector<4x48xf32>
    %1920 = vector.extract_strided_slice %1918 {offsets = [4, 48], sizes = [4, 16], strides = [1, 1]} : vector<12x112xf32> to vector<4x16xf32>
    %1921 = vector.extract_strided_slice %1918 {offsets = [8, 64], sizes = [4, 48], strides = [1, 1]} : vector<12x112xf32> to vector<4x48xf32>
    %1922 = vector.extract_strided_slice %1919 {offsets = [0, 0], sizes = [4, 16], strides = [1, 1]} : vector<4x48xf32> to vector<4x16xf32>
    %1923 = vector.extract_strided_slice %1908 {offsets = [0, 0], sizes = [4, 1], strides = [1, 1]} : vector<4x3xf32> to vector<4x1xf32>
    %1924 = vector.broadcast %1923 : vector<4x1xf32> to vector<4x16xf32>
    %1925 = arith.mulf %1922, %1924 : vector<4x16xf32>
    %1926 = vector.extract_strided_slice %1921 {offsets = [0, 0], sizes = [4, 16], strides = [1, 1]} : vector<4x48xf32> to vector<4x16xf32>
    %1927 = vector.extract_strided_slice %1908 {offsets = [0, 0], sizes = [4, 1], strides = [1, 1]} : vector<4x3xf32> to vector<4x1xf32>
    %1928 = vector.broadcast %1927 : vector<4x1xf32> to vector<4x16xf32>
    %1929 = arith.mulf %1926, %1928 : vector<4x16xf32>
    %1930 = vector.extract_strided_slice %1919 {offsets = [0, 16], sizes = [4, 16], strides = [1, 1]} : vector<4x48xf32> to vector<4x16xf32>
    %1931 = vector.extract_strided_slice %1908 {offsets = [0, 1], sizes = [4, 1], strides = [1, 1]} : vector<4x3xf32> to vector<4x1xf32>
    %1932 = vector.broadcast %1931 : vector<4x1xf32> to vector<4x16xf32>
    %1933 = arith.mulf %1930, %1932 : vector<4x16xf32>
    %1934 = arith.addf %1925, %1933 : vector<4x16xf32>
    %1935 = vector.extract_strided_slice %1921 {offsets = [0, 16], sizes = [4, 16], strides = [1, 1]} : vector<4x48xf32> to vector<4x16xf32>
    %1936 = vector.extract_strided_slice %1908 {offsets = [0, 1], sizes = [4, 1], strides = [1, 1]} : vector<4x3xf32> to vector<4x1xf32>
    %1937 = vector.broadcast %1936 : vector<4x1xf32> to vector<4x16xf32>
    %1938 = arith.mulf %1935, %1937 : vector<4x16xf32>
    %1939 = arith.addf %1929, %1938 : vector<4x16xf32>
    %1940 = vector.extract_strided_slice %1919 {offsets = [0, 32], sizes = [4, 16], strides = [1, 1]} : vector<4x48xf32> to vector<4x16xf32>
    %1941 = vector.extract_strided_slice %1908 {offsets = [0, 2], sizes = [4, 1], strides = [1, 1]} : vector<4x3xf32> to vector<4x1xf32>
    %1942 = vector.broadcast %1941 : vector<4x1xf32> to vector<4x16xf32>
    %1943 = arith.mulf %1940, %1942 : vector<4x16xf32>
    %1944 = arith.addf %1934, %1943 : vector<4x16xf32>
    %1945 = vector.extract_strided_slice %1921 {offsets = [0, 32], sizes = [4, 16], strides = [1, 1]} : vector<4x48xf32> to vector<4x16xf32>
    %1946 = vector.extract_strided_slice %1908 {offsets = [0, 2], sizes = [4, 1], strides = [1, 1]} : vector<4x3xf32> to vector<4x1xf32>
    %1947 = vector.broadcast %1946 : vector<4x1xf32> to vector<4x16xf32>
    %1948 = arith.mulf %1945, %1947 : vector<4x16xf32>
    %1949 = arith.addf %1939, %1948 : vector<4x16xf32>
    %1950 = vector.broadcast %1892 : f32 to vector<4x16xf32>
    %1951 = arith.mulf %1950, %1944 : vector<4x16xf32>
    %cst_405 = arith.constant 3.000000e+00 : f32
    %1952 = vector.broadcast %cst_405 : f32 to vector<4x16xf32>
    %1953 = arith.divf %1951, %1952 : vector<4x16xf32>
    %1954 = arith.addf %1856, %1953 : vector<4x16xf32>
    %1955 = vector.broadcast %1892 : f32 to vector<4x16xf32>
    %1956 = arith.mulf %1955, %1920 : vector<4x16xf32>
    %cst_406 = arith.constant 3.000000e+00 : f32
    %1957 = vector.broadcast %cst_406 : f32 to vector<4x16xf32>
    %1958 = arith.divf %1956, %1957 : vector<4x16xf32>
    %1959 = arith.addf %1866, %1958 : vector<4x16xf32>
    %1960 = vector.broadcast %1892 : f32 to vector<4x16xf32>
    %1961 = arith.mulf %1960, %1949 : vector<4x16xf32>
    %cst_407 = arith.constant 3.000000e+00 : f32
    %1962 = vector.broadcast %cst_407 : f32 to vector<4x16xf32>
    %1963 = arith.divf %1961, %1962 : vector<4x16xf32>
    %1964 = arith.addf %1876, %1963 : vector<4x16xf32>
    %cst_408 = arith.constant 3.000000e+00 : f32
    %1965 = arith.divf %1892, %cst_408 : f32
    %cst_409 = arith.constant 2.000000e+00 : f32
    %1966 = vector.broadcast %cst_409 : f32 to vector<4x3xf32>
    %1967 = arith.mulf %1966, %1896 : vector<4x3xf32>
    %1968 = vector.broadcast %1965 : f32 to vector<4x3xf32>
    %1969 = arith.mulf %1967, %1968 : vector<4x3xf32>
    %1970 = arith.addf %1894, %1969 : vector<4x3xf32>
    %cst_410 = arith.constant 3.000000e+00 : f32
    %1971 = vector.broadcast %cst_410 : f32 to vector<4x3xf32>
    %1972 = arith.mulf %1971, %1898 : vector<4x3xf32>
    %1973 = arith.mulf %1965, %1965 : f32
    %1974 = vector.broadcast %1973 : f32 to vector<4x3xf32>
    %1975 = arith.mulf %1972, %1974 : vector<4x3xf32>
    %1976 = arith.addf %1970, %1975 : vector<4x3xf32>
    %1977 = tpu.concatenate %1954, %1959, %1964 in 0 : vector<4x16xf32>, vector<4x16xf32>, vector<4x16xf32> -> vector<12x16xf32>
    %cst_411 = arith.constant dense<0.000000e+00> : vector<12x96xf32>
    %1978 = tpu.matmul %1977, %6, %cst_411 {dimension_numbers = #tpu.dot_dimension_numbers<[1], [0], [0], [1], [0, 0, 1, 1], [], []>} : vector<12x16xf32>, vector<16x96xf32>, vector<12x96xf32> -> vector<12x96xf32>
    %1979 = vector.broadcast %7 : vector<1x96xf32> to vector<12x96xf32>
    %1980 = arith.addf %1978, %1979 : vector<12x96xf32>
    %cst_412 = arith.constant 0.000000e+00 : f32
    %1981 = vector.broadcast %cst_412 : f32 to vector<12x96xf32>
    %1982 = arith.maximumf %1980, %1981 : vector<12x96xf32>
    %cst_413 = arith.constant dense<0.000000e+00> : vector<12x112xf32>
    %1983 = tpu.matmul %1982, %8, %cst_413 {dimension_numbers = #tpu.dot_dimension_numbers<[1], [0], [0], [1], [0, 0, 1, 1], [], []>} : vector<12x96xf32>, vector<96x112xf32>, vector<12x112xf32> -> vector<12x112xf32>
    %1984 = vector.broadcast %9 : vector<1x112xf32> to vector<12x112xf32>
    %1985 = arith.addf %1983, %1984 : vector<12x112xf32>
    %1986 = math.tanh %1985 : vector<12x112xf32>
    %1987 = vector.extract_strided_slice %1986 {offsets = [0, 0], sizes = [4, 48], strides = [1, 1]} : vector<12x112xf32> to vector<4x48xf32>
    %1988 = vector.extract_strided_slice %1986 {offsets = [4, 48], sizes = [4, 16], strides = [1, 1]} : vector<12x112xf32> to vector<4x16xf32>
    %1989 = vector.extract_strided_slice %1986 {offsets = [8, 64], sizes = [4, 48], strides = [1, 1]} : vector<12x112xf32> to vector<4x48xf32>
    %1990 = vector.extract_strided_slice %1987 {offsets = [0, 0], sizes = [4, 16], strides = [1, 1]} : vector<4x48xf32> to vector<4x16xf32>
    %1991 = vector.extract_strided_slice %1976 {offsets = [0, 0], sizes = [4, 1], strides = [1, 1]} : vector<4x3xf32> to vector<4x1xf32>
    %1992 = vector.broadcast %1991 : vector<4x1xf32> to vector<4x16xf32>
    %1993 = arith.mulf %1990, %1992 : vector<4x16xf32>
    %1994 = vector.extract_strided_slice %1989 {offsets = [0, 0], sizes = [4, 16], strides = [1, 1]} : vector<4x48xf32> to vector<4x16xf32>
    %1995 = vector.extract_strided_slice %1976 {offsets = [0, 0], sizes = [4, 1], strides = [1, 1]} : vector<4x3xf32> to vector<4x1xf32>
    %1996 = vector.broadcast %1995 : vector<4x1xf32> to vector<4x16xf32>
    %1997 = arith.mulf %1994, %1996 : vector<4x16xf32>
    %1998 = vector.extract_strided_slice %1987 {offsets = [0, 16], sizes = [4, 16], strides = [1, 1]} : vector<4x48xf32> to vector<4x16xf32>
    %1999 = vector.extract_strided_slice %1976 {offsets = [0, 1], sizes = [4, 1], strides = [1, 1]} : vector<4x3xf32> to vector<4x1xf32>
    %2000 = vector.broadcast %1999 : vector<4x1xf32> to vector<4x16xf32>
    %2001 = arith.mulf %1998, %2000 : vector<4x16xf32>
    %2002 = arith.addf %1993, %2001 : vector<4x16xf32>
    %2003 = vector.extract_strided_slice %1989 {offsets = [0, 16], sizes = [4, 16], strides = [1, 1]} : vector<4x48xf32> to vector<4x16xf32>
    %2004 = vector.extract_strided_slice %1976 {offsets = [0, 1], sizes = [4, 1], strides = [1, 1]} : vector<4x3xf32> to vector<4x1xf32>
    %2005 = vector.broadcast %2004 : vector<4x1xf32> to vector<4x16xf32>
    %2006 = arith.mulf %2003, %2005 : vector<4x16xf32>
    %2007 = arith.addf %1997, %2006 : vector<4x16xf32>
    %2008 = vector.extract_strided_slice %1987 {offsets = [0, 32], sizes = [4, 16], strides = [1, 1]} : vector<4x48xf32> to vector<4x16xf32>
    %2009 = vector.extract_strided_slice %1976 {offsets = [0, 2], sizes = [4, 1], strides = [1, 1]} : vector<4x3xf32> to vector<4x1xf32>
    %2010 = vector.broadcast %2009 : vector<4x1xf32> to vector<4x16xf32>
    %2011 = arith.mulf %2008, %2010 : vector<4x16xf32>
    %2012 = arith.addf %2002, %2011 : vector<4x16xf32>
    %2013 = vector.extract_strided_slice %1989 {offsets = [0, 32], sizes = [4, 16], strides = [1, 1]} : vector<4x48xf32> to vector<4x16xf32>
    %2014 = vector.extract_strided_slice %1976 {offsets = [0, 2], sizes = [4, 1], strides = [1, 1]} : vector<4x3xf32> to vector<4x1xf32>
    %2015 = vector.broadcast %2014 : vector<4x1xf32> to vector<4x16xf32>
    %2016 = arith.mulf %2013, %2015 : vector<4x16xf32>
    %2017 = arith.addf %2007, %2016 : vector<4x16xf32>
    %cst_414 = arith.constant 3.000000e+00 : f32
    %2018 = vector.broadcast %cst_414 : f32 to vector<4x16xf32>
    %2019 = arith.divf %1944, %2018 : vector<4x16xf32>
    %2020 = arith.subf %2012, %2019 : vector<4x16xf32>
    %2021 = vector.broadcast %1892 : f32 to vector<4x16xf32>
    %2022 = arith.mulf %2021, %2020 : vector<4x16xf32>
    %2023 = arith.addf %1856, %2022 : vector<4x16xf32>
    %cst_415 = arith.constant 3.000000e+00 : f32
    %2024 = vector.broadcast %cst_415 : f32 to vector<4x16xf32>
    %2025 = arith.divf %1920, %2024 : vector<4x16xf32>
    %2026 = arith.subf %1988, %2025 : vector<4x16xf32>
    %2027 = vector.broadcast %1892 : f32 to vector<4x16xf32>
    %2028 = arith.mulf %2027, %2026 : vector<4x16xf32>
    %2029 = arith.addf %1866, %2028 : vector<4x16xf32>
    %cst_416 = arith.constant 3.000000e+00 : f32
    %2030 = vector.broadcast %cst_416 : f32 to vector<4x16xf32>
    %2031 = arith.divf %1949, %2030 : vector<4x16xf32>
    %2032 = arith.subf %2017, %2031 : vector<4x16xf32>
    %2033 = vector.broadcast %1892 : f32 to vector<4x16xf32>
    %2034 = arith.mulf %2033, %2032 : vector<4x16xf32>
    %2035 = arith.addf %1876, %2034 : vector<4x16xf32>
    %cst_417 = arith.constant 2.000000e+00 : f32
    %2036 = arith.mulf %cst_417, %1892 : f32
    %cst_418 = arith.constant 3.000000e+00 : f32
    %2037 = arith.divf %2036, %cst_418 : f32
    %cst_419 = arith.constant 2.000000e+00 : f32
    %2038 = vector.broadcast %cst_419 : f32 to vector<4x3xf32>
    %2039 = arith.mulf %2038, %1896 : vector<4x3xf32>
    %2040 = vector.broadcast %2037 : f32 to vector<4x3xf32>
    %2041 = arith.mulf %2039, %2040 : vector<4x3xf32>
    %2042 = arith.addf %1894, %2041 : vector<4x3xf32>
    %cst_420 = arith.constant 3.000000e+00 : f32
    %2043 = vector.broadcast %cst_420 : f32 to vector<4x3xf32>
    %2044 = arith.mulf %2043, %1898 : vector<4x3xf32>
    %2045 = arith.mulf %2037, %2037 : f32
    %2046 = vector.broadcast %2045 : f32 to vector<4x3xf32>
    %2047 = arith.mulf %2044, %2046 : vector<4x3xf32>
    %2048 = arith.addf %2042, %2047 : vector<4x3xf32>
    %2049 = tpu.concatenate %2023, %2029, %2035 in 0 : vector<4x16xf32>, vector<4x16xf32>, vector<4x16xf32> -> vector<12x16xf32>
    %cst_421 = arith.constant dense<0.000000e+00> : vector<12x96xf32>
    %2050 = tpu.matmul %2049, %6, %cst_421 {dimension_numbers = #tpu.dot_dimension_numbers<[1], [0], [0], [1], [0, 0, 1, 1], [], []>} : vector<12x16xf32>, vector<16x96xf32>, vector<12x96xf32> -> vector<12x96xf32>
    %2051 = vector.broadcast %7 : vector<1x96xf32> to vector<12x96xf32>
    %2052 = arith.addf %2050, %2051 : vector<12x96xf32>
    %cst_422 = arith.constant 0.000000e+00 : f32
    %2053 = vector.broadcast %cst_422 : f32 to vector<12x96xf32>
    %2054 = arith.maximumf %2052, %2053 : vector<12x96xf32>
    %cst_423 = arith.constant dense<0.000000e+00> : vector<12x112xf32>
    %2055 = tpu.matmul %2054, %8, %cst_423 {dimension_numbers = #tpu.dot_dimension_numbers<[1], [0], [0], [1], [0, 0, 1, 1], [], []>} : vector<12x96xf32>, vector<96x112xf32>, vector<12x112xf32> -> vector<12x112xf32>
    %2056 = vector.broadcast %9 : vector<1x112xf32> to vector<12x112xf32>
    %2057 = arith.addf %2055, %2056 : vector<12x112xf32>
    %2058 = math.tanh %2057 : vector<12x112xf32>
    %2059 = vector.extract_strided_slice %2058 {offsets = [0, 0], sizes = [4, 48], strides = [1, 1]} : vector<12x112xf32> to vector<4x48xf32>
    %2060 = vector.extract_strided_slice %2058 {offsets = [4, 48], sizes = [4, 16], strides = [1, 1]} : vector<12x112xf32> to vector<4x16xf32>
    %2061 = vector.extract_strided_slice %2058 {offsets = [8, 64], sizes = [4, 48], strides = [1, 1]} : vector<12x112xf32> to vector<4x48xf32>
    %2062 = vector.extract_strided_slice %2059 {offsets = [0, 0], sizes = [4, 16], strides = [1, 1]} : vector<4x48xf32> to vector<4x16xf32>
    %2063 = vector.extract_strided_slice %2048 {offsets = [0, 0], sizes = [4, 1], strides = [1, 1]} : vector<4x3xf32> to vector<4x1xf32>
    %2064 = vector.broadcast %2063 : vector<4x1xf32> to vector<4x16xf32>
    %2065 = arith.mulf %2062, %2064 : vector<4x16xf32>
    %2066 = vector.extract_strided_slice %2061 {offsets = [0, 0], sizes = [4, 16], strides = [1, 1]} : vector<4x48xf32> to vector<4x16xf32>
    %2067 = vector.extract_strided_slice %2048 {offsets = [0, 0], sizes = [4, 1], strides = [1, 1]} : vector<4x3xf32> to vector<4x1xf32>
    %2068 = vector.broadcast %2067 : vector<4x1xf32> to vector<4x16xf32>
    %2069 = arith.mulf %2066, %2068 : vector<4x16xf32>
    %2070 = vector.extract_strided_slice %2059 {offsets = [0, 16], sizes = [4, 16], strides = [1, 1]} : vector<4x48xf32> to vector<4x16xf32>
    %2071 = vector.extract_strided_slice %2048 {offsets = [0, 1], sizes = [4, 1], strides = [1, 1]} : vector<4x3xf32> to vector<4x1xf32>
    %2072 = vector.broadcast %2071 : vector<4x1xf32> to vector<4x16xf32>
    %2073 = arith.mulf %2070, %2072 : vector<4x16xf32>
    %2074 = arith.addf %2065, %2073 : vector<4x16xf32>
    %2075 = vector.extract_strided_slice %2061 {offsets = [0, 16], sizes = [4, 16], strides = [1, 1]} : vector<4x48xf32> to vector<4x16xf32>
    %2076 = vector.extract_strided_slice %2048 {offsets = [0, 1], sizes = [4, 1], strides = [1, 1]} : vector<4x3xf32> to vector<4x1xf32>
    %2077 = vector.broadcast %2076 : vector<4x1xf32> to vector<4x16xf32>
    %2078 = arith.mulf %2075, %2077 : vector<4x16xf32>
    %2079 = arith.addf %2069, %2078 : vector<4x16xf32>
    %2080 = vector.extract_strided_slice %2059 {offsets = [0, 32], sizes = [4, 16], strides = [1, 1]} : vector<4x48xf32> to vector<4x16xf32>
    %2081 = vector.extract_strided_slice %2048 {offsets = [0, 2], sizes = [4, 1], strides = [1, 1]} : vector<4x3xf32> to vector<4x1xf32>
    %2082 = vector.broadcast %2081 : vector<4x1xf32> to vector<4x16xf32>
    %2083 = arith.mulf %2080, %2082 : vector<4x16xf32>
    %2084 = arith.addf %2074, %2083 : vector<4x16xf32>
    %2085 = vector.extract_strided_slice %2061 {offsets = [0, 32], sizes = [4, 16], strides = [1, 1]} : vector<4x48xf32> to vector<4x16xf32>
    %2086 = vector.extract_strided_slice %2048 {offsets = [0, 2], sizes = [4, 1], strides = [1, 1]} : vector<4x3xf32> to vector<4x1xf32>
    %2087 = vector.broadcast %2086 : vector<4x1xf32> to vector<4x16xf32>
    %2088 = arith.mulf %2085, %2087 : vector<4x16xf32>
    %2089 = arith.addf %2079, %2088 : vector<4x16xf32>
    %2090 = arith.subf %1944, %2012 : vector<4x16xf32>
    %2091 = arith.addf %2090, %2084 : vector<4x16xf32>
    %2092 = vector.broadcast %1892 : f32 to vector<4x16xf32>
    %2093 = arith.mulf %2092, %2091 : vector<4x16xf32>
    %2094 = arith.addf %1856, %2093 : vector<4x16xf32>
    %2095 = arith.subf %1920, %1988 : vector<4x16xf32>
    %2096 = arith.addf %2095, %2060 : vector<4x16xf32>
    %2097 = vector.broadcast %1892 : f32 to vector<4x16xf32>
    %2098 = arith.mulf %2097, %2096 : vector<4x16xf32>
    %2099 = arith.addf %1866, %2098 : vector<4x16xf32>
    %2100 = arith.subf %1949, %2017 : vector<4x16xf32>
    %2101 = arith.addf %2100, %2089 : vector<4x16xf32>
    %2102 = vector.broadcast %1892 : f32 to vector<4x16xf32>
    %2103 = arith.mulf %2102, %2101 : vector<4x16xf32>
    %2104 = arith.addf %1876, %2103 : vector<4x16xf32>
    %cst_424 = arith.constant 2.000000e+00 : f32
    %2105 = vector.broadcast %cst_424 : f32 to vector<4x3xf32>
    %2106 = arith.mulf %2105, %1896 : vector<4x3xf32>
    %2107 = vector.broadcast %1892 : f32 to vector<4x3xf32>
    %2108 = arith.mulf %2106, %2107 : vector<4x3xf32>
    %2109 = arith.addf %1894, %2108 : vector<4x3xf32>
    %cst_425 = arith.constant 3.000000e+00 : f32
    %2110 = vector.broadcast %cst_425 : f32 to vector<4x3xf32>
    %2111 = arith.mulf %2110, %1898 : vector<4x3xf32>
    %2112 = arith.mulf %1892, %1892 : f32
    %2113 = vector.broadcast %2112 : f32 to vector<4x3xf32>
    %2114 = arith.mulf %2111, %2113 : vector<4x3xf32>
    %2115 = arith.addf %2109, %2114 : vector<4x3xf32>
    %2116 = tpu.concatenate %2094, %2099, %2104 in 0 : vector<4x16xf32>, vector<4x16xf32>, vector<4x16xf32> -> vector<12x16xf32>
    %cst_426 = arith.constant dense<0.000000e+00> : vector<12x96xf32>
    %2117 = tpu.matmul %2116, %6, %cst_426 {dimension_numbers = #tpu.dot_dimension_numbers<[1], [0], [0], [1], [0, 0, 1, 1], [], []>} : vector<12x16xf32>, vector<16x96xf32>, vector<12x96xf32> -> vector<12x96xf32>
    %2118 = vector.broadcast %7 : vector<1x96xf32> to vector<12x96xf32>
    %2119 = arith.addf %2117, %2118 : vector<12x96xf32>
    %cst_427 = arith.constant 0.000000e+00 : f32
    %2120 = vector.broadcast %cst_427 : f32 to vector<12x96xf32>
    %2121 = arith.maximumf %2119, %2120 : vector<12x96xf32>
    %cst_428 = arith.constant dense<0.000000e+00> : vector<12x112xf32>
    %2122 = tpu.matmul %2121, %8, %cst_428 {dimension_numbers = #tpu.dot_dimension_numbers<[1], [0], [0], [1], [0, 0, 1, 1], [], []>} : vector<12x96xf32>, vector<96x112xf32>, vector<12x112xf32> -> vector<12x112xf32>
    %2123 = vector.broadcast %9 : vector<1x112xf32> to vector<12x112xf32>
    %2124 = arith.addf %2122, %2123 : vector<12x112xf32>
    %2125 = math.tanh %2124 : vector<12x112xf32>
    %2126 = vector.extract_strided_slice %2125 {offsets = [0, 0], sizes = [4, 48], strides = [1, 1]} : vector<12x112xf32> to vector<4x48xf32>
    %2127 = vector.extract_strided_slice %2125 {offsets = [4, 48], sizes = [4, 16], strides = [1, 1]} : vector<12x112xf32> to vector<4x16xf32>
    %2128 = vector.extract_strided_slice %2125 {offsets = [8, 64], sizes = [4, 48], strides = [1, 1]} : vector<12x112xf32> to vector<4x48xf32>
    %2129 = vector.extract_strided_slice %2126 {offsets = [0, 0], sizes = [4, 16], strides = [1, 1]} : vector<4x48xf32> to vector<4x16xf32>
    %2130 = vector.extract_strided_slice %2115 {offsets = [0, 0], sizes = [4, 1], strides = [1, 1]} : vector<4x3xf32> to vector<4x1xf32>
    %2131 = vector.broadcast %2130 : vector<4x1xf32> to vector<4x16xf32>
    %2132 = arith.mulf %2129, %2131 : vector<4x16xf32>
    %2133 = vector.extract_strided_slice %2128 {offsets = [0, 0], sizes = [4, 16], strides = [1, 1]} : vector<4x48xf32> to vector<4x16xf32>
    %2134 = vector.extract_strided_slice %2115 {offsets = [0, 0], sizes = [4, 1], strides = [1, 1]} : vector<4x3xf32> to vector<4x1xf32>
    %2135 = vector.broadcast %2134 : vector<4x1xf32> to vector<4x16xf32>
    %2136 = arith.mulf %2133, %2135 : vector<4x16xf32>
    %2137 = vector.extract_strided_slice %2126 {offsets = [0, 16], sizes = [4, 16], strides = [1, 1]} : vector<4x48xf32> to vector<4x16xf32>
    %2138 = vector.extract_strided_slice %2115 {offsets = [0, 1], sizes = [4, 1], strides = [1, 1]} : vector<4x3xf32> to vector<4x1xf32>
    %2139 = vector.broadcast %2138 : vector<4x1xf32> to vector<4x16xf32>
    %2140 = arith.mulf %2137, %2139 : vector<4x16xf32>
    %2141 = arith.addf %2132, %2140 : vector<4x16xf32>
    %2142 = vector.extract_strided_slice %2128 {offsets = [0, 16], sizes = [4, 16], strides = [1, 1]} : vector<4x48xf32> to vector<4x16xf32>
    %2143 = vector.extract_strided_slice %2115 {offsets = [0, 1], sizes = [4, 1], strides = [1, 1]} : vector<4x3xf32> to vector<4x1xf32>
    %2144 = vector.broadcast %2143 : vector<4x1xf32> to vector<4x16xf32>
    %2145 = arith.mulf %2142, %2144 : vector<4x16xf32>
    %2146 = arith.addf %2136, %2145 : vector<4x16xf32>
    %2147 = vector.extract_strided_slice %2126 {offsets = [0, 32], sizes = [4, 16], strides = [1, 1]} : vector<4x48xf32> to vector<4x16xf32>
    %2148 = vector.extract_strided_slice %2115 {offsets = [0, 2], sizes = [4, 1], strides = [1, 1]} : vector<4x3xf32> to vector<4x1xf32>
    %2149 = vector.broadcast %2148 : vector<4x1xf32> to vector<4x16xf32>
    %2150 = arith.mulf %2147, %2149 : vector<4x16xf32>
    %2151 = arith.addf %2141, %2150 : vector<4x16xf32>
    %2152 = vector.extract_strided_slice %2128 {offsets = [0, 32], sizes = [4, 16], strides = [1, 1]} : vector<4x48xf32> to vector<4x16xf32>
    %2153 = vector.extract_strided_slice %2115 {offsets = [0, 2], sizes = [4, 1], strides = [1, 1]} : vector<4x3xf32> to vector<4x1xf32>
    %2154 = vector.broadcast %2153 : vector<4x1xf32> to vector<4x16xf32>
    %2155 = arith.mulf %2152, %2154 : vector<4x16xf32>
    %2156 = arith.addf %2146, %2155 : vector<4x16xf32>
    %2157 = arith.addf %2012, %2084 : vector<4x16xf32>
    %cst_429 = arith.constant 3.000000e+00 : f32
    %2158 = vector.broadcast %cst_429 : f32 to vector<4x16xf32>
    %2159 = arith.mulf %2158, %2157 : vector<4x16xf32>
    %2160 = arith.addf %1944, %2159 : vector<4x16xf32>
    %2161 = arith.addf %2160, %2151 : vector<4x16xf32>
    %2162 = vector.broadcast %1892 : f32 to vector<4x16xf32>
    %2163 = arith.mulf %2162, %2161 : vector<4x16xf32>
    %cst_430 = arith.constant 1.250000e-01 : f32
    %2164 = vector.broadcast %cst_430 : f32 to vector<4x16xf32>
    %2165 = arith.mulf %2163, %2164 : vector<4x16xf32>
    %2166 = arith.addf %1856, %2165 : vector<4x16xf32>
    %2167 = arith.addf %1988, %2060 : vector<4x16xf32>
    %cst_431 = arith.constant 3.000000e+00 : f32
    %2168 = vector.broadcast %cst_431 : f32 to vector<4x16xf32>
    %2169 = arith.mulf %2168, %2167 : vector<4x16xf32>
    %2170 = arith.addf %1920, %2169 : vector<4x16xf32>
    %2171 = arith.addf %2170, %2127 : vector<4x16xf32>
    %2172 = vector.broadcast %1892 : f32 to vector<4x16xf32>
    %2173 = arith.mulf %2172, %2171 : vector<4x16xf32>
    %cst_432 = arith.constant 1.250000e-01 : f32
    %2174 = vector.broadcast %cst_432 : f32 to vector<4x16xf32>
    %2175 = arith.mulf %2173, %2174 : vector<4x16xf32>
    %2176 = arith.addf %1866, %2175 : vector<4x16xf32>
    %2177 = arith.addf %2017, %2089 : vector<4x16xf32>
    %cst_433 = arith.constant 3.000000e+00 : f32
    %2178 = vector.broadcast %cst_433 : f32 to vector<4x16xf32>
    %2179 = arith.mulf %2178, %2177 : vector<4x16xf32>
    %2180 = arith.addf %1949, %2179 : vector<4x16xf32>
    %2181 = arith.addf %2180, %2156 : vector<4x16xf32>
    %2182 = vector.broadcast %1892 : f32 to vector<4x16xf32>
    %2183 = arith.mulf %2182, %2181 : vector<4x16xf32>
    %cst_434 = arith.constant 1.250000e-01 : f32
    %2184 = vector.broadcast %cst_434 : f32 to vector<4x16xf32>
    %2185 = arith.mulf %2183, %2184 : vector<4x16xf32>
    %2186 = arith.addf %1876, %2185 : vector<4x16xf32>
    %c7_435 = arith.constant 7 : index
    %c0_436 = arith.constant 0 : index
    %c0_437 = arith.constant 0 : index
    %2187 = vector.load %arg16[%c7_435, %c0_436, %c0_437] : memref<8x4x16xf32, #tpu.memory_space<vmem>>, vector<1x4x16xf32>
    %2188 = vector.shape_cast %2187 : vector<1x4x16xf32> to vector<4x16xf32>
    %2189 = vector.shape_cast %2166 : vector<4x16xf32> to vector<1x4x16xf32>
    tpu.vector_store %arg16[%c7_435, %c0_436, %c0_437], %2189 {strides = array<i32>} : memref<8x4x16xf32, #tpu.memory_space<vmem>>, vector<1x4x16xf32>,
    %c7_438 = arith.constant 7 : index
    %c0_439 = arith.constant 0 : index
    %c0_440 = arith.constant 0 : index
    %2190 = vector.load %arg17[%c7_438, %c0_439, %c0_440] : memref<8x4x16xf32, #tpu.memory_space<vmem>>, vector<1x4x16xf32>
    %2191 = vector.shape_cast %2190 : vector<1x4x16xf32> to vector<4x16xf32>
    %2192 = vector.shape_cast %2176 : vector<4x16xf32> to vector<1x4x16xf32>
    tpu.vector_store %arg17[%c7_438, %c0_439, %c0_440], %2192 {strides = array<i32>} : memref<8x4x16xf32, #tpu.memory_space<vmem>>, vector<1x4x16xf32>,
    %c7_441 = arith.constant 7 : index
    %c0_442 = arith.constant 0 : index
    %c0_443 = arith.constant 0 : index
    %2193 = vector.load %arg18[%c7_441, %c0_442, %c0_443] : memref<8x4x16xf32, #tpu.memory_space<vmem>>, vector<1x4x16xf32>
    %2194 = vector.shape_cast %2193 : vector<1x4x16xf32> to vector<4x16xf32>
    %2195 = vector.shape_cast %2186 : vector<4x16xf32> to vector<1x4x16xf32>
    tpu.vector_store %arg18[%c7_441, %c0_442, %c0_443], %2195 {strides = array<i32>} : memref<8x4x16xf32, #tpu.memory_space<vmem>>, vector<1x4x16xf32>,
    %cst_444 = arith.constant dense<0.000000e+00> : vector<4x2xf32>
    %2196 = tpu.matmul %2186, %4, %cst_444 {dimension_numbers = #tpu.dot_dimension_numbers<[1], [0], [0], [1], [0, 0, 1, 1], [], []>} : vector<4x16xf32>, vector<16x2xf32>, vector<4x2xf32> -> vector<4x2xf32>
    %2197 = vector.broadcast %5 : vector<1x2xf32> to vector<4x2xf32>
    %2198 = arith.addf %2196, %2197 : vector<4x2xf32>
    %c7_445 = arith.constant 7 : index
    %c0_446 = arith.constant 0 : index
    %c0_447 = arith.constant 0 : index
    %2199 = vector.load %arg19[%c7_445, %c0_446, %c0_447] : memref<8x4x2xf32, #tpu.memory_space<vmem>>, vector<1x4x2xf32>
    %2200 = vector.shape_cast %2199 : vector<1x4x2xf32> to vector<4x2xf32>
    %2201 = vector.shape_cast %2198 : vector<4x2xf32> to vector<1x4x2xf32>
    tpu.vector_store %arg19[%c7_445, %c0_446, %c0_447], %2201 {strides = array<i32>} : memref<8x4x2xf32, #tpu.memory_space<vmem>>, vector<1x4x2xf32>,
    return
  }
  func.func @transform_0(%arg0: i32) -> i32 {
    %c0_i32 = arith.constant 0 : i32
    %c0_i32_0 = arith.constant 0 : i32
    return %c0_i32 : i32
  }
  func.func @transform_1(%arg0: i32) -> (i32, i32, i32) {
    %c0_i32 = arith.constant 0 : i32
    %c0_i32_0 = arith.constant 0 : i32
    %c0_i32_1 = arith.constant 0 : i32
    %c0_i32_2 = arith.constant 0 : i32
    return %c0_i32, %c0_i32_0, %c0_i32_1 : i32, i32, i32
  }
  func.func @transform_2(%arg0: i32) -> (i32, i32, i32) {
    %c0_i32 = arith.constant 0 : i32
    %c0_i32_0 = arith.constant 0 : i32
    %c0_i32_1 = arith.constant 0 : i32
    %c0_i32_2 = arith.constant 0 : i32
    return %c0_i32, %c0_i32_0, %c0_i32_1 : i32, i32, i32
  }
  func.func @transform_3(%arg0: i32) -> (i32, i32, i32) {
    %c0_i32 = arith.constant 0 : i32
    %c0_i32_0 = arith.constant 0 : i32
    %c0_i32_1 = arith.constant 0 : i32
    %c0_i32_2 = arith.constant 0 : i32
    return %c0_i32, %c0_i32_0, %c0_i32_1 : i32, i32, i32
  }
  func.func @transform_4(%arg0: i32) -> (i32, i32) {
    %c0_i32 = arith.constant 0 : i32
    %c0_i32_0 = arith.constant 0 : i32
    %c0_i32_1 = arith.constant 0 : i32
    return %c0_i32, %c0_i32_0 : i32, i32
  }
  func.func @transform_5(%arg0: i32) -> (i32, i32) {
    %c0_i32 = arith.constant 0 : i32
    %c0_i32_0 = arith.constant 0 : i32
    %c0_i32_1 = arith.constant 0 : i32
    return %c0_i32, %c0_i32_0 : i32, i32
  }
  func.func @transform_6(%arg0: i32) -> (i32, i32) {
    %c0_i32 = arith.constant 0 : i32
    %c0_i32_0 = arith.constant 0 : i32
    %c0_i32_1 = arith.constant 0 : i32
    return %c0_i32, %c0_i32_0 : i32, i32
  }
  func.func @transform_7(%arg0: i32) -> (i32, i32) {
    %c0_i32 = arith.constant 0 : i32
    %c0_i32_0 = arith.constant 0 : i32
    %c0_i32_1 = arith.constant 0 : i32
    return %c0_i32, %c0_i32_0 : i32, i32
  }
  func.func @transform_8(%arg0: i32) -> (i32, i32) {
    %c0_i32 = arith.constant 0 : i32
    %c0_i32_0 = arith.constant 0 : i32
    %c0_i32_1 = arith.constant 0 : i32
    return %c0_i32, %c0_i32_0 : i32, i32
  }
  func.func @transform_9(%arg0: i32) -> (i32, i32) {
    %c0_i32 = arith.constant 0 : i32
    %c0_i32_0 = arith.constant 0 : i32
    %c0_i32_1 = arith.constant 0 : i32
    return %c0_i32, %c0_i32_0 : i32, i32
  }
  func.func @transform_10(%arg0: i32) -> (i32, i32) {
    %c0_i32 = arith.constant 0 : i32
    %c0_i32_0 = arith.constant 0 : i32
    %c0_i32_1 = arith.constant 0 : i32
    return %c0_i32, %c0_i32_0 : i32, i32
  }
  func.func @transform_11(%arg0: i32) -> (i32, i32) {
    %c0_i32 = arith.constant 0 : i32
    %c0_i32_0 = arith.constant 0 : i32
    %c0_i32_1 = arith.constant 0 : i32
    return %c0_i32, %c0_i32_0 : i32, i32
  }
  func.func @transform_12(%arg0: i32) -> (i32, i32) {
    %c0_i32 = arith.constant 0 : i32
    %c0_i32_0 = arith.constant 0 : i32
    %c0_i32_1 = arith.constant 0 : i32
    return %c0_i32, %c0_i32_0 : i32, i32
  }
  func.func @transform_13(%arg0: i32) -> (i32, i32) {
    %c0_i32 = arith.constant 0 : i32
    %c0_i32_0 = arith.constant 0 : i32
    %c0_i32_1 = arith.constant 0 : i32
    return %c0_i32, %c0_i32_0 : i32, i32
  }
  func.func @transform_14(%arg0: i32) -> (i32, i32) {
    %c0_i32 = arith.constant 0 : i32
    %c0_i32_0 = arith.constant 0 : i32
    %c0_i32_1 = arith.constant 0 : i32
    return %c0_i32, %c0_i32_0 : i32, i32
  }
  func.func @transform_15(%arg0: i32) -> (i32, i32, i32) {
    %c0_i32 = arith.constant 0 : i32
    %c0_i32_0 = arith.constant 0 : i32
    %c0_i32_1 = arith.constant 0 : i32
    %c0_i32_2 = arith.constant 0 : i32
    return %c0_i32, %c0_i32_0, %c0_i32_1 : i32, i32, i32
  }
  func.func @transform_16(%arg0: i32) -> (i32, i32, i32) {
    %c0_i32 = arith.constant 0 : i32
    %c0_i32_0 = arith.constant 0 : i32
    %c0_i32_1 = arith.constant 0 : i32
    %c0_i32_2 = arith.constant 0 : i32
    return %c0_i32, %c0_i32_0, %c0_i32_1 : i32, i32, i32
  }
  func.func @transform_17(%arg0: i32) -> (i32, i32, i32) {
    %c0_i32 = arith.constant 0 : i32
    %c0_i32_0 = arith.constant 0 : i32
    %c0_i32_1 = arith.constant 0 : i32
    %c0_i32_2 = arith.constant 0 : i32
    return %c0_i32, %c0_i32_0, %c0_i32_1 : i32, i32, i32
  }
  func.func @transform_18(%arg0: i32) -> (i32, i32, i32) {
    %c0_i32 = arith.constant 0 : i32
    %c0_i32_0 = arith.constant 0 : i32
    %c0_i32_1 = arith.constant 0 : i32
    %c0_i32_2 = arith.constant 0 : i32
    return %c0_i32, %c0_i32_0, %c0_i32_1 : i32, i32, i32
  }
}

</mosaic_0001>

<bundles_post_ra>
// kernel: tpu_custom_call.1
= control target key start
LH: loop header
LB: loop body
LE: loop exit
PB: predicated region body
PF: predicated region fallthrough
CT: control target
= control target key end

     0   :  { %s12711_s0 = inlined_call_operand.vmem [shape: f32[8], index: 0, kind: input, shape index: {}]   ;;  %s12712_s1 = inlined_call_operand.vmem [shape: f32[7,4,3], index: 1, kind: input, shape index: {}]   ;;  %s12713_s2 = inlined_call_operand.vmem [shape: f32[7,4,3], index: 2, kind: input, shape index: {}]   ;;  %s12714_s3 = inlined_call_operand.vmem [shape: f32[7,4,3], index: 3, kind: input, shape index: {}]   ;;  %s12715_s4 = inlined_call_operand.vmem [shape: f32[4,3], index: 4, kind: input, shape index: {}]   ;;  %s12716_s5 = inlined_call_operand.vmem [shape: f32[3,16], index: 5, kind: input, shape index: {}]   ;;  %s12717_s6 = inlined_call_operand.vmem [shape: f32[1,16], index: 6, kind: input, shape index: {}]   ;;  %s12718_s7 = inlined_call_operand.vmem [shape: f32[16,16], index: 7, kind: input, shape index: {}]   ;;  %s12719_s8 = inlined_call_operand.vmem [shape: f32[1,16], index: 8, kind: input, shape index: {}]   ;;  %s12720_s9 = inlined_call_operand.vmem [shape: f32[16,2], index: 9, kind: input, shape index: {}]   ;;  %s12721_s10 = inlined_call_operand.vmem [shape: f32[1,2], index: 10, kind: input, shape index: {}]   ;;  %s12722_s11 = inlined_call_operand.vmem [shape: f32[16,96], index: 11, kind: input, shape index: {}]   ;;  %s12723_s12 = inlined_call_operand.vmem [shape: f32[1,96], index: 12, kind: input, shape index: {}]   ;;  %s12724_s13 = inlined_call_operand.vmem [shape: f32[96,112], index: 13, kind: input, shape index: {}]   ;;  %s12725_s14 = inlined_call_operand.vmem [shape: f32[1,112], index: 14, kind: input, shape index: {}]   ;;  %s12726_s15 = inlined_call_operand.hbm [shape: f32[8,4,16], index: 15, kind: output, shape index: {0}]   ;;  %s12727_s16 = inlined_call_operand.hbm [shape: f32[8,4,16], index: 16, kind: output, shape index: {1}]   ;;  %s12728_s17 = inlined_call_operand.hbm [shape: f32[8,4,16], index: 17, kind: output, shape index: {2}]   ;;  %s12729_s18 = inlined_call_operand.vmem [shape: f32[8,4,2], index: 18, kind: output, shape index: {3}]  }
   0x1   :  { %12732 = sst [smem:[#allocation12_spill]] %s12711_s0 }
   0x2   :  { %12733 = sst [smem:[#allocation13_spill]] %s12712_s1 }
   0x3   :  { %12734 = sst [smem:[#allocation14_spill]] %s12713_s2 }
   0x4   :  { %24 = vsyncpa [#allocation4], 0 }
   0x5   :  { %25 = vsyncpa [#allocation3], 0 }
   0x6   :  { %26 = vsyncpa [#allocation7], 0  ;;  %s12735_s29 = sld [smem:[#allocation12_spill]] }
   0xc   :  { %s33_s30 = sshll.u32 %s12735_s29, 4  ;;  %s34_s30 = int_to_ptr.vmem [resolvable:$true] %s33_s30 }
   0xd   :  { %s10440_s0 = scalar_lea.vmem %s34_s30, 16  ;;  %p10445_p1 = scmp.lt.s32.totalorder %s34_s30, %s34_s30 }
   0xe   :  { %p10441_p0 = scmp.ne.s32.totalorder %s34_s30, %s10440_s0  ;;  %p10446_p2 = scmp.lt.s32.totalorder %s10440_s0, %s10440_s0 }
  0x10   :  { %p10447_p3 = por %p10446_p2, %p10445_p1 }
  0x12   :  { %p10448_p4 = pnand %p10447_p3, %p10441_p0 }
  0x14   :  { %10451 = shalt.err (!%p10448_p4)
}
  0x15   :  { %s10524_s19 = smov [#allocation2]  }
  0x16   :  { %36 = dma.vmem_to_smem %s34_s30, 16, %s10524_s19, [#allocation4]  }
  0x17   :  { %10518 = dma.done.wait [#allocation4], 16  }
  0x18   :  { %10519 = vsyncadd [#allocation4], 4294967280 }
  0x19   :  { %68 = sfence }
  0x1a   :  { %v69_v0 = vld [vmem:[%s12716_s5] sm:$0x7]  ;;  %vm104_vm0 = vcmask 1042432   ;;  %vm100_vm1 = vcmask 23552   ;;  %v10525_v1 = vmov 0.0   ;;  %vm10526_vm2 = vmmov 0  }
  0x1b   :  { %8412 = vmatprep.subr.mxu0 %v10525_v1  ;;  %8414 = vmatprep.mubr.msk.f32.mxu0 %vm10526_vm2, %v10525_v1  ;;  %v93_v2 = vld [vmem:[%s12715_s4] sm:$0xf]  ;;  %v10527_v3 = vmov 0.0|0.0   ;;  %v72_v5 = vld [vmem:[%s12718_s7 + $0x8] sm:$0xff]  ;;  %vm184_vm3 = vcmask 130048   ;;  %vm258_vm4 = vcmask 125952  }
  0x1c   :  { %8413 = vmatpush3.msk.msra.mxu0 %vm104_vm0, %v69_v0  ;;  %9432 = vmatprep.subr.bf16.mxu1 %v10527_v3  ;;  %v71_v4 = vld [vmem:[%s12718_s7] sm:$0xff]  ;;  %v75_v8 = vld [vmem:[%s12720_s9 + $0x8] sm:$0xff]  ;;  %v82_v19 = vld [vmem:[%s12724_s13 + $0x10] sm:$0xff]  ;;  %vm338_vm5 = vcmask 11264   ;;  %vm353_vm6 = vcmask 1043456   ;;  %s12736_s24 = sld [smem:[#allocation14_spill]] }
  0x1d   :  { %8415 = vmatmul.mubr.msk.f32.vlgmr.msra.gmra.mrb[0].mxu0 %vm100_vm1, %v93_v2  ;;  %9435 = vmatprep.subr.bf16.mxu0 %v10527_v3  ;;  %v74_v6 = vld [vmem:[%s12720_s9] sm:$0xff]  ;;  %v9433_v7 = vpack.c.bf16 %v72_v5, %v71_v4  ;;  %v78_v15 = vld [vmem:[%s12722_s11 + $0x8] sm:$0xff]  ;;  %v83_v21 = vld [vmem:[%s12724_s13 + $0x18] sm:$0xff]  ;;  %v10528_v46 = vmov 1   ;;  %v10529_v49 = vmov 0   ;;  %s12737_s27 = sld [smem:[#allocation13_spill]] }
  0x1e   :  { %8421 = vmatprep.mubr.msk.f32.mxu1 %vm10526_vm2, %v10525_v1  ;;  %8428 = vmatprep.mubr.msk.f32.mxu0 %vm10526_vm2, %v10525_v1  ;;  %v10664_v9 = vpack.c.bf16 %v75_v8, %v74_v6  ;;  %v7719_v10 = vld [vmem:[%s12717_s6] ss:$0 sm:$0xff]  ;;  %v81_v18 = vld [vmem:[%s12724_s13 + $0x8] sm:$0xff]  ;;  %v10705_v22 = vpack.c.bf16 %v83_v21, %v82_v19  ;;  %v86_v26 = vld [vmem:[%s12724_s13 + $0x30] sm:$0xff]  ;;  %v10530_v56 = vmov 2   ;;  %vm447_vm7 = vcmask 785408  }
  0x1f   :  { %9434 = vmatpush3.bf16.msra.mxu1 %v9433_v7  ;;  %v77_v14 = vld [vmem:[%s12722_s11] sm:$0xff]  ;;  %v85_v24 = vld [vmem:[%s12724_s13 + $0x28] sm:$0xff]  ;;  %v87_v27 = vld [vmem:[%s12724_s13 + $0x38] sm:$0xff]  ;;  %10258 = vset.pattern.permute.xlu0 %v10528_v46  ;;  %s10818_s9 = sld [smem:[#allocation2 + $0x1]]  ;;  %s10531_s30 = smov 112  }
  0x20   :  { %9437 = vmatpush3.bf16.msra.mxu0 %v10664_v9  ;;  %v10686_v16 = vpack.c.bf16 %v78_v15, %v77_v14  ;;  %v80_v17 = vld [vmem:[%s12724_s13] sm:$0xff]  ;;  %v10726_v28 = vpack.c.bf16 %v87_v27, %v86_v26  ;;  %v89_v30 = vld [vmem:[%s12724_s13 + $0x48] sm:$0xff]  ;;  %v90_v42 = vld [vmem:[%s12724_s13 + $0x50] sm:$0xff]  ;;  %10260 = vset.pattern.permute.xlu1 %v10529_v49  ;;  %s10532_s0 = smov 96   ;;  %s10533_s19 = smov 80  }
  0x21   :  { %v10700_v20 = vpack.c.bf16 %v81_v18, %v80_v17  ;;  %v84_v23 = vld [vmem:[%s12724_s13 + $0x20] sm:$0xff]  ;;  %v91_v43 = vld [vmem:[%s12724_s13 + $0x58] sm:$0xff]  ;;  %s10534_s1 = smov 64   ;;  %s11083_s7 = sld [smem:[#allocation2 + $0x2]] }
  0x22   :  { %9439 = vmatprep.subr.bf16.mxu1 %v10686_v16  ;;  %v10716_v25 = vpack.c.bf16 %v85_v24, %v84_v23  ;;  %v88_v29 = vld [vmem:[%s12724_s13 + $0x40] sm:$0xff]  ;;  %v10772_v44 = vpack.c.bf16 %v91_v43, %v90_v42 }
  0x23   :  { %9443 = vmatprep.subr.bf16.mxu0 %v10700_v20  ;;  %v10736_v31 = vpack.c.bf16 %v89_v30, %v88_v29  ;;  %v7722_v32 = vld [vmem:[%s12719_s8] ss:$0 sm:$0xff] }
  0x24   :  { %v10747_v33 = vld [vmem:[%s12721_s10] ss:$0 sm:$0xff] }
  0x25   :  { %v342_v45 = vld [vmem:[%s12736_s24] sm:$0xf]  ;;  %v10821_v8 = vstv %s10818_s9  ;;  %s592_s8 = smul.f32 0.33333334, %s10818_s9 }
  0x26   :  { %v343_v47 = vld [vmem:[%s12714_s3] sm:$0xf]  ;;  %v10784_v48 = vmul.f32 2.0, %v342_v45  ;;  %s830_s21 = smul.f32 2.0, %s10818_s9 }
  0x27   :  { %v10790_v50 = vld [vmem:[%s12737_s27] sm:$0xf]  ;;  %v10792_v51 = vmul.f32 3.0, %v343_v47  ;;  %s596_s20 = smul.f32 %s592_s8, %s592_s8 }
  0x28   :  { %v345_v52 = vmul.f32 0.0, %v10784_v48  ;;  %v10803_v57 = vld [vmem:[%s12723_s12] ss:$0 sm:$0xff]  ;;  %s833_s22 = smul.f32 0.33333334, %s830_s21 }
  0x29   :  { %v348_v53 = vmul.f32 0.0, %v10792_v51  ;;  %v10814_v0 = vld [vmem:[%s12725_s14] ss:$0 sm:$0xff]  ;;  %s1073_s5 = smul.f32 %s10818_s9, %s10818_s9 }
  0x2a   :  { %v346_v54 = vadd.f32 %v345_v52, %v10790_v50  ;;  %s837_s11 = smul.f32 %s833_s22, %s833_s22 }
  0x2b   :  { %s1637_s6 = smul.f32 0.33333334, %s11083_s7 }
  0x2c   :  { %v349_v55 = vadd.f32 %v348_v53, %v346_v54  ;;  %s2118_s23 = smul.f32 %s11083_s7, %s11083_s7 }
  0x2d   :  { %s1641_s9 = smul.f32 %s1637_s6, %s1637_s6 }
  0x2e   :  { %539 = vperm.xlu0 %10258, %v349_v55   ;;  %533 = vperm.xlu1 %10260, %v349_v55  }
  0x32   :  { %10259 = vset.pattern.permute.xlu0 %v10530_v56  ;;  %10262 = vset.pattern.permute.xlu1 %v10530_v56 }
  0x33   :  { %555 = vperm.xlu0 %10259, %v349_v55  }
  0x37   :  { %10261 = vset.pattern.permute.xlu0 %v10528_v46 }
  0xad   :  { %v540_v7 = vpop.permute.xlu0 %539  ;;  %v534_v24 = vpop.permute.xlu1 %533 }
  0xb2   :  { %v556_v15 = vpop.permute.xlu0 %555 }
  0xf0   :  { %v174_v11 = vpop.f32.mrb[0].mxu0 }
  0xf1   :  { %v10670_v12 = vadd.f32 %v7719_v10, %v174_v11  ;;  %v8416_v13 = vpop.f32.mrb[1].mxu0 }
  0xf3   :  { %8422 = vmatmul.mubr.msk.f32.vlgmr.msra.gmra.mrb[0].mxu1 %vm184_vm3, %v10670_v12  ;;  %8429 = vmatmul.mubr.msk.f32.vlgmr.msra.gmra.mrb[2].mxu0 %vm184_vm3, %v10670_v12  ;;  %259 = vst.msk [vmem:[#allocation5] sm:$0xf] %vm258_vm4, %v10670_v12  ;;  %261 = vst.msk [vmem:[#allocation8] sm:$0xf] %vm258_vm4, %v10670_v12 }
  0xf4   :  { %9441 = vmatpush3.bf16.msra.mxu1 %v10686_v16  ;;  %9445 = vmatpush3.bf16.msra.mxu0 %v10700_v20 }
  0xf5   :  { %9467 = vmatprep.subr.bf16.mxu1 %v10686_v16  ;;  %9447 = vmatprep.subr.bf16.mxu0 %v10705_v22 }
  0xf8   :  { %9449 = vmatpush3.bf16.msra.mxu0 %v10705_v22 }
  0xf9   :  { %9451 = vmatprep.subr.bf16.mxu0 %v10716_v25 }
  0xfc   :  { %9453 = vmatpush3.bf16.msra.mxu0 %v10716_v25 }
  0xfd   :  { %9455 = vmatprep.subr.bf16.mxu0 %v10726_v28 }
 0x100   :  { %9457 = vmatpush3.bf16.msra.mxu0 %v10726_v28 }
 0x101   :  { %9459 = vmatprep.subr.bf16.mxu0 %v10736_v31 }
 0x104   :  { %9461 = vmatpush3.bf16.msra.mxu0 %v10736_v31 }
 0x105   :  { %9463 = vmatprep.subr.bf16.mxu0 %v10772_v44 }
 0x108   :  { %9465 = vmatpush3.bf16.msra.mxu0 %v10772_v44 }
 0x109   :  { %9495 = vmatprep.subr.bf16.mxu0 %v10686_v16 }
 0x1c6   :  { %v254_v34 = vpop.f32.mrb[0].mxu1  ;;  %v334_v35 = vpop.f32.mrb[2].mxu0 }
 0x1c7   :  { %v10749_v36 = vadd.f32 %v7722_v32, %v254_v34  ;;  %v335_v37 = vadd.f32 %v10747_v33, %v334_v35  ;;  %v8423_v38 = vpop.f32.mrb[1].mxu1  ;;  %v8430_v39 = vpop.f32.mrb[3].mxu0 }
 0x1c9   :  { %260 = vst.msk [vmem:[#allocation6] sm:$0xf] %vm258_vm4, %v10749_v36  ;;  %v351_v40 = vrot.slane %v10749_v36, 4 }
 0x1ca   :  { %339 = vst.msk [vmem:[%s12729_s18] sm:$0xf] %vm338_vm5, %v335_v37 }
 0x1cb   :  { %v354_v41 = vsel %vm353_vm6, %v10670_v12, %v351_v40 }
 0x1cc   :  { %8435 = vmatprep.mubr.msk.f32.mxu1 %vm184_vm3, %v354_v41 }
 0x1cd   :  { %8436 = vmatmul.mubr.msk.f32.vlgmr.msra.gmra.mrb[2].mxu1 %vm184_vm3, %v10670_v12 }
 0x1ce   :  { %9469 = vmatpush3.bf16.msra.mxu1 %v10686_v16 }
 0x1cf   :  { %9471 = vmatprep.subr.bf16.mxu1 %v10700_v20 }
 0x2a0   :  { %v8437_v58 = vpop.f32.mrb[2].mxu1 }
 0x2a1   :  { %v436_v59 = vadd.f32 %v8437_v58, %v10803_v57  ;;  %v430_v60 = vpop.f32.mrb[3].mxu1 }
 0x2a2   :  { %v431_v61 = vadd.f32 %v10803_v57, %v430_v60 }
 0x2a3   :  { %v440_v63 = vmax.f32 %v436_v59, 0.0  ;;  %v593_v59 = vstv %s592_s8  ;;  %s1875_s8 = smul.f32 2.0, %s11083_s7 }
 0x2a4   :  { %v439_v62 = vmax.f32 %v431_v61, 0.0  ;;  %v594_v60 = vmul.f32 %v593_v59, %v10784_v48  ;;  %v597_v61 = vstv %s596_s20 }
 0x2a5   :  { %s1878_s20 = smul.f32 0.33333334, %s1875_s8 }
 0x2a6   :  { %8462 = vmatprep.mubr.msk.f32.mxu0 %vm447_vm7, %v439_v62  ;;  %v595_v62 = vadd.f32 %v594_v60, %v10790_v50 }
 0x2a7   :  { %8463 = vmatmul.mubr.msk.f32.vlgmr.msra.gmra.mrb[4].mxu0 %vm447_vm7, %v440_v63  ;;  %v598_v63 = vmul.f32 %v597_v61, %v10792_v51  ;;  %s1882_s21 = smul.f32 %s1878_s20, %s1878_s20 }
 0x2a8   :  { %9497 = vmatpush3.bf16.msra.mxu0 %v10686_v16 }
 0x2a9   :  { %9499 = vmatprep.subr.bf16.mxu0 %v10700_v20 }
 0x37a   :  { %v8464_v2 = vpop.f32.mrb[4].mxu0 }
 0x37b   :  { %v526_v4 = vadd.f32 %v8464_v2, %v10814_v0  ;;  %v520_v5 = vpop.f32.mrb[5].mxu0  ;;  %v599_v2 = vadd.f32 %v598_v63, %v595_v62 }
 0x37c   :  { %v521_v6 = vadd.f32 %v10814_v0, %v520_v5 }
 0x37d   :  { %10317 = vtanh.f32 %v526_v4 }
 0x37e   :  { %10319 = vtanh.f32 %v521_v6 }
 0x387   :  { %v10318_v10 = vpop.eup %10317 }
 0x388   :  { %v10823_v11 = vpop.eup %10319  ;;  %v548_v13 = vmul.f32 %v10318_v10, %v540_v7  ;;  %v564_v19 = vmul.f32 %v10318_v10, %v556_v15  ;;  %v537_v27 = vmul.f32 %v10318_v10, %v534_v24 }
 0x389   :  { %v542_v14 = vmul.f32 %v10823_v11, %v540_v7  ;;  %v575_v17 = vmul.f32 %v10823_v11, %v10821_v8  ;;  %v558_v23 = vmul.f32 %v10823_v11, %v556_v15  ;;  %v536_v34 = vmul.f32 %v10823_v11, %v534_v24 }
 0x38a   :  { %550 = vrot.lane.b32.xlu1 %v548_v13, %s10531_s30  ;;  %v813_v24 = vmul.f32 0.33333334, %v10823_v11 }
 0x38b   :  { %544 = vrot.lane.b32.xlu0 %v542_v14, %s10531_s30  ;;  %v576_v18 = vmul.f32 0.33333334, %v575_v17 }
 0x38d   :  { %v578_v21 = vrot.slane %v576_v18, 4 }
 0x38e   :  { %566 = vrot.lane.b32.xlu1 %v564_v19, %s10532_s0 }
 0x38f   :  { %579 = vrot.lane.b32.xlu0 %v578_v21, %s10533_s19 }
 0x392   :  { %560 = vrot.lane.b32.xlu1 %v558_v23, %s10532_s0 }
 0x393   :  { %778 = vperm.xlu0 %10261, %v599_v2  }
 0x3fc   :  { %v551_v26 = vpop.permute.xlu1 %550 }
 0x3fd   :  { %v545_v29 = vpop.permute.xlu0 %544  ;;  %v553_v30 = vadd.f32 %v551_v26, %v537_v27  ;;  %v834_v26 = vstv %s833_s22 }
 0x3fe   :  { %v547_v37 = vadd.f32 %v545_v29, %v536_v34  ;;  %v835_v34 = vmul.f32 %v834_v26, %v10784_v48 }
 0x400   :  { %v567_v32 = vpop.permute.xlu1 %566 }
 0x401   :  { %v10835_v35 = vadd.f32 %v567_v32, %v553_v30  ;;  %v580_v39 = vpop.permute.xlu0 %579 }
 0x402   :  { %v582_v43 = vadd.f32 %v580_v39, %v10749_v36 }
 0x403   :  { %v583_v38 = vmul.f32 %v10821_v8, %v10835_v35  ;;  %v822_v61 = vmul.f32 0.33333334, %v10835_v35 }
 0x404   :  { %v561_v40 = vpop.permute.xlu1 %560  ;;  %v601_v52 = vrot.slane %v582_v43, 4 }
 0x405   :  { %v10839_v41 = vadd.f32 %v561_v40, %v547_v37  ;;  %v584_v42 = vmul.f32 0.33333334, %v583_v38  ;;  %v838_v37 = vstv %s837_s11 }
 0x406   :  { %v839_v43 = vmul.f32 %v838_v37, %v10792_v51 }
 0x407   :  { %v571_v45 = vmul.f32 %v10821_v8, %v10839_v41  ;;  %586 = vrot.lane.b32.xlu1 %v584_v42, %s10534_s1  ;;  %v836_v42 = vadd.f32 %v835_v34, %v10790_v50 }
 0x409   :  { %v573_v47 = vmul.f32 0.33333334, %v571_v45 }
 0x40b   :  { %v574_v53 = vadd.f32 %v573_v47, %v10670_v12  ;;  %794 = vperm.xlu1 %10262, %v599_v2   ;;  %v840_v47 = vadd.f32 %v839_v43, %v836_v42 }
 0x40d   :  { %v603_v54 = vsel %vm353_vm6, %v574_v53, %v601_v52 }
 0x40e   :  { %8469 = vmatprep.mubr.msk.f32.mxu1 %vm184_vm3, %v603_v54 }
 0x40f   :  { %10263 = vset.pattern.permute.xlu1 %v10529_v49 }
 0x410   :  { %772 = vperm.xlu1 %10263, %v599_v2  }
 0x412   :  { %v779_v19 = vpop.permute.xlu0 %778 }
 0x414   :  { %10264 = vset.pattern.permute.xlu1 %v10530_v56 }
 0x479   :  { %v587_v55 = vpop.permute.xlu1 %586 }
 0x47a   :  { %v589_v58 = vadd.f32 %v587_v55, %v10670_v12 }
 0x47c   :  { %8470 = vmatmul.mubr.msk.f32.vlgmr.msra.gmra.mrb[4].mxu1 %vm184_vm3, %v589_v58 }
 0x47d   :  { %9473 = vmatpush3.bf16.msra.mxu1 %v10700_v20 }
 0x47e   :  { %9475 = vmatprep.subr.bf16.mxu1 %v10705_v22 }
 0x481   :  { %9477 = vmatpush3.bf16.msra.mxu1 %v10705_v22 }
 0x482   :  { %9479 = vmatprep.subr.bf16.mxu1 %v10716_v25 }
 0x485   :  { %9481 = vmatpush3.bf16.msra.mxu1 %v10716_v25 }
 0x486   :  { %9483 = vmatprep.subr.bf16.mxu1 %v10726_v28 }
 0x489   :  { %9485 = vmatpush3.bf16.msra.mxu1 %v10726_v28 }
 0x48a   :  { %9487 = vmatprep.subr.bf16.mxu1 %v10736_v31  ;;  %v795_v23 = vpop.permute.xlu1 %794 }
 0x48d   :  { %9489 = vmatpush3.bf16.msra.mxu1 %v10736_v31 }
 0x48e   :  { %9491 = vmatprep.subr.bf16.mxu1 %v10772_v44 }
 0x48f   :  { %v773_v52 = vpop.permute.xlu1 %772 }
 0x491   :  { %9493 = vmatpush3.bf16.msra.mxu1 %v10772_v44 }
 0x492   :  { %9523 = vmatprep.subr.bf16.mxu1 %v10686_v16 }
 0x54f   :  { %v8471_v4 = vpop.f32.mrb[4].mxu1 }
 0x550   :  { %v682_v5 = vadd.f32 %v8471_v4, %v10803_v57  ;;  %v676_v6 = vpop.f32.mrb[5].mxu1 }
 0x551   :  { %v677_v7 = vadd.f32 %v10803_v57, %v676_v6 }
 0x552   :  { %v686_v13 = vmax.f32 %v682_v5, 0.0  ;;  %v809_v5 = vmul.f32 0.33333334, %v10839_v41 }
 0x553   :  { %v685_v10 = vmax.f32 %v677_v7, 0.0 }
 0x555   :  { %8496 = vmatprep.mubr.msk.f32.mxu1 %vm447_vm7, %v685_v10 }
 0x556   :  { %8497 = vmatmul.mubr.msk.f32.vlgmr.msra.gmra.mrb[6].mxu1 %vm447_vm7, %v686_v13 }
 0x557   :  { %9525 = vmatpush3.bf16.msra.mxu1 %v10686_v16 }
 0x558   :  { %9527 = vmatprep.subr.bf16.mxu1 %v10700_v20 }
 0x629   :  { %v8498_v14 = vpop.f32.mrb[6].mxu1 }
 0x62a   :  { %v765_v15 = vadd.f32 %v8498_v14, %v10814_v0  ;;  %v759_v17 = vpop.f32.mrb[7].mxu1 }
 0x62b   :  { %v760_v18 = vadd.f32 %v10814_v0, %v759_v17 }
 0x62c   :  { %10321 = vtanh.f32 %v765_v15 }
 0x62d   :  { %10323 = vtanh.f32 %v760_v18 }
 0x636   :  { %v10322_v21 = vpop.eup %10321 }
 0x637   :  { %v10878_v27 = vpop.eup %10323  ;;  %v803_v29 = vmul.f32 %v10322_v21, %v795_v23  ;;  %v787_v30 = vmul.f32 %v10322_v21, %v779_v19  ;;  %v776_v53 = vmul.f32 %v10322_v21, %v773_v52 }
 0x638   :  { %v814_v32 = vsub.f32 %v10878_v27, %v813_v24  ;;  %v797_v38 = vmul.f32 %v10878_v27, %v795_v23  ;;  %v781_v39 = vmul.f32 %v10878_v27, %v779_v19  ;;  %v775_v59 = vmul.f32 %v10878_v27, %v773_v52 }
 0x639   :  { %805 = vrot.lane.b32.xlu1 %v803_v29, %s10532_s0  ;;  %789 = vrot.lane.b32.xlu0 %v787_v30, %s10531_s30 }
 0x63a   :  { %v815_v40 = vmul.f32 %v814_v32, %v10821_v8 }
 0x63c   :  { %v817_v45 = vrot.slane %v815_v40, 4 }
 0x63d   :  { %799 = vrot.lane.b32.xlu1 %v797_v38, %s10532_s0  ;;  %783 = vrot.lane.b32.xlu0 %v781_v39, %s10531_s30 }
 0x641   :  { %818 = vrot.lane.b32.xlu0 %v817_v45, %s10533_s19  ;;  %v1054_v45 = vsub.f32 %v10823_v11, %v10878_v27 }
 0x645   :  { %1019 = vperm.xlu0 %10261, %v840_v47  }
 0x649   :  { %10265 = vset.pattern.permute.xlu0 %v10529_v49 }
 0x64a   :  { %1013 = vperm.xlu0 %10265, %v840_v47  }
 0x64e   :  { %10266 = vset.pattern.permute.xlu0 %v10528_v46 }
 0x6ab   :  { %v806_v54 = vpop.permute.xlu1 %805  ;;  %v790_v55 = vpop.permute.xlu0 %789 }
 0x6ac   :  { %v792_v58 = vadd.f32 %v790_v55, %v776_v53 }
 0x6ae   :  { %v10895_v60 = vadd.f32 %v806_v54, %v792_v58  ;;  %v1071_v58 = vmul.f32 %v10821_v8, %v10784_v48 }
 0x6af   :  { %v784_v62 = vpop.permute.xlu0 %783  ;;  %v800_v4 = vpop.permute.xlu1 %799 }
 0x6b0   :  { %v786_v63 = vadd.f32 %v784_v62, %v775_v59  ;;  %v823_v2 = vsub.f32 %v10895_v60, %v822_v61  ;;  %v1074_v59 = vstv %s1073_s5 }
 0x6b2   :  { %v10900_v6 = vadd.f32 %v800_v4, %v786_v63  ;;  %v824_v7 = vmul.f32 %v823_v2, %v10821_v8  ;;  %v1072_v2 = vadd.f32 %v1071_v58, %v10790_v50  ;;  %v1075_v4 = vmul.f32 %v1074_v59, %v10792_v51 }
 0x6b3   :  { %v819_v10 = vpop.permute.xlu0 %818  ;;  %v1063_v51 = vsub.f32 %v10835_v35, %v10895_v60 }
 0x6b4   :  { %v810_v13 = vsub.f32 %v10900_v6, %v809_v5  ;;  %v821_v14 = vadd.f32 %v819_v10, %v10749_v36  ;;  %826 = vrot.lane.b32.xlu1 %v824_v7, %s10534_s1  ;;  %v1076_v48 = vadd.f32 %v1075_v4, %v1072_v2 }
 0x6b6   :  { %v811_v15 = vmul.f32 %v810_v13, %v10821_v8  ;;  %v842_v17 = vrot.slane %v821_v14, 4 }
 0x6b8   :  { %v812_v18 = vadd.f32 %v811_v15, %v10670_v12  ;;  %1035 = vperm.xlu1 %10264, %v840_v47  }
 0x6ba   :  { %v844_v19 = vsel %vm353_vm6, %v812_v18, %v842_v17 }
 0x6bb   :  { %8503 = vmatprep.mubr.msk.f32.mxu0 %vm184_vm3, %v844_v19 }
 0x6c4   :  { %v1020_v43 = vpop.permute.xlu0 %1019 }
 0x6c9   :  { %v1014_v7 = vpop.permute.xlu0 %1013 }
 0x726   :  { %v827_v21 = vpop.permute.xlu1 %826 }
 0x727   :  { %v829_v23 = vadd.f32 %v827_v21, %v10670_v12 }
 0x729   :  { %8504 = vmatmul.mubr.msk.f32.vlgmr.msra.gmra.mrb[6].mxu0 %vm184_vm3, %v829_v23 }
 0x72a   :  { %9501 = vmatpush3.bf16.msra.mxu0 %v10700_v20 }
 0x72b   :  { %9503 = vmatprep.subr.bf16.mxu0 %v10705_v22 }
 0x72e   :  { %9505 = vmatpush3.bf16.msra.mxu0 %v10705_v22 }
 0x72f   :  { %9507 = vmatprep.subr.bf16.mxu0 %v10716_v25 }
 0x732   :  { %9509 = vmatpush3.bf16.msra.mxu0 %v10716_v25 }
 0x733   :  { %9511 = vmatprep.subr.bf16.mxu0 %v10726_v28 }
 0x736   :  { %9513 = vmatpush3.bf16.msra.mxu0 %v10726_v28 }
 0x737   :  { %9515 = vmatprep.subr.bf16.mxu0 %v10736_v31  ;;  %v1036_v53 = vpop.permute.xlu1 %1035 }
 0x73a   :  { %9517 = vmatpush3.bf16.msra.mxu0 %v10736_v31 }
 0x73b   :  { %9519 = vmatprep.subr.bf16.mxu0 %v10772_v44 }
 0x73e   :  { %9521 = vmatpush3.bf16.msra.mxu0 %v10772_v44 }
 0x73f   :  { %9550 = vmatprep.subr.bf16.mxu0 %v10527_v3 }
 0x7fc   :  { %v8505_v24 = vpop.f32.mrb[6].mxu0 }
 0x7fd   :  { %v923_v26 = vadd.f32 %v8505_v24, %v10803_v57  ;;  %v917_v29 = vpop.f32.mrb[7].mxu0 }
 0x7fe   :  { %v918_v30 = vadd.f32 %v10803_v57, %v917_v29 }
 0x7ff   :  { %v927_v34 = vmax.f32 %v923_v26, 0.0  ;;  %v1050_v26 = vsub.f32 %v10839_v41, %v10900_v6 }
 0x800   :  { %v926_v32 = vmax.f32 %v918_v30, 0.0 }
 0x802   :  { %8530 = vmatprep.mubr.msk.f32.mxu0 %vm447_vm7, %v926_v32 }
 0x803   :  { %8531 = vmatmul.mubr.msk.f32.vlgmr.msra.gmra.mrb[8].mxu0 %vm447_vm7, %v927_v34 }
 0x804   :  { %9552 = vmatpush3.bf16.msra.mxu0 %v10664_v9  ;;  %8571 = vmatprep.mubr.msk.f32.mxu0 %vm10526_vm2, %v10525_v1 }
 0x805   :  { %9554 = vmatprep.subr.bf16.mxu0 %v10686_v16 }
 0x8d6   :  { %v8532_v37 = vpop.f32.mrb[8].mxu0 }
 0x8d7   :  { %v1006_v38 = vadd.f32 %v8532_v37, %v10814_v0  ;;  %v1000_v39 = vpop.f32.mrb[9].mxu0 }
 0x8d8   :  { %v1001_v40 = vadd.f32 %v10814_v0, %v1000_v39 }
 0x8d9   :  { %10325 = vtanh.f32 %v1006_v38 }
 0x8da   :  { %10327 = vtanh.f32 %v1001_v40 }
 0x8e3   :  { %v10326_v42 = vpop.eup %10325 }
 0x8e4   :  { %v10938_v47 = vpop.eup %10327  ;;  %v1028_v52 = vmul.f32 %v10326_v42, %v1020_v43  ;;  %v1044_v62 = vmul.f32 %v10326_v42, %v1036_v53  ;;  %v1017_v13 = vmul.f32 %v10326_v42, %v1014_v7 }
 0x8e5   :  { %v1022_v54 = vmul.f32 %v10938_v47, %v1020_v43  ;;  %v1055_v55 = vadd.f32 %v10938_v47, %v1054_v45  ;;  %v1038_v5 = vmul.f32 %v10938_v47, %v1036_v53  ;;  %v1016_v50 = vmul.f32 %v10938_v47, %v1014_v7 }
 0x8e6   :  { %1030 = vrot.lane.b32.xlu1 %v1028_v52, %s10531_s30  ;;  %v1293_v2 = vadd.f32 %v10938_v47, %v10878_v27 }
 0x8e7   :  { %1024 = vrot.lane.b32.xlu0 %v1022_v54, %s10531_s30  ;;  %v1056_v61 = vmul.f32 %v1055_v55, %v10821_v8 }
 0x8e8   :  { %v1294_v4 = vmul.f32 3.0, %v1293_v2 }
 0x8e9   :  { %v1058_v63 = vrot.slane %v1056_v61, 4 }
 0x8ea   :  { %1046 = vrot.lane.b32.xlu1 %v1044_v62, %s10532_s0 }
 0x8eb   :  { %1059 = vrot.lane.b32.xlu0 %v1058_v63, %s10533_s19 }
 0x8ee   :  { %1040 = vrot.lane.b32.xlu1 %v1038_v5, %s10532_s0  ;;  %v7749_v5 = vld [vmem:[%s12736_s24 + $0x4] sm:$0xf] }
 0x8ef   :  { %1255 = vperm.xlu0 %10266, %v1076_v48   ;;  %v11010_v7 = vmul.f32 2.0, %v7749_v5 }
 0x8f1   :  { %v1405_v47 = vmul.f32 0.0, %v11010_v7 }
 0x958   :  { %v1031_v10 = vpop.permute.xlu1 %1030 }
 0x959   :  { %v1025_v14 = vpop.permute.xlu0 %1024  ;;  %v1033_v15 = vadd.f32 %v1031_v10, %v1017_v13 }
 0x95a   :  { %v1027_v19 = vadd.f32 %v1025_v14, %v1016_v50  ;;  %v1295_v14 = vadd.f32 %v10823_v11, %v1294_v4  ;;  %v11025_v11 = vld [vmem:[%s12737_s27 + $0x4] sm:$0xf] }
 0x95c   :  { %v1047_v17 = vpop.permute.xlu1 %1046 }
 0x95d   :  { %v10956_v18 = vadd.f32 %v1047_v17, %v1033_v15  ;;  %v1060_v23 = vpop.permute.xlu0 %1059  ;;  %v7750_v15 = vld [vmem:[%s12714_s3 + $0x4] sm:$0xf] }
 0x95e   :  { %v1062_v32 = vadd.f32 %v1060_v23, %v10749_v36 }
 0x95f   :  { %v1064_v21 = vadd.f32 %v1063_v51, %v10956_v18 }
 0x960   :  { %v1041_v24 = vpop.permute.xlu1 %1040  ;;  %v1078_v38 = vrot.slane %v1062_v32, 4 }
 0x961   :  { %v10961_v29 = vadd.f32 %v1041_v24, %v1027_v19  ;;  %v1065_v30 = vmul.f32 %v1064_v21, %v10821_v8  ;;  %v11019_v19 = vmul.f32 3.0, %v7750_v15 }
 0x963   :  { %v1051_v34 = vadd.f32 %v1050_v26, %v10961_v29  ;;  %1067 = vrot.lane.b32.xlu1 %v1065_v30, %s10534_s1  ;;  %v1406_v30 = vadd.f32 %v11025_v11, %v1405_v47  ;;  %v1408_v32 = vmul.f32 0.0, %v11019_v19 }
 0x965   :  { %v1052_v37 = vmul.f32 %v1051_v34, %v10821_v8 }
 0x967   :  { %v1053_v39 = vadd.f32 %v1052_v37, %v10670_v12  ;;  %1271 = vperm.xlu1 %10264, %v1076_v48   ;;  %v1409_v37 = vadd.f32 %v1408_v32, %v1406_v30  ;;  %v11087_v32 = vstv %s11083_s7 }
 0x969   :  { %v1080_v40 = vsel %vm353_vm6, %v1053_v39, %v1078_v38  ;;  %v1305_v38 = vadd.f32 %v10956_v18, %v10895_v60 }
 0x96a   :  { %8537 = vmatprep.mubr.msk.f32.mxu1 %vm184_vm3, %v1080_v40 }
 0x96b   :  { %10267 = vset.pattern.permute.xlu1 %v10529_v49  ;;  %v1306_v40 = vmul.f32 3.0, %v1305_v38 }
 0x96c   :  { %1249 = vperm.xlu1 %10267, %v1076_v48  }
 0x96e   :  { %v1256_v48 = vpop.permute.xlu0 %1255 }
 0x970   :  { %10268 = vset.pattern.permute.xlu1 %v10530_v56 }
 0x9d5   :  { %v1068_v42 = vpop.permute.xlu1 %1067 }
 0x9d6   :  { %v1070_v43 = vadd.f32 %v1068_v42, %v10670_v12  ;;  %v1286_v42 = vadd.f32 %v10961_v29, %v10900_v6 }
 0x9d8   :  { %8538 = vmatmul.mubr.msk.f32.vlgmr.msra.gmra.mrb[8].mxu1 %vm184_vm3, %v1070_v43 }
 0x9d9   :  { %9529 = vmatpush3.bf16.msra.mxu1 %v10700_v20 }
 0x9da   :  { %9531 = vmatprep.subr.bf16.mxu1 %v10705_v22 }
 0x9dd   :  { %9533 = vmatpush3.bf16.msra.mxu1 %v10705_v22 }
 0x9de   :  { %9535 = vmatprep.subr.bf16.mxu1 %v10716_v25 }
 0x9e1   :  { %9537 = vmatpush3.bf16.msra.mxu1 %v10716_v25 }
 0x9e2   :  { %9539 = vmatprep.subr.bf16.mxu1 %v10726_v28 }
 0x9e5   :  { %9541 = vmatpush3.bf16.msra.mxu1 %v10726_v28 }
 0x9e6   :  { %9543 = vmatprep.subr.bf16.mxu1 %v10736_v31  ;;  %v1272_v13 = vpop.permute.xlu1 %1271 }
 0x9e9   :  { %9545 = vmatpush3.bf16.msra.mxu1 %v10736_v31 }
 0x9ea   :  { %9547 = vmatprep.subr.bf16.mxu1 %v10772_v44 }
 0x9eb   :  { %v1250_v39 = vpop.permute.xlu1 %1249 }
 0x9ed   :  { %9549 = vmatpush3.bf16.msra.mxu1 %v10772_v44 }
 0x9ee   :  { %9558 = vmatprep.subr.bf16.mxu1 %v10700_v20 }
 0xaab   :  { %v8539_v45 = vpop.f32.mrb[8].mxu1 }
 0xaac   :  { %v1159_v52 = vadd.f32 %v8539_v45, %v10803_v57  ;;  %v1153_v53 = vpop.f32.mrb[9].mxu1 }
 0xaad   :  { %v1154_v54 = vadd.f32 %v10803_v57, %v1153_v53 }
 0xaae   :  { %v1163_v58 = vmax.f32 %v1159_v52, 0.0 }
 0xaaf   :  { %v1162_v55 = vmax.f32 %v1154_v54, 0.0  ;;  %v1307_v54 = vadd.f32 %v1306_v40, %v10835_v35 }
 0xab1   :  { %8564 = vmatprep.mubr.msk.f32.mxu1 %vm447_vm7, %v1162_v55  ;;  %v1287_v55 = vmul.f32 3.0, %v1286_v42 }
 0xab2   :  { %8565 = vmatmul.mubr.msk.f32.vlgmr.msra.gmra.mrb[10].mxu1 %vm447_vm7, %v1163_v58 }
 0xab3   :  { %9560 = vmatpush3.bf16.msra.mxu1 %v10700_v20  ;;  %v1288_v60 = vadd.f32 %v1287_v55, %v10839_v41 }
 0xab4   :  { %9562 = vmatprep.subr.bf16.mxu1 %v10705_v22 }
 0xab7   :  { %9564 = vmatpush3.bf16.msra.mxu1 %v10705_v22 }
 0xab8   :  { %9566 = vmatprep.subr.bf16.mxu1 %v10716_v25 }
 0xabb   :  { %9568 = vmatpush3.bf16.msra.mxu1 %v10716_v25 }
 0xabc   :  { %9570 = vmatprep.subr.bf16.mxu1 %v10726_v28 }
 0xabf   :  { %9572 = vmatpush3.bf16.msra.mxu1 %v10726_v28 }
 0xac0   :  { %9574 = vmatprep.subr.bf16.mxu1 %v10736_v31 }
 0xac3   :  { %9576 = vmatpush3.bf16.msra.mxu1 %v10736_v31 }
 0xac4   :  { %9578 = vmatprep.subr.bf16.mxu1 %v10772_v44 }
 0xac7   :  { %9580 = vmatpush3.bf16.msra.mxu1 %v10772_v44 }
 0xac8   :  { %9610 = vmatprep.subr.bf16.mxu1 %v10686_v16 }
 0xb85   :  { %v8566_v59 = vpop.f32.mrb[10].mxu1 }
 0xb86   :  { %v1242_v61 = vadd.f32 %v8566_v59, %v10814_v0  ;;  %v1236_v62 = vpop.f32.mrb[11].mxu1 }
 0xb87   :  { %v1237_v63 = vadd.f32 %v10814_v0, %v1236_v62 }
 0xb88   :  { %10329 = vtanh.f32 %v1242_v61 }
 0xb89   :  { %10331 = vtanh.f32 %v1237_v63 }
 0xb92   :  { %v10330_v10 = vpop.eup %10329 }
 0xb93   :  { %v10332_v17 = vpop.eup %10331  ;;  %v1264_v50 = vmul.f32 %v10330_v10, %v1256_v48  ;;  %v1280_v51 = vmul.f32 %v10330_v10, %v1272_v13  ;;  %v1253_v43 = vmul.f32 %v10330_v10, %v1250_v39 }
 0xb94   :  { %v1296_v27 = vadd.f32 %v10332_v17, %v1295_v14  ;;  %v1258_v23 = vmul.f32 %v10332_v17, %v1256_v48  ;;  %v1274_v24 = vmul.f32 %v10332_v17, %v1272_v13  ;;  %v1252_v58 = vmul.f32 %v10332_v17, %v1250_v39 }
 0xb95   :  { %1282 = vrot.lane.b32.xlu1 %v1280_v51, %s10532_s0  ;;  %1266 = vrot.lane.b32.xlu0 %v1264_v50, %s10531_s30 }
 0xb96   :  { %v1297_v21 = vmul.f32 %v1296_v27, %v10821_v8 }
 0xb98   :  { %v1298_v26 = vmul.f32 0.125, %v1297_v21 }
 0xb99   :  { %1276 = vrot.lane.b32.xlu1 %v1274_v24, %s10532_s0  ;;  %1260 = vrot.lane.b32.xlu0 %v1258_v23, %s10531_s30 }
 0xb9a   :  { %v1300_v34 = vrot.slane %v1298_v26, 4 }
 0xb9d   :  { %1301 = vrot.lane.b32.xlu0 %v1300_v34, %s10533_s19  ;;  %v1638_v34 = vstv %s1637_s6 }
 0xba1   :  { %1585 = vperm.xlu0 %10266, %v1409_v37  }
 0xba5   :  { %10269 = vset.pattern.permute.xlu0 %v10529_v49 }
 0xba6   :  { %1579 = vperm.xlu0 %10269, %v1409_v37  }
 0xbaa   :  { %10270 = vset.pattern.permute.xlu0 %v10528_v46 }
 0xc07   :  { %v1283_v45 = vpop.permute.xlu1 %1282  ;;  %v1267_v52 = vpop.permute.xlu0 %1266 }
 0xc08   :  { %v1269_v53 = vadd.f32 %v1267_v52, %v1253_v43  ;;  %v1639_v52 = vmul.f32 %v1638_v34, %v11010_v7 }
 0xc0a   :  { %v1285_v59 = vadd.f32 %v1283_v45, %v1269_v53  ;;  %v1642_v53 = vstv %s1641_s9 }
 0xc0b   :  { %v1261_v61 = vpop.permute.xlu0 %1260  ;;  %v1277_v2 = vpop.permute.xlu1 %1276 }
 0xc0c   :  { %v1308_v62 = vadd.f32 %v1307_v54, %v1285_v59  ;;  %v1263_v63 = vadd.f32 %v1261_v61, %v1252_v58  ;;  %v1640_v59 = vadd.f32 %v11025_v11, %v1639_v52  ;;  %v1643_v61 = vmul.f32 %v1642_v53, %v11019_v19 }
 0xc0e   :  { %v1279_v18 = vadd.f32 %v1277_v2, %v1263_v63  ;;  %v1309_v4 = vmul.f32 %v1308_v62, %v10821_v8  ;;  %v1644_v63 = vadd.f32 %v1643_v61, %v1640_v59 }
 0xc0f   :  { %v1302_v5 = vpop.permute.xlu0 %1301 }
 0xc10   :  { %v1289_v6 = vadd.f32 %v1288_v60, %v1279_v18  ;;  %v11042_v29 = vadd.f32 %v1302_v5, %v10749_v36  ;;  %v1310_v48 = vmul.f32 0.125, %v1309_v4 }
 0xc12   :  { %v1290_v35 = vmul.f32 %v1289_v6, %v10821_v8  ;;  %1319 = vst.msk [vmem:[#allocation6 + $0x4] sm:$0xf] %vm258_vm4, %v11042_v29  ;;  %1312 = vrot.lane.b32.xlu1 %v1310_v48, %s10534_s1  ;;  %v1411_v14 = vrot.slane %v11042_v29, 4 }
 0xc14   :  { %v1291_v10 = vmul.f32 0.125, %v1290_v35 }
 0xc16   :  { %v11049_v13 = vadd.f32 %v1291_v10, %v10670_v12  ;;  %1601 = vperm.xlu1 %10268, %v1409_v37  }
 0xc18   :  { %1317 = vst.msk [vmem:[#allocation5 + $0x4] sm:$0xf] %vm258_vm4, %v11049_v13  ;;  %v1413_v8 = vsel %vm353_vm6, %v11049_v13, %v1411_v14 }
 0xc20   :  { %v1586_v38 = vpop.permute.xlu0 %1585 }
 0xc25   :  { %v1580_v2 = vpop.permute.xlu0 %1579 }
 0xc84   :  { %v1313_v41 = vpop.permute.xlu1 %1312 }
 0xc85   :  { %v11054_v36 = vadd.f32 %v1313_v41, %v10670_v12 }
 0xc87   :  { %1321 = vst.msk [vmem:[#allocation8 + $0x4] sm:$0xf] %vm258_vm4, %v11054_v36  ;;  %8572 = vmatmul.mubr.msk.f32.vlgmr.msra.gmra.mrb[10].mxu0 %vm184_vm3, %v11054_v36 }
 0xc88   :  { %9556 = vmatpush3.bf16.msra.mxu0 %v10686_v16  ;;  %8578 = vmatprep.mubr.msk.f32.mxu0 %vm184_vm3, %v1413_v8 }
 0xc89   :  { %9582 = vmatprep.subr.bf16.mxu0 %v10686_v16 }
 0xc8b   :  { %8579 = vmatmul.mubr.msk.f32.vlgmr.msra.gmra.mrb[12].mxu0 %vm184_vm3, %v11054_v36 }
 0xc8c   :  { %9584 = vmatpush3.bf16.msra.mxu0 %v10686_v16 }
 0xc8d   :  { %9586 = vmatprep.subr.bf16.mxu0 %v10700_v20 }
 0xc95   :  { %v1602_v42 = vpop.permute.xlu1 %1601 }
 0xd5a   :  { %v1391_v12 = vpop.f32.mrb[10].mxu0 }
 0xd5b   :  { %v1392_v15 = vadd.f32 %v10747_v33, %v1391_v12  ;;  %v8573_v17 = vpop.f32.mrb[11].mxu0 }
 0xd5d   :  { %7746 = vst.msk [vmem:[%s12729_s18 + $0x4] sm:$0xf] %vm338_vm5, %v1392_v15 }
 0xd5e   :  { %v8580_v50 = vpop.f32.mrb[12].mxu0 }
 0xd5f   :  { %v1489_v51 = vadd.f32 %v8580_v50, %v10803_v57  ;;  %v1483_v27 = vpop.f32.mrb[13].mxu0 }
 0xd60   :  { %v1484_v47 = vadd.f32 %v10803_v57, %v1483_v27 }
 0xd61   :  { %v1493_v23 = vmax.f32 %v1489_v51, 0.0 }
 0xd62   :  { %v1492_v21 = vmax.f32 %v1484_v47, 0.0 }
 0xd64   :  { %8605 = vmatprep.mubr.msk.f32.mxu1 %vm447_vm7, %v1492_v21 }
 0xd65   :  { %8606 = vmatmul.mubr.msk.f32.vlgmr.msra.gmra.mrb[12].mxu1 %vm447_vm7, %v1493_v23 }
 0xd66   :  { %9612 = vmatpush3.bf16.msra.mxu1 %v10686_v16 }
 0xd67   :  { %9614 = vmatprep.subr.bf16.mxu1 %v10700_v20 }
 0xe38   :  { %v8607_v33 = vpop.f32.mrb[12].mxu1 }
 0xe39   :  { %v1572_v24 = vadd.f32 %v8607_v33, %v10814_v0  ;;  %v1566_v26 = vpop.f32.mrb[13].mxu1 }
 0xe3a   :  { %v1567_v30 = vadd.f32 %v10814_v0, %v1566_v26 }
 0xe3b   :  { %10333 = vtanh.f32 %v1572_v24 }
 0xe3c   :  { %10335 = vtanh.f32 %v1567_v30 }
 0xe45   :  { %v10334_v37 = vpop.eup %10333 }
 0xe46   :  { %v11089_v39 = vpop.eup %10335  ;;  %v1594_v40 = vmul.f32 %v10334_v37, %v1586_v38  ;;  %v1610_v55 = vmul.f32 %v10334_v37, %v1602_v42  ;;  %v1583_v18 = vmul.f32 %v10334_v37, %v1580_v2 }
 0xe47   :  { %v1588_v43 = vmul.f32 %v11089_v39, %v1586_v38  ;;  %v1620_v45 = vmul.f32 %v11089_v39, %v11087_v32  ;;  %v1604_v62 = vmul.f32 %v11089_v39, %v1602_v42  ;;  %v1582_v48 = vmul.f32 %v11089_v39, %v1580_v2 }
 0xe48   :  { %1596 = vrot.lane.b32.xlu1 %v1594_v40, %s10531_s30 }
 0xe49   :  { %1590 = vrot.lane.b32.xlu0 %v1588_v43, %s10531_s30  ;;  %v1621_v54 = vmul.f32 0.33333334, %v1620_v45 }
 0xe4b   :  { %v1623_v58 = vrot.slane %v1621_v54, 4  ;;  %v1858_v54 = vmul.f32 0.33333334, %v11089_v39 }
 0xe4c   :  { %1612 = vrot.lane.b32.xlu1 %v1610_v55, %s10532_s0  ;;  %v1879_v55 = vstv %s1878_s20  ;;  %s11363_s20 = sld [smem:[#allocation2 + $0x3]] }
 0xe4d   :  { %1624 = vrot.lane.b32.xlu0 %v1623_v58, %s10533_s19 }
 0xe50   :  { %1606 = vrot.lane.b32.xlu1 %v1604_v62, %s10532_s0 }
 0xe51   :  { %1823 = vperm.xlu0 %10270, %v1644_v63  }
 0xe52   :  { %s2920_s11 = smul.f32 2.0, %s11363_s20 }
 0xe54   :  { %s2923_s5 = smul.f32 0.33333334, %s2920_s11 }
 0xe56   :  { %s2927_s2 = smul.f32 %s2923_s5, %s2923_s5 }
 0xeba   :  { %v1597_v60 = vpop.permute.xlu1 %1596 }
 0xebb   :  { %v1591_v4 = vpop.permute.xlu0 %1590  ;;  %v1599_v5 = vadd.f32 %v1597_v60, %v1583_v18 }
 0xebc   :  { %v1593_v10 = vadd.f32 %v1591_v4, %v1582_v48 }
 0xebe   :  { %v1613_v6 = vpop.permute.xlu1 %1612 }
 0xebf   :  { %v11104_v35 = vadd.f32 %v1613_v6, %v1599_v5  ;;  %v1625_v14 = vpop.permute.xlu0 %1624 }
 0xec0   :  { %v1627_v17 = vadd.f32 %v1625_v14, %v11042_v29 }
 0xec1   :  { %v1628_v41 = vmul.f32 %v11087_v32, %v11104_v35 }
 0xec2   :  { %v1607_v8 = vpop.permute.xlu1 %1606  ;;  %v1646_v27 = vrot.slane %v1627_v17, 4 }
 0xec3   :  { %v11108_v12 = vadd.f32 %v1607_v8, %v1593_v10  ;;  %v1629_v15 = vmul.f32 0.33333334, %v1628_v41 }
 0xec5   :  { %v1617_v50 = vmul.f32 %v11087_v32, %v11108_v12  ;;  %1631 = vrot.lane.b32.xlu1 %v1629_v15, %s10534_s1 }
 0xec7   :  { %v1618_v51 = vmul.f32 0.33333334, %v1617_v50 }
 0xec9   :  { %1839 = vperm.xlu1 %10268, %v1644_v63   ;;  %v1619_v47 = vadd.f32 %v1618_v51, %v11049_v13  ;;  %v1867_v51 = vmul.f32 0.33333334, %v11104_v35 }
 0xecb   :  { %v1648_v21 = vsel %vm353_vm6, %v1619_v47, %v1646_v27 }
 0xecc   :  { %8612 = vmatprep.mubr.msk.f32.mxu0 %vm184_vm3, %v1648_v21 }
 0xecd   :  { %10271 = vset.pattern.permute.xlu1 %v10529_v49 }
 0xece   :  { %1817 = vperm.xlu1 %10271, %v1644_v63   ;;  %v1883_v63 = vstv %s1882_s21  ;;  %s2682_s21 = smul.f32 0.33333334, %s11363_s20 }
 0xecf   :  { %v1884_v5 = vmul.f32 %v1883_v63, %v11019_v19  ;;  %v11205_v63 = vld [vmem:[%s12725_s14] ss:$0 sm:$0xff] }
 0xed0   :  { %s2686_s22 = smul.f32 %s2682_s21, %s2682_s21 }
 0xed2   :  { %10272 = vset.pattern.permute.xlu1 %v10530_v56 }
 0xf37   :  { %v1632_v23 = vpop.permute.xlu1 %1631 }
 0xf38   :  { %v1634_v33 = vadd.f32 %v1632_v23, %v11054_v36 }
 0xf3a   :  { %8613 = vmatmul.mubr.msk.f32.vlgmr.msra.gmra.mrb[14].mxu0 %vm184_vm3, %v1634_v33  ;;  %v1854_v33 = vmul.f32 0.33333334, %v11108_v12 }
 0xf3b   :  { %9588 = vmatpush3.bf16.msra.mxu0 %v10700_v20 }
 0xf3c   :  { %9590 = vmatprep.subr.bf16.mxu0 %v10705_v22 }
 0xf3f   :  { %9592 = vmatpush3.bf16.msra.mxu0 %v10705_v22 }
 0xf40   :  { %9594 = vmatprep.subr.bf16.mxu0 %v10716_v25 }
 0xf43   :  { %9596 = vmatpush3.bf16.msra.mxu0 %v10716_v25 }
 0xf44   :  { %9598 = vmatprep.subr.bf16.mxu0 %v10726_v28 }
 0xf47   :  { %9600 = vmatpush3.bf16.msra.mxu0 %v10726_v28 }
 0xf48   :  { %9602 = vmatprep.subr.bf16.mxu0 %v10736_v31  ;;  %v1840_v53 = vpop.permute.xlu1 %1839 }
 0xf4b   :  { %9604 = vmatpush3.bf16.msra.mxu0 %v10736_v31 }
 0xf4c   :  { %9606 = vmatprep.subr.bf16.mxu0 %v10772_v44 }
 0xf4d   :  { %v1818_v10 = vpop.permute.xlu1 %1817 }
 0xf4f   :  { %9608 = vmatpush3.bf16.msra.mxu0 %v10772_v44 }
 0xf50   :  { %9638 = vmatprep.subr.bf16.mxu0 %v10686_v16 }
0x100d   :  { %v8614_v24 = vpop.f32.mrb[14].mxu0 }
0x100e   :  { %v1727_v26 = vadd.f32 %v8614_v24, %v10803_v57  ;;  %v1721_v30 = vpop.f32.mrb[15].mxu0 }
0x100f   :  { %v1722_v34 = vadd.f32 %v10803_v57, %v1721_v30  ;;  %v1824_v57 = vpop.permute.xlu0 %1823 }
0x1010   :  { %v1731_v38 = vmax.f32 %v1727_v26, 0.0 }
0x1011   :  { %v1730_v37 = vmax.f32 %v1722_v34, 0.0 }
0x1013   :  { %8639 = vmatprep.mubr.msk.f32.mxu0 %vm447_vm7, %v1730_v37 }
0x1014   :  { %8640 = vmatmul.mubr.msk.f32.vlgmr.msra.gmra.mrb[16].mxu0 %vm447_vm7, %v1731_v38 }
0x1015   :  { %9640 = vmatpush3.bf16.msra.mxu0 %v10686_v16 }
0x1016   :  { %9642 = vmatprep.subr.bf16.mxu0 %v10700_v20 }
0x10e7   :  { %v8641_v40 = vpop.f32.mrb[16].mxu0 }
0x10e8   :  { %v1810_v42 = vadd.f32 %v8641_v40, %v10814_v0  ;;  %v1804_v43 = vpop.f32.mrb[17].mxu0 }
0x10e9   :  { %v1805_v45 = vadd.f32 %v10814_v0, %v1804_v43  ;;  %v1880_v0 = vmul.f32 %v1879_v55, %v11010_v7 }
0x10ea   :  { %10337 = vtanh.f32 %v1810_v42 }
0x10eb   :  { %10339 = vtanh.f32 %v1805_v45  ;;  %v1881_v4 = vadd.f32 %v11025_v11, %v1880_v0 }
0x10ed   :  { %v1885_v48 = vadd.f32 %v1884_v5, %v1881_v4 }
0x10f4   :  { %v10338_v52 = vpop.eup %10337 }
0x10f5   :  { %v11143_v58 = vpop.eup %10339  ;;  %v1832_v59 = vmul.f32 %v10338_v52, %v1824_v57  ;;  %v1848_v61 = vmul.f32 %v10338_v52, %v1840_v53  ;;  %v1821_v41 = vmul.f32 %v10338_v52, %v1818_v10 }
0x10f6   :  { %v1859_v62 = vsub.f32 %v11143_v58, %v1858_v54  ;;  %v1826_v2 = vmul.f32 %v11143_v58, %v1824_v57  ;;  %v1842_v60 = vmul.f32 %v11143_v58, %v1840_v53  ;;  %v1820_v17 = vmul.f32 %v11143_v58, %v1818_v10  ;;  %v11192_v53 = vld [vmem:[%s12723_s12] ss:$0 sm:$0xff] }
0x10f7   :  { %1850 = vrot.lane.b32.xlu1 %v1848_v61, %s10532_s0  ;;  %1834 = vrot.lane.b32.xlu0 %v1832_v59, %s10531_s30 }
0x10f8   :  { %v1860_v18 = vmul.f32 %v1859_v62, %v11087_v32 }
0x10fa   :  { %v1862_v6 = vrot.slane %v1860_v18, 4 }
0x10fb   :  { %1844 = vrot.lane.b32.xlu1 %v1842_v60, %s10532_s0  ;;  %1828 = vrot.lane.b32.xlu0 %v1826_v2, %s10531_s30 }
0x10ff   :  { %1863 = vrot.lane.b32.xlu0 %v1862_v6, %s10533_s19  ;;  %v2099_v6 = vsub.f32 %v11089_v39, %v11143_v58 }
0x1103   :  { %2064 = vperm.xlu0 %10270, %v1885_v48  }
0x1107   :  { %10273 = vset.pattern.permute.xlu0 %v10529_v49 }
0x1108   :  { %2058 = vperm.xlu0 %10273, %v1885_v48  }
0x110c   :  { %10274 = vset.pattern.permute.xlu0 %v10528_v46 }
0x1169   :  { %v1851_v14 = vpop.permute.xlu1 %1850  ;;  %v1835_v8 = vpop.permute.xlu0 %1834 }
0x116a   :  { %v1837_v15 = vadd.f32 %v1835_v8, %v1821_v41 }
0x116c   :  { %v11160_v50 = vadd.f32 %v1851_v14, %v1837_v15  ;;  %v2116_v15 = vmul.f32 %v11087_v32, %v11010_v7 }
0x116d   :  { %v1829_v27 = vpop.permute.xlu0 %1828  ;;  %v1845_v23 = vpop.permute.xlu1 %1844 }
0x116e   :  { %v1831_v47 = vadd.f32 %v1829_v27, %v1820_v17  ;;  %v1868_v21 = vsub.f32 %v11160_v50, %v1867_v51  ;;  %v2119_v17 = vstv %s2118_s23  ;;  %s3163_s23 = smul.f32 %s11363_s20, %s11363_s20 }
0x1170   :  { %v11165_v24 = vadd.f32 %v1845_v23, %v1831_v47  ;;  %v1869_v26 = vmul.f32 %v1868_v21, %v11087_v32  ;;  %v2117_v21 = vadd.f32 %v11025_v11, %v2116_v15  ;;  %v2120_v23 = vmul.f32 %v2119_v17, %v11019_v19 }
0x1171   :  { %v1864_v30 = vpop.permute.xlu0 %1863  ;;  %v2108_v19 = vsub.f32 %v11104_v35, %v11160_v50 }
0x1172   :  { %v1855_v34 = vsub.f32 %v11165_v24, %v1854_v33  ;;  %v1866_v37 = vadd.f32 %v1864_v30, %v11042_v29  ;;  %1871 = vrot.lane.b32.xlu1 %v1869_v26, %s10534_s1  ;;  %v2121_v7 = vadd.f32 %v2120_v23, %v2117_v21 }
0x1174   :  { %v1856_v38 = vmul.f32 %v1855_v34, %v11087_v32  ;;  %v1887_v40 = vrot.slane %v1866_v37, 4 }
0x1176   :  { %v1857_v42 = vadd.f32 %v1856_v38, %v11049_v13  ;;  %2080 = vperm.xlu1 %10272, %v1885_v48  }
0x1178   :  { %v1889_v43 = vsel %vm353_vm6, %v1857_v42, %v1887_v40 }
0x1179   :  { %8646 = vmatprep.mubr.msk.f32.mxu1 %vm184_vm3, %v1889_v43 }
0x1182   :  { %v2065_v5 = vpop.permute.xlu0 %2064 }
0x1187   :  { %v2059_v26 = vpop.permute.xlu0 %2058 }
0x11e4   :  { %v1872_v45 = vpop.permute.xlu1 %1871 }
0x11e5   :  { %v1874_v57 = vadd.f32 %v1872_v45, %v11054_v36 }
0x11e7   :  { %8647 = vmatmul.mubr.msk.f32.vlgmr.msra.gmra.mrb[14].mxu1 %vm184_vm3, %v1874_v57 }
0x11e8   :  { %9616 = vmatpush3.bf16.msra.mxu1 %v10700_v20 }
0x11e9   :  { %9618 = vmatprep.subr.bf16.mxu1 %v10705_v22 }
0x11ec   :  { %9620 = vmatpush3.bf16.msra.mxu1 %v10705_v22 }
0x11ed   :  { %9622 = vmatprep.subr.bf16.mxu1 %v10716_v25 }
0x11f0   :  { %9624 = vmatpush3.bf16.msra.mxu1 %v10716_v25 }
0x11f1   :  { %9626 = vmatprep.subr.bf16.mxu1 %v10726_v28 }
0x11f4   :  { %9628 = vmatpush3.bf16.msra.mxu1 %v10726_v28 }
0x11f5   :  { %9630 = vmatprep.subr.bf16.mxu1 %v10736_v31  ;;  %v2081_v41 = vpop.permute.xlu1 %2080 }
0x11f8   :  { %9632 = vmatpush3.bf16.msra.mxu1 %v10736_v31 }
0x11f9   :  { %9634 = vmatprep.subr.bf16.mxu1 %v10772_v44 }
0x11fc   :  { %9636 = vmatpush3.bf16.msra.mxu1 %v10772_v44 }
0x11fd   :  { %9665 = vmatprep.subr.bf16.mxu1 %v10527_v3 }
0x12ba   :  { %v8648_v52 = vpop.f32.mrb[14].mxu1 }
0x12bb   :  { %v1968_v54 = vadd.f32 %v11192_v53, %v8648_v52  ;;  %v1962_v55 = vpop.f32.mrb[15].mxu1 }
0x12bc   :  { %v1963_v59 = vadd.f32 %v11192_v53, %v1962_v55 }
0x12bd   :  { %v1972_v62 = vmax.f32 %v1968_v54, 0.0  ;;  %v2095_v54 = vsub.f32 %v11108_v12, %v11165_v24 }
0x12be   :  { %v1971_v61 = vmax.f32 %v1963_v59, 0.0 }
0x12c0   :  { %8673 = vmatprep.mubr.msk.f32.mxu1 %vm447_vm7, %v1971_v61 }
0x12c1   :  { %8674 = vmatmul.mubr.msk.f32.vlgmr.msra.gmra.mrb[16].mxu1 %vm447_vm7, %v1972_v62 }
0x12c2   :  { %9667 = vmatpush3.bf16.msra.mxu1 %v10664_v9  ;;  %8714 = vmatprep.mubr.msk.f32.mxu1 %vm10526_vm2, %v10525_v1 }
0x12c3   :  { %9669 = vmatprep.subr.bf16.mxu1 %v10686_v16 }
0x1394   :  { %v8675_v0 = vpop.f32.mrb[16].mxu1 }
0x1395   :  { %v2051_v2 = vadd.f32 %v11205_v63, %v8675_v0  ;;  %v2045_v60 = vpop.f32.mrb[17].mxu1 }
0x1396   :  { %v2046_v18 = vadd.f32 %v11205_v63, %v2045_v60 }
0x1397   :  { %10341 = vtanh.f32 %v2051_v2 }
0x1398   :  { %10343 = vtanh.f32 %v2046_v18 }
0x13a1   :  { %v10342_v4 = vpop.eup %10341 }
0x13a2   :  { %v11213_v48 = vpop.eup %10343  ;;  %v2073_v10 = vmul.f32 %v10342_v4, %v2065_v5  ;;  %v2089_v27 = vmul.f32 %v10342_v4, %v2081_v41  ;;  %v2062_v34 = vmul.f32 %v10342_v4, %v2059_v26 }
0x13a3   :  { %v2067_v14 = vmul.f32 %v11213_v48, %v2065_v5  ;;  %v2100_v8 = vadd.f32 %v11213_v48, %v2099_v6  ;;  %v2083_v33 = vmul.f32 %v11213_v48, %v2081_v41  ;;  %v2061_v11 = vmul.f32 %v11213_v48, %v2059_v26 }
0x13a4   :  { %2075 = vrot.lane.b32.xlu1 %v2073_v10, %s10531_s30  ;;  %v2338_v21 = vadd.f32 %v11213_v48, %v11143_v58 }
0x13a5   :  { %2069 = vrot.lane.b32.xlu0 %v2067_v14, %s10531_s30  ;;  %v2101_v51 = vmul.f32 %v2100_v8, %v11087_v32 }
0x13a6   :  { %v2339_v23 = vmul.f32 3.0, %v2338_v21 }
0x13a7   :  { %v2103_v47 = vrot.slane %v2101_v51, 4 }
0x13a8   :  { %2091 = vrot.lane.b32.xlu1 %v2089_v27, %s10532_s0 }
0x13a9   :  { %2104 = vrot.lane.b32.xlu0 %v2103_v47, %s10533_s19 }
0x13ac   :  { %2085 = vrot.lane.b32.xlu1 %v2083_v33, %s10532_s0  ;;  %v7771_v33 = vld [vmem:[%s12736_s24 + $0x8] sm:$0xf] }
0x13ad   :  { %2300 = vperm.xlu0 %10274, %v2121_v7   ;;  %v11285_v26 = vmul.f32 2.0, %v7771_v33 }
0x13af   :  { %v2450_v48 = vmul.f32 0.0, %v11285_v26 }
0x1416   :  { %v2076_v30 = vpop.permute.xlu1 %2075 }
0x1417   :  { %v2070_v37 = vpop.permute.xlu0 %2069  ;;  %v2078_v38 = vadd.f32 %v2076_v30, %v2062_v34 }
0x1418   :  { %v2072_v43 = vadd.f32 %v2070_v37, %v2061_v11  ;;  %v2340_v37 = vadd.f32 %v11089_v39, %v2339_v23  ;;  %v11300_v39 = vld [vmem:[%s12737_s27 + $0x8] sm:$0xf] }
0x141a   :  { %v2092_v40 = vpop.permute.xlu1 %2091 }
0x141b   :  { %v11231_v42 = vadd.f32 %v2092_v40, %v2078_v38  ;;  %v2105_v57 = vpop.permute.xlu0 %2104  ;;  %v7772_v38 = vld [vmem:[%s12714_s3 + $0x8] sm:$0xf] }
0x141c   :  { %v2107_v61 = vadd.f32 %v2105_v57, %v11042_v29 }
0x141d   :  { %v2109_v45 = vadd.f32 %v2108_v19, %v11231_v42 }
0x141e   :  { %v2086_v52 = vpop.permute.xlu1 %2085  ;;  %v2123_v2 = vrot.slane %v2107_v61, 4 }
0x141f   :  { %v11236_v55 = vadd.f32 %v2086_v52, %v2072_v43  ;;  %v2110_v59 = vmul.f32 %v2109_v45, %v11087_v32  ;;  %v11294_v43 = vmul.f32 3.0, %v7772_v38 }
0x1421   :  { %v2096_v62 = vadd.f32 %v2095_v54, %v11236_v55  ;;  %2112 = vrot.lane.b32.xlu1 %v2110_v59, %s10534_s1  ;;  %v2451_v59 = vadd.f32 %v11300_v39, %v2450_v48  ;;  %v2453_v61 = vmul.f32 0.0, %v11294_v43 }
0x1423   :  { %v2097_v0 = vmul.f32 %v2096_v62, %v11087_v32 }
0x1425   :  { %v2098_v60 = vadd.f32 %v2097_v0, %v11049_v13  ;;  %2316 = vperm.xlu1 %10272, %v2121_v7   ;;  %v2454_v0 = vadd.f32 %v2453_v61, %v2451_v59 }
0x1427   :  { %v2125_v18 = vsel %vm353_vm6, %v2098_v60, %v2123_v2  ;;  %v2350_v2 = vadd.f32 %v11231_v42, %v11160_v50 }
0x1428   :  { %8680 = vmatprep.mubr.msk.f32.mxu0 %vm184_vm3, %v2125_v18 }
0x1429   :  { %10275 = vset.pattern.permute.xlu1 %v10529_v49  ;;  %v2351_v18 = vmul.f32 3.0, %v2350_v2 }
0x142a   :  { %2294 = vperm.xlu1 %10275, %v2121_v7  }
0x142c   :  { %v2301_v7 = vpop.permute.xlu0 %2300 }
0x142e   :  { %10276 = vset.pattern.permute.xlu1 %v10530_v56 }
0x1493   :  { %v2113_v4 = vpop.permute.xlu1 %2112 }
0x1494   :  { %v2115_v5 = vadd.f32 %v2113_v4, %v11054_v36  ;;  %v2331_v4 = vadd.f32 %v11236_v55, %v11165_v24 }
0x1496   :  { %8681 = vmatmul.mubr.msk.f32.vlgmr.msra.gmra.mrb[18].mxu0 %vm184_vm3, %v2115_v5 }
0x1497   :  { %9644 = vmatpush3.bf16.msra.mxu0 %v10700_v20 }
0x1498   :  { %9646 = vmatprep.subr.bf16.mxu0 %v10705_v22 }
0x149b   :  { %9648 = vmatpush3.bf16.msra.mxu0 %v10705_v22 }
0x149c   :  { %9650 = vmatprep.subr.bf16.mxu0 %v10716_v25 }
0x149f   :  { %9652 = vmatpush3.bf16.msra.mxu0 %v10716_v25 }
0x14a0   :  { %9654 = vmatprep.subr.bf16.mxu0 %v10726_v28 }
0x14a3   :  { %9656 = vmatpush3.bf16.msra.mxu0 %v10726_v28 }
0x14a4   :  { %9658 = vmatprep.subr.bf16.mxu0 %v10736_v31  ;;  %v2317_v34 = vpop.permute.xlu1 %2316 }
0x14a7   :  { %9660 = vmatpush3.bf16.msra.mxu0 %v10736_v31 }
0x14a8   :  { %9662 = vmatprep.subr.bf16.mxu0 %v10772_v44 }
0x14a9   :  { %v2295_v60 = vpop.permute.xlu1 %2294 }
0x14ab   :  { %9664 = vmatpush3.bf16.msra.mxu0 %v10772_v44 }
0x14ac   :  { %9673 = vmatprep.subr.bf16.mxu0 %v10700_v20 }
0x1569   :  { %v8682_v6 = vpop.f32.mrb[18].mxu0 }
0x156a   :  { %v2204_v10 = vadd.f32 %v11192_v53, %v8682_v6  ;;  %v2198_v41 = vpop.f32.mrb[19].mxu0 }
0x156b   :  { %v2199_v14 = vadd.f32 %v11192_v53, %v2198_v41 }
0x156c   :  { %v2208_v15 = vmax.f32 %v2204_v10, 0.0 }
0x156d   :  { %v2207_v8 = vmax.f32 %v2199_v14, 0.0  ;;  %v2352_v14 = vadd.f32 %v2351_v18, %v11104_v35 }
0x156f   :  { %8707 = vmatprep.mubr.msk.f32.mxu0 %vm447_vm7, %v2207_v8  ;;  %v2332_v8 = vmul.f32 3.0, %v2331_v4 }
0x1570   :  { %8708 = vmatmul.mubr.msk.f32.vlgmr.msra.gmra.mrb[20].mxu0 %vm447_vm7, %v2208_v15 }
0x1571   :  { %9675 = vmatpush3.bf16.msra.mxu0 %v10700_v20  ;;  %v2333_v50 = vadd.f32 %v2332_v8, %v11108_v12 }
0x1572   :  { %9677 = vmatprep.subr.bf16.mxu0 %v10705_v22 }
0x1575   :  { %9679 = vmatpush3.bf16.msra.mxu0 %v10705_v22 }
0x1576   :  { %9681 = vmatprep.subr.bf16.mxu0 %v10716_v25 }
0x1579   :  { %9683 = vmatpush3.bf16.msra.mxu0 %v10716_v25 }
0x157a   :  { %9685 = vmatprep.subr.bf16.mxu0 %v10726_v28 }
0x157d   :  { %9687 = vmatpush3.bf16.msra.mxu0 %v10726_v28 }
0x157e   :  { %9689 = vmatprep.subr.bf16.mxu0 %v10736_v31 }
0x1581   :  { %9691 = vmatpush3.bf16.msra.mxu0 %v10736_v31 }
0x1582   :  { %9693 = vmatprep.subr.bf16.mxu0 %v10772_v44 }
0x1585   :  { %9695 = vmatpush3.bf16.msra.mxu0 %v10772_v44 }
0x1586   :  { %9725 = vmatprep.subr.bf16.mxu0 %v10686_v16 }
0x1643   :  { %v8709_v17 = vpop.f32.mrb[20].mxu0 }
0x1644   :  { %v2287_v51 = vadd.f32 %v11205_v63, %v8709_v17  ;;  %v2281_v27 = vpop.f32.mrb[21].mxu0 }
0x1645   :  { %v2282_v47 = vadd.f32 %v11205_v63, %v2281_v27 }
0x1646   :  { %10345 = vtanh.f32 %v2287_v51 }
0x1647   :  { %10347 = vtanh.f32 %v2282_v47 }
0x1650   :  { %v10346_v30 = vpop.eup %10345 }
0x1651   :  { %v10348_v40 = vpop.eup %10347  ;;  %v2309_v11 = vmul.f32 %v10346_v30, %v2301_v7  ;;  %v2325_v19 = vmul.f32 %v10346_v30, %v2317_v34  ;;  %v2298_v5 = vmul.f32 %v10346_v30, %v2295_v60 }
0x1652   :  { %v2341_v58 = vadd.f32 %v10348_v40, %v2340_v37  ;;  %v2303_v57 = vmul.f32 %v10348_v40, %v2301_v7  ;;  %v2319_v52 = vmul.f32 %v10348_v40, %v2317_v34  ;;  %v2297_v15 = vmul.f32 %v10348_v40, %v2295_v60 }
0x1653   :  { %2327 = vrot.lane.b32.xlu1 %v2325_v19, %s10532_s0  ;;  %2311 = vrot.lane.b32.xlu0 %v2309_v11, %s10531_s30 }
0x1654   :  { %v2342_v45 = vmul.f32 %v2341_v58, %v11087_v32 }
0x1656   :  { %v2343_v54 = vmul.f32 0.125, %v2342_v45 }
0x1657   :  { %2321 = vrot.lane.b32.xlu1 %v2319_v52, %s10532_s0  ;;  %2305 = vrot.lane.b32.xlu0 %v2303_v57, %s10531_s30 }
0x1658   :  { %v2345_v62 = vrot.slane %v2343_v54, 4 }
0x165b   :  { %2346 = vrot.lane.b32.xlu0 %v2345_v62, %s10533_s19  ;;  %v11367_v62 = vstv %s11363_s20 }
0x165f   :  { %2630 = vperm.xlu0 %10274, %v2454_v0  }
0x1663   :  { %10277 = vset.pattern.permute.xlu0 %v10529_v49 }
0x1664   :  { %2624 = vperm.xlu0 %10277, %v2454_v0  }
0x1668   :  { %10278 = vset.pattern.permute.xlu0 %v10528_v46 }
0x16c5   :  { %v2328_v6 = vpop.permute.xlu1 %2327  ;;  %v2312_v10 = vpop.permute.xlu0 %2311 }
0x16c6   :  { %v2314_v41 = vadd.f32 %v2312_v10, %v2298_v5 }
0x16c8   :  { %v2330_v17 = vadd.f32 %v2328_v6, %v2314_v41 }
0x16c9   :  { %v2306_v51 = vpop.permute.xlu0 %2305  ;;  %v2322_v21 = vpop.permute.xlu1 %2321 }
0x16ca   :  { %v2353_v27 = vadd.f32 %v2352_v14, %v2330_v17  ;;  %v2308_v47 = vadd.f32 %v2306_v51, %v2297_v15  ;;  %v2687_v14 = vstv %s2686_s22  ;;  %s11638_s22 = sld [smem:[#allocation2 + $0x4]] }
0x16cc   :  { %v2324_v42 = vadd.f32 %v2322_v21, %v2308_v47  ;;  %v2354_v23 = vmul.f32 %v2353_v27, %v11087_v32  ;;  %v2688_v27 = vmul.f32 %v2687_v14, %v11294_v43 }
0x16cd   :  { %v2347_v33 = vpop.permute.xlu0 %2346 }
0x16ce   :  { %v2334_v24 = vadd.f32 %v2333_v50, %v2324_v42  ;;  %v11317_v55 = vadd.f32 %v2347_v33, %v11042_v29  ;;  %v2355_v7 = vmul.f32 0.125, %v2354_v23 }
0x16d0   :  { %v2335_v35 = vmul.f32 %v2334_v24, %v11087_v32  ;;  %2364 = vst.msk [vmem:[#allocation6 + $0x8] sm:$0xf] %vm258_vm4, %v11317_v55  ;;  %2357 = vrot.lane.b32.xlu1 %v2355_v7, %s10534_s1  ;;  %v2456_v37 = vrot.slane %v11317_v55, 4  ;;  %v11348_v32 = vld [vmem:[%s12721_s10] ss:$0 sm:$0xff]  ;;  %s4208_s25 = smul.f32 %s11638_s22, %s11638_s22 }
0x16d1   :  { %s3727_s11 = smul.f32 0.33333334, %s11638_s22 }
0x16d2   :  { %v2336_v30 = vmul.f32 0.125, %v2335_v35 }
0x16d4   :  { %v11324_v34 = vadd.f32 %v2336_v30, %v11049_v13  ;;  %2646 = vperm.xlu1 %10276, %v2454_v0   ;;  %v2683_v0 = vstv %s2682_s21 }
0x16d5   :  { %v2684_v41 = vmul.f32 %v2683_v0, %v11285_v26 }
0x16d6   :  { %2362 = vst.msk [vmem:[#allocation5 + $0x8] sm:$0xf] %vm258_vm4, %v11324_v34  ;;  %v2458_v13 = vsel %vm353_vm6, %v11324_v34, %v2456_v37 }
0x16d7   :  { %v2685_v51 = vadd.f32 %v11300_v39, %v2684_v41 }
0x16d9   :  { %v2689_v21 = vadd.f32 %v2688_v27, %v2685_v51  ;;  %v2924_v51 = vstv %s2923_s5  ;;  %s3731_s5 = smul.f32 %s3727_s11, %s3727_s11 }
0x16de   :  { %v2631_v60 = vpop.permute.xlu0 %2630 }
0x16e3   :  { %v2625_v50 = vpop.permute.xlu0 %2624 }
0x1742   :  { %v2358_v12 = vpop.permute.xlu1 %2357 }
0x1743   :  { %v11329_v29 = vadd.f32 %v2358_v12, %v11054_v36 }
0x1745   :  { %2366 = vst.msk [vmem:[#allocation8 + $0x8] sm:$0xf] %vm258_vm4, %v11329_v29  ;;  %8715 = vmatmul.mubr.msk.f32.vlgmr.msra.gmra.mrb[18].mxu1 %vm184_vm3, %v11329_v29 }
0x1746   :  { %9671 = vmatpush3.bf16.msra.mxu1 %v10686_v16  ;;  %8721 = vmatprep.mubr.msk.f32.mxu1 %vm184_vm3, %v2458_v13 }
0x1747   :  { %9697 = vmatprep.subr.bf16.mxu1 %v10686_v16 }
0x1749   :  { %8722 = vmatmul.mubr.msk.f32.vlgmr.msra.gmra.mrb[20].mxu1 %vm184_vm3, %v11329_v29 }
0x174a   :  { %9699 = vmatpush3.bf16.msra.mxu1 %v10686_v16 }
0x174b   :  { %9701 = vmatprep.subr.bf16.mxu1 %v10700_v20 }
0x1753   :  { %v2647_v5 = vpop.permute.xlu1 %2646 }
0x1818   :  { %v2436_v36 = vpop.f32.mrb[18].mxu1 }
0x1819   :  { %v2437_v38 = vadd.f32 %v11348_v32, %v2436_v36  ;;  %v8716_v40 = vpop.f32.mrb[19].mxu1 }
0x181b   :  { %7768 = vst.msk [vmem:[%s12729_s18 + $0x8] sm:$0xf] %vm338_vm5, %v2437_v38 }
0x181c   :  { %v8723_v11 = vpop.f32.mrb[20].mxu1 }
0x181d   :  { %v2534_v19 = vadd.f32 %v11192_v53, %v8723_v11  ;;  %v2528_v58 = vpop.f32.mrb[21].mxu1 }
0x181e   :  { %v2529_v48 = vadd.f32 %v11192_v53, %v2528_v58 }
0x181f   :  { %v2538_v57 = vmax.f32 %v2534_v19, 0.0 }
0x1820   :  { %v2537_v45 = vmax.f32 %v2529_v48, 0.0 }
0x1822   :  { %8748 = vmatprep.mubr.msk.f32.mxu0 %vm447_vm7, %v2537_v45 }
0x1823   :  { %8749 = vmatmul.mubr.msk.f32.vlgmr.msra.gmra.mrb[22].mxu0 %vm447_vm7, %v2538_v57 }
0x1824   :  { %9727 = vmatpush3.bf16.msra.mxu0 %v10686_v16 }
0x1825   :  { %9729 = vmatprep.subr.bf16.mxu0 %v10700_v20 }
0x18f6   :  { %v8750_v52 = vpop.f32.mrb[22].mxu0 }
0x18f7   :  { %v2617_v54 = vadd.f32 %v11205_v63, %v8750_v52  ;;  %v2611_v59 = vpop.f32.mrb[23].mxu0 }
0x18f8   :  { %v2612_v61 = vadd.f32 %v11205_v63, %v2611_v59 }
0x18f9   :  { %10349 = vtanh.f32 %v2617_v54 }
0x18fa   :  { %10351 = vtanh.f32 %v2612_v61 }
0x1903   :  { %v10350_v2 = vpop.eup %10349 }
0x1904   :  { %v11369_v18 = vpop.eup %10351  ;;  %v2639_v4 = vmul.f32 %v10350_v2, %v2631_v60  ;;  %v2655_v15 = vmul.f32 %v10350_v2, %v2647_v5  ;;  %v2628_v23 = vmul.f32 %v10350_v2, %v2625_v50 }
0x1905   :  { %v2633_v6 = vmul.f32 %v11369_v18, %v2631_v60  ;;  %v2665_v10 = vmul.f32 %v11369_v18, %v11367_v62  ;;  %v2649_v47 = vmul.f32 %v11369_v18, %v2647_v5  ;;  %v2627_v35 = vmul.f32 %v11369_v18, %v2625_v50 }
0x1906   :  { %2641 = vrot.lane.b32.xlu1 %v2639_v4, %s10531_s30 }
0x1907   :  { %2635 = vrot.lane.b32.xlu0 %v2633_v6, %s10531_s30  ;;  %v2666_v8 = vmul.f32 0.33333334, %v2665_v10 }
0x1909   :  { %v2668_v17 = vrot.slane %v2666_v8, 4 }
0x190a   :  { %2657 = vrot.lane.b32.xlu1 %v2655_v15, %s10532_s0 }
0x190b   :  { %2669 = vrot.lane.b32.xlu0 %v2668_v17, %s10533_s19  ;;  %v2903_v17 = vmul.f32 0.33333334, %v11369_v18 }
0x190e   :  { %2651 = vrot.lane.b32.xlu1 %v2649_v47, %s10532_s0 }
0x190f   :  { %2868 = vperm.xlu0 %10278, %v2689_v21  }
0x1978   :  { %v2642_v42 = vpop.permute.xlu1 %2641 }
0x1979   :  { %v2636_v33 = vpop.permute.xlu0 %2635  ;;  %v2644_v24 = vadd.f32 %v2642_v42, %v2628_v23  ;;  %v2925_v42 = vmul.f32 %v2924_v51, %v11285_v26  ;;  %v2928_v23 = vstv %s2927_s2  ;;  %s3965_s2 = smul.f32 2.0, %s11638_s22 }
0x197a   :  { %v2638_v12 = vadd.f32 %v2636_v33, %v2627_v35 }
0x197b   :  { %v2926_v35 = vadd.f32 %v11300_v39, %v2925_v42 }
0x197c   :  { %v2658_v7 = vpop.permute.xlu1 %2657 }
0x197d   :  { %v11384_v30 = vadd.f32 %v2658_v7, %v2644_v24  ;;  %v2670_v13 = vpop.permute.xlu0 %2669 }
0x197e   :  { %v2672_v11 = vadd.f32 %v2670_v13, %v11317_v55 }
0x197f   :  { %v2673_v37 = vmul.f32 %v11367_v62, %v11384_v30 }
0x1980   :  { %v2652_v36 = vpop.permute.xlu1 %2651  ;;  %v2691_v48 = vrot.slane %v2672_v11, 4 }
0x1981   :  { %v11388_v38 = vadd.f32 %v2652_v36, %v2638_v12  ;;  %v2674_v40 = vmul.f32 0.33333334, %v2673_v37  ;;  %v2929_v12 = vmul.f32 %v2928_v23, %v11294_v43 }
0x1983   :  { %v2662_v19 = vmul.f32 %v11367_v62, %v11388_v38  ;;  %2676 = vrot.lane.b32.xlu1 %v2674_v40, %s10534_s1  ;;  %v2930_v13 = vadd.f32 %v2929_v12, %v2926_v35 }
0x1985   :  { %v2663_v58 = vmul.f32 0.33333334, %v2662_v19 }
0x1987   :  { %2884 = vperm.xlu1 %10276, %v2689_v21   ;;  %v2664_v45 = vadd.f32 %v2663_v58, %v11324_v34 }
0x1989   :  { %v2693_v57 = vsel %vm353_vm6, %v2664_v45, %v2691_v48  ;;  %v2912_v48 = vmul.f32 0.33333334, %v11384_v30 }
0x198a   :  { %8755 = vmatprep.mubr.msk.f32.mxu1 %vm184_vm3, %v2693_v57 }
0x198b   :  { %10279 = vset.pattern.permute.xlu1 %v10529_v49 }
0x198c   :  { %2862 = vperm.xlu1 %10279, %v2689_v21  }
0x198e   :  { %v2869_v14 = vpop.permute.xlu0 %2868 }
0x1990   :  { %10280 = vset.pattern.permute.xlu1 %v10530_v56 }
0x19f5   :  { %v2677_v52 = vpop.permute.xlu1 %2676 }
0x19f6   :  { %v2679_v54 = vadd.f32 %v2677_v52, %v11329_v29 }
0x19f8   :  { %8756 = vmatmul.mubr.msk.f32.vlgmr.msra.gmra.mrb[22].mxu1 %vm184_vm3, %v2679_v54 }
0x19f9   :  { %9703 = vmatpush3.bf16.msra.mxu1 %v10700_v20 }
0x19fa   :  { %9705 = vmatprep.subr.bf16.mxu1 %v10705_v22 }
0x19fd   :  { %9707 = vmatpush3.bf16.msra.mxu1 %v10705_v22 }
0x19fe   :  { %9709 = vmatprep.subr.bf16.mxu1 %v10716_v25 }
0x1a01   :  { %9711 = vmatpush3.bf16.msra.mxu1 %v10716_v25 }
0x1a02   :  { %9713 = vmatprep.subr.bf16.mxu1 %v10726_v28 }
0x1a05   :  { %9715 = vmatpush3.bf16.msra.mxu1 %v10726_v28 }
0x1a06   :  { %9717 = vmatprep.subr.bf16.mxu1 %v10736_v31  ;;  %v2885_v15 = vpop.permute.xlu1 %2884 }
0x1a09   :  { %9719 = vmatpush3.bf16.msra.mxu1 %v10736_v31 }
0x1a0a   :  { %9721 = vmatprep.subr.bf16.mxu1 %v10772_v44 }
0x1a0b   :  { %v2863_v36 = vpop.permute.xlu1 %2862 }
0x1a0d   :  { %9723 = vmatpush3.bf16.msra.mxu1 %v10772_v44 }
0x1a0e   :  { %9753 = vmatprep.subr.bf16.mxu1 %v10686_v16 }
0x1acb   :  { %v8757_v59 = vpop.f32.mrb[22].mxu1 }
0x1acc   :  { %v2772_v61 = vadd.f32 %v11192_v53, %v8757_v59  ;;  %v2766_v0 = vpop.f32.mrb[23].mxu1 }
0x1acd   :  { %v2767_v2 = vadd.f32 %v11192_v53, %v2766_v0  ;;  %v2899_v0 = vmul.f32 0.33333334, %v11388_v38 }
0x1ace   :  { %v2776_v4 = vmax.f32 %v2772_v61, 0.0 }
0x1acf   :  { %v2775_v60 = vmax.f32 %v2767_v2, 0.0 }
0x1ad1   :  { %8782 = vmatprep.mubr.msk.f32.mxu1 %vm447_vm7, %v2775_v60 }
0x1ad2   :  { %8783 = vmatmul.mubr.msk.f32.vlgmr.msra.gmra.mrb[24].mxu1 %vm447_vm7, %v2776_v4 }
0x1ad3   :  { %9755 = vmatpush3.bf16.msra.mxu1 %v10686_v16 }
0x1ad4   :  { %9757 = vmatprep.subr.bf16.mxu1 %v10700_v20 }
0x1ba5   :  { %v8784_v5 = vpop.f32.mrb[24].mxu1 }
0x1ba6   :  { %v2855_v6 = vadd.f32 %v11205_v63, %v8784_v5  ;;  %v2849_v10 = vpop.f32.mrb[25].mxu1 }
0x1ba7   :  { %v2850_v41 = vadd.f32 %v11205_v63, %v2849_v10 }
0x1ba8   :  { %10353 = vtanh.f32 %v2855_v6 }
0x1ba9   :  { %10355 = vtanh.f32 %v2850_v41 }
0x1bb2   :  { %v10354_v8 = vpop.eup %10353 }
0x1bb3   :  { %v11423_v27 = vpop.eup %10355  ;;  %v2877_v47 = vmul.f32 %v10354_v8, %v2869_v14  ;;  %v2893_v21 = vmul.f32 %v10354_v8, %v2885_v15  ;;  %v2866_v40 = vmul.f32 %v10354_v8, %v2863_v36 }
0x1bb4   :  { %v2904_v50 = vsub.f32 %v11423_v27, %v2903_v17  ;;  %v2871_v33 = vmul.f32 %v11423_v27, %v2869_v14  ;;  %v2887_v24 = vmul.f32 %v11423_v27, %v2885_v15  ;;  %v2865_v45 = vmul.f32 %v11423_v27, %v2863_v36 }
0x1bb5   :  { %2895 = vrot.lane.b32.xlu1 %v2893_v21, %s10532_s0  ;;  %2879 = vrot.lane.b32.xlu0 %v2877_v47, %s10531_s30 }
0x1bb6   :  { %v2905_v7 = vmul.f32 %v2904_v50, %v11367_v62 }
0x1bb8   :  { %v2907_v37 = vrot.slane %v2905_v7, 4 }
0x1bb9   :  { %2889 = vrot.lane.b32.xlu1 %v2887_v24, %s10532_s0  ;;  %2873 = vrot.lane.b32.xlu0 %v2871_v33, %s10531_s30 }
0x1bbd   :  { %2908 = vrot.lane.b32.xlu0 %v2907_v37, %s10533_s19 }
0x1bc1   :  { %3109 = vperm.xlu0 %10278, %v2930_v13  }
0x1bc5   :  { %10281 = vset.pattern.permute.xlu0 %v10529_v49 }
0x1bc6   :  { %3103 = vperm.xlu0 %10281, %v2930_v13  }
0x1bca   :  { %10282 = vset.pattern.permute.xlu0 %v10528_v46 }
0x1c27   :  { %v2896_v11 = vpop.permute.xlu1 %2895  ;;  %v2880_v19 = vpop.permute.xlu0 %2879 }
0x1c28   :  { %v2882_v58 = vadd.f32 %v2880_v19, %v2866_v40 }
0x1c2a   :  { %v11441_v57 = vadd.f32 %v2896_v11, %v2882_v58 }
0x1c2b   :  { %v2874_v52 = vpop.permute.xlu0 %2873  ;;  %v2890_v61 = vpop.permute.xlu1 %2889 }
0x1c2c   :  { %v2913_v54 = vsub.f32 %v11441_v57, %v2912_v48  ;;  %v2876_v59 = vadd.f32 %v2874_v52, %v2865_v45  ;;  %v3161_v48 = vmul.f32 %v11367_v62, %v11285_v26  ;;  %v3164_v45 = vstv %s3163_s23  ;;  %s3968_s23 = smul.f32 0.33333334, %s3965_s2 }
0x1c2e   :  { %v11445_v2 = vadd.f32 %v2890_v61, %v2876_v59  ;;  %v2914_v60 = vmul.f32 %v2913_v54, %v11367_v62  ;;  %v3162_v61 = vadd.f32 %v11300_v39, %v3161_v48  ;;  %s3972_s4 = smul.f32 %s3968_s23, %s3968_s23 }
0x1c2f   :  { %v2909_v4 = vpop.permute.xlu0 %2908 }
0x1c30   :  { %v2900_v5 = vsub.f32 %v11445_v2, %v2899_v0  ;;  %v2911_v6 = vadd.f32 %v2909_v4, %v11317_v55  ;;  %2916 = vrot.lane.b32.xlu1 %v2914_v60, %s10534_s1  ;;  %v3165_v0 = vmul.f32 %v3164_v45, %v11294_v43  ;;  %v3153_v43 = vsub.f32 %v11384_v30, %v11441_v57 }
0x1c32   :  { %v2901_v10 = vmul.f32 %v2900_v5, %v11367_v62  ;;  %v2932_v41 = vrot.slane %v2911_v6, 4  ;;  %v3166_v26 = vadd.f32 %v3165_v0, %v3162_v61 }
0x1c34   :  { %v2902_v14 = vadd.f32 %v2901_v10, %v11324_v34  ;;  %3125 = vperm.xlu1 %10280, %v2930_v13   ;;  %v3144_v13 = vsub.f32 %v11369_v18, %v11423_v27 }
0x1c36   :  { %v2934_v8 = vsel %vm353_vm6, %v2902_v14, %v2932_v41 }
0x1c37   :  { %8789 = vmatprep.mubr.msk.f32.mxu0 %vm184_vm3, %v2934_v8 }
0x1c40   :  { %v3110_v37 = vpop.permute.xlu0 %3109 }
0x1c45   :  { %v3104_v4 = vpop.permute.xlu0 %3103 }
0x1ca2   :  { %v2917_v15 = vpop.permute.xlu1 %2916 }
0x1ca3   :  { %v2919_v17 = vadd.f32 %v2917_v15, %v11329_v29 }
0x1ca5   :  { %8790 = vmatmul.mubr.msk.f32.vlgmr.msra.gmra.mrb[24].mxu0 %vm184_vm3, %v2919_v17 }
0x1ca6   :  { %9731 = vmatpush3.bf16.msra.mxu0 %v10700_v20 }
0x1ca7   :  { %9733 = vmatprep.subr.bf16.mxu0 %v10705_v22 }
0x1caa   :  { %9735 = vmatpush3.bf16.msra.mxu0 %v10705_v22 }
0x1cab   :  { %9737 = vmatprep.subr.bf16.mxu0 %v10716_v25 }
0x1cae   :  { %9739 = vmatpush3.bf16.msra.mxu0 %v10716_v25 }
0x1caf   :  { %9741 = vmatprep.subr.bf16.mxu0 %v10726_v28 }
0x1cb2   :  { %9743 = vmatpush3.bf16.msra.mxu0 %v10726_v28 }
0x1cb3   :  { %9745 = vmatprep.subr.bf16.mxu0 %v10736_v31  ;;  %v3126_v11 = vpop.permute.xlu1 %3125 }
0x1cb6   :  { %9747 = vmatpush3.bf16.msra.mxu0 %v10736_v31 }
0x1cb7   :  { %9749 = vmatprep.subr.bf16.mxu0 %v10772_v44 }
0x1cba   :  { %9751 = vmatpush3.bf16.msra.mxu0 %v10772_v44 }
0x1cbb   :  { %9780 = vmatprep.subr.bf16.mxu0 %v10527_v3 }
0x1d78   :  { %v8791_v51 = vpop.f32.mrb[24].mxu0 }
0x1d79   :  { %v3013_v47 = vadd.f32 %v11192_v53, %v8791_v51  ;;  %v3007_v21 = vpop.f32.mrb[25].mxu0 }
0x1d7a   :  { %v3008_v50 = vadd.f32 %v11192_v53, %v3007_v21 }
0x1d7b   :  { %v3017_v23 = vmax.f32 %v3013_v47, 0.0 }
0x1d7c   :  { %v3016_v42 = vmax.f32 %v3008_v50, 0.0  ;;  %v3140_v50 = vsub.f32 %v11388_v38, %v11445_v2 }
0x1d7e   :  { %8816 = vmatprep.mubr.msk.f32.mxu0 %vm447_vm7, %v3016_v42 }
0x1d7f   :  { %8817 = vmatmul.mubr.msk.f32.vlgmr.msra.gmra.mrb[26].mxu0 %vm447_vm7, %v3017_v23 }
0x1d80   :  { %9782 = vmatpush3.bf16.msra.mxu0 %v10664_v9  ;;  %8857 = vmatprep.mubr.msk.f32.mxu0 %vm10526_vm2, %v10525_v1 }
0x1d81   :  { %9784 = vmatprep.subr.bf16.mxu0 %v10686_v16 }
0x1e52   :  { %v8818_v33 = vpop.f32.mrb[26].mxu0 }
0x1e53   :  { %v3096_v24 = vadd.f32 %v11205_v63, %v8818_v33  ;;  %v3090_v7 = vpop.f32.mrb[27].mxu0 }
0x1e54   :  { %v3091_v35 = vadd.f32 %v11205_v63, %v3090_v7 }
0x1e55   :  { %10357 = vtanh.f32 %v3096_v24 }
0x1e56   :  { %10359 = vtanh.f32 %v3091_v35 }
0x1e5f   :  { %v10358_v12 = vpop.eup %10357 }
0x1e60   :  { %v11483_v36 = vpop.eup %10359  ;;  %v3118_v40 = vmul.f32 %v10358_v12, %v3110_v37  ;;  %v3134_v54 = vmul.f32 %v10358_v12, %v3126_v11  ;;  %v3107_v6 = vmul.f32 %v10358_v12, %v3104_v4 }
0x1e61   :  { %v3112_v19 = vmul.f32 %v11483_v36, %v3110_v37  ;;  %v3145_v58 = vadd.f32 %v11483_v36, %v3144_v13  ;;  %v3128_v60 = vmul.f32 %v11483_v36, %v3126_v11  ;;  %v3106_v39 = vmul.f32 %v11483_v36, %v3104_v4 }
0x1e62   :  { %3120 = vrot.lane.b32.xlu1 %v3118_v40, %s10531_s30  ;;  %v3383_v61 = vadd.f32 %v11483_v36, %v11423_v27 }
0x1e63   :  { %3114 = vrot.lane.b32.xlu0 %v3112_v19, %s10531_s30  ;;  %v3146_v52 = vmul.f32 %v3145_v58, %v11367_v62 }
0x1e64   :  { %v3384_v0 = vmul.f32 3.0, %v3383_v61 }
0x1e65   :  { %v3148_v59 = vrot.slane %v3146_v52, 4 }
0x1e66   :  { %3136 = vrot.lane.b32.xlu1 %v3134_v54, %s10532_s0 }
0x1e67   :  { %3149 = vrot.lane.b32.xlu0 %v3148_v59, %s10533_s19 }
0x1e6a   :  { %3130 = vrot.lane.b32.xlu1 %v3128_v60, %s10532_s0  ;;  %v7793_v60 = vld [vmem:[%s12736_s24 + $0xc] sm:$0xf] }
0x1e6b   :  { %3345 = vperm.xlu0 %10282, %v3166_v26   ;;  %v11555_v4 = vmul.f32 2.0, %v7793_v60 }
0x1e6d   :  { %v3495_v36 = vmul.f32 0.0, %v11555_v4 }
0x1ed4   :  { %v3121_v5 = vpop.permute.xlu1 %3120 }
0x1ed5   :  { %v3115_v10 = vpop.permute.xlu0 %3114  ;;  %v3123_v41 = vadd.f32 %v3121_v5, %v3107_v6 }
0x1ed6   :  { %v3117_v15 = vadd.f32 %v3115_v10, %v3106_v39  ;;  %v3385_v10 = vadd.f32 %v11369_v18, %v3384_v0  ;;  %v11570_v18 = vld [vmem:[%s12737_s27 + $0xc] sm:$0xf] }
0x1ed8   :  { %v3137_v14 = vpop.permute.xlu1 %3136 }
0x1ed9   :  { %v11501_v8 = vadd.f32 %v3137_v14, %v3123_v41  ;;  %v3150_v51 = vpop.permute.xlu0 %3149 }
0x1eda   :  { %v3152_v23 = vadd.f32 %v3150_v51, %v11317_v55 }
0x1edb   :  { %v3154_v17 = vadd.f32 %v3153_v43, %v11501_v8 }
0x1edc   :  { %v3131_v47 = vpop.permute.xlu1 %3130  ;;  %v3168_v7 = vrot.slane %v3152_v23, 4 }
0x1edd   :  { %v3155_v21 = vmul.f32 %v3154_v17, %v11367_v62  ;;  %v11507_v42 = vadd.f32 %v3131_v47, %v3117_v15 }
0x1edf   :  { %v3141_v33 = vadd.f32 %v3140_v50, %v11507_v42  ;;  %3157 = vrot.lane.b32.xlu1 %v3155_v21, %s10534_s1  ;;  %v3496_v21 = vadd.f32 %v11570_v18, %v3495_v36 }
0x1ee1   :  { %v3142_v24 = vmul.f32 %v3141_v33, %v11367_v62 }
0x1ee3   :  { %v3143_v35 = vadd.f32 %v3142_v24, %v11324_v34  ;;  %3361 = vperm.xlu1 %10280, %v3166_v26   ;;  %v3395_v24 = vadd.f32 %v11501_v8, %v11441_v57 }
0x1ee5   :  { %v3170_v12 = vsel %vm353_vm6, %v3143_v35, %v3168_v7  ;;  %v3396_v35 = vmul.f32 3.0, %v3395_v24 }
0x1ee6   :  { %8823 = vmatprep.mubr.msk.f32.mxu1 %vm184_vm3, %v3170_v12  ;;  %v3376_v12 = vadd.f32 %v11507_v42, %v11445_v2 }
0x1ee7   :  { %10283 = vset.pattern.permute.xlu1 %v10529_v49 }
0x1ee8   :  { %3339 = vperm.xlu1 %10283, %v3166_v26  }
0x1eea   :  { %v3346_v26 = vpop.permute.xlu0 %3345 }
0x1eec   :  { %10284 = vset.pattern.permute.xlu1 %v10530_v56 }
0x1f51   :  { %v3158_v37 = vpop.permute.xlu1 %3157 }
0x1f52   :  { %v3160_v13 = vadd.f32 %v3158_v37, %v11329_v29 }
0x1f54   :  { %8824 = vmatmul.mubr.msk.f32.vlgmr.msra.gmra.mrb[26].mxu1 %vm184_vm3, %v3160_v13 }
0x1f55   :  { %9759 = vmatpush3.bf16.msra.mxu1 %v10700_v20 }
0x1f56   :  { %9761 = vmatprep.subr.bf16.mxu1 %v10705_v22 }
0x1f59   :  { %9763 = vmatpush3.bf16.msra.mxu1 %v10705_v22 }
0x1f5a   :  { %9765 = vmatprep.subr.bf16.mxu1 %v10716_v25 }
0x1f5d   :  { %9767 = vmatpush3.bf16.msra.mxu1 %v10716_v25 }
0x1f5e   :  { %9769 = vmatprep.subr.bf16.mxu1 %v10726_v28 }
0x1f61   :  { %9771 = vmatpush3.bf16.msra.mxu1 %v10726_v28 }
0x1f62   :  { %9773 = vmatprep.subr.bf16.mxu1 %v10736_v31  ;;  %v3362_v6 = vpop.permute.xlu1 %3361 }
0x1f65   :  { %9775 = vmatpush3.bf16.msra.mxu1 %v10736_v31 }
0x1f66   :  { %9777 = vmatprep.subr.bf16.mxu1 %v10772_v44 }
0x1f67   :  { %v3340_v7 = vpop.permute.xlu1 %3339 }
0x1f69   :  { %9779 = vmatpush3.bf16.msra.mxu1 %v10772_v44 }
0x1f6a   :  { %9788 = vmatprep.subr.bf16.mxu1 %v10700_v20 }
0x2027   :  { %v8825_v40 = vpop.f32.mrb[26].mxu1 }
0x2028   :  { %v3249_v11 = vadd.f32 %v11192_v53, %v8825_v40  ;;  %v3243_v19 = vpop.f32.mrb[27].mxu1 }
0x2029   :  { %v3244_v58 = vadd.f32 %v11192_v53, %v3243_v19  ;;  %v3397_v19 = vadd.f32 %v3396_v35, %v11384_v30 }
0x202a   :  { %v3253_v45 = vmax.f32 %v3249_v11, 0.0 }
0x202b   :  { %v3252_v48 = vmax.f32 %v3244_v58, 0.0  ;;  %v3377_v58 = vmul.f32 3.0, %v3376_v12 }
0x202d   :  { %8850 = vmatprep.mubr.msk.f32.mxu1 %vm447_vm7, %v3252_v48  ;;  %v3378_v57 = vadd.f32 %v3377_v58, %v11388_v38 }
0x202e   :  { %8851 = vmatmul.mubr.msk.f32.vlgmr.msra.gmra.mrb[28].mxu1 %vm447_vm7, %v3253_v45 }
0x202f   :  { %9790 = vmatpush3.bf16.msra.mxu1 %v10700_v20 }
0x2030   :  { %9792 = vmatprep.subr.bf16.mxu1 %v10705_v22 }
0x2033   :  { %9794 = vmatpush3.bf16.msra.mxu1 %v10705_v22 }
0x2034   :  { %9796 = vmatprep.subr.bf16.mxu1 %v10716_v25 }
0x2037   :  { %9798 = vmatpush3.bf16.msra.mxu1 %v10716_v25 }
0x2038   :  { %9800 = vmatprep.subr.bf16.mxu1 %v10726_v28 }
0x203b   :  { %9802 = vmatpush3.bf16.msra.mxu1 %v10726_v28 }
0x203c   :  { %9804 = vmatprep.subr.bf16.mxu1 %v10736_v31 }
0x203f   :  { %9806 = vmatpush3.bf16.msra.mxu1 %v10736_v31 }
0x2040   :  { %9808 = vmatprep.subr.bf16.mxu1 %v10772_v44 }
0x2043   :  { %9810 = vmatpush3.bf16.msra.mxu1 %v10772_v44 }
0x2044   :  { %9840 = vmatprep.subr.bf16.mxu1 %v10686_v16 }
0x2101   :  { %v8852_v53 = vpop.f32.mrb[28].mxu1 }
0x2102   :  { %v3332_v52 = vadd.f32 %v11205_v63, %v8852_v53  ;;  %v3326_v54 = vpop.f32.mrb[29].mxu1 }
0x2103   :  { %v3327_v59 = vadd.f32 %v11205_v63, %v3326_v54  ;;  %v7794_v63 = vld [vmem:[%s12714_s3 + $0xc] sm:$0xf] }
0x2104   :  { %10361 = vtanh.f32 %v3332_v52  ;;  %v11564_v43 = vmul.f32 3.0, %v7794_v63 }
0x2105   :  { %10363 = vtanh.f32 %v3327_v59 }
0x2106   :  { %v3498_v50 = vmul.f32 0.0, %v11564_v43 }
0x2108   :  { %v3499_v33 = vadd.f32 %v3498_v50, %v3496_v21  ;;  %v11642_v50 = vstv %s11638_s22  ;;  %s11908_s22 = sld [smem:[#allocation2 + $0x5]] }
0x210e   :  { %v10362_v5 = vpop.eup %10361  ;;  %s5010_s2 = smul.f32 2.0, %s11908_s22 }
0x210f   :  { %v10364_v41 = vpop.eup %10363  ;;  %v3354_v14 = vmul.f32 %v10362_v5, %v3346_v26  ;;  %v3370_v39 = vmul.f32 %v10362_v5, %v3362_v6  ;;  %v3343_v37 = vmul.f32 %v10362_v5, %v3340_v7  ;;  %s5253_s29 = smul.f32 %s11908_s22, %s11908_s22 }
0x2110   :  { %v3386_v27 = vadd.f32 %v10364_v41, %v3385_v10  ;;  %v3348_v17 = vmul.f32 %v10364_v41, %v3346_v26  ;;  %v3364_v51 = vmul.f32 %v10364_v41, %v3362_v6  ;;  %v3342_v48 = vmul.f32 %v10364_v41, %v3340_v7  ;;  %v11623_v41 = vld [vmem:[%s12723_s12] ss:$0 sm:$0xff] }
0x2111   :  { %3372 = vrot.lane.b32.xlu1 %v3370_v39, %s10532_s0  ;;  %3356 = vrot.lane.b32.xlu0 %v3354_v14, %s10531_s30 }
0x2112   :  { %v3387_v15 = vmul.f32 %v3386_v27, %v11367_v62 }
0x2114   :  { %v3388_v47 = vmul.f32 0.125, %v3387_v15 }
0x2115   :  { %3366 = vrot.lane.b32.xlu1 %v3364_v51, %s10532_s0  ;;  %3350 = vrot.lane.b32.xlu0 %v3348_v17, %s10531_s30  ;;  %v11634_v17 = vld [vmem:[%s12725_s14] ss:$0 sm:$0xff] }
0x2116   :  { %v3390_v23 = vrot.slane %v3388_v47, 4 }
0x2119   :  { %3391 = vrot.lane.b32.xlu0 %v3390_v23, %s10533_s19  ;;  %v3728_v23 = vstv %s3727_s11  ;;  %s4772_s11 = smul.f32 0.33333334, %s11908_s22 }
0x211d   :  { %3675 = vperm.xlu0 %10282, %v3499_v33  }
0x2121   :  { %10285 = vset.pattern.permute.xlu0 %v10529_v49 }
0x2122   :  { %3669 = vperm.xlu0 %10285, %v3499_v33  }
0x2126   :  { %10286 = vset.pattern.permute.xlu0 %v10528_v46 }
0x2183   :  { %v3373_v13 = vpop.permute.xlu1 %3372  ;;  %v3357_v40 = vpop.permute.xlu0 %3356 }
0x2184   :  { %v3359_v11 = vadd.f32 %v3357_v40, %v3343_v37  ;;  %v3729_v40 = vmul.f32 %v3728_v23, %v11555_v4 }
0x2186   :  { %v3375_v45 = vadd.f32 %v3373_v13, %v3359_v11  ;;  %v3732_v11 = vstv %s3731_s5  ;;  %s4776_s5 = smul.f32 %s4772_s11, %s4772_s11 }
0x2187   :  { %v3351_v53 = vpop.permute.xlu0 %3350  ;;  %v3367_v59 = vpop.permute.xlu1 %3366 }
0x2188   :  { %v3398_v52 = vadd.f32 %v3397_v19, %v3375_v45  ;;  %v3353_v54 = vadd.f32 %v3351_v53, %v3342_v48  ;;  %v3730_v45 = vadd.f32 %v11570_v18, %v3729_v40  ;;  %v3733_v53 = vmul.f32 %v3732_v11, %v11564_v43 }
0x218a   :  { %v3399_v8 = vmul.f32 %v3398_v52, %v11367_v62  ;;  %v3369_v61 = vadd.f32 %v3367_v59, %v3353_v54  ;;  %v3734_v54 = vadd.f32 %v3733_v53, %v3730_v45 }
0x218b   :  { %v3392_v0 = vpop.permute.xlu0 %3391 }
0x218c   :  { %v3379_v2 = vadd.f32 %v3378_v57, %v3369_v61  ;;  %v11587_v42 = vadd.f32 %v3392_v0, %v11317_v55  ;;  %v3400_v60 = vmul.f32 0.125, %v3399_v8 }
0x218e   :  { %v3380_v30 = vmul.f32 %v3379_v2, %v11367_v62  ;;  %3409 = vst.msk [vmem:[#allocation6 + $0xc] sm:$0xf] %vm258_vm4, %v11587_v42  ;;  %3402 = vrot.lane.b32.xlu1 %v3400_v60, %s10534_s1  ;;  %v3501_v6 = vrot.slane %v11587_v42, 4 }
0x2190   :  { %v3381_v26 = vmul.f32 0.125, %v3380_v30 }
0x2192   :  { %v11594_v5 = vadd.f32 %v3381_v26, %v11324_v34  ;;  %3691 = vperm.xlu1 %10284, %v3499_v33  }
0x2194   :  { %3407 = vst.msk [vmem:[#allocation5 + $0xc] sm:$0xf] %vm258_vm4, %v11594_v5  ;;  %v3503_v34 = vsel %vm353_vm6, %v11594_v5, %v3501_v6 }
0x219c   :  { %v3676_v24 = vpop.permute.xlu0 %3675 }
0x21a1   :  { %v3670_v59 = vpop.permute.xlu0 %3669 }
0x2200   :  { %v3403_v38 = vpop.permute.xlu1 %3402 }
0x2201   :  { %v11599_v55 = vadd.f32 %v3403_v38, %v11329_v29 }
0x2203   :  { %3411 = vst.msk [vmem:[#allocation8 + $0xc] sm:$0xf] %vm258_vm4, %v11599_v55  ;;  %8858 = vmatmul.mubr.msk.f32.vlgmr.msra.gmra.mrb[28].mxu0 %vm184_vm3, %v11599_v55 }
0x2204   :  { %9786 = vmatpush3.bf16.msra.mxu0 %v10686_v16  ;;  %8864 = vmatprep.mubr.msk.f32.mxu0 %vm184_vm3, %v3503_v34 }
0x2205   :  { %9812 = vmatprep.subr.bf16.mxu0 %v10686_v16 }
0x2207   :  { %8865 = vmatmul.mubr.msk.f32.vlgmr.msra.gmra.mrb[30].mxu0 %vm184_vm3, %v11599_v55 }
0x2208   :  { %9814 = vmatpush3.bf16.msra.mxu0 %v10686_v16 }
0x2209   :  { %9816 = vmatprep.subr.bf16.mxu0 %v10700_v20 }
0x2211   :  { %v3692_v12 = vpop.permute.xlu1 %3691 }
0x22d6   :  { %v3481_v29 = vpop.f32.mrb[28].mxu0 }
0x22d7   :  { %v3482_v62 = vadd.f32 %v11348_v32, %v3481_v29  ;;  %v8859_v10 = vpop.f32.mrb[29].mxu0 }
0x22d9   :  { %7790 = vst.msk [vmem:[%s12729_s18 + $0xc] sm:$0xf] %vm338_vm5, %v3482_v62 }
0x22da   :  { %v8866_v63 = vpop.f32.mrb[30].mxu0 }
0x22db   :  { %v3579_v14 = vadd.f32 %v11623_v41, %v8866_v63  ;;  %v3573_v39 = vpop.f32.mrb[31].mxu0 }
0x22dc   :  { %v3574_v27 = vadd.f32 %v11623_v41, %v3573_v39 }
0x22dd   :  { %v3583_v15 = vmax.f32 %v3579_v14, 0.0 }
0x22de   :  { %v3582_v36 = vmax.f32 %v3574_v27, 0.0 }
0x22e0   :  { %8891 = vmatprep.mubr.msk.f32.mxu1 %vm447_vm7, %v3582_v36 }
0x22e1   :  { %8892 = vmatmul.mubr.msk.f32.vlgmr.msra.gmra.mrb[30].mxu1 %vm447_vm7, %v3583_v15 }
0x22e2   :  { %9842 = vmatpush3.bf16.msra.mxu1 %v10686_v16 }
0x22e3   :  { %9844 = vmatprep.subr.bf16.mxu1 %v10700_v20 }
0x23b4   :  { %v8893_v32 = vpop.f32.mrb[30].mxu1 }
0x23b5   :  { %v3662_v51 = vadd.f32 %v11634_v17, %v8893_v32  ;;  %v3656_v47 = vpop.f32.mrb[31].mxu1 }
0x23b6   :  { %v3657_v21 = vadd.f32 %v11634_v17, %v3656_v47 }
0x23b7   :  { %10365 = vtanh.f32 %v3662_v51 }
0x23b8   :  { %10367 = vtanh.f32 %v3657_v21 }
0x23c1   :  { %v10366_v33 = vpop.eup %10365 }
0x23c2   :  { %v11644_v7 = vpop.eup %10367  ;;  %v3684_v35 = vmul.f32 %v10366_v33, %v3676_v24  ;;  %v3700_v58 = vmul.f32 %v10366_v33, %v3692_v12  ;;  %v3673_v8 = vmul.f32 %v10366_v33, %v3670_v59 }
0x23c3   :  { %v3678_v37 = vmul.f32 %v11644_v7, %v3676_v24  ;;  %v3710_v13 = vmul.f32 %v11644_v7, %v11642_v50  ;;  %v3694_v52 = vmul.f32 %v11644_v7, %v3692_v12  ;;  %v3672_v60 = vmul.f32 %v11644_v7, %v3670_v59 }
0x23c4   :  { %3686 = vrot.lane.b32.xlu1 %v3684_v35, %s10531_s30 }
0x23c5   :  { %3680 = vrot.lane.b32.xlu0 %v3678_v37, %s10531_s30  ;;  %v3711_v19 = vmul.f32 0.33333334, %v3710_v13 }
0x23c7   :  { %v3713_v48 = vrot.slane %v3711_v19, 4 }
0x23c8   :  { %3702 = vrot.lane.b32.xlu1 %v3700_v58, %s10532_s0  ;;  %v3948_v58 = vmul.f32 0.33333334, %v11644_v7 }
0x23c9   :  { %3714 = vrot.lane.b32.xlu0 %v3713_v48, %s10533_s19  ;;  %v3969_v48 = vstv %s3968_s23  ;;  %s5013_s23 = smul.f32 0.33333334, %s5010_s2 }
0x23ca   :  { %v3970_v59 = vmul.f32 %v3969_v48, %v11555_v4 }
0x23cc   :  { %3696 = vrot.lane.b32.xlu1 %v3694_v52, %s10532_s0 }
0x23cd   :  { %3913 = vperm.xlu0 %10286, %v3734_v54  }
0x2436   :  { %v3687_v57 = vpop.permute.xlu1 %3686 }
0x2437   :  { %v3681_v61 = vpop.permute.xlu0 %3680  ;;  %v3689_v0 = vadd.f32 %v3687_v57, %v3673_v8  ;;  %v3973_v57 = vstv %s3972_s4  ;;  %s5017_s4 = smul.f32 %s5013_s23, %s5013_s23 }
0x2438   :  { %v3683_v26 = vadd.f32 %v3681_v61, %v3672_v60  ;;  %v3974_v60 = vmul.f32 %v3973_v57, %v11564_v43 }
0x243a   :  { %v3703_v2 = vpop.permute.xlu1 %3702 }
0x243b   :  { %v11659_v30 = vadd.f32 %v3703_v2, %v3689_v0  ;;  %v3715_v6 = vpop.permute.xlu0 %3714  ;;  %v3971_v2 = vadd.f32 %v11570_v18, %v3970_v59 }
0x243c   :  { %v3717_v10 = vadd.f32 %v3715_v6, %v11587_v42 }
0x243d   :  { %v3718_v38 = vmul.f32 %v11642_v50, %v11659_v30 }
0x243e   :  { %v3697_v34 = vpop.permute.xlu1 %3696  ;;  %v3736_v39 = vrot.slane %v3717_v10, 4 }
0x243f   :  { %v11663_v29 = vadd.f32 %v3697_v34, %v3683_v26  ;;  %v3719_v62 = vmul.f32 0.33333334, %v3718_v38  ;;  %v3975_v38 = vadd.f32 %v3974_v60, %v3971_v2 }
0x2441   :  { %v3707_v63 = vmul.f32 %v11642_v50, %v11663_v29  ;;  %3721 = vrot.lane.b32.xlu1 %v3719_v62, %s10534_s1 }
0x2443   :  { %v3708_v14 = vmul.f32 0.33333334, %v3707_v63 }
0x2445   :  { %3929 = vperm.xlu1 %10284, %v3734_v54   ;;  %v3709_v27 = vadd.f32 %v3708_v14, %v11594_v5  ;;  %v3957_v14 = vmul.f32 0.33333334, %v11659_v30 }
0x2447   :  { %v3738_v36 = vsel %vm353_vm6, %v3709_v27, %v3736_v39 }
0x2448   :  { %8898 = vmatprep.mubr.msk.f32.mxu0 %vm184_vm3, %v3738_v36 }
0x2449   :  { %10287 = vset.pattern.permute.xlu1 %v10529_v49 }
0x244a   :  { %3907 = vperm.xlu1 %10287, %v3734_v54  }
0x244c   :  { %v3914_v40 = vpop.permute.xlu0 %3913 }
0x244e   :  { %10288 = vset.pattern.permute.xlu1 %v10530_v56 }
0x24b3   :  { %v3722_v15 = vpop.permute.xlu1 %3721 }
0x24b4   :  { %v3724_v32 = vadd.f32 %v3722_v15, %v11599_v55 }
0x24b6   :  { %8899 = vmatmul.mubr.msk.f32.vlgmr.msra.gmra.mrb[32].mxu0 %vm184_vm3, %v3724_v32 }
0x24b7   :  { %9818 = vmatpush3.bf16.msra.mxu0 %v10700_v20 }
0x24b8   :  { %9820 = vmatprep.subr.bf16.mxu0 %v10705_v22 }
0x24bb   :  { %9822 = vmatpush3.bf16.msra.mxu0 %v10705_v22 }
0x24bc   :  { %9824 = vmatprep.subr.bf16.mxu0 %v10716_v25 }
0x24bf   :  { %9826 = vmatpush3.bf16.msra.mxu0 %v10716_v25 }
0x24c0   :  { %9828 = vmatprep.subr.bf16.mxu0 %v10726_v28 }
0x24c3   :  { %9830 = vmatpush3.bf16.msra.mxu0 %v10726_v28 }
0x24c4   :  { %9832 = vmatprep.subr.bf16.mxu0 %v10736_v31  ;;  %v3930_v19 = vpop.permute.xlu1 %3929 }
0x24c7   :  { %9834 = vmatpush3.bf16.msra.mxu0 %v10736_v31 }
0x24c8   :  { %9836 = vmatprep.subr.bf16.mxu0 %v10772_v44 }
0x24c9   :  { %v3908_v6 = vpop.permute.xlu1 %3907 }
0x24cb   :  { %9838 = vmatpush3.bf16.msra.mxu0 %v10772_v44 }
0x24cc   :  { %9868 = vmatprep.subr.bf16.mxu0 %v10686_v16 }
0x2589   :  { %v8900_v51 = vpop.f32.mrb[32].mxu0 }
0x258a   :  { %v3817_v47 = vadd.f32 %v11623_v41, %v8900_v51  ;;  %v3811_v21 = vpop.f32.mrb[33].mxu0 }
0x258b   :  { %v3812_v23 = vadd.f32 %v11623_v41, %v3811_v21 }
0x258c   :  { %v3821_v24 = vmax.f32 %v3817_v47, 0.0  ;;  %v3944_v47 = vmul.f32 0.33333334, %v11663_v29 }
0x258d   :  { %v3820_v33 = vmax.f32 %v3812_v23, 0.0 }
0x258f   :  { %8925 = vmatprep.mubr.msk.f32.mxu0 %vm447_vm7, %v3820_v33 }
0x2590   :  { %8926 = vmatmul.mubr.msk.f32.vlgmr.msra.gmra.mrb[34].mxu0 %vm447_vm7, %v3821_v24 }
0x2591   :  { %9870 = vmatpush3.bf16.msra.mxu0 %v10686_v16 }
0x2592   :  { %9872 = vmatprep.subr.bf16.mxu0 %v10700_v20 }
0x2663   :  { %v8927_v35 = vpop.f32.mrb[34].mxu0 }
0x2664   :  { %v3900_v12 = vadd.f32 %v11634_v17, %v8927_v35  ;;  %v3894_v37 = vpop.f32.mrb[35].mxu0 }
0x2665   :  { %v3895_v13 = vadd.f32 %v11634_v17, %v3894_v37 }
0x2666   :  { %10369 = vtanh.f32 %v3900_v12 }
0x2667   :  { %10371 = vtanh.f32 %v3895_v13 }
0x2670   :  { %v10370_v11 = vpop.eup %10369 }
0x2671   :  { %v11698_v45 = vpop.eup %10371  ;;  %v3922_v53 = vmul.f32 %v10370_v11, %v3914_v40  ;;  %v3938_v52 = vmul.f32 %v10370_v11, %v3930_v19  ;;  %v3911_v34 = vmul.f32 %v10370_v11, %v3908_v6 }
0x2672   :  { %v3949_v54 = vsub.f32 %v11698_v45, %v3948_v58  ;;  %v3916_v8 = vmul.f32 %v11698_v45, %v3914_v40  ;;  %v3932_v61 = vmul.f32 %v11698_v45, %v3930_v19  ;;  %v3910_v39 = vmul.f32 %v11698_v45, %v3908_v6 }
0x2673   :  { %3940 = vrot.lane.b32.xlu1 %v3938_v52, %s10532_s0  ;;  %3924 = vrot.lane.b32.xlu0 %v3922_v53, %s10531_s30 }
0x2674   :  { %v3950_v0 = vmul.f32 %v3949_v54, %v11642_v50 }
0x2676   :  { %v3952_v26 = vrot.slane %v3950_v0, 4 }
0x2677   :  { %3934 = vrot.lane.b32.xlu1 %v3932_v61, %s10532_s0  ;;  %3918 = vrot.lane.b32.xlu0 %v3916_v8, %s10531_s30 }
0x267b   :  { %3953 = vrot.lane.b32.xlu0 %v3952_v26, %s10533_s19  ;;  %v4189_v26 = vsub.f32 %v11644_v7, %v11698_v45 }
0x267f   :  { %4154 = vperm.xlu0 %10286, %v3975_v38  }
0x2683   :  { %10289 = vset.pattern.permute.xlu0 %v10529_v49 }
0x2684   :  { %4148 = vperm.xlu0 %10289, %v3975_v38  }
0x2688   :  { %10290 = vset.pattern.permute.xlu0 %v10528_v46 }
0x26e5   :  { %v3941_v62 = vpop.permute.xlu1 %3940  ;;  %v3925_v10 = vpop.permute.xlu0 %3924 }
0x26e6   :  { %v3927_v63 = vadd.f32 %v3925_v10, %v3911_v34 }
0x26e8   :  { %v11716_v27 = vadd.f32 %v3941_v62, %v3927_v63  ;;  %v4206_v63 = vmul.f32 %v11642_v50, %v11555_v4 }
0x26e9   :  { %v3919_v36 = vpop.permute.xlu0 %3918  ;;  %v3935_v51 = vpop.permute.xlu1 %3934 }
0x26ea   :  { %v3958_v15 = vsub.f32 %v11716_v27, %v3957_v14  ;;  %v3921_v32 = vadd.f32 %v3919_v36, %v3910_v39  ;;  %v4209_v14 = vstv %s4208_s25 }
0x26ec   :  { %v11720_v21 = vadd.f32 %v3935_v51, %v3921_v32  ;;  %v3959_v23 = vmul.f32 %v3958_v15, %v11642_v50  ;;  %v4207_v32 = vadd.f32 %v11570_v18, %v4206_v63  ;;  %v4210_v51 = vmul.f32 %v4209_v14, %v11564_v43 }
0x26ed   :  { %v3954_v33 = vpop.permute.xlu0 %3953  ;;  %v4198_v43 = vsub.f32 %v11659_v30, %v11716_v27 }
0x26ee   :  { %v3945_v24 = vsub.f32 %v11720_v21, %v3944_v47  ;;  %v3956_v35 = vadd.f32 %v3954_v33, %v11587_v42  ;;  %3961 = vrot.lane.b32.xlu1 %v3959_v23, %s10534_s1  ;;  %v4211_v4 = vadd.f32 %v4210_v51, %v4207_v32 }
0x26f0   :  { %v3946_v12 = vmul.f32 %v3945_v24, %v11642_v50  ;;  %v3977_v37 = vrot.slane %v3956_v35, 4 }
0x26f2   :  { %v3947_v13 = vadd.f32 %v3946_v12, %v11594_v5  ;;  %4170 = vperm.xlu1 %10288, %v3975_v38  }
0x26f4   :  { %v3979_v40 = vsel %vm353_vm6, %v3947_v13, %v3977_v37 }
0x26f5   :  { %8932 = vmatprep.mubr.msk.f32.mxu1 %vm184_vm3, %v3979_v40 }
0x26fe   :  { %v4155_v60 = vpop.permute.xlu0 %4154 }
0x2703   :  { %v4149_v23 = vpop.permute.xlu0 %4148 }
0x2760   :  { %v3962_v11 = vpop.permute.xlu1 %3961 }
0x2761   :  { %v3964_v19 = vadd.f32 %v3962_v11, %v11599_v55 }
0x2763   :  { %8933 = vmatmul.mubr.msk.f32.vlgmr.msra.gmra.mrb[32].mxu1 %vm184_vm3, %v3964_v19 }
0x2764   :  { %9846 = vmatpush3.bf16.msra.mxu1 %v10700_v20 }
0x2765   :  { %9848 = vmatprep.subr.bf16.mxu1 %v10705_v22 }
0x2768   :  { %9850 = vmatpush3.bf16.msra.mxu1 %v10705_v22 }
0x2769   :  { %9852 = vmatprep.subr.bf16.mxu1 %v10716_v25 }
0x276c   :  { %9854 = vmatpush3.bf16.msra.mxu1 %v10716_v25 }
0x276d   :  { %9856 = vmatprep.subr.bf16.mxu1 %v10726_v28 }
0x2770   :  { %9858 = vmatpush3.bf16.msra.mxu1 %v10726_v28 }
0x2771   :  { %9860 = vmatprep.subr.bf16.mxu1 %v10736_v31  ;;  %v4171_v34 = vpop.permute.xlu1 %4170 }
0x2774   :  { %9862 = vmatpush3.bf16.msra.mxu1 %v10736_v31 }
0x2775   :  { %9864 = vmatprep.subr.bf16.mxu1 %v10772_v44 }
0x2778   :  { %9866 = vmatpush3.bf16.msra.mxu1 %v10772_v44 }
0x2779   :  { %9895 = vmatprep.subr.bf16.mxu1 %v10527_v3 }
0x2836   :  { %v8934_v58 = vpop.f32.mrb[32].mxu1 }
0x2837   :  { %v4058_v48 = vadd.f32 %v11623_v41, %v8934_v58  ;;  %v4052_v53 = vpop.f32.mrb[33].mxu1 }
0x2838   :  { %v4053_v52 = vadd.f32 %v11623_v41, %v4052_v53  ;;  %v4185_v53 = vsub.f32 %v11663_v29, %v11720_v21 }
0x2839   :  { %v4062_v59 = vmax.f32 %v4058_v48, 0.0 }
0x283a   :  { %v4061_v54 = vmax.f32 %v4053_v52, 0.0 }
0x283c   :  { %8959 = vmatprep.mubr.msk.f32.mxu1 %vm447_vm7, %v4061_v54 }
0x283d   :  { %8960 = vmatmul.mubr.msk.f32.vlgmr.msra.gmra.mrb[34].mxu1 %vm447_vm7, %v4062_v59 }
0x283e   :  { %9897 = vmatpush3.bf16.msra.mxu1 %v10664_v9  ;;  %9000 = vmatprep.mubr.msk.f32.mxu1 %vm10526_vm2, %v10525_v1 }
0x283f   :  { %9899 = vmatprep.subr.bf16.mxu1 %v10686_v16 }
0x2910   :  { %v8961_v57 = vpop.f32.mrb[34].mxu1 }
0x2911   :  { %v4141_v8 = vadd.f32 %v11634_v17, %v8961_v57  ;;  %v4135_v61 = vpop.f32.mrb[35].mxu1 }
0x2912   :  { %v4136_v0 = vadd.f32 %v11634_v17, %v4135_v61 }
0x2913   :  { %10373 = vtanh.f32 %v4141_v8 }
0x2914   :  { %10375 = vtanh.f32 %v4136_v0 }
0x291d   :  { %v10374_v2 = vpop.eup %10373 }
0x291e   :  { %v11758_v38 = vpop.eup %10375  ;;  %v4163_v6 = vmul.f32 %v10374_v2, %v4155_v60  ;;  %v4179_v36 = vmul.f32 %v10374_v2, %v4171_v34  ;;  %v4152_v24 = vmul.f32 %v10374_v2, %v4149_v23 }
0x291f   :  { %v4157_v62 = vmul.f32 %v11758_v38, %v4155_v60  ;;  %v4190_v10 = vadd.f32 %v11758_v38, %v4189_v26  ;;  %v4173_v47 = vmul.f32 %v11758_v38, %v4171_v34  ;;  %v4151_v18 = vmul.f32 %v11758_v38, %v4149_v23 }
0x2920   :  { %4165 = vrot.lane.b32.xlu1 %v4163_v6, %s10531_s30  ;;  %v4428_v32 = vadd.f32 %v11758_v38, %v11698_v45 }
0x2921   :  { %4159 = vrot.lane.b32.xlu0 %v4157_v62, %s10531_s30  ;;  %v4191_v39 = vmul.f32 %v4190_v10, %v11642_v50 }
0x2922   :  { %v4429_v51 = vmul.f32 3.0, %v4428_v32 }
0x2923   :  { %v4193_v15 = vrot.slane %v4191_v39, 4 }
0x2924   :  { %4181 = vrot.lane.b32.xlu1 %v4179_v36, %s10532_s0 }
0x2925   :  { %4194 = vrot.lane.b32.xlu0 %v4193_v15, %s10533_s19 }
0x2928   :  { %4175 = vrot.lane.b32.xlu1 %v4173_v47, %s10532_s0  ;;  %v7815_v47 = vld [vmem:[%s12736_s24 + $0x10] sm:$0xf] }
0x2929   :  { %4390 = vperm.xlu0 %10290, %v4211_v4   ;;  %v11830_v23 = vmul.f32 2.0, %v7815_v47 }
0x292b   :  { %v4540_v38 = vmul.f32 0.0, %v11830_v23 }
0x2992   :  { %v4166_v33 = vpop.permute.xlu1 %4165 }
0x2993   :  { %v4160_v35 = vpop.permute.xlu0 %4159  ;;  %v4168_v12 = vadd.f32 %v4166_v33, %v4152_v24 }
0x2994   :  { %v4162_v40 = vadd.f32 %v4160_v35, %v4151_v18  ;;  %v4430_v35 = vadd.f32 %v11644_v7, %v4429_v51  ;;  %v11845_v7 = vld [vmem:[%s12737_s27 + $0x10] sm:$0xf] }
0x2996   :  { %v4182_v37 = vpop.permute.xlu1 %4181 }
0x2997   :  { %v11776_v13 = vadd.f32 %v4182_v37, %v4168_v12  ;;  %v4195_v19 = vpop.permute.xlu0 %4194  ;;  %v7816_v12 = vld [vmem:[%s12714_s3 + $0x10] sm:$0xf] }
0x2998   :  { %v4197_v54 = vadd.f32 %v4195_v19, %v11587_v42 }
0x2999   :  { %v4199_v11 = vadd.f32 %v4198_v43, %v11776_v13 }
0x299a   :  { %v4176_v58 = vpop.permute.xlu1 %4175  ;;  %v4213_v8 = vrot.slane %v4197_v54, 4 }
0x299b   :  { %v4200_v48 = vmul.f32 %v4199_v11, %v11642_v50  ;;  %v11782_v52 = vadd.f32 %v4176_v58, %v4162_v40  ;;  %v11839_v40 = vmul.f32 3.0, %v7816_v12 }
0x299d   :  { %v4186_v59 = vadd.f32 %v4185_v53, %v11782_v52  ;;  %4202 = vrot.lane.b32.xlu1 %v4200_v48, %s10534_s1  ;;  %v4541_v53 = vadd.f32 %v11845_v7, %v4540_v38  ;;  %v4543_v54 = vmul.f32 0.0, %v11839_v40 }
0x299f   :  { %v4187_v57 = vmul.f32 %v4186_v59, %v11642_v50 }
0x29a1   :  { %v4188_v61 = vadd.f32 %v4187_v57, %v11594_v5  ;;  %4406 = vperm.xlu1 %10288, %v4211_v4   ;;  %v4544_v57 = vadd.f32 %v4543_v54, %v4541_v53 }
0x29a3   :  { %v4215_v0 = vsel %vm353_vm6, %v4188_v61, %v4213_v8  ;;  %v4440_v8 = vadd.f32 %v11776_v13, %v11716_v27 }
0x29a4   :  { %8966 = vmatprep.mubr.msk.f32.mxu0 %vm184_vm3, %v4215_v0 }
0x29a5   :  { %10291 = vset.pattern.permute.xlu1 %v10529_v49  ;;  %v4441_v0 = vmul.f32 3.0, %v4440_v8 }
0x29a6   :  { %4384 = vperm.xlu1 %10291, %v4211_v4  }
0x29a8   :  { %v4391_v4 = vpop.permute.xlu0 %4390 }
0x29aa   :  { %10292 = vset.pattern.permute.xlu1 %v10530_v56 }
0x2a0f   :  { %v4203_v2 = vpop.permute.xlu1 %4202 }
0x2a10   :  { %v4205_v60 = vadd.f32 %v4203_v2, %v11599_v55  ;;  %v4421_v2 = vadd.f32 %v11782_v52, %v11720_v21 }
0x2a12   :  { %8967 = vmatmul.mubr.msk.f32.vlgmr.msra.gmra.mrb[36].mxu0 %vm184_vm3, %v4205_v60 }
0x2a13   :  { %9874 = vmatpush3.bf16.msra.mxu0 %v10700_v20 }
0x2a14   :  { %9876 = vmatprep.subr.bf16.mxu0 %v10705_v22 }
0x2a17   :  { %9878 = vmatpush3.bf16.msra.mxu0 %v10705_v22 }
0x2a18   :  { %9880 = vmatprep.subr.bf16.mxu0 %v10716_v25 }
0x2a1b   :  { %9882 = vmatpush3.bf16.msra.mxu0 %v10716_v25 }
0x2a1c   :  { %9884 = vmatprep.subr.bf16.mxu0 %v10726_v28 }
0x2a1f   :  { %9886 = vmatpush3.bf16.msra.mxu0 %v10726_v28 }
0x2a20   :  { %9888 = vmatprep.subr.bf16.mxu0 %v10736_v31  ;;  %v4407_v24 = vpop.permute.xlu1 %4406 }
0x2a23   :  { %9890 = vmatpush3.bf16.msra.mxu0 %v10736_v31 }
0x2a24   :  { %9892 = vmatprep.subr.bf16.mxu0 %v10772_v44 }
0x2a25   :  { %v4385_v61 = vpop.permute.xlu1 %4384 }
0x2a27   :  { %9894 = vmatpush3.bf16.msra.mxu0 %v10772_v44 }
0x2a28   :  { %9903 = vmatprep.subr.bf16.mxu0 %v10700_v20 }
0x2ae5   :  { %v8968_v26 = vpop.f32.mrb[36].mxu0 }
0x2ae6   :  { %v4294_v6 = vadd.f32 %v11623_v41, %v8968_v26  ;;  %v4288_v34 = vpop.f32.mrb[37].mxu0 }
0x2ae7   :  { %v4289_v62 = vadd.f32 %v11623_v41, %v4288_v34 }
0x2ae8   :  { %v4298_v63 = vmax.f32 %v4294_v6, 0.0 }
0x2ae9   :  { %v4297_v10 = vmax.f32 %v4289_v62, 0.0  ;;  %v4442_v62 = vadd.f32 %v4441_v0, %v11659_v30 }
0x2aeb   :  { %8993 = vmatprep.mubr.msk.f32.mxu0 %vm447_vm7, %v4297_v10  ;;  %v4422_v10 = vmul.f32 3.0, %v4421_v2 }
0x2aec   :  { %8994 = vmatmul.mubr.msk.f32.vlgmr.msra.gmra.mrb[38].mxu0 %vm447_vm7, %v4298_v63 }
0x2aed   :  { %9905 = vmatpush3.bf16.msra.mxu0 %v10700_v20  ;;  %v4423_v27 = vadd.f32 %v4422_v10, %v11663_v29 }
0x2aee   :  { %9907 = vmatprep.subr.bf16.mxu0 %v10705_v22 }
0x2af1   :  { %9909 = vmatpush3.bf16.msra.mxu0 %v10705_v22 }
0x2af2   :  { %9911 = vmatprep.subr.bf16.mxu0 %v10716_v25 }
0x2af5   :  { %9913 = vmatpush3.bf16.msra.mxu0 %v10716_v25 }
0x2af6   :  { %9915 = vmatprep.subr.bf16.mxu0 %v10726_v28 }
0x2af9   :  { %9917 = vmatpush3.bf16.msra.mxu0 %v10726_v28 }
0x2afa   :  { %9919 = vmatprep.subr.bf16.mxu0 %v10736_v31 }
0x2afd   :  { %9921 = vmatpush3.bf16.msra.mxu0 %v10736_v31 }
0x2afe   :  { %9923 = vmatprep.subr.bf16.mxu0 %v10772_v44 }
0x2b01   :  { %9925 = vmatpush3.bf16.msra.mxu0 %v10772_v44 }
0x2b02   :  { %9955 = vmatprep.subr.bf16.mxu0 %v10686_v16 }
0x2bbf   :  { %v8995_v14 = vpop.f32.mrb[38].mxu0 }
0x2bc0   :  { %v4377_v39 = vadd.f32 %v11634_v17, %v8995_v14  ;;  %v4371_v36 = vpop.f32.mrb[39].mxu0 }
0x2bc1   :  { %v4372_v15 = vadd.f32 %v11634_v17, %v4371_v36 }
0x2bc2   :  { %10377 = vtanh.f32 %v4377_v39 }
0x2bc3   :  { %10379 = vtanh.f32 %v4372_v15 }
0x2bcc   :  { %v10378_v33 = vpop.eup %10377 }
0x2bcd   :  { %v10380_v37 = vpop.eup %10379  ;;  %v4399_v18 = vmul.f32 %v10378_v33, %v4391_v4  ;;  %v4415_v43 = vmul.f32 %v10378_v33, %v4407_v24  ;;  %v4388_v60 = vmul.f32 %v10378_v33, %v4385_v61 }
0x2bce   :  { %v4431_v45 = vadd.f32 %v10380_v37, %v4430_v35  ;;  %v4393_v19 = vmul.f32 %v10380_v37, %v4391_v4  ;;  %v4409_v58 = vmul.f32 %v10380_v37, %v4407_v24  ;;  %v4387_v63 = vmul.f32 %v10380_v37, %v4385_v61 }
0x2bcf   :  { %4417 = vrot.lane.b32.xlu1 %v4415_v43, %s10532_s0  ;;  %4401 = vrot.lane.b32.xlu0 %v4399_v18, %s10531_s30 }
0x2bd0   :  { %v4432_v11 = vmul.f32 %v4431_v45, %v11642_v50 }
0x2bd2   :  { %v4433_v48 = vmul.f32 0.125, %v4432_v11 }
0x2bd3   :  { %4411 = vrot.lane.b32.xlu1 %v4409_v58, %s10532_s0  ;;  %4395 = vrot.lane.b32.xlu0 %v4393_v19, %s10531_s30 }
0x2bd4   :  { %v4435_v59 = vrot.slane %v4433_v48, 4 }
0x2bd7   :  { %4436 = vrot.lane.b32.xlu0 %v4435_v59, %s10533_s19  ;;  %v11912_v59 = vstv %s11908_s22 }
0x2bdb   :  { %4720 = vperm.xlu0 %10290, %v4544_v57  }
0x2bdf   :  { %10293 = vset.pattern.permute.xlu0 %v10529_v49 }
0x2be0   :  { %4714 = vperm.xlu0 %10293, %v4544_v57  }
0x2be4   :  { %10294 = vset.pattern.permute.xlu0 %v10528_v46 }
0x2c41   :  { %v4418_v26 = vpop.permute.xlu1 %4417  ;;  %v4402_v6 = vpop.permute.xlu0 %4401 }
0x2c42   :  { %v4404_v34 = vadd.f32 %v4402_v6, %v4388_v60 }
0x2c44   :  { %v4420_v14 = vadd.f32 %v4418_v26, %v4404_v34 }
0x2c45   :  { %v4396_v39 = vpop.permute.xlu0 %4395  ;;  %v4412_v32 = vpop.permute.xlu1 %4411 }
0x2c46   :  { %v4443_v36 = vadd.f32 %v4442_v62, %v4420_v14  ;;  %v4398_v15 = vadd.f32 %v4396_v39, %v4387_v63  ;;  %v4777_v62 = vstv %s4776_s5  ;;  %s12183_s5 = sld [smem:[#allocation2 + $0x6]] }
0x2c48   :  { %v4444_v13 = vmul.f32 %v4443_v36, %v11642_v50  ;;  %v4414_v51 = vadd.f32 %v4412_v32, %v4398_v15  ;;  %v4778_v36 = vmul.f32 %v4777_v62, %v11839_v40 }
0x2c49   :  { %v4437_v47 = vpop.permute.xlu0 %4436 }
0x2c4a   :  { %v4424_v21 = vadd.f32 %v4423_v27, %v4414_v51  ;;  %v11862_v52 = vadd.f32 %v4437_v47, %v11587_v42  ;;  %v4445_v4 = vmul.f32 0.125, %v4444_v13 }
0x2c4c   :  { %v4425_v30 = vmul.f32 %v4424_v21, %v11642_v50  ;;  %4454 = vst.msk [vmem:[#allocation6 + $0x10] sm:$0xf] %vm258_vm4, %v11862_v52  ;;  %4447 = vrot.lane.b32.xlu1 %v4445_v4, %s10534_s1  ;;  %v4546_v35 = vrot.slane %v11862_v52, 4  ;;  %v11893_v50 = vld [vmem:[%s12721_s10] ss:$0 sm:$0xff]  ;;  %s6298_s26 = smul.f32 %s12183_s5, %s12183_s5 }
0x2c4d   :  { %s5817_s2 = smul.f32 0.33333334, %s12183_s5 }
0x2c4e   :  { %v4426_v33 = vmul.f32 0.125, %v4425_v30 }
0x2c50   :  { %v11869_v24 = vadd.f32 %v4426_v33, %v11594_v5  ;;  %4736 = vperm.xlu1 %10292, %v4544_v57   ;;  %v4773_v57 = vstv %s4772_s11 }
0x2c51   :  { %v4774_v34 = vmul.f32 %v4773_v57, %v11830_v23 }
0x2c52   :  { %4452 = vst.msk [vmem:[#allocation5 + $0x10] sm:$0xf] %vm258_vm4, %v11869_v24  ;;  %v4548_v5 = vsel %vm353_vm6, %v11869_v24, %v4546_v35 }
0x2c53   :  { %v4775_v39 = vadd.f32 %v11845_v7, %v4774_v34 }
0x2c55   :  { %v4779_v32 = vadd.f32 %v4778_v36, %v4775_v39 }
0x2c5a   :  { %v4721_v61 = vpop.permute.xlu0 %4720 }
0x2c5f   :  { %v4715_v27 = vpop.permute.xlu0 %4714 }
0x2cbe   :  { %v4448_v29 = vpop.permute.xlu1 %4447 }
0x2cbf   :  { %v11874_v42 = vadd.f32 %v4448_v29, %v11599_v55 }
0x2cc1   :  { %4456 = vst.msk [vmem:[#allocation8 + $0x10] sm:$0xf] %vm258_vm4, %v11874_v42  ;;  %9001 = vmatmul.mubr.msk.f32.vlgmr.msra.gmra.mrb[36].mxu1 %vm184_vm3, %v11874_v42 }
0x2cc2   :  { %9901 = vmatpush3.bf16.msra.mxu1 %v10686_v16  ;;  %9007 = vmatprep.mubr.msk.f32.mxu1 %vm184_vm3, %v4548_v5 }
0x2cc3   :  { %9927 = vmatprep.subr.bf16.mxu1 %v10686_v16 }
0x2cc5   :  { %9008 = vmatmul.mubr.msk.f32.vlgmr.msra.gmra.mrb[38].mxu1 %vm184_vm3, %v11874_v42 }
0x2cc6   :  { %9929 = vmatpush3.bf16.msra.mxu1 %v10686_v16 }
0x2cc7   :  { %9931 = vmatprep.subr.bf16.mxu1 %v10700_v20 }
0x2ccf   :  { %v4737_v60 = vpop.permute.xlu1 %4736 }
0x2d94   :  { %v4526_v55 = vpop.f32.mrb[36].mxu1 }
0x2d95   :  { %v4527_v12 = vadd.f32 %v11893_v50, %v4526_v55  ;;  %v9002_v37 = vpop.f32.mrb[37].mxu1 }
0x2d97   :  { %7812 = vst.msk [vmem:[%s12729_s18 + $0x10] sm:$0xf] %vm338_vm5, %v4527_v12 }
0x2d98   :  { %v9009_v18 = vpop.f32.mrb[38].mxu1 }
0x2d99   :  { %v4624_v43 = vadd.f32 %v11623_v41, %v9009_v18  ;;  %v4618_v45 = vpop.f32.mrb[39].mxu1 }
0x2d9a   :  { %v4619_v38 = vadd.f32 %v11623_v41, %v4618_v45 }
0x2d9b   :  { %v4628_v19 = vmax.f32 %v4624_v43, 0.0 }
0x2d9c   :  { %v4627_v11 = vmax.f32 %v4619_v38, 0.0 }
0x2d9e   :  { %9034 = vmatprep.mubr.msk.f32.mxu0 %vm447_vm7, %v4627_v11 }
0x2d9f   :  { %9035 = vmatmul.mubr.msk.f32.vlgmr.msra.gmra.mrb[40].mxu0 %vm447_vm7, %v4628_v19 }
0x2da0   :  { %9957 = vmatpush3.bf16.msra.mxu0 %v10686_v16 }
0x2da1   :  { %9959 = vmatprep.subr.bf16.mxu0 %v10700_v20 }
0x2e72   :  { %v9036_v58 = vpop.f32.mrb[40].mxu0 }
0x2e73   :  { %v4707_v48 = vadd.f32 %v11634_v17, %v9036_v58  ;;  %v4701_v53 = vpop.f32.mrb[41].mxu0 }
0x2e74   :  { %v4702_v54 = vadd.f32 %v11634_v17, %v4701_v53 }
0x2e75   :  { %10381 = vtanh.f32 %v4707_v48 }
0x2e76   :  { %10383 = vtanh.f32 %v4702_v54 }
0x2e7f   :  { %v10382_v8 = vpop.eup %10381 }
0x2e80   :  { %v11914_v0 = vpop.eup %10383  ;;  %v4729_v2 = vmul.f32 %v10382_v8, %v4721_v61  ;;  %v4745_v63 = vmul.f32 %v10382_v8, %v4737_v60  ;;  %v4718_v51 = vmul.f32 %v10382_v8, %v4715_v27 }
0x2e81   :  { %v4723_v26 = vmul.f32 %v11914_v0, %v4721_v61  ;;  %v4755_v6 = vmul.f32 %v11914_v0, %v11912_v59  ;;  %v4739_v15 = vmul.f32 %v11914_v0, %v4737_v60  ;;  %v4717_v30 = vmul.f32 %v11914_v0, %v4715_v27 }
0x2e82   :  { %4731 = vrot.lane.b32.xlu1 %v4729_v2, %s10531_s30  ;;  %v5018_v27 = vstv %s5017_s4  ;;  %s6055_s4 = smul.f32 2.0, %s12183_s5 }
0x2e83   :  { %4725 = vrot.lane.b32.xlu0 %v4723_v26, %s10531_s30  ;;  %v4756_v10 = vmul.f32 0.33333334, %v4755_v6 }
0x2e84   :  { %s6058_s25 = smul.f32 0.33333334, %s6055_s4 }
0x2e85   :  { %v4758_v14 = vrot.slane %v4756_v10, 4 }
0x2e86   :  { %4747 = vrot.lane.b32.xlu1 %v4745_v63, %s10532_s0  ;;  %v4993_v63 = vmul.f32 0.33333334, %v11914_v0  ;;  %s6062_s13 = smul.f32 %s6058_s25, %s6058_s25 }
0x2e87   :  { %4759 = vrot.lane.b32.xlu0 %v4758_v14, %s10533_s19  ;;  %v5014_v14 = vstv %s5013_s23  ;;  %s5821_s23 = smul.f32 %s5817_s2, %s5817_s2 }
0x2e8a   :  { %4741 = vrot.lane.b32.xlu1 %v4739_v15, %s10532_s0 }
0x2e8b   :  { %4958 = vperm.xlu0 %10294, %v4779_v32  }
0x2ef4   :  { %v4732_v13 = vpop.permute.xlu1 %4731 }
0x2ef5   :  { %v4726_v47 = vpop.permute.xlu0 %4725  ;;  %v4734_v21 = vadd.f32 %v4732_v13, %v4718_v51 }
0x2ef6   :  { %v4728_v29 = vadd.f32 %v4726_v47, %v4717_v30 }
0x2ef8   :  { %v4748_v4 = vpop.permute.xlu1 %4747 }
0x2ef9   :  { %v11929_v33 = vadd.f32 %v4748_v4, %v4734_v21  ;;  %v4760_v5 = vpop.permute.xlu0 %4759  ;;  %v5019_v4 = vmul.f32 %v5018_v27, %v11839_v40 }
0x2efa   :  { %v4762_v18 = vadd.f32 %v4760_v5, %v11862_v52 }
0x2efb   :  { %v4763_v35 = vmul.f32 %v11912_v59, %v11929_v33 }
0x2efc   :  { %v4742_v55 = vpop.permute.xlu1 %4741  ;;  %v4781_v38 = vrot.slane %v4762_v18, 4 }
0x2efd   :  { %v11933_v12 = vadd.f32 %v4742_v55, %v4728_v29  ;;  %v4764_v37 = vmul.f32 0.33333334, %v4763_v35 }
0x2eff   :  { %v4752_v43 = vmul.f32 %v11912_v59, %v11933_v12  ;;  %4766 = vrot.lane.b32.xlu1 %v4764_v37, %s10534_s1 }
0x2f01   :  { %v4753_v45 = vmul.f32 0.33333334, %v4752_v43  ;;  %v5002_v43 = vmul.f32 0.33333334, %v11929_v33 }
0x2f03   :  { %4974 = vperm.xlu1 %10292, %v4779_v32   ;;  %v4754_v11 = vadd.f32 %v4753_v45, %v11869_v24 }
0x2f05   :  { %v4783_v19 = vsel %vm353_vm6, %v4754_v11, %v4781_v38 }
0x2f06   :  { %9041 = vmatprep.mubr.msk.f32.mxu1 %vm184_vm3, %v4783_v19 }
0x2f07   :  { %10295 = vset.pattern.permute.xlu1 %v10529_v49 }
0x2f08   :  { %4952 = vperm.xlu1 %10295, %v4779_v32  }
0x2f0c   :  { %10296 = vset.pattern.permute.xlu1 %v10530_v56 }
0x2f71   :  { %v4767_v58 = vpop.permute.xlu1 %4766 }
0x2f72   :  { %v4769_v48 = vadd.f32 %v4767_v58, %v11874_v42 }
0x2f74   :  { %9042 = vmatmul.mubr.msk.f32.vlgmr.msra.gmra.mrb[40].mxu1 %vm184_vm3, %v4769_v48 }
0x2f75   :  { %9933 = vmatpush3.bf16.msra.mxu1 %v10700_v20 }
0x2f76   :  { %9935 = vmatprep.subr.bf16.mxu1 %v10705_v22 }
0x2f79   :  { %9937 = vmatpush3.bf16.msra.mxu1 %v10705_v22 }
0x2f7a   :  { %9939 = vmatprep.subr.bf16.mxu1 %v10716_v25 }
0x2f7d   :  { %9941 = vmatpush3.bf16.msra.mxu1 %v10716_v25 }
0x2f7e   :  { %9943 = vmatprep.subr.bf16.mxu1 %v10726_v28 }
0x2f81   :  { %9945 = vmatpush3.bf16.msra.mxu1 %v10726_v28 }
0x2f82   :  { %9947 = vmatprep.subr.bf16.mxu1 %v10736_v31  ;;  %v4975_v10 = vpop.permute.xlu1 %4974 }
0x2f85   :  { %9949 = vmatpush3.bf16.msra.mxu1 %v10736_v31 }
0x2f86   :  { %9951 = vmatprep.subr.bf16.mxu1 %v10772_v44 }
0x2f87   :  { %v4953_v35 = vpop.permute.xlu1 %4952 }
0x2f89   :  { %9953 = vmatpush3.bf16.msra.mxu1 %v10772_v44 }
0x2f8a   :  { %9983 = vmatprep.subr.bf16.mxu1 %v10686_v16 }
0x3047   :  { %v9043_v53 = vpop.f32.mrb[40].mxu1 }
0x3048   :  { %v4862_v54 = vadd.f32 %v11623_v41, %v9043_v53  ;;  %v4856_v57 = vpop.f32.mrb[41].mxu1  ;;  %v4989_v53 = vmul.f32 0.33333334, %v11933_v12 }
0x3049   :  { %v4857_v8 = vadd.f32 %v11623_v41, %v4856_v57  ;;  %v4959_v41 = vpop.permute.xlu0 %4958 }
0x304a   :  { %v4866_v2 = vmax.f32 %v4862_v54, 0.0 }
0x304b   :  { %v4865_v61 = vmax.f32 %v4857_v8, 0.0 }
0x304d   :  { %9068 = vmatprep.mubr.msk.f32.mxu1 %vm447_vm7, %v4865_v61 }
0x304e   :  { %9069 = vmatmul.mubr.msk.f32.vlgmr.msra.gmra.mrb[42].mxu1 %vm447_vm7, %v4866_v2 }
0x304f   :  { %9985 = vmatpush3.bf16.msra.mxu1 %v10686_v16 }
0x3050   :  { %9987 = vmatprep.subr.bf16.mxu1 %v10700_v20 }
0x3121   :  { %v9070_v60 = vpop.f32.mrb[42].mxu1 }
0x3122   :  { %v4945_v26 = vadd.f32 %v11634_v17, %v9070_v60  ;;  %v4939_v6 = vpop.f32.mrb[43].mxu1 }
0x3123   :  { %v4940_v34 = vadd.f32 %v11634_v17, %v4939_v6  ;;  %v5015_v17 = vmul.f32 %v5014_v14, %v11830_v23 }
0x3124   :  { %10385 = vtanh.f32 %v4945_v26 }
0x3125   :  { %10387 = vtanh.f32 %v4940_v34  ;;  %v5016_v21 = vadd.f32 %v11845_v7, %v5015_v17 }
0x3127   :  { %v5020_v29 = vadd.f32 %v5019_v4, %v5016_v21 }
0x312e   :  { %v10386_v62 = vpop.eup %10385 }
0x312f   :  { %v11968_v39 = vpop.eup %10387  ;;  %v4967_v36 = vmul.f32 %v10386_v62, %v4959_v41  ;;  %v4983_v15 = vmul.f32 %v10386_v62, %v4975_v10  ;;  %v4956_v5 = vmul.f32 %v10386_v62, %v4953_v35 }
0x3130   :  { %v4994_v32 = vsub.f32 %v11968_v39, %v4993_v63  ;;  %v4961_v13 = vmul.f32 %v11968_v39, %v4959_v41  ;;  %v4977_v51 = vmul.f32 %v11968_v39, %v4975_v10  ;;  %v4955_v38 = vmul.f32 %v11968_v39, %v4953_v35  ;;  %v12017_v63 = vld [vmem:[%s12723_s12] ss:$0 sm:$0xff] }
0x3131   :  { %4985 = vrot.lane.b32.xlu1 %v4983_v15, %s10532_s0  ;;  %4969 = vrot.lane.b32.xlu0 %v4967_v36, %s10531_s30 }
0x3132   :  { %v4995_v47 = vmul.f32 %v4994_v32, %v11912_v59 }
0x3134   :  { %v4997_v30 = vrot.slane %v4995_v47, 4 }
0x3135   :  { %4979 = vrot.lane.b32.xlu1 %v4977_v51, %s10532_s0  ;;  %4963 = vrot.lane.b32.xlu0 %v4961_v13, %s10531_s30  ;;  %v12030_v13 = vld [vmem:[%s12725_s14] ss:$0 sm:$0xff] }
0x3139   :  { %4998 = vrot.lane.b32.xlu0 %v4997_v30, %s10533_s19 }
0x313d   :  { %5199 = vperm.xlu0 %10294, %v5020_v29  }
0x3141   :  { %10297 = vset.pattern.permute.xlu0 %v10529_v49 }
0x3142   :  { %5193 = vperm.xlu0 %10297, %v5020_v29  }
0x3146   :  { %10298 = vset.pattern.permute.xlu0 %v10528_v46 }
0x31a3   :  { %v4986_v55 = vpop.permute.xlu1 %4985  ;;  %v4970_v37 = vpop.permute.xlu0 %4969 }
0x31a4   :  { %v4972_v18 = vadd.f32 %v4970_v37, %v4956_v5 }
0x31a6   :  { %v11985_v45 = vadd.f32 %v4986_v55, %v4972_v18 }
0x31a7   :  { %v4964_v11 = vpop.permute.xlu0 %4963  ;;  %v4980_v48 = vpop.permute.xlu1 %4979 }
0x31a8   :  { %v5003_v19 = vsub.f32 %v11985_v45, %v5002_v43  ;;  %v4966_v58 = vadd.f32 %v4964_v11, %v4955_v38  ;;  %v5251_v43 = vmul.f32 %v11912_v59, %v11830_v23  ;;  %v5254_v38 = vstv %s5253_s29 }
0x31aa   :  { %v11990_v54 = vadd.f32 %v4980_v48, %v4966_v58  ;;  %v5004_v57 = vmul.f32 %v5003_v19, %v11912_v59  ;;  %v5252_v48 = vadd.f32 %v11845_v7, %v5251_v43 }
0x31ab   :  { %v4999_v8 = vpop.permute.xlu0 %4998 }
0x31ac   :  { %v4990_v61 = vsub.f32 %v11990_v54, %v4989_v53  ;;  %v5001_v2 = vadd.f32 %v4999_v8, %v11862_v52  ;;  %5006 = vrot.lane.b32.xlu1 %v5004_v57, %s10534_s1  ;;  %v5255_v53 = vmul.f32 %v5254_v38, %v11839_v40  ;;  %v5243_v40 = vsub.f32 %v11929_v33, %v11985_v45 }
0x31ae   :  { %v4991_v60 = vmul.f32 %v4990_v61, %v11912_v59  ;;  %v5022_v26 = vrot.slane %v5001_v2, 4  ;;  %v5256_v23 = vadd.f32 %v5255_v53, %v5252_v48 }
0x31b0   :  { %v4992_v6 = vadd.f32 %v4991_v60, %v11869_v24  ;;  %5215 = vperm.xlu1 %10296, %v5020_v29   ;;  %v5234_v29 = vsub.f32 %v11914_v0, %v11968_v39 }
0x31b2   :  { %v5024_v34 = vsel %vm353_vm6, %v4992_v6, %v5022_v26 }
0x31b3   :  { %9075 = vmatprep.mubr.msk.f32.mxu0 %vm184_vm3, %v5024_v34 }
0x31bc   :  { %v5200_v30 = vpop.permute.xlu0 %5199 }
0x31c1   :  { %v5194_v8 = vpop.permute.xlu0 %5193 }
0x321e   :  { %v5007_v41 = vpop.permute.xlu1 %5006 }
0x321f   :  { %v5009_v62 = vadd.f32 %v5007_v41, %v11874_v42 }
0x3221   :  { %9076 = vmatmul.mubr.msk.f32.vlgmr.msra.gmra.mrb[42].mxu0 %vm184_vm3, %v5009_v62 }
0x3222   :  { %9961 = vmatpush3.bf16.msra.mxu0 %v10700_v20 }
0x3223   :  { %9963 = vmatprep.subr.bf16.mxu0 %v10705_v22 }
0x3226   :  { %9965 = vmatpush3.bf16.msra.mxu0 %v10705_v22 }
0x3227   :  { %9967 = vmatprep.subr.bf16.mxu0 %v10716_v25 }
0x322a   :  { %9969 = vmatpush3.bf16.msra.mxu0 %v10716_v25 }
0x322b   :  { %9971 = vmatprep.subr.bf16.mxu0 %v10726_v28 }
0x322e   :  { %9973 = vmatpush3.bf16.msra.mxu0 %v10726_v28 }
0x322f   :  { %9975 = vmatprep.subr.bf16.mxu0 %v10736_v31  ;;  %v5216_v55 = vpop.permute.xlu1 %5215 }
0x3232   :  { %9977 = vmatpush3.bf16.msra.mxu0 %v10736_v31 }
0x3233   :  { %9979 = vmatprep.subr.bf16.mxu0 %v10772_v44 }
0x3236   :  { %9981 = vmatpush3.bf16.msra.mxu0 %v10772_v44 }
0x3237   :  { %10010 = vmatprep.subr.bf16.mxu0 %v10527_v3 }
0x32f4   :  { %v9077_v10 = vpop.f32.mrb[42].mxu0 }
0x32f5   :  { %v5103_v14 = vadd.f32 %v12017_v63, %v9077_v10  ;;  %v5097_v36 = vpop.f32.mrb[43].mxu0 }
0x32f6   :  { %v5098_v15 = vadd.f32 %v12017_v63, %v5097_v36 }
0x32f7   :  { %v5107_v17 = vmax.f32 %v5103_v14, 0.0 }
0x32f8   :  { %v5106_v32 = vmax.f32 %v5098_v15, 0.0  ;;  %v5230_v15 = vsub.f32 %v11933_v12, %v11990_v54 }
0x32fa   :  { %9102 = vmatprep.mubr.msk.f32.mxu0 %vm447_vm7, %v5106_v32 }
0x32fb   :  { %9103 = vmatmul.mubr.msk.f32.vlgmr.msra.gmra.mrb[44].mxu0 %vm447_vm7, %v5107_v17 }
0x32fc   :  { %10012 = vmatpush3.bf16.msra.mxu0 %v10664_v9  ;;  %9143 = vmatprep.mubr.msk.f32.mxu0 %vm10526_vm2, %v10525_v1 }
0x32fd   :  { %10014 = vmatprep.subr.bf16.mxu0 %v10686_v16 }
0x33ce   :  { %v9104_v27 = vpop.f32.mrb[44].mxu0 }
0x33cf   :  { %v5186_v51 = vadd.f32 %v12030_v13, %v9104_v27  ;;  %v5180_v47 = vpop.f32.mrb[45].mxu0 }
0x33d0   :  { %v5181_v21 = vadd.f32 %v12030_v13, %v5180_v47 }
0x33d1   :  { %10389 = vtanh.f32 %v5186_v51 }
0x33d2   :  { %10391 = vtanh.f32 %v5181_v21 }
0x33db   :  { %v10390_v4 = vpop.eup %10389 }
0x33dc   :  { %v12038_v35 = vpop.eup %10391  ;;  %v5208_v5 = vmul.f32 %v10390_v4, %v5200_v30  ;;  %v5224_v19 = vmul.f32 %v10390_v4, %v5216_v55  ;;  %v5197_v2 = vmul.f32 %v10390_v4, %v5194_v8 }
0x33dd   :  { %v5202_v37 = vmul.f32 %v12038_v35, %v5200_v30  ;;  %v5235_v18 = vadd.f32 %v12038_v35, %v5234_v29  ;;  %v5218_v57 = vmul.f32 %v12038_v35, %v5216_v55  ;;  %v5196_v7 = vmul.f32 %v12038_v35, %v5194_v8 }
0x33de   :  { %5210 = vrot.lane.b32.xlu1 %v5208_v5, %s10531_s30  ;;  %v5473_v53 = vadd.f32 %v12038_v35, %v11968_v39 }
0x33df   :  { %5204 = vrot.lane.b32.xlu0 %v5202_v37, %s10531_s30  ;;  %v5236_v11 = vmul.f32 %v5235_v18, %v11912_v59 }
0x33e1   :  { %v5238_v58 = vrot.slane %v5236_v11, 4 }
0x33e2   :  { %5226 = vrot.lane.b32.xlu1 %v5224_v19, %s10532_s0 }
0x33e3   :  { %5239 = vrot.lane.b32.xlu0 %v5238_v58, %s10533_s19 }
0x33e6   :  { %5220 = vrot.lane.b32.xlu1 %v5218_v57, %s10532_s0  ;;  %v5474_v57 = vmul.f32 3.0, %v5473_v53 }
0x33e7   :  { %5435 = vperm.xlu0 %10298, %v5256_v23  }
0x3450   :  { %v5211_v61 = vpop.permute.xlu1 %5210 }
0x3451   :  { %v5205_v60 = vpop.permute.xlu0 %5204  ;;  %v5213_v26 = vadd.f32 %v5211_v61, %v5197_v2 }
0x3452   :  { %v5207_v41 = vadd.f32 %v5205_v60, %v5196_v7 }
0x3454   :  { %v5227_v6 = vpop.permute.xlu1 %5226 }
0x3455   :  { %v12056_v34 = vadd.f32 %v5227_v6, %v5213_v26  ;;  %v5240_v10 = vpop.permute.xlu0 %5239  ;;  %v5475_v26 = vadd.f32 %v11914_v0, %v5474_v57  ;;  %v7838_v6 = vld [vmem:[%s12714_s3 + $0x14] sm:$0xf] }
0x3456   :  { %v5242_v17 = vadd.f32 %v5240_v10, %v11862_v52  ;;  %v12125_v0 = vld [vmem:[%s12737_s27 + $0x14] sm:$0xf] }
0x3457   :  { %v5244_v62 = vadd.f32 %v5243_v40, %v12056_v34 }
0x3458   :  { %v5221_v14 = vpop.permute.xlu1 %5220  ;;  %v5258_v47 = vrot.slane %v5242_v17, 4 }
0x3459   :  { %v5245_v36 = vmul.f32 %v5244_v62, %v11912_v59  ;;  %v12062_v32 = vadd.f32 %v5221_v14, %v5207_v41  ;;  %v12119_v62 = vmul.f32 3.0, %v7838_v6 }
0x345b   :  { %v5231_v27 = vadd.f32 %v5230_v15, %v12062_v32  ;;  %5247 = vrot.lane.b32.xlu1 %v5245_v36, %s10534_s1 }
0x345d   :  { %v5232_v51 = vmul.f32 %v5231_v27, %v11912_v59  ;;  %v5588_v27 = vmul.f32 0.0, %v12119_v62 }
0x345f   :  { %v5233_v21 = vadd.f32 %v5232_v51, %v11869_v24  ;;  %5451 = vperm.xlu1 %10296, %v5256_v23  }
0x3461   :  { %v5260_v4 = vsel %vm353_vm6, %v5233_v21, %v5258_v47  ;;  %v5485_v21 = vadd.f32 %v12056_v34, %v11985_v45 }
0x3462   :  { %9109 = vmatprep.mubr.msk.f32.mxu1 %vm184_vm3, %v5260_v4 }
0x3463   :  { %10299 = vset.pattern.permute.xlu1 %v10529_v49 }
0x3464   :  { %5429 = vperm.xlu1 %10299, %v5256_v23   ;;  %v7837_v23 = vld [vmem:[%s12736_s24 + $0x14] sm:$0xf] }
0x3465   :  { %v12110_v61 = vmul.f32 2.0, %v7837_v23 }
0x3466   :  { %v5436_v8 = vpop.permute.xlu0 %5435 }
0x3467   :  { %v5585_v35 = vmul.f32 0.0, %v12110_v61 }
0x3468   :  { %10300 = vset.pattern.permute.xlu1 %v10530_v56 }
0x3469   :  { %v5586_v17 = vadd.f32 %v12125_v0, %v5585_v35 }
0x346b   :  { %v5589_v47 = vadd.f32 %v5588_v27, %v5586_v17  ;;  %v12187_v27 = vstv %s12183_s5 }
0x34cd   :  { %v5248_v30 = vpop.permute.xlu1 %5247 }
0x34ce   :  { %v5250_v29 = vadd.f32 %v5248_v30, %v11874_v42  ;;  %v5486_v30 = vmul.f32 3.0, %v5485_v21 }
0x34d0   :  { %9110 = vmatmul.mubr.msk.f32.vlgmr.msra.gmra.mrb[44].mxu1 %vm184_vm3, %v5250_v29  ;;  %v5466_v29 = vadd.f32 %v12062_v32, %v11990_v54 }
0x34d1   :  { %9989 = vmatpush3.bf16.msra.mxu1 %v10700_v20 }
0x34d2   :  { %9991 = vmatprep.subr.bf16.mxu1 %v10705_v22 }
0x34d5   :  { %9993 = vmatpush3.bf16.msra.mxu1 %v10705_v22 }
0x34d6   :  { %9995 = vmatprep.subr.bf16.mxu1 %v10716_v25 }
0x34d9   :  { %9997 = vmatpush3.bf16.msra.mxu1 %v10716_v25 }
0x34da   :  { %9999 = vmatprep.subr.bf16.mxu1 %v10726_v28 }
0x34dd   :  { %10001 = vmatpush3.bf16.msra.mxu1 %v10726_v28 }
0x34de   :  { %10003 = vmatprep.subr.bf16.mxu1 %v10736_v31  ;;  %v5452_v60 = vpop.permute.xlu1 %5451 }
0x34e1   :  { %10005 = vmatpush3.bf16.msra.mxu1 %v10736_v31 }
0x34e2   :  { %10007 = vmatprep.subr.bf16.mxu1 %v10772_v44 }
0x34e3   :  { %v5430_v4 = vpop.permute.xlu1 %5429 }
0x34e5   :  { %10009 = vmatpush3.bf16.msra.mxu1 %v10772_v44 }
0x34e6   :  { %10018 = vmatprep.subr.bf16.mxu1 %v10700_v20 }
0x35a3   :  { %v9111_v5 = vpop.f32.mrb[44].mxu1 }
0x35a4   :  { %v5339_v55 = vadd.f32 %v12017_v63, %v9111_v5  ;;  %v5333_v37 = vpop.f32.mrb[45].mxu1 }
0x35a5   :  { %v5334_v18 = vadd.f32 %v12017_v63, %v5333_v37 }
0x35a6   :  { %v5343_v38 = vmax.f32 %v5339_v55, 0.0 }
0x35a7   :  { %v5342_v43 = vmax.f32 %v5334_v18, 0.0 }
0x35a9   :  { %9136 = vmatprep.mubr.msk.f32.mxu1 %vm447_vm7, %v5342_v43  ;;  %v5487_v43 = vadd.f32 %v5486_v30, %v11929_v33 }
0x35aa   :  { %9137 = vmatmul.mubr.msk.f32.vlgmr.msra.gmra.mrb[46].mxu1 %vm447_vm7, %v5343_v38  ;;  %v5467_v38 = vmul.f32 3.0, %v5466_v29 }
0x35ab   :  { %10020 = vmatpush3.bf16.msra.mxu1 %v10700_v20 }
0x35ac   :  { %10022 = vmatprep.subr.bf16.mxu1 %v10705_v22  ;;  %v5468_v45 = vadd.f32 %v5467_v38, %v11933_v12 }
0x35af   :  { %10024 = vmatpush3.bf16.msra.mxu1 %v10705_v22 }
0x35b0   :  { %10026 = vmatprep.subr.bf16.mxu1 %v10716_v25 }
0x35b3   :  { %10028 = vmatpush3.bf16.msra.mxu1 %v10716_v25 }
0x35b4   :  { %10030 = vmatprep.subr.bf16.mxu1 %v10726_v28 }
0x35b7   :  { %10032 = vmatpush3.bf16.msra.mxu1 %v10726_v28 }
0x35b8   :  { %10034 = vmatprep.subr.bf16.mxu1 %v10736_v31 }
0x35bb   :  { %10036 = vmatpush3.bf16.msra.mxu1 %v10736_v31 }
0x35bc   :  { %10038 = vmatprep.subr.bf16.mxu1 %v10772_v44 }
0x35bf   :  { %10040 = vmatpush3.bf16.msra.mxu1 %v10772_v44 }
0x35c0   :  { %10070 = vmatprep.subr.bf16.mxu1 %v10686_v16 }
0x367d   :  { %v9138_v11 = vpop.f32.mrb[46].mxu1 }
0x367e   :  { %v5422_v19 = vadd.f32 %v12030_v13, %v9138_v11  ;;  %v5416_v58 = vpop.f32.mrb[47].mxu1 }
0x367f   :  { %v5417_v48 = vadd.f32 %v12030_v13, %v5416_v58 }
0x3680   :  { %10393 = vtanh.f32 %v5422_v19 }
0x3681   :  { %10395 = vtanh.f32 %v5417_v48 }
0x368a   :  { %v10394_v2 = vpop.eup %10393 }
0x368b   :  { %v10396_v7 = vpop.eup %10395  ;;  %v5444_v40 = vmul.f32 %v10394_v2, %v5436_v8  ;;  %v5460_v41 = vmul.f32 %v10394_v2, %v5452_v60  ;;  %v5433_v5 = vmul.f32 %v10394_v2, %v5430_v4 }
0x368c   :  { %v5476_v39 = vadd.f32 %v10396_v7, %v5475_v26  ;;  %v5438_v14 = vmul.f32 %v10396_v7, %v5436_v8  ;;  %v5454_v36 = vmul.f32 %v10396_v7, %v5452_v60  ;;  %v5432_v11 = vmul.f32 %v10396_v7, %v5430_v4 }
0x368d   :  { %5462 = vrot.lane.b32.xlu1 %v5460_v41, %s10532_s0  ;;  %5446 = vrot.lane.b32.xlu0 %v5444_v40, %s10531_s30 }
0x368e   :  { %v5477_v10 = vmul.f32 %v5476_v39, %v11912_v59 }
0x3690   :  { %v5478_v15 = vmul.f32 0.125, %v5477_v10 }
0x3691   :  { %5456 = vrot.lane.b32.xlu1 %v5454_v36, %s10532_s0  ;;  %5440 = vrot.lane.b32.xlu0 %v5438_v14, %s10531_s30 }
0x3692   :  { %v5480_v51 = vrot.slane %v5478_v15, 4 }
0x3695   :  { %5481 = vrot.lane.b32.xlu0 %v5480_v51, %s10533_s19  ;;  %v5818_v51 = vstv %s5817_s2 }
0x3699   :  { %5765 = vperm.xlu0 %10298, %v5589_v47  }
0x369d   :  { %10301 = vset.pattern.permute.xlu0 %v10529_v49 }
0x369e   :  { %5759 = vperm.xlu0 %10301, %v5589_v47  }
0x36a2   :  { %10302 = vset.pattern.permute.xlu0 %v10528_v46 }
0x36ff   :  { %v5463_v55 = vpop.permute.xlu1 %5462  ;;  %v5447_v37 = vpop.permute.xlu0 %5446 }
0x3700   :  { %v5449_v18 = vadd.f32 %v5447_v37, %v5433_v5  ;;  %v5819_v37 = vmul.f32 %v5818_v51, %v12110_v61 }
0x3702   :  { %v5465_v19 = vadd.f32 %v5463_v55, %v5449_v18  ;;  %v5822_v18 = vstv %s5821_s23 }
0x3703   :  { %v5441_v58 = vpop.permute.xlu0 %5440  ;;  %v5457_v57 = vpop.permute.xlu1 %5456 }
0x3704   :  { %v5488_v48 = vadd.f32 %v5487_v43, %v5465_v19  ;;  %v5443_v53 = vadd.f32 %v5441_v58, %v5432_v11  ;;  %v5820_v19 = vadd.f32 %v12125_v0, %v5819_v37  ;;  %v5823_v58 = vmul.f32 %v5822_v18, %v12119_v62 }
0x3706   :  { %v5489_v34 = vmul.f32 %v5488_v48, %v11912_v59  ;;  %v5459_v23 = vadd.f32 %v5457_v57, %v5443_v53  ;;  %v5824_v53 = vadd.f32 %v5823_v58, %v5820_v19 }
0x3707   :  { %v5482_v8 = vpop.permute.xlu0 %5481 }
0x3708   :  { %v5490_v54 = vmul.f32 0.125, %v5489_v34  ;;  %v5469_v32 = vadd.f32 %v5468_v45, %v5459_v23  ;;  %v12142_v2 = vadd.f32 %v5482_v8, %v11862_v52 }
0x370a   :  { %v5470_v33 = vmul.f32 %v5469_v32, %v11912_v59  ;;  %5499 = vst.msk [vmem:[#allocation6 + $0x14] sm:$0xf] %vm258_vm4, %v12142_v2  ;;  %5492 = vrot.lane.b32.xlu1 %v5490_v54, %s10534_s1  ;;  %v5591_v52 = vrot.slane %v12142_v2, 4 }
0x370c   :  { %v5471_v60 = vmul.f32 0.125, %v5470_v33 }
0x370e   :  { %v12149_v26 = vadd.f32 %v5471_v60, %v11869_v24  ;;  %5781 = vperm.xlu1 %10300, %v5589_v47  }
0x3710   :  { %5497 = vst.msk [vmem:[#allocation5 + $0x14] sm:$0xf] %vm258_vm4, %v12149_v26  ;;  %v5593_v24 = vsel %vm353_vm6, %v12149_v26, %v5591_v52 }
0x3718   :  { %v5766_v21 = vpop.permute.xlu0 %5765 }
0x371d   :  { %v5760_v57 = vpop.permute.xlu0 %5759 }
0x377c   :  { %v5493_v12 = vpop.permute.xlu1 %5492 }
0x377d   :  { %v12154_v6 = vadd.f32 %v5493_v12, %v11874_v42 }
0x377f   :  { %5501 = vst.msk [vmem:[#allocation8 + $0x14] sm:$0xf] %vm258_vm4, %v12154_v6  ;;  %9144 = vmatmul.mubr.msk.f32.vlgmr.msra.gmra.mrb[46].mxu0 %vm184_vm3, %v12154_v6 }
0x3780   :  { %10016 = vmatpush3.bf16.msra.mxu0 %v10686_v16  ;;  %9150 = vmatprep.mubr.msk.f32.mxu0 %vm184_vm3, %v5593_v24 }
0x3781   :  { %10042 = vmatprep.subr.bf16.mxu0 %v10686_v16 }
0x3783   :  { %9151 = vmatmul.mubr.msk.f32.vlgmr.msra.gmra.mrb[48].mxu0 %vm184_vm3, %v12154_v6 }
0x3784   :  { %10044 = vmatpush3.bf16.msra.mxu0 %v10686_v16 }
0x3785   :  { %10046 = vmatprep.subr.bf16.mxu0 %v10700_v20 }
0x378d   :  { %v5782_v29 = vpop.permute.xlu1 %5781 }
0x3852   :  { %v5571_v42 = vpop.f32.mrb[46].mxu0 }
0x3853   :  { %v5572_v59 = vadd.f32 %v11893_v50, %v5571_v42  ;;  %v9145_v7 = vpop.f32.mrb[47].mxu0 }
0x3855   :  { %7834 = vst.msk [vmem:[%s12729_s18 + $0x14] sm:$0xf] %vm338_vm5, %v5572_v59 }
0x3856   :  { %v9152_v40 = vpop.f32.mrb[48].mxu0 }
0x3857   :  { %v5669_v41 = vadd.f32 %v12017_v63, %v9152_v40  ;;  %v5663_v39 = vpop.f32.mrb[49].mxu0 }
0x3858   :  { %v5664_v35 = vadd.f32 %v12017_v63, %v5663_v39 }
0x3859   :  { %v5673_v14 = vmax.f32 %v5669_v41, 0.0 }
0x385a   :  { %v5672_v10 = vmax.f32 %v5664_v35, 0.0 }
0x385c   :  { %9177 = vmatprep.mubr.msk.f32.mxu1 %vm447_vm7, %v5672_v10 }
0x385d   :  { %9178 = vmatmul.mubr.msk.f32.vlgmr.msra.gmra.mrb[48].mxu1 %vm447_vm7, %v5673_v14 }
0x385e   :  { %10072 = vmatpush3.bf16.msra.mxu1 %v10686_v16 }
0x385f   :  { %10074 = vmatprep.subr.bf16.mxu1 %v10700_v20 }
0x3930   :  { %v9179_v50 = vpop.f32.mrb[48].mxu1 }
0x3931   :  { %v5752_v36 = vadd.f32 %v12030_v13, %v9179_v50  ;;  %v5746_v15 = vpop.f32.mrb[49].mxu1 }
0x3932   :  { %v5747_v17 = vadd.f32 %v12030_v13, %v5746_v15 }
0x3933   :  { %10397 = vtanh.f32 %v5752_v36 }
0x3934   :  { %10399 = vtanh.f32 %v5747_v17 }
0x393d   :  { %v10398_v47 = vpop.eup %10397 }
0x393e   :  { %v12189_v4 = vpop.eup %10399  ;;  %v5774_v30 = vmul.f32 %v10398_v47, %v5766_v21  ;;  %v5790_v38 = vmul.f32 %v10398_v47, %v5782_v29  ;;  %v5763_v34 = vmul.f32 %v10398_v47, %v5760_v57 }
0x393f   :  { %v5768_v5 = vmul.f32 %v12189_v4, %v5766_v21  ;;  %v5800_v55 = vmul.f32 %v12189_v4, %v12187_v27  ;;  %v5784_v48 = vmul.f32 %v12189_v4, %v5782_v29  ;;  %v5762_v32 = vmul.f32 %v12189_v4, %v5760_v57 }
0x3940   :  { %5776 = vrot.lane.b32.xlu1 %v5774_v30, %s10531_s30 }
0x3941   :  { %5770 = vrot.lane.b32.xlu0 %v5768_v5, %s10531_s30  ;;  %v5801_v43 = vmul.f32 0.33333334, %v5800_v55 }
0x3943   :  { %v5803_v11 = vrot.slane %v5801_v43, 4 }
0x3944   :  { %5792 = vrot.lane.b32.xlu1 %v5790_v38, %s10532_s0  ;;  %v6038_v38 = vmul.f32 0.33333334, %v12189_v4 }
0x3945   :  { %5804 = vrot.lane.b32.xlu0 %v5803_v11, %s10533_s19  ;;  %v6059_v11 = vstv %s6058_s25 }
0x3946   :  { %v6060_v57 = vmul.f32 %v6059_v11, %v12110_v61 }
0x3948   :  { %5786 = vrot.lane.b32.xlu1 %v5784_v48, %s10532_s0 }
0x3949   :  { %6003 = vperm.xlu0 %10302, %v5824_v53  }
0x39b2   :  { %v5777_v45 = vpop.permute.xlu1 %5776 }
0x39b3   :  { %v5771_v23 = vpop.permute.xlu0 %5770  ;;  %v5779_v8 = vadd.f32 %v5777_v45, %v5763_v34  ;;  %v6063_v45 = vstv %s6062_s13 }
0x39b4   :  { %v5773_v60 = vadd.f32 %v5771_v23, %v5762_v32  ;;  %v6064_v32 = vmul.f32 %v6063_v45, %v12119_v62 }
0x39b6   :  { %v5793_v54 = vpop.permute.xlu1 %5792 }
0x39b7   :  { %v12204_v33 = vadd.f32 %v5793_v54, %v5779_v8  ;;  %v5805_v52 = vpop.permute.xlu0 %5804  ;;  %v6061_v54 = vadd.f32 %v12125_v0, %v6060_v57 }
0x39b8   :  { %v5807_v7 = vadd.f32 %v5805_v52, %v12142_v2 }
0x39b9   :  { %v5808_v12 = vmul.f32 %v12187_v27, %v12204_v33 }
0x39ba   :  { %v5787_v24 = vpop.permute.xlu1 %5786  ;;  %v5826_v39 = vrot.slane %v5807_v7, 4 }
0x39bb   :  { %v12208_v42 = vadd.f32 %v5787_v24, %v5773_v60  ;;  %v5809_v59 = vmul.f32 0.33333334, %v5808_v12  ;;  %v6065_v12 = vadd.f32 %v6064_v32, %v6061_v54 }
0x39bd   :  { %v5797_v40 = vmul.f32 %v12187_v27, %v12208_v42  ;;  %5811 = vrot.lane.b32.xlu1 %v5809_v59, %s10534_s1 }
0x39bf   :  { %v5798_v41 = vmul.f32 0.33333334, %v5797_v40 }
0x39c1   :  { %6019 = vperm.xlu1 %10300, %v5824_v53   ;;  %v5799_v35 = vadd.f32 %v5798_v41, %v12149_v26  ;;  %v6047_v41 = vmul.f32 0.33333334, %v12204_v33 }
0x39c3   :  { %v5828_v10 = vsel %vm353_vm6, %v5799_v35, %v5826_v39 }
0x39c4   :  { %9184 = vmatprep.mubr.msk.f32.mxu0 %vm184_vm3, %v5828_v10 }
0x39c5   :  { %10303 = vset.pattern.permute.xlu1 %v10529_v49 }
0x39c6   :  { %5997 = vperm.xlu1 %10303, %v5824_v53  }
0x39c8   :  { %v6004_v37 = vpop.permute.xlu0 %6003 }
0x39ca   :  { %10304 = vset.pattern.permute.xlu1 %v10530_v56 }
0x3a2f   :  { %v5812_v14 = vpop.permute.xlu1 %5811 }
0x3a30   :  { %v5814_v50 = vadd.f32 %v5812_v14, %v12154_v6 }
0x3a32   :  { %9185 = vmatmul.mubr.msk.f32.vlgmr.msra.gmra.mrb[50].mxu0 %vm184_vm3, %v5814_v50 }
0x3a33   :  { %10048 = vmatpush3.bf16.msra.mxu0 %v10700_v20 }
0x3a34   :  { %10050 = vmatprep.subr.bf16.mxu0 %v10705_v22 }
0x3a37   :  { %10052 = vmatpush3.bf16.msra.mxu0 %v10705_v22 }
0x3a38   :  { %10054 = vmatprep.subr.bf16.mxu0 %v10716_v25 }
0x3a3b   :  { %10056 = vmatpush3.bf16.msra.mxu0 %v10716_v25 }
0x3a3c   :  { %10058 = vmatprep.subr.bf16.mxu0 %v10726_v28 }
0x3a3f   :  { %10060 = vmatpush3.bf16.msra.mxu0 %v10726_v28 }
0x3a40   :  { %10062 = vmatprep.subr.bf16.mxu0 %v10736_v31  ;;  %v6020_v43 = vpop.permute.xlu1 %6019 }
0x3a43   :  { %10064 = vmatpush3.bf16.msra.mxu0 %v10736_v31 }
0x3a44   :  { %10066 = vmatprep.subr.bf16.mxu0 %v10772_v44 }
0x3a45   :  { %v5998_v52 = vpop.permute.xlu1 %5997 }
0x3a47   :  { %10068 = vmatpush3.bf16.msra.mxu0 %v10772_v44 }
0x3a48   :  { %10098 = vmatprep.subr.bf16.mxu0 %v10686_v16 }
0x3b05   :  { %v9186_v36 = vpop.f32.mrb[50].mxu0 }
0x3b06   :  { %v5907_v15 = vadd.f32 %v12017_v63, %v9186_v36  ;;  %v5901_v17 = vpop.f32.mrb[51].mxu0 }
0x3b07   :  { %v5902_v51 = vadd.f32 %v12017_v63, %v5901_v17 }
0x3b08   :  { %v5911_v21 = vmax.f32 %v5907_v15, 0.0  ;;  %v6034_v15 = vmul.f32 0.33333334, %v12208_v42 }
0x3b09   :  { %v5910_v47 = vmax.f32 %v5902_v51, 0.0 }
0x3b0b   :  { %9211 = vmatprep.mubr.msk.f32.mxu0 %vm447_vm7, %v5910_v47 }
0x3b0c   :  { %9212 = vmatmul.mubr.msk.f32.vlgmr.msra.gmra.mrb[52].mxu0 %vm447_vm7, %v5911_v21 }
0x3b0d   :  { %10100 = vmatpush3.bf16.msra.mxu0 %v10686_v16 }
0x3b0e   :  { %10102 = vmatprep.subr.bf16.mxu0 %v10700_v20 }
0x3bdf   :  { %v9213_v30 = vpop.f32.mrb[52].mxu0 }
0x3be0   :  { %v5990_v29 = vadd.f32 %v12030_v13, %v9213_v30  ;;  %v5984_v5 = vpop.f32.mrb[53].mxu0 }
0x3be1   :  { %v5985_v55 = vadd.f32 %v12030_v13, %v5984_v5 }
0x3be2   :  { %10401 = vtanh.f32 %v5990_v29 }
0x3be3   :  { %10403 = vtanh.f32 %v5985_v55 }
0x3bec   :  { %v10402_v18 = vpop.eup %10401 }
0x3bed   :  { %v12243_v19 = vpop.eup %10403  ;;  %v6012_v58 = vmul.f32 %v10402_v18, %v6004_v37  ;;  %v6028_v48 = vmul.f32 %v10402_v18, %v6020_v43  ;;  %v6001_v24 = vmul.f32 %v10402_v18, %v5998_v52 }
0x3bee   :  { %v6039_v53 = vsub.f32 %v12243_v19, %v6038_v38  ;;  %v6006_v34 = vmul.f32 %v12243_v19, %v6004_v37  ;;  %v6022_v23 = vmul.f32 %v12243_v19, %v6020_v43  ;;  %v6000_v39 = vmul.f32 %v12243_v19, %v5998_v52 }
0x3bef   :  { %6030 = vrot.lane.b32.xlu1 %v6028_v48, %s10532_s0  ;;  %6014 = vrot.lane.b32.xlu0 %v6012_v58, %s10531_s30 }
0x3bf0   :  { %v6040_v8 = vmul.f32 %v6039_v53, %v12187_v27 }
0x3bf2   :  { %v6042_v60 = vrot.slane %v6040_v8, 4 }
0x3bf3   :  { %6024 = vrot.lane.b32.xlu1 %v6022_v23, %s10532_s0  ;;  %6008 = vrot.lane.b32.xlu0 %v6006_v34, %s10531_s30 }
0x3bf7   :  { %6043 = vrot.lane.b32.xlu0 %v6042_v60, %s10533_s19  ;;  %v6279_v60 = vsub.f32 %v12189_v4, %v12243_v19 }
0x3bfb   :  { %6244 = vperm.xlu0 %10302, %v6065_v12  }
0x3bff   :  { %10305 = vset.pattern.permute.xlu0 %v10529_v49 }
0x3c00   :  { %6238 = vperm.xlu0 %10305, %v6065_v12  }
0x3c04   :  { %10306 = vset.pattern.permute.xlu0 %v10528_v46 }
0x3c61   :  { %v6031_v59 = vpop.permute.xlu1 %6030  ;;  %v6015_v7 = vpop.permute.xlu0 %6014 }
0x3c62   :  { %v6017_v40 = vadd.f32 %v6015_v7, %v6001_v24 }
0x3c64   :  { %v12261_v35 = vadd.f32 %v6031_v59, %v6017_v40  ;;  %v6296_v40 = vmul.f32 %v12187_v27, %v12110_v61 }
0x3c65   :  { %v6009_v10 = vpop.permute.xlu0 %6008  ;;  %v6025_v36 = vpop.permute.xlu1 %6024 }
0x3c66   :  { %v6048_v14 = vsub.f32 %v12261_v35, %v6047_v41  ;;  %v6011_v50 = vadd.f32 %v6009_v10, %v6000_v39  ;;  %v6299_v41 = vstv %s6298_s26 }
0x3c68   :  { %v12265_v17 = vadd.f32 %v6025_v36, %v6011_v50  ;;  %v6049_v51 = vmul.f32 %v6048_v14, %v12187_v27  ;;  %v6297_v50 = vadd.f32 %v12125_v0, %v6296_v40  ;;  %v6300_v36 = vmul.f32 %v6299_v41, %v12119_v62 }
0x3c69   :  { %v6044_v47 = vpop.permute.xlu0 %6043  ;;  %v6288_v62 = vsub.f32 %v12204_v33, %v12261_v35 }
0x3c6a   :  { %v6035_v21 = vsub.f32 %v12265_v17, %v6034_v15  ;;  %v6046_v30 = vadd.f32 %v6044_v47, %v12142_v2  ;;  %6051 = vrot.lane.b32.xlu1 %v6049_v51, %s10534_s1  ;;  %v6301_v61 = vadd.f32 %v6300_v36, %v6297_v50  ;;  %v7859_v36 = vld [vmem:[%s12736_s24 + $0x18] sm:$0xf] }
0x3c6c   :  { %v6036_v29 = vmul.f32 %v6035_v21, %v12187_v27  ;;  %v6067_v5 = vrot.slane %v6046_v30, 4 }
0x3c6e   :  { %v6037_v55 = vadd.f32 %v6036_v29, %v12149_v26  ;;  %6260 = vperm.xlu1 %10304, %v6065_v12  }
0x3c70   :  { %v6069_v37 = vsel %vm353_vm6, %v6037_v55, %v6067_v5 }
0x3c71   :  { %9218 = vmatprep.mubr.msk.f32.mxu1 %vm184_vm3, %v6069_v37 }
0x3c7a   :  { %v6245_v32 = vpop.permute.xlu0 %6244 }
0x3c7f   :  { %v6239_v51 = vpop.permute.xlu0 %6238 }
0x3cdc   :  { %v6052_v18 = vpop.permute.xlu1 %6051 }
0x3cdd   :  { %v6054_v43 = vadd.f32 %v6052_v18, %v12154_v6 }
0x3cdf   :  { %9219 = vmatmul.mubr.msk.f32.vlgmr.msra.gmra.mrb[50].mxu1 %vm184_vm3, %v6054_v43 }
0x3ce0   :  { %10076 = vmatpush3.bf16.msra.mxu1 %v10700_v20 }
0x3ce1   :  { %10078 = vmatprep.subr.bf16.mxu1 %v10705_v22 }
0x3ce4   :  { %10080 = vmatpush3.bf16.msra.mxu1 %v10705_v22 }
0x3ce5   :  { %10082 = vmatprep.subr.bf16.mxu1 %v10716_v25 }
0x3ce8   :  { %10084 = vmatpush3.bf16.msra.mxu1 %v10716_v25 }
0x3ce9   :  { %10086 = vmatprep.subr.bf16.mxu1 %v10726_v28 }
0x3cec   :  { %10088 = vmatpush3.bf16.msra.mxu1 %v10726_v28 }
0x3ced   :  { %10090 = vmatprep.subr.bf16.mxu1 %v10736_v31  ;;  %v6261_v24 = vpop.permute.xlu1 %6260 }
0x3cf0   :  { %10092 = vmatpush3.bf16.msra.mxu1 %v10736_v31 }
0x3cf1   :  { %10094 = vmatprep.subr.bf16.mxu1 %v10772_v44 }
0x3cf4   :  { %10096 = vmatpush3.bf16.msra.mxu1 %v10772_v44 }
0x3cf5   :  { %10125 = vmatprep.subr.bf16.mxu1 %v10527_v3 }
0x3db2   :  { %v9220_v38 = vpop.f32.mrb[50].mxu1 }
0x3db3   :  { %v6148_v11 = vadd.f32 %v12017_v63, %v9220_v38  ;;  %v6142_v58 = vpop.f32.mrb[51].mxu1 }
0x3db4   :  { %v6143_v48 = vadd.f32 %v12017_v63, %v6142_v58  ;;  %v6275_v58 = vsub.f32 %v12208_v42, %v12265_v17 }
0x3db5   :  { %v6152_v57 = vmax.f32 %v6148_v11, 0.0 }
0x3db6   :  { %v6151_v53 = vmax.f32 %v6143_v48, 0.0 }
0x3db8   :  { %9245 = vmatprep.mubr.msk.f32.mxu1 %vm447_vm7, %v6151_v53 }
0x3db9   :  { %9246 = vmatmul.mubr.msk.f32.vlgmr.msra.gmra.mrb[52].mxu1 %vm447_vm7, %v6152_v57 }
0x3dba   :  { %10127 = vmatpush3.bf16.msra.mxu1 %v10664_v9  ;;  %9286 = vmatprep.mubr.msk.f32.mxu1 %vm10526_vm2, %v10525_v1 }
0x3dbb   :  { %10129 = vmatprep.subr.bf16.mxu1 %v10686_v16 }
0x3e8c   :  { %v9247_v45 = vpop.f32.mrb[52].mxu1 }
0x3e8d   :  { %v6231_v34 = vadd.f32 %v12030_v13, %v9247_v45  ;;  %v6225_v23 = vpop.f32.mrb[53].mxu1 }
0x3e8e   :  { %v6226_v8 = vadd.f32 %v12030_v13, %v6225_v23 }
0x3e8f   :  { %10405 = vtanh.f32 %v6231_v34 }
0x3e90   :  { %10407 = vtanh.f32 %v6226_v8 }
0x3e99   :  { %v10406_v54 = vpop.eup %10405 }
0x3e9a   :  { %v12303_v12 = vpop.eup %10407  ;;  %v6253_v52 = vmul.f32 %v10406_v54, %v6245_v32  ;;  %v6269_v10 = vmul.f32 %v10406_v54, %v6261_v24  ;;  %v6242_v21 = vmul.f32 %v10406_v54, %v6239_v51 }
0x3e9b   :  { %v6247_v59 = vmul.f32 %v12303_v12, %v6245_v32  ;;  %v6280_v7 = vadd.f32 %v12303_v12, %v6279_v60  ;;  %v6263_v15 = vmul.f32 %v12303_v12, %v6261_v24  ;;  %v6241_v0 = vmul.f32 %v12303_v12, %v6239_v51 }
0x3e9c   :  { %6255 = vrot.lane.b32.xlu1 %v6253_v52, %s10531_s30 }
0x3e9d   :  { %6249 = vrot.lane.b32.xlu0 %v6247_v59, %s10531_s30  ;;  %v6281_v39 = vmul.f32 %v6280_v7, %v12187_v27 }
0x3e9f   :  { %v6283_v14 = vrot.slane %v6281_v39, 4 }
0x3ea0   :  { %6271 = vrot.lane.b32.xlu1 %v6269_v10, %s10532_s0 }
0x3ea1   :  { %6284 = vrot.lane.b32.xlu0 %v6283_v14, %s10533_s19  ;;  %v6518_v14 = vadd.f32 %v12303_v12, %v12243_v19 }
0x3ea3   :  { %v6519_v50 = vmul.f32 3.0, %v6518_v14 }
0x3ea4   :  { %6265 = vrot.lane.b32.xlu1 %v6263_v15, %s10532_s0 }
0x3ea5   :  { %6480 = vperm.xlu0 %10306, %v6301_v61  }
0x3f0e   :  { %v6256_v47 = vpop.permute.xlu1 %6255 }
0x3f0f   :  { %v6250_v30 = vpop.permute.xlu0 %6249  ;;  %v6258_v29 = vadd.f32 %v6256_v47, %v6242_v21  ;;  %v6520_v21 = vadd.f32 %v12189_v4, %v6519_v50  ;;  %v12390_v4 = vld [vmem:[%s12737_s27 + $0x18] sm:$0xf] }
0x3f10   :  { %v6252_v37 = vadd.f32 %v6250_v30, %v6241_v0 }
0x3f12   :  { %v6272_v5 = vpop.permute.xlu1 %6271 }
0x3f13   :  { %v12321_v55 = vadd.f32 %v6272_v5, %v6258_v29  ;;  %v6285_v43 = vpop.permute.xlu0 %6284 }
0x3f14   :  { %v6287_v53 = vadd.f32 %v6285_v43, %v12142_v2 }
0x3f15   :  { %v6289_v18 = vadd.f32 %v6288_v62, %v12321_v55 }
0x3f16   :  { %v6266_v38 = vpop.permute.xlu1 %6265  ;;  %v6303_v34 = vrot.slane %v6287_v53, 4 }
0x3f17   :  { %v6290_v11 = vmul.f32 %v6289_v18, %v12187_v27  ;;  %v12327_v48 = vadd.f32 %v6266_v38, %v6252_v37 }
0x3f19   :  { %v6276_v57 = vadd.f32 %v6275_v58, %v12327_v48  ;;  %6292 = vrot.lane.b32.xlu1 %v6290_v11, %s10534_s1 }
0x3f1b   :  { %v6277_v45 = vmul.f32 %v6276_v57, %v12187_v27  ;;  %v6530_v57 = vadd.f32 %v12321_v55, %v12261_v35 }
0x3f1d   :  { %v6278_v23 = vadd.f32 %v6277_v45, %v12149_v26  ;;  %6496 = vperm.xlu1 %10304, %v6301_v61  }
0x3f1f   :  { %v6305_v8 = vsel %vm353_vm6, %v6278_v23, %v6303_v34  ;;  %v6531_v34 = vmul.f32 3.0, %v6530_v57  ;;  %v6511_v23 = vadd.f32 %v12327_v48, %v12265_v17 }
0x3f20   :  { %9252 = vmatprep.mubr.msk.f32.mxu0 %vm184_vm3, %v6305_v8 }
0x3f21   :  { %10307 = vset.pattern.permute.xlu1 %v10529_v49 }
0x3f22   :  { %6474 = vperm.xlu1 %10307, %v6301_v61   ;;  %v12375_v61 = vmul.f32 2.0, %v7859_v36 }
0x3f24   :  { %v6481_v15 = vpop.permute.xlu0 %6480  ;;  %v6630_v12 = vmul.f32 0.0, %v12375_v61 }
0x3f26   :  { %10308 = vset.pattern.permute.xlu1 %v10530_v56  ;;  %v6631_v38 = vadd.f32 %v12390_v4, %v6630_v12 }
0x3f8b   :  { %v6293_v54 = vpop.permute.xlu1 %6292 }
0x3f8c   :  { %v6295_v32 = vadd.f32 %v6293_v54, %v12154_v6 }
0x3f8e   :  { %9253 = vmatmul.mubr.msk.f32.vlgmr.msra.gmra.mrb[54].mxu0 %vm184_vm3, %v6295_v32 }
0x3f8f   :  { %10104 = vmatpush3.bf16.msra.mxu0 %v10700_v20 }
0x3f90   :  { %10106 = vmatprep.subr.bf16.mxu0 %v10705_v22 }
0x3f93   :  { %10108 = vmatpush3.bf16.msra.mxu0 %v10705_v22 }
0x3f94   :  { %10110 = vmatprep.subr.bf16.mxu0 %v10716_v25 }
0x3f97   :  { %10112 = vmatpush3.bf16.msra.mxu0 %v10716_v25 }
0x3f98   :  { %10114 = vmatprep.subr.bf16.mxu0 %v10726_v28 }
0x3f9b   :  { %10116 = vmatpush3.bf16.msra.mxu0 %v10726_v28 }
0x3f9c   :  { %10118 = vmatprep.subr.bf16.mxu0 %v10736_v31  ;;  %v6497_v47 = vpop.permute.xlu1 %6496 }
0x3f9f   :  { %10120 = vmatpush3.bf16.msra.mxu0 %v10736_v31 }
0x3fa0   :  { %10122 = vmatprep.subr.bf16.mxu0 %v10772_v44 }
0x3fa1   :  { %v6475_v45 = vpop.permute.xlu1 %6474 }
0x3fa3   :  { %10124 = vmatpush3.bf16.msra.mxu0 %v10772_v44 }
0x3fa4   :  { %10133 = vmatprep.subr.bf16.mxu0 %v10700_v20 }
0x4061   :  { %v9254_v60 = vpop.f32.mrb[54].mxu0 }
0x4062   :  { %v6384_v52 = vadd.f32 %v12017_v63, %v9254_v60  ;;  %v6378_v24 = vpop.f32.mrb[55].mxu0 }
0x4063   :  { %v6379_v59 = vadd.f32 %v12017_v63, %v6378_v24  ;;  %v6512_v24 = vmul.f32 3.0, %v6511_v23 }
0x4064   :  { %v6388_v40 = vmax.f32 %v6384_v52, 0.0  ;;  %v6532_v52 = vadd.f32 %v6531_v34, %v12204_v33 }
0x4065   :  { %v6387_v7 = vmax.f32 %v6379_v59, 0.0  ;;  %v6513_v35 = vadd.f32 %v6512_v24, %v12208_v42 }
0x4067   :  { %9279 = vmatprep.mubr.msk.f32.mxu0 %vm447_vm7, %v6387_v7 }
0x4068   :  { %9280 = vmatmul.mubr.msk.f32.vlgmr.msra.gmra.mrb[56].mxu0 %vm447_vm7, %v6388_v40 }
0x4069   :  { %10135 = vmatpush3.bf16.msra.mxu0 %v10700_v20 }
0x406a   :  { %10137 = vmatprep.subr.bf16.mxu0 %v10705_v22 }
0x406d   :  { %10139 = vmatpush3.bf16.msra.mxu0 %v10705_v22 }
0x406e   :  { %10141 = vmatprep.subr.bf16.mxu0 %v10716_v25 }
0x4071   :  { %10143 = vmatpush3.bf16.msra.mxu0 %v10716_v25 }
0x4072   :  { %10145 = vmatprep.subr.bf16.mxu0 %v10726_v28 }
0x4075   :  { %10147 = vmatpush3.bf16.msra.mxu0 %v10726_v28 }
0x4076   :  { %10149 = vmatprep.subr.bf16.mxu0 %v10736_v31 }
0x4079   :  { %10151 = vmatpush3.bf16.msra.mxu0 %v10736_v31 }
0x407a   :  { %10153 = vmatprep.subr.bf16.mxu0 %v10772_v44 }
0x407d   :  { %10155 = vmatpush3.bf16.msra.mxu0 %v10772_v44 }
0x407e   :  { %10185 = vmatprep.subr.bf16.mxu0 %v10686_v16 }
0x413b   :  { %v9281_v63 = vpop.f32.mrb[56].mxu0 }
0x413c   :  { %v6467_v41 = vadd.f32 %v12030_v13, %v9281_v63  ;;  %v6461_v39 = vpop.f32.mrb[57].mxu0 }
0x413d   :  { %v6462_v10 = vadd.f32 %v12030_v13, %v6461_v39  ;;  %v7860_v13 = vld [vmem:[%s12714_s3 + $0x18] sm:$0xf] }
0x413e   :  { %10409 = vtanh.f32 %v6467_v41  ;;  %v12384_v0 = vmul.f32 3.0, %v7860_v13 }
0x413f   :  { %10411 = vtanh.f32 %v6462_v10 }
0x4140   :  { %v6633_v11 = vmul.f32 0.0, %v12384_v0 }
0x4142   :  { %v6634_v53 = vadd.f32 %v6633_v11, %v6631_v38 }
0x4148   :  { %v10410_v51 = vpop.eup %10409 }
0x4149   :  { %v10412_v30 = vpop.eup %10411  ;;  %v6489_v29 = vmul.f32 %v10410_v51, %v6481_v15  ;;  %v6505_v5 = vmul.f32 %v10410_v51, %v6497_v47  ;;  %v6478_v8 = vmul.f32 %v10410_v51, %v6475_v45 }
0x414a   :  { %v6521_v19 = vadd.f32 %v10412_v30, %v6520_v21  ;;  %v6483_v37 = vmul.f32 %v10412_v30, %v6481_v15  ;;  %v6499_v18 = vmul.f32 %v10412_v30, %v6497_v47  ;;  %v6477_v59 = vmul.f32 %v10412_v30, %v6475_v45  ;;  %v12448_v30 = vld [vmem:[%s12723_s12] ss:$0 sm:$0xff]  ;;  %s12463_s12 = sld [smem:[#allocation2 + $0x7]] }
0x414b   :  { %6507 = vrot.lane.b32.xlu1 %v6505_v5, %s10532_s0  ;;  %6491 = vrot.lane.b32.xlu0 %v6489_v29, %s10531_s30 }
0x414c   :  { %v6522_v62 = vmul.f32 %v6521_v19, %v12187_v27 }
0x414e   :  { %v6523_v43 = vmul.f32 0.125, %v6522_v62 }
0x414f   :  { %6501 = vrot.lane.b32.xlu1 %v6499_v18, %s10532_s0  ;;  %6485 = vrot.lane.b32.xlu0 %v6483_v37, %s10531_s30  ;;  %v12459_v18 = vld [vmem:[%s12725_s14] ss:$0 sm:$0xff] }
0x4150   :  { %v6525_v58 = vrot.slane %v6523_v43, 4  ;;  %s6862_s5 = smul.f32 0.33333334, %s12463_s12 }
0x4151   :  { %s7100_s14 = smul.f32 2.0, %s12463_s12 }
0x4152   :  { %s6866_s2 = smul.f32 %s6862_s5, %s6862_s5 }
0x4153   :  { %6526 = vrot.lane.b32.xlu0 %v6525_v58, %s10533_s19  ;;  %v12467_v58 = vstv %s12463_s12  ;;  %s7103_s23 = smul.f32 0.33333334, %s7100_s14 }
0x4154   :  { %s7343_s25 = smul.f32 %s12463_s12, %s12463_s12 }
0x4155   :  { %s7107_s4 = smul.f32 %s7103_s23, %s7103_s23 }
0x4157   :  { %6810 = vperm.xlu0 %10306, %v6634_v53  }
0x415b   :  { %10309 = vset.pattern.permute.xlu0 %v10529_v49 }
0x415c   :  { %6804 = vperm.xlu0 %10309, %v6634_v53  }
0x4160   :  { %10310 = vset.pattern.permute.xlu0 %v10528_v46 }
0x41bd   :  { %v6508_v54 = vpop.permute.xlu1 %6507  ;;  %v6492_v32 = vpop.permute.xlu0 %6491 }
0x41be   :  { %v6494_v60 = vadd.f32 %v6492_v32, %v6478_v8 }
0x41c0   :  { %v6510_v7 = vadd.f32 %v6508_v54, %v6494_v60 }
0x41c1   :  { %v6486_v40 = vpop.permute.xlu0 %6485  ;;  %v6502_v39 = vpop.permute.xlu1 %6501 }
0x41c2   :  { %v6533_v63 = vadd.f32 %v6532_v52, %v6510_v7  ;;  %v6488_v41 = vadd.f32 %v6486_v40, %v6477_v59  ;;  %v6867_v52 = vstv %s6866_s2 }
0x41c4   :  { %v6534_v55 = vmul.f32 %v6533_v63, %v12187_v27  ;;  %v6504_v10 = vadd.f32 %v6502_v39, %v6488_v41  ;;  %v6868_v63 = vmul.f32 %v6867_v52, %v12384_v0 }
0x41c5   :  { %v6527_v14 = vpop.permute.xlu0 %6526 }
0x41c6   :  { %v6535_v17 = vmul.f32 0.125, %v6534_v55  ;;  %v6514_v48 = vadd.f32 %v6513_v35, %v6504_v10  ;;  %v12407_v50 = vadd.f32 %v6527_v14, %v12142_v2 }
0x41c8   :  { %v6515_v33 = vmul.f32 %v6514_v48, %v12187_v27  ;;  %6544 = vst.msk [vmem:[#allocation6 + $0x18] sm:$0xf] %vm258_vm4, %v12407_v50  ;;  %6537 = vrot.lane.b32.xlu1 %v6535_v17, %s10534_s1  ;;  %v6636_v2 = vrot.slane %v12407_v50, 4  ;;  %v12438_v27 = vld [vmem:[%s12721_s10] ss:$0 sm:$0xff] }
0x41ca   :  { %v6516_v36 = vmul.f32 0.125, %v6515_v33 }
0x41cc   :  { %v12414_v15 = vadd.f32 %v6516_v36, %v12149_v26  ;;  %6826 = vperm.xlu1 %10308, %v6634_v53   ;;  %v6863_v53 = vstv %s6862_s5 }
0x41cd   :  { %v6864_v60 = vmul.f32 %v6863_v53, %v12375_v61 }
0x41ce   :  { %6542 = vst.msk [vmem:[#allocation5 + $0x18] sm:$0xf] %vm258_vm4, %v12414_v15  ;;  %v6638_v26 = vsel %vm353_vm6, %v12414_v15, %v6636_v2 }
0x41cf   :  { %v6865_v40 = vadd.f32 %v12390_v4, %v6864_v60 }
0x41d1   :  { %v6869_v39 = vadd.f32 %v6868_v63, %v6865_v40  ;;  %v7104_v40 = vstv %s7103_s23 }
0x41d6   :  { %v6811_v45 = vpop.permute.xlu0 %6810 }
0x41db   :  { %v6805_v35 = vpop.permute.xlu0 %6804 }
0x423a   :  { %v6538_v42 = vpop.permute.xlu1 %6537 }
0x423b   :  { %v12419_v51 = vadd.f32 %v6538_v42, %v12154_v6 }
0x423d   :  { %6546 = vst.msk [vmem:[#allocation8 + $0x18] sm:$0xf] %vm258_vm4, %v12419_v51  ;;  %9287 = vmatmul.mubr.msk.f32.vlgmr.msra.gmra.mrb[54].mxu1 %vm184_vm3, %v12419_v51 }
0x423e   :  { %10131 = vmatpush3.bf16.msra.mxu1 %v10686_v16  ;;  %9293 = vmatprep.mubr.msk.f32.mxu1 %vm184_vm3, %v6638_v26 }
0x423f   :  { %10157 = vmatprep.subr.bf16.mxu1 %v10686_v16 }
0x4241   :  { %9294 = vmatmul.mubr.msk.f32.vlgmr.msra.gmra.mrb[56].mxu1 %vm184_vm3, %v12419_v51 }
0x4242   :  { %10159 = vmatpush3.bf16.msra.mxu1 %v10686_v16 }
0x4243   :  { %10161 = vmatprep.subr.bf16.mxu1 %v10700_v20 }
0x424b   :  { %v6827_v8 = vpop.permute.xlu1 %6826 }
0x4310   :  { %v6616_v6 = vpop.f32.mrb[54].mxu1 }
0x4311   :  { %v6617_v47 = vadd.f32 %v12438_v27, %v6616_v6  ;;  %v9288_v21 = vpop.f32.mrb[55].mxu1 }
0x4313   :  { %7856 = vst.msk [vmem:[%s12729_s18 + $0x18] sm:$0xf] %vm338_vm5, %v6617_v47 }
0x4314   :  { %v9295_v13 = vpop.f32.mrb[56].mxu1 }
0x4315   :  { %v6714_v29 = vadd.f32 %v12448_v30, %v9295_v13  ;;  %v6708_v5 = vpop.f32.mrb[57].mxu1 }
0x4316   :  { %v6709_v19 = vadd.f32 %v12448_v30, %v6708_v5 }
0x4317   :  { %v6718_v62 = vmax.f32 %v6714_v29, 0.0 }
0x4318   :  { %v6717_v12 = vmax.f32 %v6709_v19, 0.0 }
0x431a   :  { %9320 = vmatprep.mubr.msk.f32.mxu0 %vm447_vm7, %v6717_v12 }
0x431b   :  { %9321 = vmatmul.mubr.msk.f32.vlgmr.msra.gmra.mrb[58].mxu0 %vm447_vm7, %v6718_v62 }
0x431c   :  { %10187 = vmatpush3.bf16.msra.mxu0 %v10686_v16 }
0x431d   :  { %10189 = vmatprep.subr.bf16.mxu0 %v10700_v20 }
0x43ee   :  { %v9322_v37 = vpop.f32.mrb[58].mxu0 }
0x43ef   :  { %v6797_v43 = vadd.f32 %v12459_v18, %v9322_v37  ;;  %v6791_v38 = vpop.f32.mrb[59].mxu0 }
0x43f0   :  { %v6792_v11 = vadd.f32 %v12459_v18, %v6791_v38 }
0x43f1   :  { %10413 = vtanh.f32 %v6797_v43 }
0x43f2   :  { %10415 = vtanh.f32 %v6792_v11 }
0x43fb   :  { %v10414_v57 = vpop.eup %10413 }
0x43fc   :  { %v12469_v34 = vpop.eup %10415  ;;  %v6819_v23 = vmul.f32 %v10414_v57, %v6811_v45  ;;  %v6835_v59 = vmul.f32 %v10414_v57, %v6827_v8  ;;  %v6808_v10 = vmul.f32 %v10414_v57, %v6805_v35 }
0x43fd   :  { %v6813_v54 = vmul.f32 %v12469_v34, %v6811_v45  ;;  %v6845_v32 = vmul.f32 %v12469_v34, %v12467_v58  ;;  %v6829_v41 = vmul.f32 %v12469_v34, %v6827_v8  ;;  %v6807_v33 = vmul.f32 %v12469_v34, %v6805_v35 }
0x43fe   :  { %6821 = vrot.lane.b32.xlu1 %v6819_v23, %s10531_s30  ;;  %v7105_v35 = vmul.f32 %v7104_v40, %v12375_v61 }
0x43ff   :  { %6815 = vrot.lane.b32.xlu0 %v6813_v54, %s10531_s30  ;;  %v6846_v24 = vmul.f32 0.33333334, %v6845_v32 }
0x4401   :  { %v6848_v7 = vrot.slane %v6846_v24, 4 }
0x4402   :  { %6837 = vrot.lane.b32.xlu1 %v6835_v59, %s10532_s0 }
0x4403   :  { %6849 = vrot.lane.b32.xlu0 %v6848_v7, %s10533_s19  ;;  %v7083_v7 = vmul.f32 0.33333334, %v12469_v34 }
0x4406   :  { %6831 = vrot.lane.b32.xlu1 %v6829_v41, %s10532_s0 }
0x4407   :  { %7048 = vperm.xlu0 %10310, %v6869_v39  }
0x4470   :  { %v6822_v55 = vpop.permute.xlu1 %6821 }
0x4471   :  { %v6816_v14 = vpop.permute.xlu0 %6815  ;;  %v6824_v17 = vadd.f32 %v6822_v55, %v6808_v10  ;;  %v7108_v55 = vstv %s7107_s4 }
0x4472   :  { %v6818_v42 = vadd.f32 %v6816_v14, %v6807_v33  ;;  %v7109_v33 = vmul.f32 %v7108_v55, %v12384_v0 }
0x4474   :  { %v6838_v48 = vpop.permute.xlu1 %6837 }
0x4475   :  { %v12484_v36 = vadd.f32 %v6838_v48, %v6824_v17  ;;  %v6850_v26 = vpop.permute.xlu0 %6849  ;;  %v7106_v48 = vadd.f32 %v12390_v4, %v7105_v35 }
0x4476   :  { %v6852_v13 = vadd.f32 %v6850_v26, %v12407_v50 }
0x4477   :  { %v6853_v2 = vmul.f32 %v12467_v58, %v12484_v36 }
0x4478   :  { %v6832_v6 = vpop.permute.xlu1 %6831  ;;  %v6871_v19 = vrot.slane %v6852_v13, 4 }
0x4479   :  { %v12488_v47 = vadd.f32 %v6832_v6, %v6818_v42  ;;  %v6854_v21 = vmul.f32 0.33333334, %v6853_v2  ;;  %v7110_v2 = vadd.f32 %v7109_v33, %v7106_v48 }
0x447b   :  { %v6842_v29 = vmul.f32 %v12467_v58, %v12488_v47  ;;  %6856 = vrot.lane.b32.xlu1 %v6854_v21, %s10534_s1 }
0x447d   :  { %v6843_v5 = vmul.f32 0.33333334, %v6842_v29 }
0x447f   :  { %7064 = vperm.xlu1 %10308, %v6869_v39   ;;  %v6844_v12 = vadd.f32 %v6843_v5, %v12414_v15  ;;  %v7092_v5 = vmul.f32 0.33333334, %v12484_v36 }
0x4481   :  { %v6873_v62 = vsel %vm353_vm6, %v6844_v12, %v6871_v19 }
0x4482   :  { %9327 = vmatprep.mubr.msk.f32.mxu1 %vm184_vm3, %v6873_v62 }
0x4483   :  { %10311 = vset.pattern.permute.xlu1 %v10529_v49 }
0x4484   :  { %7042 = vperm.xlu1 %10311, %v6869_v39  }
0x4486   :  { %v7049_v52 = vpop.permute.xlu0 %7048 }
0x4488   :  { %10312 = vset.pattern.permute.xlu1 %v10530_v56 }
0x44ed   :  { %v6857_v37 = vpop.permute.xlu1 %6856 }
0x44ee   :  { %v6859_v43 = vadd.f32 %v6857_v37, %v12419_v51 }
0x44f0   :  { %9328 = vmatmul.mubr.msk.f32.vlgmr.msra.gmra.mrb[58].mxu1 %vm184_vm3, %v6859_v43 }
0x44f1   :  { %10163 = vmatpush3.bf16.msra.mxu1 %v10700_v20 }
0x44f2   :  { %10165 = vmatprep.subr.bf16.mxu1 %v10705_v22 }
0x44f5   :  { %10167 = vmatpush3.bf16.msra.mxu1 %v10705_v22 }
0x44f6   :  { %10169 = vmatprep.subr.bf16.mxu1 %v10716_v25 }
0x44f9   :  { %10171 = vmatpush3.bf16.msra.mxu1 %v10716_v25 }
0x44fa   :  { %10173 = vmatprep.subr.bf16.mxu1 %v10726_v28 }
0x44fd   :  { %10175 = vmatpush3.bf16.msra.mxu1 %v10726_v28 }
0x44fe   :  { %10177 = vmatprep.subr.bf16.mxu1 %v10736_v31  ;;  %v7065_v59 = vpop.permute.xlu1 %7064 }
0x4501   :  { %10179 = vmatpush3.bf16.msra.mxu1 %v10736_v31 }
0x4502   :  { %10181 = vmatprep.subr.bf16.mxu1 %v10772_v44 }
0x4503   :  { %v7043_v26 = vpop.permute.xlu1 %7042 }
0x4505   :  { %10183 = vmatpush3.bf16.msra.mxu1 %v10772_v44 }
0x4506   :  { %10213 = vmatprep.subr.bf16.mxu1 %v10686_v16 }
0x45c3   :  { %v9329_v38 = vpop.f32.mrb[58].mxu1 }
0x45c4   :  { %v6952_v11 = vadd.f32 %v12448_v30, %v9329_v38  ;;  %v6946_v53 = vpop.f32.mrb[59].mxu1 }
0x45c5   :  { %v6947_v57 = vadd.f32 %v12448_v30, %v6946_v53 }
0x45c6   :  { %v6956_v23 = vmax.f32 %v6952_v11, 0.0  ;;  %v7079_v11 = vmul.f32 0.33333334, %v12488_v47 }
0x45c7   :  { %v6955_v45 = vmax.f32 %v6947_v57, 0.0 }
0x45c9   :  { %9354 = vmatprep.mubr.msk.f32.mxu1 %vm447_vm7, %v6955_v45 }
0x45ca   :  { %9355 = vmatmul.mubr.msk.f32.vlgmr.msra.gmra.mrb[60].mxu1 %vm447_vm7, %v6956_v23 }
0x45cb   :  { %10215 = vmatpush3.bf16.msra.mxu1 %v10686_v16 }
0x45cc   :  { %10217 = vmatprep.subr.bf16.mxu1 %v10700_v20 }
0x469d   :  { %v9356_v8 = vpop.f32.mrb[60].mxu1 }
0x469e   :  { %v7035_v54 = vadd.f32 %v12459_v18, %v9356_v8  ;;  %v7029_v32 = vpop.f32.mrb[61].mxu1 }
0x469f   :  { %v7030_v60 = vadd.f32 %v12459_v18, %v7029_v32 }
0x46a0   :  { %10417 = vtanh.f32 %v7035_v54 }
0x46a1   :  { %10419 = vtanh.f32 %v7030_v60 }
0x46aa   :  { %v10418_v24 = vpop.eup %10417 }
0x46ab   :  { %v12523_v16 = vpop.eup %10419  ;;  %v7057_v63 = vmul.f32 %v10418_v24, %v7049_v52  ;;  %v7073_v41 = vmul.f32 %v10418_v24, %v7065_v59  ;;  %v7046_v6 = vmul.f32 %v10418_v24, %v7043_v26 }
0x46ac   :  { %v7084_v39 = vsub.f32 %v12523_v16, %v7083_v7  ;;  %v7051_v10 = vmul.f32 %v12523_v16, %v7049_v52  ;;  %v7067_v14 = vmul.f32 %v12523_v16, %v7065_v59  ;;  %v7045_v19 = vmul.f32 %v12523_v16, %v7043_v26 }
0x46ad   :  { %7075 = vrot.lane.b32.xlu1 %v7073_v41, %s10532_s0  ;;  %7059 = vrot.lane.b32.xlu0 %v7057_v63, %s10531_s30  ;;  %v7324_v48 = vsub.f32 %v12469_v34, %v12523_v16  ;;  %v7341_v26 = vmul.f32 %v12467_v58, %v12375_v61 }
0x46ae   :  { %v7085_v17 = vmul.f32 %v7084_v39, %v12467_v58 }
0x46b0   :  { %v7087_v42 = vrot.slane %v7085_v17, 4 }
0x46b1   :  { %7069 = vrot.lane.b32.xlu1 %v7067_v14, %s10532_s0  ;;  %7053 = vrot.lane.b32.xlu0 %v7051_v10, %s10531_s30 }
0x46b5   :  { %7088 = vrot.lane.b32.xlu0 %v7087_v42, %s10533_s19 }
0x46b9   :  { %7289 = vperm.xlu0 %10310, %v7110_v2  }
0x46bd   :  { %10313 = vset.pattern.permute.xlu0 %v10529_v49 }
0x46be   :  { %7283 = vperm.xlu0 %10313, %v7110_v2  }
0x46c2   :  { %10314 = vset.pattern.permute.xlu0 %v10528_v46 }
0x471f   :  { %v7076_v21 = vpop.permute.xlu1 %7075  ;;  %v7060_v13 = vpop.permute.xlu0 %7059 }
0x4720   :  { %v7062_v29 = vadd.f32 %v7060_v13, %v7046_v6  ;;  %v7344_v6 = vstv %s7343_s25 }
0x4722   :  { %v12541_v12 = vadd.f32 %v7076_v21, %v7062_v29 }
0x4723   :  { %v7054_v62 = vpop.permute.xlu0 %7053  ;;  %v7070_v38 = vpop.permute.xlu1 %7069 }
0x4724   :  { %v7093_v37 = vsub.f32 %v12541_v12, %v7092_v5  ;;  %v7056_v43 = vadd.f32 %v7054_v62, %v7045_v19  ;;  %v7342_v5 = vadd.f32 %v12390_v4, %v7341_v26  ;;  %v7345_v19 = vmul.f32 %v7344_v6, %v12384_v0 }
0x4726   :  { %v12545_v53 = vadd.f32 %v7070_v38, %v7056_v43  ;;  %v7094_v46 = vmul.f32 %v7093_v37, %v12467_v58  ;;  %v7346_v61 = vadd.f32 %v7345_v19, %v7342_v5 }
0x4727   :  { %v7089_v57 = vpop.permute.xlu0 %7088 }
0x4728   :  { %v7080_v45 = vsub.f32 %v12545_v53, %v7079_v11  ;;  %v7091_v23 = vadd.f32 %v7089_v57, %v12407_v50  ;;  %7096 = vrot.lane.b32.xlu1 %v7094_v46, %s10534_s1  ;;  %v7333_v57 = vsub.f32 %v12484_v36, %v12541_v12 }
0x472a   :  { %v7081_v8 = vmul.f32 %v7080_v45, %v12467_v58  ;;  %v7112_v54 = vrot.slane %v7091_v23, 4 }
0x472c   :  { %v7082_v32 = vadd.f32 %v7081_v8, %v12414_v15  ;;  %7305 = vperm.xlu1 %10312, %v7110_v2  }
0x472e   :  { %v7114_v60 = vsel %vm353_vm6, %v7082_v32, %v7112_v54 }
0x472f   :  { %9361 = vmatprep.mubr.msk.f32.mxu0 %vm184_vm3, %v7114_v60  ;;  %v7320_v60 = vsub.f32 %v12488_v47, %v12545_v53 }
0x4738   :  { %v7290_v17 = vpop.permute.xlu0 %7289 }
0x473d   :  { %v7284_v37 = vpop.permute.xlu0 %7283 }
0x479a   :  { %v7097_v52 = vpop.permute.xlu1 %7096 }
0x479b   :  { %v7099_v24 = vadd.f32 %v7097_v52, %v12419_v51 }
0x479d   :  { %9362 = vmatmul.mubr.msk.f32.vlgmr.msra.gmra.mrb[60].mxu0 %vm184_vm3, %v7099_v24 }
0x479e   :  { %10191 = vmatpush3.bf16.msra.mxu0 %v10700_v20 }
0x479f   :  { %10193 = vmatprep.subr.bf16.mxu0 %v10705_v22 }
0x47a2   :  { %10195 = vmatpush3.bf16.msra.mxu0 %v10705_v22 }
0x47a3   :  { %10197 = vmatprep.subr.bf16.mxu0 %v10716_v25 }
0x47a6   :  { %10199 = vmatpush3.bf16.msra.mxu0 %v10716_v25 }
0x47a7   :  { %10201 = vmatprep.subr.bf16.mxu0 %v10726_v28 }
0x47aa   :  { %10203 = vmatpush3.bf16.msra.mxu0 %v10726_v28 }
0x47ab   :  { %10205 = vmatprep.subr.bf16.mxu0 %v10736_v31  ;;  %v7306_v42 = vpop.permute.xlu1 %7305 }
0x47ae   :  { %10207 = vmatpush3.bf16.msra.mxu0 %v10736_v31 }
0x47af   :  { %10209 = vmatprep.subr.bf16.mxu0 %v10772_v44 }
0x47b2   :  { %10211 = vmatpush3.bf16.msra.mxu0 %v10772_v44 }
0x47b3   :  { %10240 = vmatprep.subr.bf16.mxu0 %v10527_v3 }
0x4870   :  { %v9363_v59 = vpop.f32.mrb[60].mxu0 }
0x4871   :  { %v7193_v7 = vadd.f32 %v12448_v30, %v9363_v59  ;;  %v7187_v40 = vpop.f32.mrb[61].mxu0 }
0x4872   :  { %v7188_v63 = vadd.f32 %v12448_v30, %v7187_v40 }
0x4873   :  { %v7197_v39 = vmax.f32 %v7193_v7, 0.0 }
0x4874   :  { %v7196_v41 = vmax.f32 %v7188_v63, 0.0 }
0x4876   :  { %9388 = vmatprep.mubr.msk.f32.mxu0 %vm447_vm7, %v7196_v41 }
0x4877   :  { %9389 = vmatmul.mubr.msk.f32.vlgmr.msra.gmra.mrb[62].mxu0 %vm447_vm7, %v7197_v39 }
0x4878   :  { %10242 = vmatpush3.bf16.msra.mxu0 %v10664_v9  ;;  %9429 = vmatprep.mubr.msk.f32.mxu0 %vm10526_vm2, %v10525_v1 }
0x494a   :  { %v9390_v35 = vpop.f32.mrb[62].mxu0 }
0x494b   :  { %v7276_v3 = vadd.f32 %v12459_v18, %v9390_v35  ;;  %v7270_v55 = vpop.f32.mrb[63].mxu0 }
0x494c   :  { %v7271_v10 = vadd.f32 %v12459_v18, %v7270_v55 }
0x494d   :  { %10421 = vtanh.f32 %v7276_v3 }
0x494e   :  { %10423 = vtanh.f32 %v7271_v10 }
0x4957   :  { %v10422_v14 = vpop.eup %10421 }
0x4958   :  { %v12582_v33 = vpop.eup %10423  ;;  %v7298_v9 = vmul.f32 %v10422_v14, %v7290_v17  ;;  %v7314_v13 = vmul.f32 %v10422_v14, %v7306_v42  ;;  %v7287_v38 = vmul.f32 %v10422_v14, %v7284_v37 }
0x4959   :  { %v7292_v1 = vmul.f32 %v12582_v33, %v7290_v17  ;;  %v7325_v2 = vadd.f32 %v12582_v33, %v7324_v48  ;;  %v7308_v62 = vmul.f32 %v12582_v33, %v7306_v42  ;;  %v7286_v0 = vmul.f32 %v12582_v33, %v7284_v37 }
0x495a   :  { %7300 = vrot.lane.b32.xlu1 %v7298_v9, %s10531_s30 }
0x495b   :  { %7294 = vrot.lane.b32.xlu0 %v7292_v1, %s10531_s30  ;;  %v7326_v21 = vmul.f32 %v7325_v2, %v12467_v58 }
0x495d   :  { %v7328_v29 = vrot.slane %v7326_v21, 4 }
0x495e   :  { %7316 = vrot.lane.b32.xlu1 %v7314_v13, %s10532_s0 }
0x495f   :  { %7329 = vrot.lane.b32.xlu0 %v7328_v29, %s10533_s19 }
0x4962   :  { %7310 = vrot.lane.b32.xlu1 %v7308_v62, %s10532_s0 }
0x4963   :  { %7525 = vperm.xlu0 %10314, %v7346_v61  }
0x4967   :  { %10316 = vset.pattern.permute.xlu0 %v10530_v56 }
0x49cc   :  { %v7301_v43 = vpop.permute.xlu1 %7300 }
0x49cd   :  { %v7295_v11 = vpop.permute.xlu0 %7294  ;;  %v7303_v46 = vadd.f32 %v7301_v43, %v7287_v38 }
0x49ce   :  { %v7297_v23 = vadd.f32 %v7295_v11, %v7286_v0 }
0x49d0   :  { %v7317_v4 = vpop.permute.xlu1 %7316 }
0x49d1   :  { %v12601_v45 = vadd.f32 %v7317_v4, %v7303_v46  ;;  %v7330_v54 = vpop.permute.xlu0 %7329 }
0x49d2   :  { %v7332_v24 = vadd.f32 %v7330_v54, %v12407_v50 }
0x49d3   :  { %v7334_v8 = vadd.f32 %v7333_v57, %v12601_v45 }
0x49d4   :  { %v7311_v32 = vpop.permute.xlu1 %7310  ;;  %v7348_v40 = vrot.slane %v7332_v24, 4 }
0x49d5   :  { %v7335_v56 = vmul.f32 %v7334_v8, %v12467_v58  ;;  %v12607_v52 = vadd.f32 %v7311_v32, %v7297_v23 }
0x49d7   :  { %v7321_v59 = vadd.f32 %v7320_v60, %v12607_v52  ;;  %7337 = vrot.lane.b32.xlu1 %v7335_v56, %s10534_s1 }
0x49d9   :  { %v7322_v7 = vmul.f32 %v7321_v59, %v12467_v58 }
0x49db   :  { %v7323_v63 = vadd.f32 %v7322_v7, %v12414_v15  ;;  %7541 = vperm.xlu1 %10312, %v7346_v61  }
0x49dd   :  { %v7350_v41 = vsel %vm353_vm6, %v7323_v63, %v7348_v40 }
0x49de   :  { %9395 = vmatprep.mubr.msk.f32.mxu1 %vm184_vm3, %v7350_v41 }
0x49df   :  { %10315 = vset.pattern.permute.xlu1 %v10529_v49 }
0x49e0   :  { %7519 = vperm.xlu1 %10315, %v7346_v61  }
0x49e2   :  { %v7526_v48 = vpop.permute.xlu0 %7525 }
0x4a49   :  { %v7338_v39 = vpop.permute.xlu1 %7337 }
0x4a4a   :  { %v7340_v35 = vadd.f32 %v7338_v39, %v12419_v51 }
0x4a4c   :  { %9396 = vmatmul.mubr.msk.f32.vlgmr.msra.gmra.mrb[62].mxu1 %vm184_vm3, %v7340_v35 }
0x4a4d   :  { %10219 = vmatpush3.bf16.msra.mxu1 %v10700_v20 }
0x4a4e   :  { %10221 = vmatprep.subr.bf16.mxu1 %v10705_v22 }
0x4a51   :  { %10223 = vmatpush3.bf16.msra.mxu1 %v10705_v22 }
0x4a52   :  { %10225 = vmatprep.subr.bf16.mxu1 %v10716_v25 }
0x4a55   :  { %10227 = vmatpush3.bf16.msra.mxu1 %v10716_v25 }
0x4a56   :  { %10229 = vmatprep.subr.bf16.mxu1 %v10726_v28 }
0x4a59   :  { %10231 = vmatpush3.bf16.msra.mxu1 %v10726_v28 }
0x4a5a   :  { %10233 = vmatprep.subr.bf16.mxu1 %v10736_v31  ;;  %v7542_v9 = vpop.permute.xlu1 %7541 }
0x4a5d   :  { %10235 = vmatpush3.bf16.msra.mxu1 %v10736_v31 }
0x4a5e   :  { %10237 = vmatprep.subr.bf16.mxu1 %v10772_v44 }
0x4a61   :  { %10239 = vmatpush3.bf16.msra.mxu1 %v10772_v44  ;;  %v7563_v44 = vadd.f32 %v12582_v33, %v12523_v16  ;;  %v7520_v33 = vpop.permute.xlu1 %7519 }
0x4a63   :  { %v7564_v17 = vmul.f32 3.0, %v7563_v44 }
0x4a65   :  { %v7565_v42 = vadd.f32 %v12469_v34, %v7564_v17  ;;  %v7575_v34 = vadd.f32 %v12601_v45, %v12541_v12 }
0x4a67   :  { %v7576_v29 = vmul.f32 3.0, %v7575_v34 }
0x4a69   :  { %v7577_v37 = vadd.f32 %v7576_v29, %v12484_v36  ;;  %v7556_v36 = vadd.f32 %v12607_v52, %v12545_v53 }
0x4a6b   :  { %v7557_v54 = vmul.f32 3.0, %v7556_v36 }
0x4b1f   :  { %v9397_v20 = vpop.f32.mrb[62].mxu1 }
0x4b20   :  { %v7429_v49 = vadd.f32 %v12448_v30, %v9397_v20  ;;  %v7423_v22 = vpop.f32.mrb[63].mxu1 }
0x4b21   :  { %v7424_v3 = vadd.f32 %v12448_v30, %v7423_v22 }
0x4b22   :  { %v7433_v25 = vmax.f32 %v7429_v49, 0.0 }
0x4b23   :  { %v7432_v55 = vmax.f32 %v7424_v3, 0.0 }
0x4b25   :  { %9422 = vmatprep.mubr.msk.f32.mxu1 %vm447_vm7, %v7432_v55 }
0x4b26   :  { %9423 = vmatmul.mubr.msk.f32.vlgmr.msra.gmra.mrb[64].mxu1 %vm447_vm7, %v7433_v25 }
0x4bf9   :  { %v9424_v28 = vpop.f32.mrb[64].mxu1 }
0x4bfa   :  { %v7512_v10 = vadd.f32 %v12459_v18, %v9424_v28  ;;  %v7506_v31 = vpop.f32.mrb[65].mxu1 }
0x4bfb   :  { %v7507_v14 = vadd.f32 %v12459_v18, %v7506_v31 }
0x4bfc   :  { %10425 = vtanh.f32 %v7512_v10 }
0x4bfd   :  { %10427 = vtanh.f32 %v7507_v14 }
0x4c06   :  { %v10426_v30 = vpop.eup %10425 }
0x4c07   :  { %v10428_v1 = vpop.eup %10427  ;;  %v7534_v2 = vmul.f32 %v10426_v30, %v7526_v48  ;;  %v7550_v26 = vmul.f32 %v10426_v30, %v7542_v9  ;;  %v7523_v5 = vmul.f32 %v10426_v30, %v7520_v33 }
0x4c08   :  { %v7566_v6 = vadd.f32 %v10428_v1, %v7565_v42  ;;  %v7528_v21 = vmul.f32 %v10428_v1, %v7526_v48  ;;  %v7522_v43 = vmul.f32 %v10428_v1, %v7520_v33  ;;  %v7544_v12 = vmul.f32 %v10428_v1, %v7542_v9 }
0x4c09   :  { %7552 = vrot.lane.b32.xlu1 %v7550_v26, %s10532_s0  ;;  %7536 = vrot.lane.b32.xlu0 %v7534_v2, %s10531_s30 }
0x4c0a   :  { %v7567_v18 = vmul.f32 %v7566_v6, %v12467_v58 }
0x4c0c   :  { %v7568_v13 = vmul.f32 0.125, %v7567_v18 }
0x4c0d   :  { %7530 = vrot.lane.b32.xlu1 %v7528_v21, %s10531_s30  ;;  %s10535_s30 = smov [#allocation6]  }
0x4c0e   :  { %v7570_v16 = vrot.slane %v7568_v13, 4 }
0x4c11   :  { %7571 = vrot.lane.b32.xlu1 %v7570_v16, %s10533_s19 }
0x4c7b   :  { %v7553_v19 = vpop.permute.xlu1 %7552  ;;  %v7537_v62 = vpop.permute.xlu0 %7536 }
0x4c7c   :  { %v7539_v61 = vadd.f32 %v7537_v62, %v7523_v5 }
0x4c7e   :  { %v7555_v38 = vadd.f32 %v7553_v19, %v7539_v61 }
0x4c7f   :  { %v7531_v11 = vpop.permute.xlu1 %7530 }
0x4c80   :  { %v7578_v46 = vadd.f32 %v7577_v37, %v7555_v38  ;;  %v7533_v4 = vadd.f32 %v7531_v11, %v7522_v43 }
0x4c82   :  { %v7579_v0 = vmul.f32 %v7578_v46, %v12467_v58 }
0x4c83   :  { %v7572_v57 = vpop.permute.xlu1 %7571 }
0x4c84   :  { %v7580_v23 = vmul.f32 0.125, %v7579_v0  ;;  %v7574_v8 = vadd.f32 %v7572_v57, %v12407_v50  ;;  %v7558_v50 = vadd.f32 %v7557_v54, %v12488_v47 }
0x4c86   :  { %7589 = vst.msk [vmem:[#allocation6 + $0x1c] sm:$0xf] %vm258_vm4, %v7574_v8  ;;  %7582 = vrot.lane.b32.xlu0 %v7580_v23, %s10534_s1 }
0x4c8a   :  { %7546 = vrot.lane.b32.xlu0 %v7544_v12, %s10532_s0  ;;  %s7684_s0 = sshll.u32 %s10535_s30, 4  ;;  %s7685_s0 = int_to_ptr.vmem [resolvable:$true] %s7684_s0 }
0x4c8b   :  { %s10452_s19 = scalar_lea.vmem %s7685_s0, 512  ;;  %p10457_p6 = scmp.lt.s32.totalorder %s7685_s0, %s7685_s0 }
0x4c8c   :  { %p10453_p5 = scmp.ne.s32.totalorder %s7685_s0, %s10452_s19  ;;  %p10458_p7 = scmp.lt.s32.totalorder %s10452_s19, %s10452_s19 }
0x4c8e   :  { %p10459_p8 = por %p10458_p7, %p10457_p6 }
0x4c90   :  { %p10460_p9 = pnand %p10459_p8, %p10453_p5 }
0x4cf8   :  { %v7583_v45 = vpop.permute.xlu0 %7582 }
0x4cf9   :  { %v7585_v32 = vadd.f32 %v7583_v45, %v12419_v51 }
0x4cfb   :  { %7591 = vst.msk [vmem:[#allocation8 + $0x1c] sm:$0xf] %vm258_vm4, %v7585_v32  ;;  %9430 = vmatmul.mubr.msk.f32.vlgmr.msra.gmra.mrb[64].mxu0 %vm184_vm3, %v7585_v32 }
0x4cfc   :  { %v7547_v56 = vpop.permute.xlu0 %7546 }
0x4cfd   :  { %v7549_v60 = vadd.f32 %v7547_v56, %v7533_v4 }
0x4cff   :  { %v7559_v24 = vadd.f32 %v7558_v50, %v7549_v60 }
0x4d01   :  { %v7560_v59 = vmul.f32 %v7559_v24, %v12467_v58 }
0x4d03   :  { %v7561_v7 = vmul.f32 0.125, %v7560_v59 }
0x4d05   :  { %v7562_v40 = vadd.f32 %v7561_v7, %v12414_v15 }
0x4d07   :  { %7587 = vst.msk [vmem:[#allocation5 + $0x1c] sm:$0xf] %vm258_vm4, %v7562_v40 }
0x4d08   :  { %10463 = shalt.err (!%p10460_p9)
}
0x4d09   :  { %s10464_s28 = scalar_lea.hbm %s12727_s16, 512 }
0x4d0a   :  { %p10465_p10 = scmp.ne.s32.totalorder %s12727_s16, %s10464_s28  ;;  %p10468_p11 = scmp.lt.u32.totalorder %s10464_s28, %s12727_s16 }
0x4d0c   :  { %p10470_p12 = pnand %p10468_p11, %p10465_p10 }
0x4d0e   :  { %10473 = shalt.err (!%p10470_p12)
}
0x4d0f   :  { %s10536_s9 = smov 4   ;;  %s10537_s8 = smov [#allocation5]  }
0x4d10   :  { %7690 = dma.vmem_to_hbm [thread:$0]  %s7685_s0, 512, %s12727_s16, [#allocation7], %s10534_s1, %s10534_s1, %s10536_s9  }
0x4d11   :  { %s7672_s20 = sshll.u32 %s10537_s8, 4  ;;  %s10538_s21 = smov [#allocation8]   ;;  %s7673_s20 = int_to_ptr.vmem [resolvable:$true] %s7672_s20 }
0x4d12   :  { %s7696_s22 = sshll.u32 %s10538_s21, 4  ;;  %s10474_s10 = scalar_lea.vmem %s7673_s20, 512  ;;  %s7697_s22 = int_to_ptr.vmem [resolvable:$true] %s7696_s22 }
0x4d13   :  { %p10475_p13 = scmp.ne.s32.totalorder %s7673_s20, %s10474_s10  ;;  %p10479_p0 = scmp.lt.s32.totalorder %s7673_s20, %s7673_s20 }
0x4d14   :  { %p10480_p1 = scmp.lt.s32.totalorder %s10474_s10, %s10474_s10 }
0x4d16   :  { %p10481_p2 = por %p10480_p1, %p10479_p0 }
0x4d18   :  { %p10482_p3 = pnand %p10481_p2, %p10475_p13 }
0x4d1a   :  { %10485 = shalt.err (!%p10482_p3)
}
0x4d1b   :  { %s10486_s5 = scalar_lea.hbm %s12726_s15, 512 }
0x4d1c   :  { %p10487_p4 = scmp.ne.s32.totalorder %s12726_s15, %s10486_s5  ;;  %p10490_p5 = scmp.lt.u32.totalorder %s10486_s5, %s12726_s15 }
0x4d1e   :  { %p10492_p6 = pnand %p10490_p5, %p10487_p4 }
0x4d20   :  { %10495 = shalt.err (!%p10492_p6)
}
0x4d21   :  { %7678 = dma.vmem_to_hbm [thread:$0]  %s7673_s20, 512, %s12726_s15, [#allocation3], %s10534_s1, %s10534_s1, %s10536_s9  }
0x4d22   :  { %s10496_s30 = scalar_lea.vmem %s7697_s22, 512  ;;  %p10501_p8 = scmp.lt.s32.totalorder %s7697_s22, %s7697_s22 }
0x4d23   :  { %p10497_p7 = scmp.ne.s32.totalorder %s7697_s22, %s10496_s30  ;;  %p10502_p9 = scmp.lt.s32.totalorder %s10496_s30, %s10496_s30 }
0x4d25   :  { %p10503_p10 = por %p10502_p9, %p10501_p8 }
0x4d27   :  { %p10504_p11 = pnand %p10503_p10, %p10497_p7 }
0x4d29   :  { %10507 = shalt.err (!%p10504_p11)
}
0x4d2a   :  { %s10508_s13 = scalar_lea.hbm %s12728_s17, 512 }
0x4d2b   :  { %p10509_p12 = scmp.ne.s32.totalorder %s12728_s17, %s10508_s13  ;;  %p10512_p13 = scmp.lt.u32.totalorder %s10508_s13, %s12728_s17 }
0x4d2d   :  { %p10514_p0 = pnand %p10512_p13, %p10509_p12 }
0x4d2f   :  { %10517 = shalt.err (!%p10514_p0)
}
0x4d30   :  { %7702 = dma.vmem_to_hbm [thread:$0]  %s7697_s22, 512, %s12728_s17, [#allocation7], %s10534_s1, %s10534_s1, %s10536_s9  }
0x4dce   :  { %v7661_v15 = vpop.f32.mrb[64].mxu0 }
0x4dcf   :  { %v7662_v51 = vadd.f32 %v12438_v27, %v7661_v15  ;;  %v9431_v58 = vpop.f32.mrb[65].mxu0 }
0x4dd1   :  { %7878 = vst.msk [vmem:[%s12729_s18 + $0x1c] sm:$0xf] %vm338_vm5, %v7662_v51 }
0x4dd2   :  { %10520 = dma.done.wait [#allocation3], 512  }
0x4dd3   :  { %10521 = vsyncadd [#allocation3], 4294966784 }
0x4dd4   :  { %10522 = dma.done.wait [#allocation7], 1024  }
0x4dd5   :  { %10523 = vsyncadd [#allocation7], 4294966272 }
0x4dd6   :  { %7716 = vsyncpa [#allocation3], 1 }
0x4dd7   :  { %7717 = vsyncpa [#allocation7], 1 }
0x4dd8   :  { %7718 = vsyncpa [#allocation4], 1 }

</bundles_post_ra>
